<compile_context>
chip_gen: v7x
topology: tpu7x:2x2x1
jax: 0.10.0
libtpu: 0.0.40
codegen_flags: <defaults>
</compile_context>

<pallas_src>
import math

import jax
import jax.numpy as jnp
from jax.experimental import pallas as pl
from jax.experimental.pallas import tpu as pltpu

HIDDEN = 64                  # hidden_size
N_HEADS = 8                  # num_heads
D_K = HIDDEN // N_HEADS      # per-head depth
FF = 4 * HIDDEN              # default ff_size = 4 * hidden_size
N_LAYERS = 2                 # num_layers (each with its own parameters)
LN_EPS = 1e-6                # annotated-transformer LayerNorm: (x-mu)/(std+eps)
NLN = 3 * N_LAYERS + 1       # number of LayerNorms (3 per layer + final)


# ---------------------------------------------------------------------------
# Single fused kernel: all decoder layers + final LayerNorm.
# ---------------------------------------------------------------------------
def _decoder_kernel(tgt_ref, mem_ref, tmask_ref, smask_ref,
                    wqkv_ref, whh_ref, wkv_ref, wff1_ref, wff2_ref,
                    bias_w_ref, bias_h_ref, ln_ref,
                    out_ref, ctx_ref):
    f32 = jnp.float32
    x = tgt_ref[...]                  # [T, H]
    mem = mem_ref[...]                # [S, H]
    tmask = tmask_ref[...]            # [T, T] additive
    smask = smask_ref[...]            # [T, S] additive
    bias_w = bias_w_ref[...]          # [3L, 4H]  (qkv_self | kv_cross | ff1 rows)
    bias_h = bias_h_ref[...]          # [4L, H]   (o_self, q_cross, o_cross, ff2)
    ln = ln_ref[...]                  # [2*NLN, H] (gains rows, then betas rows)

    def layer_norm(v, idx):
        # Matches transformer.LayerNorm: unbiased std, eps added to std.
        g = ln[idx:idx + 1, :]
        b = ln[NLN + idx:NLN + idx + 1, :]
        mu = jnp.mean(v, axis=-1, keepdims=True)
        var = jnp.sum((v - mu) ** 2, axis=-1, keepdims=True) * (1.0 / (HIDDEN - 1))
        # Exact reciprocal here: approx error would compound over 2*3+1 LNs.
        return g * (v - mu) / (jnp.sqrt(var) + LN_EPS) + b

    def mha(q, k, v, mask_add):
        """Multi-head attention on pre-projected q/k/v ([*, HIDDEN]).

        Per-head contexts are written straight into the ctx_ref VMEM scratch
        (no lane-axis concatenate); caller applies the dense Wo projection.
        mask_add is additive (0 visible, -1e9 masked) == masked_fill(mask==0,-1e9).
        """
        scale = 1.0 / math.sqrt(D_K)
        for h in range(N_HEADS):                       # unrolled at trace time
            lo = h * D_K
            s = jax.lax.dot_general(
                q[:, lo:lo + D_K], k[:, lo:lo + D_K],
                (((1,), (1,)), ((), ())),
                preferred_element_type=f32) * scale + mask_add
            m = jnp.max(s, axis=-1, keepdims=True)
            e = jnp.exp(s - m)
            p = e * pl.reciprocal(jnp.sum(e, axis=-1, keepdims=True), approx=True)
            ctx_ref[:, lo:lo + D_K] = jnp.dot(p, v[:, lo:lo + D_K],
                                              preferred_element_type=f32)
        return ctx_ref[...]

    for l in range(N_LAYERS):         # small, fully unrolled
        # ---- self-attention sublayer (pre-norm residual) -------------------
        xn = layer_norm(x, 3 * l)
        qkv = (jnp.dot(xn, wqkv_ref[l].astype(f32), preferred_element_type=f32)
               + bias_w[3 * l:3 * l + 1, :3 * HIDDEN])
        ctx = mha(qkv[:, :HIDDEN], qkv[:, HIDDEN:2 * HIDDEN],
                  qkv[:, 2 * HIDDEN:], tmask)
        x = (x + jnp.dot(ctx, whh_ref[3 * l].astype(f32), preferred_element_type=f32)
             + bias_h[4 * l:4 * l + 1, :])

        # ---- source (cross) attention sublayer over encoder memory ---------
        xn = layer_norm(x, 3 * l + 1)
        q = (jnp.dot(xn, whh_ref[3 * l + 1].astype(f32), preferred_element_type=f32)
             + bias_h[4 * l + 1:4 * l + 2, :])
        kv = (jnp.dot(mem, wkv_ref[l].astype(f32), preferred_element_type=f32)
              + bias_w[3 * l + 1:3 * l + 2, :2 * HIDDEN])
        ctx = mha(q, kv[:, :HIDDEN], kv[:, HIDDEN:], smask)
        x = (x + jnp.dot(ctx, whh_ref[3 * l + 2].astype(f32), preferred_element_type=f32)
             + bias_h[4 * l + 2:4 * l + 3, :])

        # ---- position-wise feed-forward sublayer ---------------------------
        xn = layer_norm(x, 3 * l + 2)
        h1 = jnp.maximum(
            jnp.dot(xn, wff1_ref[l].astype(f32), preferred_element_type=f32)
            + bias_w[3 * l + 2:3 * l + 3, :], 0.0)
        x = (x + jnp.dot(h1, wff2_ref[l].astype(f32), preferred_element_type=f32)
             + bias_h[4 * l + 3:4 * l + 4, :])

    out_ref[...] = layer_norm(x, 3 * N_LAYERS)        # final LayerNorm


# ---------------------------------------------------------------------------
# Wrapper: TransformerDecoder.forward(tgt, src_memory, src_mask, tgt_mask)
# ---------------------------------------------------------------------------
def transformer_decoder_forward(packed, tgt, src_memory, src_mask, tgt_mask):
    # tgt: [1, T, H]; src_memory: [1, S, H]
    # src_mask: [1, 1, S] (or [1, T, S]); tgt_mask: [1, T, T]  (nonzero = keep)
    x = tgt[0].astype(jnp.float32)
    mem = src_memory[0].astype(jnp.float32)
    T, S = x.shape[0], mem.shape[0]

    # additive masks: 0 where visible, -1e9 where masked (== masked_fill(-1e9))
    tmask_add = jnp.where(jnp.broadcast_to(tgt_mask[0].astype(bool), (T, T)),
                          0.0, -1e9).astype(jnp.float32)
    smask_add = jnp.where(jnp.broadcast_to(src_mask[0].astype(bool), (T, S)),
                          0.0, -1e9).astype(jnp.float32)

    inputs = (x, mem, tmask_add, smask_add,
              packed['w_qkv'], packed['w_hh'], packed['w_kv'],
              packed['w_f1'], packed['w_f2'],
              packed['bias_w'], packed['bias_h'], packed['ln'])

    vmem = pl.BlockSpec(memory_space=pltpu.MemorySpace.VMEM)
    out = pl.pallas_call(
        _decoder_kernel,
        out_shape=jax.ShapeDtypeStruct((T, HIDDEN), jnp.float32),
        in_specs=[vmem] * len(inputs),
        out_specs=vmem,
        scratch_shapes=[pltpu.VMEM((T, HIDDEN), jnp.float32)],   # per-head ctx
        cost_estimate=pl.CostEstimate(flops=5_000_000,
                                      transcendentals=11_000,
                                      bytes_accessed=320_000),
    )(*inputs)
    return out[None]                               # restore batch dim -> [1, T, H]


# ---------------------------------------------------------------------------
# Parameter init (deterministic; xavier_uniform for dim>1, like the module)
# and packing into the kernel's consolidated bf16/f32 slabs.
# ---------------------------------------------------------------------------
def _xavier(key, shape):
    bound = math.sqrt(6.0 / (shape[-2] + shape[-1]))
    return jax.random.uniform(key, shape, jnp.float32, -bound, bound)


def init_params(key):
    per_layer = 10
    ks = jax.random.split(key, N_LAYERS * per_layer)

    wqkv, wo_s, wq_c, wkv_c, wo_c, w1, w2 = [], [], [], [], [], [], []
    for l in range(N_LAYERS):
        k = [ks[l * per_layer + i] for i in range(per_layer)]
        wqkv.append(jnp.concatenate(
            [_xavier(k[0], (HIDDEN, HIDDEN)),
             _xavier(k[1], (HIDDEN, HIDDEN)),
             _xavier(k[2], (HIDDEN, HIDDEN))], axis=-1))          # [H, 3H]
        wo_s.append(_xavier(k[3], (HIDDEN, HIDDEN)))
        wq_c.append(_xavier(k[4], (HIDDEN, HIDDEN)))
        wkv_c.append(jnp.concatenate(
            [_xavier(k[5], (HIDDEN, HIDDEN)),
             _xavier(k[6], (HIDDEN, HIDDEN))], axis=-1))          # [H, 2H]
        wo_c.append(_xavier(k[7], (HIDDEN, HIDDEN)))
        w1.append(_xavier(k[8], (HIDDEN, FF)))
        w2.append(_xavier(k[9], (FF, HIDDEN)))

    z = lambda *s: jnp.zeros(s, jnp.float32)
    return {
        'w_qkv_self': jnp.stack(wqkv), 'b_qkv_self': z(N_LAYERS, 3 * HIDDEN),
        'w_o_self': jnp.stack(wo_s),   'b_o_self': z(N_LAYERS, HIDDEN),
        'w_q_cross': jnp.stack(wq_c),  'b_q_cross': z(N_LAYERS, HIDDEN),
        'w_kv_cross': jnp.stack(wkv_c), 'b_kv_cross': z(N_LAYERS, 2 * HIDDEN),
        'w_o_cross': jnp.stack(wo_c),  'b_o_cross': z(N_LAYERS, HIDDEN),
        'w_ff1': jnp.stack(w1), 'b_ff1': z(N_LAYERS, FF),
        'w_ff2': jnp.stack(w2), 'b_ff2': z(N_LAYERS, HIDDEN),
        'ln_g': jnp.ones((3 * N_LAYERS, HIDDEN), jnp.float32),
        'ln_b': z(3 * N_LAYERS, HIDDEN),
        'lnf_g': jnp.ones((1, HIDDEN), jnp.float32),
        'lnf_b': z(1, HIDDEN),
    }


def pack_params(p):
    """Pack natural params into the kernel's slabs (done once, off the hot path)."""
    bf16 = jnp.bfloat16
    L = N_LAYERS

    def pad_to(v, width):
        return jnp.pad(v, ((0, 0), (0, width - v.shape[-1])))

    # [L, 3, H, H] -> [3L, H, H]: rows (o_self, q_cross, o_cross) per layer.
    w_hh = jnp.stack([p['w_o_self'], p['w_q_cross'], p['w_o_cross']],
                     axis=1).reshape(3 * L, HIDDEN, HIDDEN)

    # bias_w rows per layer: b_qkv_self(3H,pad), b_kv_cross(2H,pad), b_ff1(4H).
    bias_w = jnp.stack([pad_to(p['b_qkv_self'], FF),
                        pad_to(p['b_kv_cross'], FF),
                        p['b_ff1']], axis=1).reshape(3 * L, FF)
    # bias_h rows per layer: b_o_self, b_q_cross, b_o_cross, b_ff2.
    bias_h = jnp.stack([p['b_o_self'], p['b_q_cross'],
                        p['b_o_cross'], p['b_ff2']], axis=1).reshape(4 * L, HIDDEN)
    # LN slab: NLN gain rows then NLN beta rows (final LN at index 3L).
    ln = jnp.concatenate([p['ln_g'], p['lnf_g'], p['ln_b'], p['lnf_b']], axis=0)

    return {
        'w_qkv': p['w_qkv_self'].astype(bf16),     # [L, H, 3H]
        'w_hh': w_hh.astype(bf16),                 # [3L, H, H]
        'w_kv': p['w_kv_cross'].astype(bf16),      # [L, H, 2H]
        'w_f1': p['w_ff1'].astype(bf16),           # [L, H, FF]
        'w_f2': p['w_ff2'].astype(bf16),           # [L, FF, H]
        'bias_w': bias_w.astype(jnp.float32),      # [3L, FF]
        'bias_h': bias_h.astype(jnp.float32),      # [4L, H]
        'ln': ln.astype(jnp.float32),              # [2*NLN, H]
    }


if __name__ == "__main__":
    key = jax.random.PRNGKey(0)
    kp, kt, km = jax.random.split(key, 3)
    params = init_params(kp)
    packed = pack_params(params)

    T, S = 16, 24                                     # tgt_len, src_len (batch=1)
    tgt = jax.random.normal(kt, (1, T, HIDDEN), jnp.float32)
    src_memory = jax.random.normal(km, (1, S, HIDDEN), jnp.float32)
    tgt_mask = jnp.tril(jnp.ones((T, T), jnp.int32))[None]   # causal [1, T, T]
    src_mask = jnp.ones((1, 1, S), jnp.int32)                 # all visible [1, 1, S]

    fwd = jax.jit(transformer_decoder_forward)
    out = fwd(packed, tgt, src_memory, src_mask, tgt_mask)
    out = jax.block_until_ready(out)

    assert out.shape == (1, T, HIDDEN)
    assert bool(jnp.all(jnp.isfinite(out)))
    print("KERNEL_OK")
</pallas_src>

<mosaic_0001>
module attributes {stable_mosaic.version = 11 : i64} {
  func.func @_decoder_kernel(%arg0: memref<16x64xf32, #tpu.memory_space<vmem>>, %arg1: memref<24x64xf32, #tpu.memory_space<vmem>>, %arg2: memref<16x16xf32, #tpu.memory_space<vmem>>, %arg3: memref<16x24xf32, #tpu.memory_space<vmem>>, %arg4: memref<2x64x192xbf16, #tpu.memory_space<vmem>>, %arg5: memref<6x64x64xbf16, #tpu.memory_space<vmem>>, %arg6: memref<2x64x128xbf16, #tpu.memory_space<vmem>>, %arg7: memref<2x64x256xbf16, #tpu.memory_space<vmem>>, %arg8: memref<2x256x64xbf16, #tpu.memory_space<vmem>>, %arg9: memref<6x256xf32, #tpu.memory_space<vmem>>, %arg10: memref<8x64xf32, #tpu.memory_space<vmem>>, %arg11: memref<14x64xf32, #tpu.memory_space<vmem>>, %arg12: memref<16x64xf32, #tpu.memory_space<vmem>>, %arg13: memref<16x64xf32, #tpu.memory_space<vmem>>) attributes {dimension_semantics = [], scalar_prefetch = 0 : i64, scratch_operands = 1 : i64, tpu.core_type = #tpu.core_type<tc>} {
    %c0 = arith.constant 0 : index
    %c0_0 = arith.constant 0 : index
    %0 = vector.load %arg0[%c0, %c0_0] : memref<16x64xf32, #tpu.memory_space<vmem>>, vector<16x64xf32>
    %c0_1 = arith.constant 0 : index
    %c0_2 = arith.constant 0 : index
    %1 = vector.load %arg1[%c0_1, %c0_2] : memref<24x64xf32, #tpu.memory_space<vmem>>, vector<24x64xf32>
    %c0_3 = arith.constant 0 : index
    %c0_4 = arith.constant 0 : index
    %2 = vector.load %arg2[%c0_3, %c0_4] : memref<16x16xf32, #tpu.memory_space<vmem>>, vector<16x16xf32>
    %c0_5 = arith.constant 0 : index
    %c0_6 = arith.constant 0 : index
    %3 = vector.load %arg3[%c0_5, %c0_6] : memref<16x24xf32, #tpu.memory_space<vmem>>, vector<16x24xf32>
    %c0_7 = arith.constant 0 : index
    %c0_8 = arith.constant 0 : index
    %4 = vector.load %arg9[%c0_7, %c0_8] : memref<6x256xf32, #tpu.memory_space<vmem>>, vector<6x256xf32>
    %c0_9 = arith.constant 0 : index
    %c0_10 = arith.constant 0 : index
    %5 = vector.load %arg10[%c0_9, %c0_10] : memref<8x64xf32, #tpu.memory_space<vmem>>, vector<8x64xf32>
    %c0_11 = arith.constant 0 : index
    %c0_12 = arith.constant 0 : index
    %6 = vector.load %arg11[%c0_11, %c0_12] : memref<14x64xf32, #tpu.memory_space<vmem>>, vector<14x64xf32>
    %7 = vector.extract_strided_slice %6 {offsets = [0, 0], sizes = [1, 64], strides = [1, 1]} : vector<14x64xf32> to vector<1x64xf32>
    %8 = vector.extract_strided_slice %6 {offsets = [7, 0], sizes = [1, 64], strides = [1, 1]} : vector<14x64xf32> to vector<1x64xf32>
    %cst = arith.constant dense<0.000000e+00> : vector<16xf32>
    %9 = vector.multi_reduction <add>, %0, %cst [1] : vector<16x64xf32> to vector<16xf32>
    %10 = vector.shape_cast %9 : vector<16xf32> to vector<16x1xf32>
    %cst_13 = arith.constant 6.400000e+01 : f32
    %11 = vector.broadcast %cst_13 : f32 to vector<16x1xf32>
    %12 = arith.divf %10, %11 : vector<16x1xf32>
    %13 = vector.broadcast %12 : vector<16x1xf32> to vector<16x64xf32>
    %14 = arith.subf %0, %13 : vector<16x64xf32>
    %15 = arith.mulf %14, %14 : vector<16x64xf32>
    %cst_14 = arith.constant dense<0.000000e+00> : vector<16xf32>
    %16 = vector.multi_reduction <add>, %15, %cst_14 [1] : vector<16x64xf32> to vector<16xf32>
    %17 = vector.shape_cast %16 : vector<16xf32> to vector<16x1xf32>
    %cst_15 = arith.constant 0.0158730168 : f32
    %18 = vector.broadcast %cst_15 : f32 to vector<16x1xf32>
    %19 = arith.mulf %17, %18 : vector<16x1xf32>
    %20 = vector.broadcast %12 : vector<16x1xf32> to vector<16x64xf32>
    %21 = arith.subf %0, %20 : vector<16x64xf32>
    %22 = vector.broadcast %7 : vector<1x64xf32> to vector<16x64xf32>
    %23 = arith.mulf %22, %21 : vector<16x64xf32>
    %24 = math.sqrt %19 : vector<16x1xf32>
    %cst_16 = arith.constant 9.99999997E-7 : f32
    %25 = vector.broadcast %cst_16 : f32 to vector<16x1xf32>
    %26 = arith.addf %24, %25 : vector<16x1xf32>
    %27 = vector.broadcast %26 : vector<16x1xf32> to vector<16x64xf32>
    %28 = arith.divf %23, %27 : vector<16x64xf32>
    %29 = vector.broadcast %8 : vector<1x64xf32> to vector<16x64xf32>
    %30 = arith.addf %28, %29 : vector<16x64xf32>
    %c0_17 = arith.constant 0 : index
    %c0_18 = arith.constant 0 : index
    %c0_19 = arith.constant 0 : index
    %31 = vector.load %arg4[%c0_17, %c0_18, %c0_19] : memref<2x64x192xbf16, #tpu.memory_space<vmem>>, vector<1x64x192xbf16>
    %32 = vector.shape_cast %31 : vector<1x64x192xbf16> to vector<64x192xbf16>
    %33 = arith.extf %32 : vector<64x192xbf16> to vector<64x192xf32>
    %cst_20 = arith.constant dense<0.000000e+00> : vector<16x192xf32>
    %34 = tpu.matmul %30, %33, %cst_20 {dimension_numbers = #tpu.dot_dimension_numbers<[1], [0], [0], [1], [0, 0, 1, 1], [], []>} : vector<16x64xf32>, vector<64x192xf32>, vector<16x192xf32> -> vector<16x192xf32>
    %35 = vector.extract_strided_slice %4 {offsets = [0, 0], sizes = [1, 192], strides = [1, 1]} : vector<6x256xf32> to vector<1x192xf32>
    %36 = vector.broadcast %35 : vector<1x192xf32> to vector<16x192xf32>
    %37 = arith.addf %34, %36 : vector<16x192xf32>
    %38 = vector.extract_strided_slice %37 {offsets = [0, 0], sizes = [16, 64], strides = [1, 1]} : vector<16x192xf32> to vector<16x64xf32>
    %39 = vector.extract_strided_slice %37 {offsets = [0, 64], sizes = [16, 64], strides = [1, 1]} : vector<16x192xf32> to vector<16x64xf32>
    %40 = vector.extract_strided_slice %37 {offsets = [0, 128], sizes = [16, 64], strides = [1, 1]} : vector<16x192xf32> to vector<16x64xf32>
    %41 = vector.extract_strided_slice %38 {offsets = [0, 0], sizes = [16, 8], strides = [1, 1]} : vector<16x64xf32> to vector<16x8xf32>
    %42 = vector.extract_strided_slice %39 {offsets = [0, 0], sizes = [16, 8], strides = [1, 1]} : vector<16x64xf32> to vector<16x8xf32>
    %cst_21 = arith.constant dense<0.000000e+00> : vector<16x16xf32>
    %43 = tpu.matmul %41, %42, %cst_21 {dimension_numbers = #tpu.dot_dimension_numbers<[1], [1], [0], [0], [0, 0, 1, 0], [], []>} : vector<16x8xf32>, vector<16x8xf32>, vector<16x16xf32> -> vector<16x16xf32>
    %cst_22 = arith.constant 0.353553385 : f32
    %44 = vector.broadcast %cst_22 : f32 to vector<16x16xf32>
    %45 = arith.mulf %43, %44 : vector<16x16xf32>
    %46 = arith.addf %45, %2 : vector<16x16xf32>
    %cst_23 = arith.constant dense<0xFF800000> : vector<16xf32>
    %47 = vector.multi_reduction <maximumf>, %46, %cst_23 [1] : vector<16x16xf32> to vector<16xf32>
    %48 = vector.shape_cast %47 : vector<16xf32> to vector<16x1xf32>
    %49 = vector.broadcast %48 : vector<16x1xf32> to vector<16x16xf32>
    %50 = arith.subf %46, %49 : vector<16x16xf32>
    %51 = math.exp %50 : vector<16x16xf32>
    %cst_24 = arith.constant dense<0.000000e+00> : vector<16xf32>
    %52 = vector.multi_reduction <add>, %51, %cst_24 [1] : vector<16x16xf32> to vector<16xf32>
    %53 = vector.shape_cast %52 : vector<16xf32> to vector<16x1xf32>
    %54 = tpu.reciprocal %53 {approx = true} : vector<16x1xf32> -> vector<16x1xf32>
    %55 = vector.broadcast %54 : vector<16x1xf32> to vector<16x16xf32>
    %56 = arith.mulf %51, %55 : vector<16x16xf32>
    %57 = vector.extract_strided_slice %40 {offsets = [0, 0], sizes = [16, 8], strides = [1, 1]} : vector<16x64xf32> to vector<16x8xf32>
    %cst_25 = arith.constant dense<0.000000e+00> : vector<16x8xf32>
    %58 = tpu.matmul %56, %57, %cst_25 {dimension_numbers = #tpu.dot_dimension_numbers<[1], [0], [0], [1], [0, 0, 1, 1], [], []>} : vector<16x16xf32>, vector<16x8xf32>, vector<16x8xf32> -> vector<16x8xf32>
    %c0_26 = arith.constant 0 : index
    %c0_27 = arith.constant 0 : index
    %59 = vector.load %arg13[%c0_26, %c0_27] : memref<16x64xf32, #tpu.memory_space<vmem>>, vector<16x8xf32>
    tpu.vector_store %arg13[%c0_26, %c0_27], %58 {strides = array<i32>} : memref<16x64xf32, #tpu.memory_space<vmem>>, vector<16x8xf32>,
    %60 = vector.extract_strided_slice %38 {offsets = [0, 8], sizes = [16, 8], strides = [1, 1]} : vector<16x64xf32> to vector<16x8xf32>
    %61 = vector.extract_strided_slice %39 {offsets = [0, 8], sizes = [16, 8], strides = [1, 1]} : vector<16x64xf32> to vector<16x8xf32>
    %cst_28 = arith.constant dense<0.000000e+00> : vector<16x16xf32>
    %62 = tpu.matmul %60, %61, %cst_28 {dimension_numbers = #tpu.dot_dimension_numbers<[1], [1], [0], [0], [0, 0, 1, 0], [], []>} : vector<16x8xf32>, vector<16x8xf32>, vector<16x16xf32> -> vector<16x16xf32>
    %cst_29 = arith.constant 0.353553385 : f32
    %63 = vector.broadcast %cst_29 : f32 to vector<16x16xf32>
    %64 = arith.mulf %62, %63 : vector<16x16xf32>
    %65 = arith.addf %64, %2 : vector<16x16xf32>
    %cst_30 = arith.constant dense<0xFF800000> : vector<16xf32>
    %66 = vector.multi_reduction <maximumf>, %65, %cst_30 [1] : vector<16x16xf32> to vector<16xf32>
    %67 = vector.shape_cast %66 : vector<16xf32> to vector<16x1xf32>
    %68 = vector.broadcast %67 : vector<16x1xf32> to vector<16x16xf32>
    %69 = arith.subf %65, %68 : vector<16x16xf32>
    %70 = math.exp %69 : vector<16x16xf32>
    %cst_31 = arith.constant dense<0.000000e+00> : vector<16xf32>
    %71 = vector.multi_reduction <add>, %70, %cst_31 [1] : vector<16x16xf32> to vector<16xf32>
    %72 = vector.shape_cast %71 : vector<16xf32> to vector<16x1xf32>
    %73 = tpu.reciprocal %72 {approx = true} : vector<16x1xf32> -> vector<16x1xf32>
    %74 = vector.broadcast %73 : vector<16x1xf32> to vector<16x16xf32>
    %75 = arith.mulf %70, %74 : vector<16x16xf32>
    %76 = vector.extract_strided_slice %40 {offsets = [0, 8], sizes = [16, 8], strides = [1, 1]} : vector<16x64xf32> to vector<16x8xf32>
    %cst_32 = arith.constant dense<0.000000e+00> : vector<16x8xf32>
    %77 = tpu.matmul %75, %76, %cst_32 {dimension_numbers = #tpu.dot_dimension_numbers<[1], [0], [0], [1], [0, 0, 1, 1], [], []>} : vector<16x16xf32>, vector<16x8xf32>, vector<16x8xf32> -> vector<16x8xf32>
    %c0_33 = arith.constant 0 : index
    %c8 = arith.constant 8 : index
    %78 = vector.load %arg13[%c0_33, %c8] : memref<16x64xf32, #tpu.memory_space<vmem>>, vector<16x8xf32>
    tpu.vector_store %arg13[%c0_33, %c8], %77 {strides = array<i32>} : memref<16x64xf32, #tpu.memory_space<vmem>>, vector<16x8xf32>,
    %79 = vector.extract_strided_slice %38 {offsets = [0, 16], sizes = [16, 8], strides = [1, 1]} : vector<16x64xf32> to vector<16x8xf32>
    %80 = vector.extract_strided_slice %39 {offsets = [0, 16], sizes = [16, 8], strides = [1, 1]} : vector<16x64xf32> to vector<16x8xf32>
    %cst_34 = arith.constant dense<0.000000e+00> : vector<16x16xf32>
    %81 = tpu.matmul %79, %80, %cst_34 {dimension_numbers = #tpu.dot_dimension_numbers<[1], [1], [0], [0], [0, 0, 1, 0], [], []>} : vector<16x8xf32>, vector<16x8xf32>, vector<16x16xf32> -> vector<16x16xf32>
    %cst_35 = arith.constant 0.353553385 : f32
    %82 = vector.broadcast %cst_35 : f32 to vector<16x16xf32>
    %83 = arith.mulf %81, %82 : vector<16x16xf32>
    %84 = arith.addf %83, %2 : vector<16x16xf32>
    %cst_36 = arith.constant dense<0xFF800000> : vector<16xf32>
    %85 = vector.multi_reduction <maximumf>, %84, %cst_36 [1] : vector<16x16xf32> to vector<16xf32>
    %86 = vector.shape_cast %85 : vector<16xf32> to vector<16x1xf32>
    %87 = vector.broadcast %86 : vector<16x1xf32> to vector<16x16xf32>
    %88 = arith.subf %84, %87 : vector<16x16xf32>
    %89 = math.exp %88 : vector<16x16xf32>
    %cst_37 = arith.constant dense<0.000000e+00> : vector<16xf32>
    %90 = vector.multi_reduction <add>, %89, %cst_37 [1] : vector<16x16xf32> to vector<16xf32>
    %91 = vector.shape_cast %90 : vector<16xf32> to vector<16x1xf32>
    %92 = tpu.reciprocal %91 {approx = true} : vector<16x1xf32> -> vector<16x1xf32>
    %93 = vector.broadcast %92 : vector<16x1xf32> to vector<16x16xf32>
    %94 = arith.mulf %89, %93 : vector<16x16xf32>
    %95 = vector.extract_strided_slice %40 {offsets = [0, 16], sizes = [16, 8], strides = [1, 1]} : vector<16x64xf32> to vector<16x8xf32>
    %cst_38 = arith.constant dense<0.000000e+00> : vector<16x8xf32>
    %96 = tpu.matmul %94, %95, %cst_38 {dimension_numbers = #tpu.dot_dimension_numbers<[1], [0], [0], [1], [0, 0, 1, 1], [], []>} : vector<16x16xf32>, vector<16x8xf32>, vector<16x8xf32> -> vector<16x8xf32>
    %c0_39 = arith.constant 0 : index
    %c16 = arith.constant 16 : index
    %97 = vector.load %arg13[%c0_39, %c16] : memref<16x64xf32, #tpu.memory_space<vmem>>, vector<16x8xf32>
    tpu.vector_store %arg13[%c0_39, %c16], %96 {strides = array<i32>} : memref<16x64xf32, #tpu.memory_space<vmem>>, vector<16x8xf32>,
    %98 = vector.extract_strided_slice %38 {offsets = [0, 24], sizes = [16, 8], strides = [1, 1]} : vector<16x64xf32> to vector<16x8xf32>
    %99 = vector.extract_strided_slice %39 {offsets = [0, 24], sizes = [16, 8], strides = [1, 1]} : vector<16x64xf32> to vector<16x8xf32>
    %cst_40 = arith.constant dense<0.000000e+00> : vector<16x16xf32>
    %100 = tpu.matmul %98, %99, %cst_40 {dimension_numbers = #tpu.dot_dimension_numbers<[1], [1], [0], [0], [0, 0, 1, 0], [], []>} : vector<16x8xf32>, vector<16x8xf32>, vector<16x16xf32> -> vector<16x16xf32>
    %cst_41 = arith.constant 0.353553385 : f32
    %101 = vector.broadcast %cst_41 : f32 to vector<16x16xf32>
    %102 = arith.mulf %100, %101 : vector<16x16xf32>
    %103 = arith.addf %102, %2 : vector<16x16xf32>
    %cst_42 = arith.constant dense<0xFF800000> : vector<16xf32>
    %104 = vector.multi_reduction <maximumf>, %103, %cst_42 [1] : vector<16x16xf32> to vector<16xf32>
    %105 = vector.shape_cast %104 : vector<16xf32> to vector<16x1xf32>
    %106 = vector.broadcast %105 : vector<16x1xf32> to vector<16x16xf32>
    %107 = arith.subf %103, %106 : vector<16x16xf32>
    %108 = math.exp %107 : vector<16x16xf32>
    %cst_43 = arith.constant dense<0.000000e+00> : vector<16xf32>
    %109 = vector.multi_reduction <add>, %108, %cst_43 [1] : vector<16x16xf32> to vector<16xf32>
    %110 = vector.shape_cast %109 : vector<16xf32> to vector<16x1xf32>
    %111 = tpu.reciprocal %110 {approx = true} : vector<16x1xf32> -> vector<16x1xf32>
    %112 = vector.broadcast %111 : vector<16x1xf32> to vector<16x16xf32>
    %113 = arith.mulf %108, %112 : vector<16x16xf32>
    %114 = vector.extract_strided_slice %40 {offsets = [0, 24], sizes = [16, 8], strides = [1, 1]} : vector<16x64xf32> to vector<16x8xf32>
    %cst_44 = arith.constant dense<0.000000e+00> : vector<16x8xf32>
    %115 = tpu.matmul %113, %114, %cst_44 {dimension_numbers = #tpu.dot_dimension_numbers<[1], [0], [0], [1], [0, 0, 1, 1], [], []>} : vector<16x16xf32>, vector<16x8xf32>, vector<16x8xf32> -> vector<16x8xf32>
    %c0_45 = arith.constant 0 : index
    %c24 = arith.constant 24 : index
    %116 = vector.load %arg13[%c0_45, %c24] : memref<16x64xf32, #tpu.memory_space<vmem>>, vector<16x8xf32>
    tpu.vector_store %arg13[%c0_45, %c24], %115 {strides = array<i32>} : memref<16x64xf32, #tpu.memory_space<vmem>>, vector<16x8xf32>,
    %117 = vector.extract_strided_slice %38 {offsets = [0, 32], sizes = [16, 8], strides = [1, 1]} : vector<16x64xf32> to vector<16x8xf32>
    %118 = vector.extract_strided_slice %39 {offsets = [0, 32], sizes = [16, 8], strides = [1, 1]} : vector<16x64xf32> to vector<16x8xf32>
    %cst_46 = arith.constant dense<0.000000e+00> : vector<16x16xf32>
    %119 = tpu.matmul %117, %118, %cst_46 {dimension_numbers = #tpu.dot_dimension_numbers<[1], [1], [0], [0], [0, 0, 1, 0], [], []>} : vector<16x8xf32>, vector<16x8xf32>, vector<16x16xf32> -> vector<16x16xf32>
    %cst_47 = arith.constant 0.353553385 : f32
    %120 = vector.broadcast %cst_47 : f32 to vector<16x16xf32>
    %121 = arith.mulf %119, %120 : vector<16x16xf32>
    %122 = arith.addf %121, %2 : vector<16x16xf32>
    %cst_48 = arith.constant dense<0xFF800000> : vector<16xf32>
    %123 = vector.multi_reduction <maximumf>, %122, %cst_48 [1] : vector<16x16xf32> to vector<16xf32>
    %124 = vector.shape_cast %123 : vector<16xf32> to vector<16x1xf32>
    %125 = vector.broadcast %124 : vector<16x1xf32> to vector<16x16xf32>
    %126 = arith.subf %122, %125 : vector<16x16xf32>
    %127 = math.exp %126 : vector<16x16xf32>
    %cst_49 = arith.constant dense<0.000000e+00> : vector<16xf32>
    %128 = vector.multi_reduction <add>, %127, %cst_49 [1] : vector<16x16xf32> to vector<16xf32>
    %129 = vector.shape_cast %128 : vector<16xf32> to vector<16x1xf32>
    %130 = tpu.reciprocal %129 {approx = true} : vector<16x1xf32> -> vector<16x1xf32>
    %131 = vector.broadcast %130 : vector<16x1xf32> to vector<16x16xf32>
    %132 = arith.mulf %127, %131 : vector<16x16xf32>
    %133 = vector.extract_strided_slice %40 {offsets = [0, 32], sizes = [16, 8], strides = [1, 1]} : vector<16x64xf32> to vector<16x8xf32>
    %cst_50 = arith.constant dense<0.000000e+00> : vector<16x8xf32>
    %134 = tpu.matmul %132, %133, %cst_50 {dimension_numbers = #tpu.dot_dimension_numbers<[1], [0], [0], [1], [0, 0, 1, 1], [], []>} : vector<16x16xf32>, vector<16x8xf32>, vector<16x8xf32> -> vector<16x8xf32>
    %c0_51 = arith.constant 0 : index
    %c32 = arith.constant 32 : index
    %135 = vector.load %arg13[%c0_51, %c32] : memref<16x64xf32, #tpu.memory_space<vmem>>, vector<16x8xf32>
    tpu.vector_store %arg13[%c0_51, %c32], %134 {strides = array<i32>} : memref<16x64xf32, #tpu.memory_space<vmem>>, vector<16x8xf32>,
    %136 = vector.extract_strided_slice %38 {offsets = [0, 40], sizes = [16, 8], strides = [1, 1]} : vector<16x64xf32> to vector<16x8xf32>
    %137 = vector.extract_strided_slice %39 {offsets = [0, 40], sizes = [16, 8], strides = [1, 1]} : vector<16x64xf32> to vector<16x8xf32>
    %cst_52 = arith.constant dense<0.000000e+00> : vector<16x16xf32>
    %138 = tpu.matmul %136, %137, %cst_52 {dimension_numbers = #tpu.dot_dimension_numbers<[1], [1], [0], [0], [0, 0, 1, 0], [], []>} : vector<16x8xf32>, vector<16x8xf32>, vector<16x16xf32> -> vector<16x16xf32>
    %cst_53 = arith.constant 0.353553385 : f32
    %139 = vector.broadcast %cst_53 : f32 to vector<16x16xf32>
    %140 = arith.mulf %138, %139 : vector<16x16xf32>
    %141 = arith.addf %140, %2 : vector<16x16xf32>
    %cst_54 = arith.constant dense<0xFF800000> : vector<16xf32>
    %142 = vector.multi_reduction <maximumf>, %141, %cst_54 [1] : vector<16x16xf32> to vector<16xf32>
    %143 = vector.shape_cast %142 : vector<16xf32> to vector<16x1xf32>
    %144 = vector.broadcast %143 : vector<16x1xf32> to vector<16x16xf32>
    %145 = arith.subf %141, %144 : vector<16x16xf32>
    %146 = math.exp %145 : vector<16x16xf32>
    %cst_55 = arith.constant dense<0.000000e+00> : vector<16xf32>
    %147 = vector.multi_reduction <add>, %146, %cst_55 [1] : vector<16x16xf32> to vector<16xf32>
    %148 = vector.shape_cast %147 : vector<16xf32> to vector<16x1xf32>
    %149 = tpu.reciprocal %148 {approx = true} : vector<16x1xf32> -> vector<16x1xf32>
    %150 = vector.broadcast %149 : vector<16x1xf32> to vector<16x16xf32>
    %151 = arith.mulf %146, %150 : vector<16x16xf32>
    %152 = vector.extract_strided_slice %40 {offsets = [0, 40], sizes = [16, 8], strides = [1, 1]} : vector<16x64xf32> to vector<16x8xf32>
    %cst_56 = arith.constant dense<0.000000e+00> : vector<16x8xf32>
    %153 = tpu.matmul %151, %152, %cst_56 {dimension_numbers = #tpu.dot_dimension_numbers<[1], [0], [0], [1], [0, 0, 1, 1], [], []>} : vector<16x16xf32>, vector<16x8xf32>, vector<16x8xf32> -> vector<16x8xf32>
    %c0_57 = arith.constant 0 : index
    %c40 = arith.constant 40 : index
    %154 = vector.load %arg13[%c0_57, %c40] : memref<16x64xf32, #tpu.memory_space<vmem>>, vector<16x8xf32>
    tpu.vector_store %arg13[%c0_57, %c40], %153 {strides = array<i32>} : memref<16x64xf32, #tpu.memory_space<vmem>>, vector<16x8xf32>,
    %155 = vector.extract_strided_slice %38 {offsets = [0, 48], sizes = [16, 8], strides = [1, 1]} : vector<16x64xf32> to vector<16x8xf32>
    %156 = vector.extract_strided_slice %39 {offsets = [0, 48], sizes = [16, 8], strides = [1, 1]} : vector<16x64xf32> to vector<16x8xf32>
    %cst_58 = arith.constant dense<0.000000e+00> : vector<16x16xf32>
    %157 = tpu.matmul %155, %156, %cst_58 {dimension_numbers = #tpu.dot_dimension_numbers<[1], [1], [0], [0], [0, 0, 1, 0], [], []>} : vector<16x8xf32>, vector<16x8xf32>, vector<16x16xf32> -> vector<16x16xf32>
    %cst_59 = arith.constant 0.353553385 : f32
    %158 = vector.broadcast %cst_59 : f32 to vector<16x16xf32>
    %159 = arith.mulf %157, %158 : vector<16x16xf32>
    %160 = arith.addf %159, %2 : vector<16x16xf32>
    %cst_60 = arith.constant dense<0xFF800000> : vector<16xf32>
    %161 = vector.multi_reduction <maximumf>, %160, %cst_60 [1] : vector<16x16xf32> to vector<16xf32>
    %162 = vector.shape_cast %161 : vector<16xf32> to vector<16x1xf32>
    %163 = vector.broadcast %162 : vector<16x1xf32> to vector<16x16xf32>
    %164 = arith.subf %160, %163 : vector<16x16xf32>
    %165 = math.exp %164 : vector<16x16xf32>
    %cst_61 = arith.constant dense<0.000000e+00> : vector<16xf32>
    %166 = vector.multi_reduction <add>, %165, %cst_61 [1] : vector<16x16xf32> to vector<16xf32>
    %167 = vector.shape_cast %166 : vector<16xf32> to vector<16x1xf32>
    %168 = tpu.reciprocal %167 {approx = true} : vector<16x1xf32> -> vector<16x1xf32>
    %169 = vector.broadcast %168 : vector<16x1xf32> to vector<16x16xf32>
    %170 = arith.mulf %165, %169 : vector<16x16xf32>
    %171 = vector.extract_strided_slice %40 {offsets = [0, 48], sizes = [16, 8], strides = [1, 1]} : vector<16x64xf32> to vector<16x8xf32>
    %cst_62 = arith.constant dense<0.000000e+00> : vector<16x8xf32>
    %172 = tpu.matmul %170, %171, %cst_62 {dimension_numbers = #tpu.dot_dimension_numbers<[1], [0], [0], [1], [0, 0, 1, 1], [], []>} : vector<16x16xf32>, vector<16x8xf32>, vector<16x8xf32> -> vector<16x8xf32>
    %c0_63 = arith.constant 0 : index
    %c48 = arith.constant 48 : index
    %173 = vector.load %arg13[%c0_63, %c48] : memref<16x64xf32, #tpu.memory_space<vmem>>, vector<16x8xf32>
    tpu.vector_store %arg13[%c0_63, %c48], %172 {strides = array<i32>} : memref<16x64xf32, #tpu.memory_space<vmem>>, vector<16x8xf32>,
    %174 = vector.extract_strided_slice %38 {offsets = [0, 56], sizes = [16, 8], strides = [1, 1]} : vector<16x64xf32> to vector<16x8xf32>
    %175 = vector.extract_strided_slice %39 {offsets = [0, 56], sizes = [16, 8], strides = [1, 1]} : vector<16x64xf32> to vector<16x8xf32>
    %cst_64 = arith.constant dense<0.000000e+00> : vector<16x16xf32>
    %176 = tpu.matmul %174, %175, %cst_64 {dimension_numbers = #tpu.dot_dimension_numbers<[1], [1], [0], [0], [0, 0, 1, 0], [], []>} : vector<16x8xf32>, vector<16x8xf32>, vector<16x16xf32> -> vector<16x16xf32>
    %cst_65 = arith.constant 0.353553385 : f32
    %177 = vector.broadcast %cst_65 : f32 to vector<16x16xf32>
    %178 = arith.mulf %176, %177 : vector<16x16xf32>
    %179 = arith.addf %178, %2 : vector<16x16xf32>
    %cst_66 = arith.constant dense<0xFF800000> : vector<16xf32>
    %180 = vector.multi_reduction <maximumf>, %179, %cst_66 [1] : vector<16x16xf32> to vector<16xf32>
    %181 = vector.shape_cast %180 : vector<16xf32> to vector<16x1xf32>
    %182 = vector.broadcast %181 : vector<16x1xf32> to vector<16x16xf32>
    %183 = arith.subf %179, %182 : vector<16x16xf32>
    %184 = math.exp %183 : vector<16x16xf32>
    %cst_67 = arith.constant dense<0.000000e+00> : vector<16xf32>
    %185 = vector.multi_reduction <add>, %184, %cst_67 [1] : vector<16x16xf32> to vector<16xf32>
    %186 = vector.shape_cast %185 : vector<16xf32> to vector<16x1xf32>
    %187 = tpu.reciprocal %186 {approx = true} : vector<16x1xf32> -> vector<16x1xf32>
    %188 = vector.broadcast %187 : vector<16x1xf32> to vector<16x16xf32>
    %189 = arith.mulf %184, %188 : vector<16x16xf32>
    %190 = vector.extract_strided_slice %40 {offsets = [0, 56], sizes = [16, 8], strides = [1, 1]} : vector<16x64xf32> to vector<16x8xf32>
    %cst_68 = arith.constant dense<0.000000e+00> : vector<16x8xf32>
    %191 = tpu.matmul %189, %190, %cst_68 {dimension_numbers = #tpu.dot_dimension_numbers<[1], [0], [0], [1], [0, 0, 1, 1], [], []>} : vector<16x16xf32>, vector<16x8xf32>, vector<16x8xf32> -> vector<16x8xf32>
    %c0_69 = arith.constant 0 : index
    %c56 = arith.constant 56 : index
    %192 = vector.load %arg13[%c0_69, %c56] : memref<16x64xf32, #tpu.memory_space<vmem>>, vector<16x8xf32>
    tpu.vector_store %arg13[%c0_69, %c56], %191 {strides = array<i32>} : memref<16x64xf32, #tpu.memory_space<vmem>>, vector<16x8xf32>,
    %c0_70 = arith.constant 0 : index
    %c0_71 = arith.constant 0 : index
    %193 = vector.load %arg13[%c0_70, %c0_71] : memref<16x64xf32, #tpu.memory_space<vmem>>, vector<16x64xf32>
    %c0_72 = arith.constant 0 : index
    %c0_73 = arith.constant 0 : index
    %c0_74 = arith.constant 0 : index
    %194 = vector.load %arg5[%c0_72, %c0_73, %c0_74] : memref<6x64x64xbf16, #tpu.memory_space<vmem>>, vector<1x64x64xbf16>
    %195 = vector.shape_cast %194 : vector<1x64x64xbf16> to vector<64x64xbf16>
    %196 = arith.extf %195 : vector<64x64xbf16> to vector<64x64xf32>
    %cst_75 = arith.constant dense<0.000000e+00> : vector<16x64xf32>
    %197 = tpu.matmul %193, %196, %cst_75 {dimension_numbers = #tpu.dot_dimension_numbers<[1], [0], [0], [1], [0, 0, 1, 1], [], []>} : vector<16x64xf32>, vector<64x64xf32>, vector<16x64xf32> -> vector<16x64xf32>
    %198 = arith.addf %0, %197 : vector<16x64xf32>
    %199 = vector.extract_strided_slice %5 {offsets = [0, 0], sizes = [1, 64], strides = [1, 1]} : vector<8x64xf32> to vector<1x64xf32>
    %200 = vector.broadcast %199 : vector<1x64xf32> to vector<16x64xf32>
    %201 = arith.addf %198, %200 : vector<16x64xf32>
    %202 = vector.extract_strided_slice %6 {offsets = [1, 0], sizes = [1, 64], strides = [1, 1]} : vector<14x64xf32> to vector<1x64xf32>
    %203 = vector.extract_strided_slice %6 {offsets = [8, 0], sizes = [1, 64], strides = [1, 1]} : vector<14x64xf32> to vector<1x64xf32>
    %cst_76 = arith.constant dense<0.000000e+00> : vector<16xf32>
    %204 = vector.multi_reduction <add>, %201, %cst_76 [1] : vector<16x64xf32> to vector<16xf32>
    %205 = vector.shape_cast %204 : vector<16xf32> to vector<16x1xf32>
    %cst_77 = arith.constant 6.400000e+01 : f32
    %206 = vector.broadcast %cst_77 : f32 to vector<16x1xf32>
    %207 = arith.divf %205, %206 : vector<16x1xf32>
    %208 = vector.broadcast %207 : vector<16x1xf32> to vector<16x64xf32>
    %209 = arith.subf %201, %208 : vector<16x64xf32>
    %210 = arith.mulf %209, %209 : vector<16x64xf32>
    %cst_78 = arith.constant dense<0.000000e+00> : vector<16xf32>
    %211 = vector.multi_reduction <add>, %210, %cst_78 [1] : vector<16x64xf32> to vector<16xf32>
    %212 = vector.shape_cast %211 : vector<16xf32> to vector<16x1xf32>
    %cst_79 = arith.constant 0.0158730168 : f32
    %213 = vector.broadcast %cst_79 : f32 to vector<16x1xf32>
    %214 = arith.mulf %212, %213 : vector<16x1xf32>
    %215 = vector.broadcast %207 : vector<16x1xf32> to vector<16x64xf32>
    %216 = arith.subf %201, %215 : vector<16x64xf32>
    %217 = vector.broadcast %202 : vector<1x64xf32> to vector<16x64xf32>
    %218 = arith.mulf %217, %216 : vector<16x64xf32>
    %219 = math.sqrt %214 : vector<16x1xf32>
    %cst_80 = arith.constant 9.99999997E-7 : f32
    %220 = vector.broadcast %cst_80 : f32 to vector<16x1xf32>
    %221 = arith.addf %219, %220 : vector<16x1xf32>
    %222 = vector.broadcast %221 : vector<16x1xf32> to vector<16x64xf32>
    %223 = arith.divf %218, %222 : vector<16x64xf32>
    %224 = vector.broadcast %203 : vector<1x64xf32> to vector<16x64xf32>
    %225 = arith.addf %223, %224 : vector<16x64xf32>
    %c1 = arith.constant 1 : index
    %c0_81 = arith.constant 0 : index
    %c0_82 = arith.constant 0 : index
    %226 = vector.load %arg5[%c1, %c0_81, %c0_82] : memref<6x64x64xbf16, #tpu.memory_space<vmem>>, vector<1x64x64xbf16>
    %227 = vector.shape_cast %226 : vector<1x64x64xbf16> to vector<64x64xbf16>
    %228 = arith.extf %227 : vector<64x64xbf16> to vector<64x64xf32>
    %cst_83 = arith.constant dense<0.000000e+00> : vector<16x64xf32>
    %229 = tpu.matmul %225, %228, %cst_83 {dimension_numbers = #tpu.dot_dimension_numbers<[1], [0], [0], [1], [0, 0, 1, 1], [], []>} : vector<16x64xf32>, vector<64x64xf32>, vector<16x64xf32> -> vector<16x64xf32>
    %230 = vector.extract_strided_slice %5 {offsets = [1, 0], sizes = [1, 64], strides = [1, 1]} : vector<8x64xf32> to vector<1x64xf32>
    %231 = vector.broadcast %230 : vector<1x64xf32> to vector<16x64xf32>
    %232 = arith.addf %229, %231 : vector<16x64xf32>
    %c0_84 = arith.constant 0 : index
    %c0_85 = arith.constant 0 : index
    %c0_86 = arith.constant 0 : index
    %233 = vector.load %arg6[%c0_84, %c0_85, %c0_86] : memref<2x64x128xbf16, #tpu.memory_space<vmem>>, vector<1x64x128xbf16>
    %234 = vector.shape_cast %233 : vector<1x64x128xbf16> to vector<64x128xbf16>
    %235 = arith.extf %234 : vector<64x128xbf16> to vector<64x128xf32>
    %cst_87 = arith.constant dense<0.000000e+00> : vector<24x128xf32>
    %236 = tpu.matmul %1, %235, %cst_87 {dimension_numbers = #tpu.dot_dimension_numbers<[1], [0], [0], [1], [0, 0, 1, 1], [], []>} : vector<24x64xf32>, vector<64x128xf32>, vector<24x128xf32> -> vector<24x128xf32>
    %237 = vector.extract_strided_slice %4 {offsets = [1, 0], sizes = [1, 128], strides = [1, 1]} : vector<6x256xf32> to vector<1x128xf32>
    %238 = vector.broadcast %237 : vector<1x128xf32> to vector<24x128xf32>
    %239 = arith.addf %236, %238 : vector<24x128xf32>
    %240 = vector.extract_strided_slice %239 {offsets = [0, 0], sizes = [24, 64], strides = [1, 1]} : vector<24x128xf32> to vector<24x64xf32>
    %241 = vector.extract_strided_slice %239 {offsets = [0, 64], sizes = [24, 64], strides = [1, 1]} : vector<24x128xf32> to vector<24x64xf32>
    %242 = vector.extract_strided_slice %232 {offsets = [0, 0], sizes = [16, 8], strides = [1, 1]} : vector<16x64xf32> to vector<16x8xf32>
    %243 = vector.extract_strided_slice %240 {offsets = [0, 0], sizes = [24, 8], strides = [1, 1]} : vector<24x64xf32> to vector<24x8xf32>
    %cst_88 = arith.constant dense<0.000000e+00> : vector<16x24xf32>
    %244 = tpu.matmul %242, %243, %cst_88 {dimension_numbers = #tpu.dot_dimension_numbers<[1], [1], [0], [0], [0, 0, 1, 0], [], []>} : vector<16x8xf32>, vector<24x8xf32>, vector<16x24xf32> -> vector<16x24xf32>
    %cst_89 = arith.constant 0.353553385 : f32
    %245 = vector.broadcast %cst_89 : f32 to vector<16x24xf32>
    %246 = arith.mulf %244, %245 : vector<16x24xf32>
    %247 = arith.addf %246, %3 : vector<16x24xf32>
    %cst_90 = arith.constant dense<0xFF800000> : vector<16xf32>
    %248 = vector.multi_reduction <maximumf>, %247, %cst_90 [1] : vector<16x24xf32> to vector<16xf32>
    %249 = vector.shape_cast %248 : vector<16xf32> to vector<16x1xf32>
    %250 = vector.broadcast %249 : vector<16x1xf32> to vector<16x24xf32>
    %251 = arith.subf %247, %250 : vector<16x24xf32>
    %252 = math.exp %251 : vector<16x24xf32>
    %cst_91 = arith.constant dense<0.000000e+00> : vector<16xf32>
    %253 = vector.multi_reduction <add>, %252, %cst_91 [1] : vector<16x24xf32> to vector<16xf32>
    %254 = vector.shape_cast %253 : vector<16xf32> to vector<16x1xf32>
    %255 = tpu.reciprocal %254 {approx = true} : vector<16x1xf32> -> vector<16x1xf32>
    %256 = vector.broadcast %255 : vector<16x1xf32> to vector<16x24xf32>
    %257 = arith.mulf %252, %256 : vector<16x24xf32>
    %258 = vector.extract_strided_slice %241 {offsets = [0, 0], sizes = [24, 8], strides = [1, 1]} : vector<24x64xf32> to vector<24x8xf32>
    %cst_92 = arith.constant dense<0.000000e+00> : vector<16x8xf32>
    %259 = tpu.matmul %257, %258, %cst_92 {dimension_numbers = #tpu.dot_dimension_numbers<[1], [0], [0], [1], [0, 0, 1, 1], [], []>} : vector<16x24xf32>, vector<24x8xf32>, vector<16x8xf32> -> vector<16x8xf32>
    %c0_93 = arith.constant 0 : index
    %c0_94 = arith.constant 0 : index
    %260 = vector.load %arg13[%c0_93, %c0_94] : memref<16x64xf32, #tpu.memory_space<vmem>>, vector<16x8xf32>
    tpu.vector_store %arg13[%c0_93, %c0_94], %259 {strides = array<i32>} : memref<16x64xf32, #tpu.memory_space<vmem>>, vector<16x8xf32>,
    %261 = vector.extract_strided_slice %232 {offsets = [0, 8], sizes = [16, 8], strides = [1, 1]} : vector<16x64xf32> to vector<16x8xf32>
    %262 = vector.extract_strided_slice %240 {offsets = [0, 8], sizes = [24, 8], strides = [1, 1]} : vector<24x64xf32> to vector<24x8xf32>
    %cst_95 = arith.constant dense<0.000000e+00> : vector<16x24xf32>
    %263 = tpu.matmul %261, %262, %cst_95 {dimension_numbers = #tpu.dot_dimension_numbers<[1], [1], [0], [0], [0, 0, 1, 0], [], []>} : vector<16x8xf32>, vector<24x8xf32>, vector<16x24xf32> -> vector<16x24xf32>
    %cst_96 = arith.constant 0.353553385 : f32
    %264 = vector.broadcast %cst_96 : f32 to vector<16x24xf32>
    %265 = arith.mulf %263, %264 : vector<16x24xf32>
    %266 = arith.addf %265, %3 : vector<16x24xf32>
    %cst_97 = arith.constant dense<0xFF800000> : vector<16xf32>
    %267 = vector.multi_reduction <maximumf>, %266, %cst_97 [1] : vector<16x24xf32> to vector<16xf32>
    %268 = vector.shape_cast %267 : vector<16xf32> to vector<16x1xf32>
    %269 = vector.broadcast %268 : vector<16x1xf32> to vector<16x24xf32>
    %270 = arith.subf %266, %269 : vector<16x24xf32>
    %271 = math.exp %270 : vector<16x24xf32>
    %cst_98 = arith.constant dense<0.000000e+00> : vector<16xf32>
    %272 = vector.multi_reduction <add>, %271, %cst_98 [1] : vector<16x24xf32> to vector<16xf32>
    %273 = vector.shape_cast %272 : vector<16xf32> to vector<16x1xf32>
    %274 = tpu.reciprocal %273 {approx = true} : vector<16x1xf32> -> vector<16x1xf32>
    %275 = vector.broadcast %274 : vector<16x1xf32> to vector<16x24xf32>
    %276 = arith.mulf %271, %275 : vector<16x24xf32>
    %277 = vector.extract_strided_slice %241 {offsets = [0, 8], sizes = [24, 8], strides = [1, 1]} : vector<24x64xf32> to vector<24x8xf32>
    %cst_99 = arith.constant dense<0.000000e+00> : vector<16x8xf32>
    %278 = tpu.matmul %276, %277, %cst_99 {dimension_numbers = #tpu.dot_dimension_numbers<[1], [0], [0], [1], [0, 0, 1, 1], [], []>} : vector<16x24xf32>, vector<24x8xf32>, vector<16x8xf32> -> vector<16x8xf32>
    %c0_100 = arith.constant 0 : index
    %c8_101 = arith.constant 8 : index
    %279 = vector.load %arg13[%c0_100, %c8_101] : memref<16x64xf32, #tpu.memory_space<vmem>>, vector<16x8xf32>
    tpu.vector_store %arg13[%c0_100, %c8_101], %278 {strides = array<i32>} : memref<16x64xf32, #tpu.memory_space<vmem>>, vector<16x8xf32>,
    %280 = vector.extract_strided_slice %232 {offsets = [0, 16], sizes = [16, 8], strides = [1, 1]} : vector<16x64xf32> to vector<16x8xf32>
    %281 = vector.extract_strided_slice %240 {offsets = [0, 16], sizes = [24, 8], strides = [1, 1]} : vector<24x64xf32> to vector<24x8xf32>
    %cst_102 = arith.constant dense<0.000000e+00> : vector<16x24xf32>
    %282 = tpu.matmul %280, %281, %cst_102 {dimension_numbers = #tpu.dot_dimension_numbers<[1], [1], [0], [0], [0, 0, 1, 0], [], []>} : vector<16x8xf32>, vector<24x8xf32>, vector<16x24xf32> -> vector<16x24xf32>
    %cst_103 = arith.constant 0.353553385 : f32
    %283 = vector.broadcast %cst_103 : f32 to vector<16x24xf32>
    %284 = arith.mulf %282, %283 : vector<16x24xf32>
    %285 = arith.addf %284, %3 : vector<16x24xf32>
    %cst_104 = arith.constant dense<0xFF800000> : vector<16xf32>
    %286 = vector.multi_reduction <maximumf>, %285, %cst_104 [1] : vector<16x24xf32> to vector<16xf32>
    %287 = vector.shape_cast %286 : vector<16xf32> to vector<16x1xf32>
    %288 = vector.broadcast %287 : vector<16x1xf32> to vector<16x24xf32>
    %289 = arith.subf %285, %288 : vector<16x24xf32>
    %290 = math.exp %289 : vector<16x24xf32>
    %cst_105 = arith.constant dense<0.000000e+00> : vector<16xf32>
    %291 = vector.multi_reduction <add>, %290, %cst_105 [1] : vector<16x24xf32> to vector<16xf32>
    %292 = vector.shape_cast %291 : vector<16xf32> to vector<16x1xf32>
    %293 = tpu.reciprocal %292 {approx = true} : vector<16x1xf32> -> vector<16x1xf32>
    %294 = vector.broadcast %293 : vector<16x1xf32> to vector<16x24xf32>
    %295 = arith.mulf %290, %294 : vector<16x24xf32>
    %296 = vector.extract_strided_slice %241 {offsets = [0, 16], sizes = [24, 8], strides = [1, 1]} : vector<24x64xf32> to vector<24x8xf32>
    %cst_106 = arith.constant dense<0.000000e+00> : vector<16x8xf32>
    %297 = tpu.matmul %295, %296, %cst_106 {dimension_numbers = #tpu.dot_dimension_numbers<[1], [0], [0], [1], [0, 0, 1, 1], [], []>} : vector<16x24xf32>, vector<24x8xf32>, vector<16x8xf32> -> vector<16x8xf32>
    %c0_107 = arith.constant 0 : index
    %c16_108 = arith.constant 16 : index
    %298 = vector.load %arg13[%c0_107, %c16_108] : memref<16x64xf32, #tpu.memory_space<vmem>>, vector<16x8xf32>
    tpu.vector_store %arg13[%c0_107, %c16_108], %297 {strides = array<i32>} : memref<16x64xf32, #tpu.memory_space<vmem>>, vector<16x8xf32>,
    %299 = vector.extract_strided_slice %232 {offsets = [0, 24], sizes = [16, 8], strides = [1, 1]} : vector<16x64xf32> to vector<16x8xf32>
    %300 = vector.extract_strided_slice %240 {offsets = [0, 24], sizes = [24, 8], strides = [1, 1]} : vector<24x64xf32> to vector<24x8xf32>
    %cst_109 = arith.constant dense<0.000000e+00> : vector<16x24xf32>
    %301 = tpu.matmul %299, %300, %cst_109 {dimension_numbers = #tpu.dot_dimension_numbers<[1], [1], [0], [0], [0, 0, 1, 0], [], []>} : vector<16x8xf32>, vector<24x8xf32>, vector<16x24xf32> -> vector<16x24xf32>
    %cst_110 = arith.constant 0.353553385 : f32
    %302 = vector.broadcast %cst_110 : f32 to vector<16x24xf32>
    %303 = arith.mulf %301, %302 : vector<16x24xf32>
    %304 = arith.addf %303, %3 : vector<16x24xf32>
    %cst_111 = arith.constant dense<0xFF800000> : vector<16xf32>
    %305 = vector.multi_reduction <maximumf>, %304, %cst_111 [1] : vector<16x24xf32> to vector<16xf32>
    %306 = vector.shape_cast %305 : vector<16xf32> to vector<16x1xf32>
    %307 = vector.broadcast %306 : vector<16x1xf32> to vector<16x24xf32>
    %308 = arith.subf %304, %307 : vector<16x24xf32>
    %309 = math.exp %308 : vector<16x24xf32>
    %cst_112 = arith.constant dense<0.000000e+00> : vector<16xf32>
    %310 = vector.multi_reduction <add>, %309, %cst_112 [1] : vector<16x24xf32> to vector<16xf32>
    %311 = vector.shape_cast %310 : vector<16xf32> to vector<16x1xf32>
    %312 = tpu.reciprocal %311 {approx = true} : vector<16x1xf32> -> vector<16x1xf32>
    %313 = vector.broadcast %312 : vector<16x1xf32> to vector<16x24xf32>
    %314 = arith.mulf %309, %313 : vector<16x24xf32>
    %315 = vector.extract_strided_slice %241 {offsets = [0, 24], sizes = [24, 8], strides = [1, 1]} : vector<24x64xf32> to vector<24x8xf32>
    %cst_113 = arith.constant dense<0.000000e+00> : vector<16x8xf32>
    %316 = tpu.matmul %314, %315, %cst_113 {dimension_numbers = #tpu.dot_dimension_numbers<[1], [0], [0], [1], [0, 0, 1, 1], [], []>} : vector<16x24xf32>, vector<24x8xf32>, vector<16x8xf32> -> vector<16x8xf32>
    %c0_114 = arith.constant 0 : index
    %c24_115 = arith.constant 24 : index
    %317 = vector.load %arg13[%c0_114, %c24_115] : memref<16x64xf32, #tpu.memory_space<vmem>>, vector<16x8xf32>
    tpu.vector_store %arg13[%c0_114, %c24_115], %316 {strides = array<i32>} : memref<16x64xf32, #tpu.memory_space<vmem>>, vector<16x8xf32>,
    %318 = vector.extract_strided_slice %232 {offsets = [0, 32], sizes = [16, 8], strides = [1, 1]} : vector<16x64xf32> to vector<16x8xf32>
    %319 = vector.extract_strided_slice %240 {offsets = [0, 32], sizes = [24, 8], strides = [1, 1]} : vector<24x64xf32> to vector<24x8xf32>
    %cst_116 = arith.constant dense<0.000000e+00> : vector<16x24xf32>
    %320 = tpu.matmul %318, %319, %cst_116 {dimension_numbers = #tpu.dot_dimension_numbers<[1], [1], [0], [0], [0, 0, 1, 0], [], []>} : vector<16x8xf32>, vector<24x8xf32>, vector<16x24xf32> -> vector<16x24xf32>
    %cst_117 = arith.constant 0.353553385 : f32
    %321 = vector.broadcast %cst_117 : f32 to vector<16x24xf32>
    %322 = arith.mulf %320, %321 : vector<16x24xf32>
    %323 = arith.addf %322, %3 : vector<16x24xf32>
    %cst_118 = arith.constant dense<0xFF800000> : vector<16xf32>
    %324 = vector.multi_reduction <maximumf>, %323, %cst_118 [1] : vector<16x24xf32> to vector<16xf32>
    %325 = vector.shape_cast %324 : vector<16xf32> to vector<16x1xf32>
    %326 = vector.broadcast %325 : vector<16x1xf32> to vector<16x24xf32>
    %327 = arith.subf %323, %326 : vector<16x24xf32>
    %328 = math.exp %327 : vector<16x24xf32>
    %cst_119 = arith.constant dense<0.000000e+00> : vector<16xf32>
    %329 = vector.multi_reduction <add>, %328, %cst_119 [1] : vector<16x24xf32> to vector<16xf32>
    %330 = vector.shape_cast %329 : vector<16xf32> to vector<16x1xf32>
    %331 = tpu.reciprocal %330 {approx = true} : vector<16x1xf32> -> vector<16x1xf32>
    %332 = vector.broadcast %331 : vector<16x1xf32> to vector<16x24xf32>
    %333 = arith.mulf %328, %332 : vector<16x24xf32>
    %334 = vector.extract_strided_slice %241 {offsets = [0, 32], sizes = [24, 8], strides = [1, 1]} : vector<24x64xf32> to vector<24x8xf32>
    %cst_120 = arith.constant dense<0.000000e+00> : vector<16x8xf32>
    %335 = tpu.matmul %333, %334, %cst_120 {dimension_numbers = #tpu.dot_dimension_numbers<[1], [0], [0], [1], [0, 0, 1, 1], [], []>} : vector<16x24xf32>, vector<24x8xf32>, vector<16x8xf32> -> vector<16x8xf32>
    %c0_121 = arith.constant 0 : index
    %c32_122 = arith.constant 32 : index
    %336 = vector.load %arg13[%c0_121, %c32_122] : memref<16x64xf32, #tpu.memory_space<vmem>>, vector<16x8xf32>
    tpu.vector_store %arg13[%c0_121, %c32_122], %335 {strides = array<i32>} : memref<16x64xf32, #tpu.memory_space<vmem>>, vector<16x8xf32>,
    %337 = vector.extract_strided_slice %232 {offsets = [0, 40], sizes = [16, 8], strides = [1, 1]} : vector<16x64xf32> to vector<16x8xf32>
    %338 = vector.extract_strided_slice %240 {offsets = [0, 40], sizes = [24, 8], strides = [1, 1]} : vector<24x64xf32> to vector<24x8xf32>
    %cst_123 = arith.constant dense<0.000000e+00> : vector<16x24xf32>
    %339 = tpu.matmul %337, %338, %cst_123 {dimension_numbers = #tpu.dot_dimension_numbers<[1], [1], [0], [0], [0, 0, 1, 0], [], []>} : vector<16x8xf32>, vector<24x8xf32>, vector<16x24xf32> -> vector<16x24xf32>
    %cst_124 = arith.constant 0.353553385 : f32
    %340 = vector.broadcast %cst_124 : f32 to vector<16x24xf32>
    %341 = arith.mulf %339, %340 : vector<16x24xf32>
    %342 = arith.addf %341, %3 : vector<16x24xf32>
    %cst_125 = arith.constant dense<0xFF800000> : vector<16xf32>
    %343 = vector.multi_reduction <maximumf>, %342, %cst_125 [1] : vector<16x24xf32> to vector<16xf32>
    %344 = vector.shape_cast %343 : vector<16xf32> to vector<16x1xf32>
    %345 = vector.broadcast %344 : vector<16x1xf32> to vector<16x24xf32>
    %346 = arith.subf %342, %345 : vector<16x24xf32>
    %347 = math.exp %346 : vector<16x24xf32>
    %cst_126 = arith.constant dense<0.000000e+00> : vector<16xf32>
    %348 = vector.multi_reduction <add>, %347, %cst_126 [1] : vector<16x24xf32> to vector<16xf32>
    %349 = vector.shape_cast %348 : vector<16xf32> to vector<16x1xf32>
    %350 = tpu.reciprocal %349 {approx = true} : vector<16x1xf32> -> vector<16x1xf32>
    %351 = vector.broadcast %350 : vector<16x1xf32> to vector<16x24xf32>
    %352 = arith.mulf %347, %351 : vector<16x24xf32>
    %353 = vector.extract_strided_slice %241 {offsets = [0, 40], sizes = [24, 8], strides = [1, 1]} : vector<24x64xf32> to vector<24x8xf32>
    %cst_127 = arith.constant dense<0.000000e+00> : vector<16x8xf32>
    %354 = tpu.matmul %352, %353, %cst_127 {dimension_numbers = #tpu.dot_dimension_numbers<[1], [0], [0], [1], [0, 0, 1, 1], [], []>} : vector<16x24xf32>, vector<24x8xf32>, vector<16x8xf32> -> vector<16x8xf32>
    %c0_128 = arith.constant 0 : index
    %c40_129 = arith.constant 40 : index
    %355 = vector.load %arg13[%c0_128, %c40_129] : memref<16x64xf32, #tpu.memory_space<vmem>>, vector<16x8xf32>
    tpu.vector_store %arg13[%c0_128, %c40_129], %354 {strides = array<i32>} : memref<16x64xf32, #tpu.memory_space<vmem>>, vector<16x8xf32>,
    %356 = vector.extract_strided_slice %232 {offsets = [0, 48], sizes = [16, 8], strides = [1, 1]} : vector<16x64xf32> to vector<16x8xf32>
    %357 = vector.extract_strided_slice %240 {offsets = [0, 48], sizes = [24, 8], strides = [1, 1]} : vector<24x64xf32> to vector<24x8xf32>
    %cst_130 = arith.constant dense<0.000000e+00> : vector<16x24xf32>
    %358 = tpu.matmul %356, %357, %cst_130 {dimension_numbers = #tpu.dot_dimension_numbers<[1], [1], [0], [0], [0, 0, 1, 0], [], []>} : vector<16x8xf32>, vector<24x8xf32>, vector<16x24xf32> -> vector<16x24xf32>
    %cst_131 = arith.constant 0.353553385 : f32
    %359 = vector.broadcast %cst_131 : f32 to vector<16x24xf32>
    %360 = arith.mulf %358, %359 : vector<16x24xf32>
    %361 = arith.addf %360, %3 : vector<16x24xf32>
    %cst_132 = arith.constant dense<0xFF800000> : vector<16xf32>
    %362 = vector.multi_reduction <maximumf>, %361, %cst_132 [1] : vector<16x24xf32> to vector<16xf32>
    %363 = vector.shape_cast %362 : vector<16xf32> to vector<16x1xf32>
    %364 = vector.broadcast %363 : vector<16x1xf32> to vector<16x24xf32>
    %365 = arith.subf %361, %364 : vector<16x24xf32>
    %366 = math.exp %365 : vector<16x24xf32>
    %cst_133 = arith.constant dense<0.000000e+00> : vector<16xf32>
    %367 = vector.multi_reduction <add>, %366, %cst_133 [1] : vector<16x24xf32> to vector<16xf32>
    %368 = vector.shape_cast %367 : vector<16xf32> to vector<16x1xf32>
    %369 = tpu.reciprocal %368 {approx = true} : vector<16x1xf32> -> vector<16x1xf32>
    %370 = vector.broadcast %369 : vector<16x1xf32> to vector<16x24xf32>
    %371 = arith.mulf %366, %370 : vector<16x24xf32>
    %372 = vector.extract_strided_slice %241 {offsets = [0, 48], sizes = [24, 8], strides = [1, 1]} : vector<24x64xf32> to vector<24x8xf32>
    %cst_134 = arith.constant dense<0.000000e+00> : vector<16x8xf32>
    %373 = tpu.matmul %371, %372, %cst_134 {dimension_numbers = #tpu.dot_dimension_numbers<[1], [0], [0], [1], [0, 0, 1, 1], [], []>} : vector<16x24xf32>, vector<24x8xf32>, vector<16x8xf32> -> vector<16x8xf32>
    %c0_135 = arith.constant 0 : index
    %c48_136 = arith.constant 48 : index
    %374 = vector.load %arg13[%c0_135, %c48_136] : memref<16x64xf32, #tpu.memory_space<vmem>>, vector<16x8xf32>
    tpu.vector_store %arg13[%c0_135, %c48_136], %373 {strides = array<i32>} : memref<16x64xf32, #tpu.memory_space<vmem>>, vector<16x8xf32>,
    %375 = vector.extract_strided_slice %232 {offsets = [0, 56], sizes = [16, 8], strides = [1, 1]} : vector<16x64xf32> to vector<16x8xf32>
    %376 = vector.extract_strided_slice %240 {offsets = [0, 56], sizes = [24, 8], strides = [1, 1]} : vector<24x64xf32> to vector<24x8xf32>
    %cst_137 = arith.constant dense<0.000000e+00> : vector<16x24xf32>
    %377 = tpu.matmul %375, %376, %cst_137 {dimension_numbers = #tpu.dot_dimension_numbers<[1], [1], [0], [0], [0, 0, 1, 0], [], []>} : vector<16x8xf32>, vector<24x8xf32>, vector<16x24xf32> -> vector<16x24xf32>
    %cst_138 = arith.constant 0.353553385 : f32
    %378 = vector.broadcast %cst_138 : f32 to vector<16x24xf32>
    %379 = arith.mulf %377, %378 : vector<16x24xf32>
    %380 = arith.addf %379, %3 : vector<16x24xf32>
    %cst_139 = arith.constant dense<0xFF800000> : vector<16xf32>
    %381 = vector.multi_reduction <maximumf>, %380, %cst_139 [1] : vector<16x24xf32> to vector<16xf32>
    %382 = vector.shape_cast %381 : vector<16xf32> to vector<16x1xf32>
    %383 = vector.broadcast %382 : vector<16x1xf32> to vector<16x24xf32>
    %384 = arith.subf %380, %383 : vector<16x24xf32>
    %385 = math.exp %384 : vector<16x24xf32>
    %cst_140 = arith.constant dense<0.000000e+00> : vector<16xf32>
    %386 = vector.multi_reduction <add>, %385, %cst_140 [1] : vector<16x24xf32> to vector<16xf32>
    %387 = vector.shape_cast %386 : vector<16xf32> to vector<16x1xf32>
    %388 = tpu.reciprocal %387 {approx = true} : vector<16x1xf32> -> vector<16x1xf32>
    %389 = vector.broadcast %388 : vector<16x1xf32> to vector<16x24xf32>
    %390 = arith.mulf %385, %389 : vector<16x24xf32>
    %391 = vector.extract_strided_slice %241 {offsets = [0, 56], sizes = [24, 8], strides = [1, 1]} : vector<24x64xf32> to vector<24x8xf32>
    %cst_141 = arith.constant dense<0.000000e+00> : vector<16x8xf32>
    %392 = tpu.matmul %390, %391, %cst_141 {dimension_numbers = #tpu.dot_dimension_numbers<[1], [0], [0], [1], [0, 0, 1, 1], [], []>} : vector<16x24xf32>, vector<24x8xf32>, vector<16x8xf32> -> vector<16x8xf32>
    %c0_142 = arith.constant 0 : index
    %c56_143 = arith.constant 56 : index
    %393 = vector.load %arg13[%c0_142, %c56_143] : memref<16x64xf32, #tpu.memory_space<vmem>>, vector<16x8xf32>
    tpu.vector_store %arg13[%c0_142, %c56_143], %392 {strides = array<i32>} : memref<16x64xf32, #tpu.memory_space<vmem>>, vector<16x8xf32>,
    %c0_144 = arith.constant 0 : index
    %c0_145 = arith.constant 0 : index
    %394 = vector.load %arg13[%c0_144, %c0_145] : memref<16x64xf32, #tpu.memory_space<vmem>>, vector<16x64xf32>
    %c2 = arith.constant 2 : index
    %c0_146 = arith.constant 0 : index
    %c0_147 = arith.constant 0 : index
    %395 = vector.load %arg5[%c2, %c0_146, %c0_147] : memref<6x64x64xbf16, #tpu.memory_space<vmem>>, vector<1x64x64xbf16>
    %396 = vector.shape_cast %395 : vector<1x64x64xbf16> to vector<64x64xbf16>
    %397 = arith.extf %396 : vector<64x64xbf16> to vector<64x64xf32>
    %cst_148 = arith.constant dense<0.000000e+00> : vector<16x64xf32>
    %398 = tpu.matmul %394, %397, %cst_148 {dimension_numbers = #tpu.dot_dimension_numbers<[1], [0], [0], [1], [0, 0, 1, 1], [], []>} : vector<16x64xf32>, vector<64x64xf32>, vector<16x64xf32> -> vector<16x64xf32>
    %399 = arith.addf %201, %398 : vector<16x64xf32>
    %400 = vector.extract_strided_slice %5 {offsets = [2, 0], sizes = [1, 64], strides = [1, 1]} : vector<8x64xf32> to vector<1x64xf32>
    %401 = vector.broadcast %400 : vector<1x64xf32> to vector<16x64xf32>
    %402 = arith.addf %399, %401 : vector<16x64xf32>
    %403 = vector.extract_strided_slice %6 {offsets = [2, 0], sizes = [1, 64], strides = [1, 1]} : vector<14x64xf32> to vector<1x64xf32>
    %404 = vector.extract_strided_slice %6 {offsets = [9, 0], sizes = [1, 64], strides = [1, 1]} : vector<14x64xf32> to vector<1x64xf32>
    %cst_149 = arith.constant dense<0.000000e+00> : vector<16xf32>
    %405 = vector.multi_reduction <add>, %402, %cst_149 [1] : vector<16x64xf32> to vector<16xf32>
    %406 = vector.shape_cast %405 : vector<16xf32> to vector<16x1xf32>
    %cst_150 = arith.constant 6.400000e+01 : f32
    %407 = vector.broadcast %cst_150 : f32 to vector<16x1xf32>
    %408 = arith.divf %406, %407 : vector<16x1xf32>
    %409 = vector.broadcast %408 : vector<16x1xf32> to vector<16x64xf32>
    %410 = arith.subf %402, %409 : vector<16x64xf32>
    %411 = arith.mulf %410, %410 : vector<16x64xf32>
    %cst_151 = arith.constant dense<0.000000e+00> : vector<16xf32>
    %412 = vector.multi_reduction <add>, %411, %cst_151 [1] : vector<16x64xf32> to vector<16xf32>
    %413 = vector.shape_cast %412 : vector<16xf32> to vector<16x1xf32>
    %cst_152 = arith.constant 0.0158730168 : f32
    %414 = vector.broadcast %cst_152 : f32 to vector<16x1xf32>
    %415 = arith.mulf %413, %414 : vector<16x1xf32>
    %416 = vector.broadcast %408 : vector<16x1xf32> to vector<16x64xf32>
    %417 = arith.subf %402, %416 : vector<16x64xf32>
    %418 = vector.broadcast %403 : vector<1x64xf32> to vector<16x64xf32>
    %419 = arith.mulf %418, %417 : vector<16x64xf32>
    %420 = math.sqrt %415 : vector<16x1xf32>
    %cst_153 = arith.constant 9.99999997E-7 : f32
    %421 = vector.broadcast %cst_153 : f32 to vector<16x1xf32>
    %422 = arith.addf %420, %421 : vector<16x1xf32>
    %423 = vector.broadcast %422 : vector<16x1xf32> to vector<16x64xf32>
    %424 = arith.divf %419, %423 : vector<16x64xf32>
    %425 = vector.broadcast %404 : vector<1x64xf32> to vector<16x64xf32>
    %426 = arith.addf %424, %425 : vector<16x64xf32>
    %c0_154 = arith.constant 0 : index
    %c0_155 = arith.constant 0 : index
    %c0_156 = arith.constant 0 : index
    %427 = vector.load %arg7[%c0_154, %c0_155, %c0_156] : memref<2x64x256xbf16, #tpu.memory_space<vmem>>, vector<1x64x256xbf16>
    %428 = vector.shape_cast %427 : vector<1x64x256xbf16> to vector<64x256xbf16>
    %429 = arith.extf %428 : vector<64x256xbf16> to vector<64x256xf32>
    %cst_157 = arith.constant dense<0.000000e+00> : vector<16x256xf32>
    %430 = tpu.matmul %426, %429, %cst_157 {dimension_numbers = #tpu.dot_dimension_numbers<[1], [0], [0], [1], [0, 0, 1, 1], [], []>} : vector<16x64xf32>, vector<64x256xf32>, vector<16x256xf32> -> vector<16x256xf32>
    %431 = vector.extract_strided_slice %4 {offsets = [2, 0], sizes = [1, 256], strides = [1, 1]} : vector<6x256xf32> to vector<1x256xf32>
    %432 = vector.broadcast %431 : vector<1x256xf32> to vector<16x256xf32>
    %433 = arith.addf %430, %432 : vector<16x256xf32>
    %cst_158 = arith.constant 0.000000e+00 : f32
    %434 = vector.broadcast %cst_158 : f32 to vector<16x256xf32>
    %435 = arith.maximumf %433, %434 : vector<16x256xf32>
    %c0_159 = arith.constant 0 : index
    %c0_160 = arith.constant 0 : index
    %c0_161 = arith.constant 0 : index
    %436 = vector.load %arg8[%c0_159, %c0_160, %c0_161] : memref<2x256x64xbf16, #tpu.memory_space<vmem>>, vector<1x256x64xbf16>
    %437 = vector.shape_cast %436 : vector<1x256x64xbf16> to vector<256x64xbf16>
    %438 = arith.extf %437 : vector<256x64xbf16> to vector<256x64xf32>
    %cst_162 = arith.constant dense<0.000000e+00> : vector<16x64xf32>
    %439 = tpu.matmul %435, %438, %cst_162 {dimension_numbers = #tpu.dot_dimension_numbers<[1], [0], [0], [1], [0, 0, 1, 1], [], []>} : vector<16x256xf32>, vector<256x64xf32>, vector<16x64xf32> -> vector<16x64xf32>
    %440 = arith.addf %402, %439 : vector<16x64xf32>
    %441 = vector.extract_strided_slice %5 {offsets = [3, 0], sizes = [1, 64], strides = [1, 1]} : vector<8x64xf32> to vector<1x64xf32>
    %442 = vector.broadcast %441 : vector<1x64xf32> to vector<16x64xf32>
    %443 = arith.addf %440, %442 : vector<16x64xf32>
    %444 = vector.extract_strided_slice %6 {offsets = [3, 0], sizes = [1, 64], strides = [1, 1]} : vector<14x64xf32> to vector<1x64xf32>
    %445 = vector.extract_strided_slice %6 {offsets = [10, 0], sizes = [1, 64], strides = [1, 1]} : vector<14x64xf32> to vector<1x64xf32>
    %cst_163 = arith.constant dense<0.000000e+00> : vector<16xf32>
    %446 = vector.multi_reduction <add>, %443, %cst_163 [1] : vector<16x64xf32> to vector<16xf32>
    %447 = vector.shape_cast %446 : vector<16xf32> to vector<16x1xf32>
    %cst_164 = arith.constant 6.400000e+01 : f32
    %448 = vector.broadcast %cst_164 : f32 to vector<16x1xf32>
    %449 = arith.divf %447, %448 : vector<16x1xf32>
    %450 = vector.broadcast %449 : vector<16x1xf32> to vector<16x64xf32>
    %451 = arith.subf %443, %450 : vector<16x64xf32>
    %452 = arith.mulf %451, %451 : vector<16x64xf32>
    %cst_165 = arith.constant dense<0.000000e+00> : vector<16xf32>
    %453 = vector.multi_reduction <add>, %452, %cst_165 [1] : vector<16x64xf32> to vector<16xf32>
    %454 = vector.shape_cast %453 : vector<16xf32> to vector<16x1xf32>
    %cst_166 = arith.constant 0.0158730168 : f32
    %455 = vector.broadcast %cst_166 : f32 to vector<16x1xf32>
    %456 = arith.mulf %454, %455 : vector<16x1xf32>
    %457 = vector.broadcast %449 : vector<16x1xf32> to vector<16x64xf32>
    %458 = arith.subf %443, %457 : vector<16x64xf32>
    %459 = vector.broadcast %444 : vector<1x64xf32> to vector<16x64xf32>
    %460 = arith.mulf %459, %458 : vector<16x64xf32>
    %461 = math.sqrt %456 : vector<16x1xf32>
    %cst_167 = arith.constant 9.99999997E-7 : f32
    %462 = vector.broadcast %cst_167 : f32 to vector<16x1xf32>
    %463 = arith.addf %461, %462 : vector<16x1xf32>
    %464 = vector.broadcast %463 : vector<16x1xf32> to vector<16x64xf32>
    %465 = arith.divf %460, %464 : vector<16x64xf32>
    %466 = vector.broadcast %445 : vector<1x64xf32> to vector<16x64xf32>
    %467 = arith.addf %465, %466 : vector<16x64xf32>
    %c1_168 = arith.constant 1 : index
    %c0_169 = arith.constant 0 : index
    %c0_170 = arith.constant 0 : index
    %468 = vector.load %arg4[%c1_168, %c0_169, %c0_170] : memref<2x64x192xbf16, #tpu.memory_space<vmem>>, vector<1x64x192xbf16>
    %469 = vector.shape_cast %468 : vector<1x64x192xbf16> to vector<64x192xbf16>
    %470 = arith.extf %469 : vector<64x192xbf16> to vector<64x192xf32>
    %cst_171 = arith.constant dense<0.000000e+00> : vector<16x192xf32>
    %471 = tpu.matmul %467, %470, %cst_171 {dimension_numbers = #tpu.dot_dimension_numbers<[1], [0], [0], [1], [0, 0, 1, 1], [], []>} : vector<16x64xf32>, vector<64x192xf32>, vector<16x192xf32> -> vector<16x192xf32>
    %472 = vector.extract_strided_slice %4 {offsets = [3, 0], sizes = [1, 192], strides = [1, 1]} : vector<6x256xf32> to vector<1x192xf32>
    %473 = vector.broadcast %472 : vector<1x192xf32> to vector<16x192xf32>
    %474 = arith.addf %471, %473 : vector<16x192xf32>
    %475 = vector.extract_strided_slice %474 {offsets = [0, 0], sizes = [16, 64], strides = [1, 1]} : vector<16x192xf32> to vector<16x64xf32>
    %476 = vector.extract_strided_slice %474 {offsets = [0, 64], sizes = [16, 64], strides = [1, 1]} : vector<16x192xf32> to vector<16x64xf32>
    %477 = vector.extract_strided_slice %474 {offsets = [0, 128], sizes = [16, 64], strides = [1, 1]} : vector<16x192xf32> to vector<16x64xf32>
    %478 = vector.extract_strided_slice %475 {offsets = [0, 0], sizes = [16, 8], strides = [1, 1]} : vector<16x64xf32> to vector<16x8xf32>
    %479 = vector.extract_strided_slice %476 {offsets = [0, 0], sizes = [16, 8], strides = [1, 1]} : vector<16x64xf32> to vector<16x8xf32>
    %cst_172 = arith.constant dense<0.000000e+00> : vector<16x16xf32>
    %480 = tpu.matmul %478, %479, %cst_172 {dimension_numbers = #tpu.dot_dimension_numbers<[1], [1], [0], [0], [0, 0, 1, 0], [], []>} : vector<16x8xf32>, vector<16x8xf32>, vector<16x16xf32> -> vector<16x16xf32>
    %cst_173 = arith.constant 0.353553385 : f32
    %481 = vector.broadcast %cst_173 : f32 to vector<16x16xf32>
    %482 = arith.mulf %480, %481 : vector<16x16xf32>
    %483 = arith.addf %482, %2 : vector<16x16xf32>
    %cst_174 = arith.constant dense<0xFF800000> : vector<16xf32>
    %484 = vector.multi_reduction <maximumf>, %483, %cst_174 [1] : vector<16x16xf32> to vector<16xf32>
    %485 = vector.shape_cast %484 : vector<16xf32> to vector<16x1xf32>
    %486 = vector.broadcast %485 : vector<16x1xf32> to vector<16x16xf32>
    %487 = arith.subf %483, %486 : vector<16x16xf32>
    %488 = math.exp %487 : vector<16x16xf32>
    %cst_175 = arith.constant dense<0.000000e+00> : vector<16xf32>
    %489 = vector.multi_reduction <add>, %488, %cst_175 [1] : vector<16x16xf32> to vector<16xf32>
    %490 = vector.shape_cast %489 : vector<16xf32> to vector<16x1xf32>
    %491 = tpu.reciprocal %490 {approx = true} : vector<16x1xf32> -> vector<16x1xf32>
    %492 = vector.broadcast %491 : vector<16x1xf32> to vector<16x16xf32>
    %493 = arith.mulf %488, %492 : vector<16x16xf32>
    %494 = vector.extract_strided_slice %477 {offsets = [0, 0], sizes = [16, 8], strides = [1, 1]} : vector<16x64xf32> to vector<16x8xf32>
    %cst_176 = arith.constant dense<0.000000e+00> : vector<16x8xf32>
    %495 = tpu.matmul %493, %494, %cst_176 {dimension_numbers = #tpu.dot_dimension_numbers<[1], [0], [0], [1], [0, 0, 1, 1], [], []>} : vector<16x16xf32>, vector<16x8xf32>, vector<16x8xf32> -> vector<16x8xf32>
    %c0_177 = arith.constant 0 : index
    %c0_178 = arith.constant 0 : index
    %496 = vector.load %arg13[%c0_177, %c0_178] : memref<16x64xf32, #tpu.memory_space<vmem>>, vector<16x8xf32>
    tpu.vector_store %arg13[%c0_177, %c0_178], %495 {strides = array<i32>} : memref<16x64xf32, #tpu.memory_space<vmem>>, vector<16x8xf32>,
    %497 = vector.extract_strided_slice %475 {offsets = [0, 8], sizes = [16, 8], strides = [1, 1]} : vector<16x64xf32> to vector<16x8xf32>
    %498 = vector.extract_strided_slice %476 {offsets = [0, 8], sizes = [16, 8], strides = [1, 1]} : vector<16x64xf32> to vector<16x8xf32>
    %cst_179 = arith.constant dense<0.000000e+00> : vector<16x16xf32>
    %499 = tpu.matmul %497, %498, %cst_179 {dimension_numbers = #tpu.dot_dimension_numbers<[1], [1], [0], [0], [0, 0, 1, 0], [], []>} : vector<16x8xf32>, vector<16x8xf32>, vector<16x16xf32> -> vector<16x16xf32>
    %cst_180 = arith.constant 0.353553385 : f32
    %500 = vector.broadcast %cst_180 : f32 to vector<16x16xf32>
    %501 = arith.mulf %499, %500 : vector<16x16xf32>
    %502 = arith.addf %501, %2 : vector<16x16xf32>
    %cst_181 = arith.constant dense<0xFF800000> : vector<16xf32>
    %503 = vector.multi_reduction <maximumf>, %502, %cst_181 [1] : vector<16x16xf32> to vector<16xf32>
    %504 = vector.shape_cast %503 : vector<16xf32> to vector<16x1xf32>
    %505 = vector.broadcast %504 : vector<16x1xf32> to vector<16x16xf32>
    %506 = arith.subf %502, %505 : vector<16x16xf32>
    %507 = math.exp %506 : vector<16x16xf32>
    %cst_182 = arith.constant dense<0.000000e+00> : vector<16xf32>
    %508 = vector.multi_reduction <add>, %507, %cst_182 [1] : vector<16x16xf32> to vector<16xf32>
    %509 = vector.shape_cast %508 : vector<16xf32> to vector<16x1xf32>
    %510 = tpu.reciprocal %509 {approx = true} : vector<16x1xf32> -> vector<16x1xf32>
    %511 = vector.broadcast %510 : vector<16x1xf32> to vector<16x16xf32>
    %512 = arith.mulf %507, %511 : vector<16x16xf32>
    %513 = vector.extract_strided_slice %477 {offsets = [0, 8], sizes = [16, 8], strides = [1, 1]} : vector<16x64xf32> to vector<16x8xf32>
    %cst_183 = arith.constant dense<0.000000e+00> : vector<16x8xf32>
    %514 = tpu.matmul %512, %513, %cst_183 {dimension_numbers = #tpu.dot_dimension_numbers<[1], [0], [0], [1], [0, 0, 1, 1], [], []>} : vector<16x16xf32>, vector<16x8xf32>, vector<16x8xf32> -> vector<16x8xf32>
    %c0_184 = arith.constant 0 : index
    %c8_185 = arith.constant 8 : index
    %515 = vector.load %arg13[%c0_184, %c8_185] : memref<16x64xf32, #tpu.memory_space<vmem>>, vector<16x8xf32>
    tpu.vector_store %arg13[%c0_184, %c8_185], %514 {strides = array<i32>} : memref<16x64xf32, #tpu.memory_space<vmem>>, vector<16x8xf32>,
    %516 = vector.extract_strided_slice %475 {offsets = [0, 16], sizes = [16, 8], strides = [1, 1]} : vector<16x64xf32> to vector<16x8xf32>
    %517 = vector.extract_strided_slice %476 {offsets = [0, 16], sizes = [16, 8], strides = [1, 1]} : vector<16x64xf32> to vector<16x8xf32>
    %cst_186 = arith.constant dense<0.000000e+00> : vector<16x16xf32>
    %518 = tpu.matmul %516, %517, %cst_186 {dimension_numbers = #tpu.dot_dimension_numbers<[1], [1], [0], [0], [0, 0, 1, 0], [], []>} : vector<16x8xf32>, vector<16x8xf32>, vector<16x16xf32> -> vector<16x16xf32>
    %cst_187 = arith.constant 0.353553385 : f32
    %519 = vector.broadcast %cst_187 : f32 to vector<16x16xf32>
    %520 = arith.mulf %518, %519 : vector<16x16xf32>
    %521 = arith.addf %520, %2 : vector<16x16xf32>
    %cst_188 = arith.constant dense<0xFF800000> : vector<16xf32>
    %522 = vector.multi_reduction <maximumf>, %521, %cst_188 [1] : vector<16x16xf32> to vector<16xf32>
    %523 = vector.shape_cast %522 : vector<16xf32> to vector<16x1xf32>
    %524 = vector.broadcast %523 : vector<16x1xf32> to vector<16x16xf32>
    %525 = arith.subf %521, %524 : vector<16x16xf32>
    %526 = math.exp %525 : vector<16x16xf32>
    %cst_189 = arith.constant dense<0.000000e+00> : vector<16xf32>
    %527 = vector.multi_reduction <add>, %526, %cst_189 [1] : vector<16x16xf32> to vector<16xf32>
    %528 = vector.shape_cast %527 : vector<16xf32> to vector<16x1xf32>
    %529 = tpu.reciprocal %528 {approx = true} : vector<16x1xf32> -> vector<16x1xf32>
    %530 = vector.broadcast %529 : vector<16x1xf32> to vector<16x16xf32>
    %531 = arith.mulf %526, %530 : vector<16x16xf32>
    %532 = vector.extract_strided_slice %477 {offsets = [0, 16], sizes = [16, 8], strides = [1, 1]} : vector<16x64xf32> to vector<16x8xf32>
    %cst_190 = arith.constant dense<0.000000e+00> : vector<16x8xf32>
    %533 = tpu.matmul %531, %532, %cst_190 {dimension_numbers = #tpu.dot_dimension_numbers<[1], [0], [0], [1], [0, 0, 1, 1], [], []>} : vector<16x16xf32>, vector<16x8xf32>, vector<16x8xf32> -> vector<16x8xf32>
    %c0_191 = arith.constant 0 : index
    %c16_192 = arith.constant 16 : index
    %534 = vector.load %arg13[%c0_191, %c16_192] : memref<16x64xf32, #tpu.memory_space<vmem>>, vector<16x8xf32>
    tpu.vector_store %arg13[%c0_191, %c16_192], %533 {strides = array<i32>} : memref<16x64xf32, #tpu.memory_space<vmem>>, vector<16x8xf32>,
    %535 = vector.extract_strided_slice %475 {offsets = [0, 24], sizes = [16, 8], strides = [1, 1]} : vector<16x64xf32> to vector<16x8xf32>
    %536 = vector.extract_strided_slice %476 {offsets = [0, 24], sizes = [16, 8], strides = [1, 1]} : vector<16x64xf32> to vector<16x8xf32>
    %cst_193 = arith.constant dense<0.000000e+00> : vector<16x16xf32>
    %537 = tpu.matmul %535, %536, %cst_193 {dimension_numbers = #tpu.dot_dimension_numbers<[1], [1], [0], [0], [0, 0, 1, 0], [], []>} : vector<16x8xf32>, vector<16x8xf32>, vector<16x16xf32> -> vector<16x16xf32>
    %cst_194 = arith.constant 0.353553385 : f32
    %538 = vector.broadcast %cst_194 : f32 to vector<16x16xf32>
    %539 = arith.mulf %537, %538 : vector<16x16xf32>
    %540 = arith.addf %539, %2 : vector<16x16xf32>
    %cst_195 = arith.constant dense<0xFF800000> : vector<16xf32>
    %541 = vector.multi_reduction <maximumf>, %540, %cst_195 [1] : vector<16x16xf32> to vector<16xf32>
    %542 = vector.shape_cast %541 : vector<16xf32> to vector<16x1xf32>
    %543 = vector.broadcast %542 : vector<16x1xf32> to vector<16x16xf32>
    %544 = arith.subf %540, %543 : vector<16x16xf32>
    %545 = math.exp %544 : vector<16x16xf32>
    %cst_196 = arith.constant dense<0.000000e+00> : vector<16xf32>
    %546 = vector.multi_reduction <add>, %545, %cst_196 [1] : vector<16x16xf32> to vector<16xf32>
    %547 = vector.shape_cast %546 : vector<16xf32> to vector<16x1xf32>
    %548 = tpu.reciprocal %547 {approx = true} : vector<16x1xf32> -> vector<16x1xf32>
    %549 = vector.broadcast %548 : vector<16x1xf32> to vector<16x16xf32>
    %550 = arith.mulf %545, %549 : vector<16x16xf32>
    %551 = vector.extract_strided_slice %477 {offsets = [0, 24], sizes = [16, 8], strides = [1, 1]} : vector<16x64xf32> to vector<16x8xf32>
    %cst_197 = arith.constant dense<0.000000e+00> : vector<16x8xf32>
    %552 = tpu.matmul %550, %551, %cst_197 {dimension_numbers = #tpu.dot_dimension_numbers<[1], [0], [0], [1], [0, 0, 1, 1], [], []>} : vector<16x16xf32>, vector<16x8xf32>, vector<16x8xf32> -> vector<16x8xf32>
    %c0_198 = arith.constant 0 : index
    %c24_199 = arith.constant 24 : index
    %553 = vector.load %arg13[%c0_198, %c24_199] : memref<16x64xf32, #tpu.memory_space<vmem>>, vector<16x8xf32>
    tpu.vector_store %arg13[%c0_198, %c24_199], %552 {strides = array<i32>} : memref<16x64xf32, #tpu.memory_space<vmem>>, vector<16x8xf32>,
    %554 = vector.extract_strided_slice %475 {offsets = [0, 32], sizes = [16, 8], strides = [1, 1]} : vector<16x64xf32> to vector<16x8xf32>
    %555 = vector.extract_strided_slice %476 {offsets = [0, 32], sizes = [16, 8], strides = [1, 1]} : vector<16x64xf32> to vector<16x8xf32>
    %cst_200 = arith.constant dense<0.000000e+00> : vector<16x16xf32>
    %556 = tpu.matmul %554, %555, %cst_200 {dimension_numbers = #tpu.dot_dimension_numbers<[1], [1], [0], [0], [0, 0, 1, 0], [], []>} : vector<16x8xf32>, vector<16x8xf32>, vector<16x16xf32> -> vector<16x16xf32>
    %cst_201 = arith.constant 0.353553385 : f32
    %557 = vector.broadcast %cst_201 : f32 to vector<16x16xf32>
    %558 = arith.mulf %556, %557 : vector<16x16xf32>
    %559 = arith.addf %558, %2 : vector<16x16xf32>
    %cst_202 = arith.constant dense<0xFF800000> : vector<16xf32>
    %560 = vector.multi_reduction <maximumf>, %559, %cst_202 [1] : vector<16x16xf32> to vector<16xf32>
    %561 = vector.shape_cast %560 : vector<16xf32> to vector<16x1xf32>
    %562 = vector.broadcast %561 : vector<16x1xf32> to vector<16x16xf32>
    %563 = arith.subf %559, %562 : vector<16x16xf32>
    %564 = math.exp %563 : vector<16x16xf32>
    %cst_203 = arith.constant dense<0.000000e+00> : vector<16xf32>
    %565 = vector.multi_reduction <add>, %564, %cst_203 [1] : vector<16x16xf32> to vector<16xf32>
    %566 = vector.shape_cast %565 : vector<16xf32> to vector<16x1xf32>
    %567 = tpu.reciprocal %566 {approx = true} : vector<16x1xf32> -> vector<16x1xf32>
    %568 = vector.broadcast %567 : vector<16x1xf32> to vector<16x16xf32>
    %569 = arith.mulf %564, %568 : vector<16x16xf32>
    %570 = vector.extract_strided_slice %477 {offsets = [0, 32], sizes = [16, 8], strides = [1, 1]} : vector<16x64xf32> to vector<16x8xf32>
    %cst_204 = arith.constant dense<0.000000e+00> : vector<16x8xf32>
    %571 = tpu.matmul %569, %570, %cst_204 {dimension_numbers = #tpu.dot_dimension_numbers<[1], [0], [0], [1], [0, 0, 1, 1], [], []>} : vector<16x16xf32>, vector<16x8xf32>, vector<16x8xf32> -> vector<16x8xf32>
    %c0_205 = arith.constant 0 : index
    %c32_206 = arith.constant 32 : index
    %572 = vector.load %arg13[%c0_205, %c32_206] : memref<16x64xf32, #tpu.memory_space<vmem>>, vector<16x8xf32>
    tpu.vector_store %arg13[%c0_205, %c32_206], %571 {strides = array<i32>} : memref<16x64xf32, #tpu.memory_space<vmem>>, vector<16x8xf32>,
    %573 = vector.extract_strided_slice %475 {offsets = [0, 40], sizes = [16, 8], strides = [1, 1]} : vector<16x64xf32> to vector<16x8xf32>
    %574 = vector.extract_strided_slice %476 {offsets = [0, 40], sizes = [16, 8], strides = [1, 1]} : vector<16x64xf32> to vector<16x8xf32>
    %cst_207 = arith.constant dense<0.000000e+00> : vector<16x16xf32>
    %575 = tpu.matmul %573, %574, %cst_207 {dimension_numbers = #tpu.dot_dimension_numbers<[1], [1], [0], [0], [0, 0, 1, 0], [], []>} : vector<16x8xf32>, vector<16x8xf32>, vector<16x16xf32> -> vector<16x16xf32>
    %cst_208 = arith.constant 0.353553385 : f32
    %576 = vector.broadcast %cst_208 : f32 to vector<16x16xf32>
    %577 = arith.mulf %575, %576 : vector<16x16xf32>
    %578 = arith.addf %577, %2 : vector<16x16xf32>
    %cst_209 = arith.constant dense<0xFF800000> : vector<16xf32>
    %579 = vector.multi_reduction <maximumf>, %578, %cst_209 [1] : vector<16x16xf32> to vector<16xf32>
    %580 = vector.shape_cast %579 : vector<16xf32> to vector<16x1xf32>
    %581 = vector.broadcast %580 : vector<16x1xf32> to vector<16x16xf32>
    %582 = arith.subf %578, %581 : vector<16x16xf32>
    %583 = math.exp %582 : vector<16x16xf32>
    %cst_210 = arith.constant dense<0.000000e+00> : vector<16xf32>
    %584 = vector.multi_reduction <add>, %583, %cst_210 [1] : vector<16x16xf32> to vector<16xf32>
    %585 = vector.shape_cast %584 : vector<16xf32> to vector<16x1xf32>
    %586 = tpu.reciprocal %585 {approx = true} : vector<16x1xf32> -> vector<16x1xf32>
    %587 = vector.broadcast %586 : vector<16x1xf32> to vector<16x16xf32>
    %588 = arith.mulf %583, %587 : vector<16x16xf32>
    %589 = vector.extract_strided_slice %477 {offsets = [0, 40], sizes = [16, 8], strides = [1, 1]} : vector<16x64xf32> to vector<16x8xf32>
    %cst_211 = arith.constant dense<0.000000e+00> : vector<16x8xf32>
    %590 = tpu.matmul %588, %589, %cst_211 {dimension_numbers = #tpu.dot_dimension_numbers<[1], [0], [0], [1], [0, 0, 1, 1], [], []>} : vector<16x16xf32>, vector<16x8xf32>, vector<16x8xf32> -> vector<16x8xf32>
    %c0_212 = arith.constant 0 : index
    %c40_213 = arith.constant 40 : index
    %591 = vector.load %arg13[%c0_212, %c40_213] : memref<16x64xf32, #tpu.memory_space<vmem>>, vector<16x8xf32>
    tpu.vector_store %arg13[%c0_212, %c40_213], %590 {strides = array<i32>} : memref<16x64xf32, #tpu.memory_space<vmem>>, vector<16x8xf32>,
    %592 = vector.extract_strided_slice %475 {offsets = [0, 48], sizes = [16, 8], strides = [1, 1]} : vector<16x64xf32> to vector<16x8xf32>
    %593 = vector.extract_strided_slice %476 {offsets = [0, 48], sizes = [16, 8], strides = [1, 1]} : vector<16x64xf32> to vector<16x8xf32>
    %cst_214 = arith.constant dense<0.000000e+00> : vector<16x16xf32>
    %594 = tpu.matmul %592, %593, %cst_214 {dimension_numbers = #tpu.dot_dimension_numbers<[1], [1], [0], [0], [0, 0, 1, 0], [], []>} : vector<16x8xf32>, vector<16x8xf32>, vector<16x16xf32> -> vector<16x16xf32>
    %cst_215 = arith.constant 0.353553385 : f32
    %595 = vector.broadcast %cst_215 : f32 to vector<16x16xf32>
    %596 = arith.mulf %594, %595 : vector<16x16xf32>
    %597 = arith.addf %596, %2 : vector<16x16xf32>
    %cst_216 = arith.constant dense<0xFF800000> : vector<16xf32>
    %598 = vector.multi_reduction <maximumf>, %597, %cst_216 [1] : vector<16x16xf32> to vector<16xf32>
    %599 = vector.shape_cast %598 : vector<16xf32> to vector<16x1xf32>
    %600 = vector.broadcast %599 : vector<16x1xf32> to vector<16x16xf32>
    %601 = arith.subf %597, %600 : vector<16x16xf32>
    %602 = math.exp %601 : vector<16x16xf32>
    %cst_217 = arith.constant dense<0.000000e+00> : vector<16xf32>
    %603 = vector.multi_reduction <add>, %602, %cst_217 [1] : vector<16x16xf32> to vector<16xf32>
    %604 = vector.shape_cast %603 : vector<16xf32> to vector<16x1xf32>
    %605 = tpu.reciprocal %604 {approx = true} : vector<16x1xf32> -> vector<16x1xf32>
    %606 = vector.broadcast %605 : vector<16x1xf32> to vector<16x16xf32>
    %607 = arith.mulf %602, %606 : vector<16x16xf32>
    %608 = vector.extract_strided_slice %477 {offsets = [0, 48], sizes = [16, 8], strides = [1, 1]} : vector<16x64xf32> to vector<16x8xf32>
    %cst_218 = arith.constant dense<0.000000e+00> : vector<16x8xf32>
    %609 = tpu.matmul %607, %608, %cst_218 {dimension_numbers = #tpu.dot_dimension_numbers<[1], [0], [0], [1], [0, 0, 1, 1], [], []>} : vector<16x16xf32>, vector<16x8xf32>, vector<16x8xf32> -> vector<16x8xf32>
    %c0_219 = arith.constant 0 : index
    %c48_220 = arith.constant 48 : index
    %610 = vector.load %arg13[%c0_219, %c48_220] : memref<16x64xf32, #tpu.memory_space<vmem>>, vector<16x8xf32>
    tpu.vector_store %arg13[%c0_219, %c48_220], %609 {strides = array<i32>} : memref<16x64xf32, #tpu.memory_space<vmem>>, vector<16x8xf32>,
    %611 = vector.extract_strided_slice %475 {offsets = [0, 56], sizes = [16, 8], strides = [1, 1]} : vector<16x64xf32> to vector<16x8xf32>
    %612 = vector.extract_strided_slice %476 {offsets = [0, 56], sizes = [16, 8], strides = [1, 1]} : vector<16x64xf32> to vector<16x8xf32>
    %cst_221 = arith.constant dense<0.000000e+00> : vector<16x16xf32>
    %613 = tpu.matmul %611, %612, %cst_221 {dimension_numbers = #tpu.dot_dimension_numbers<[1], [1], [0], [0], [0, 0, 1, 0], [], []>} : vector<16x8xf32>, vector<16x8xf32>, vector<16x16xf32> -> vector<16x16xf32>
    %cst_222 = arith.constant 0.353553385 : f32
    %614 = vector.broadcast %cst_222 : f32 to vector<16x16xf32>
    %615 = arith.mulf %613, %614 : vector<16x16xf32>
    %616 = arith.addf %615, %2 : vector<16x16xf32>
    %cst_223 = arith.constant dense<0xFF800000> : vector<16xf32>
    %617 = vector.multi_reduction <maximumf>, %616, %cst_223 [1] : vector<16x16xf32> to vector<16xf32>
    %618 = vector.shape_cast %617 : vector<16xf32> to vector<16x1xf32>
    %619 = vector.broadcast %618 : vector<16x1xf32> to vector<16x16xf32>
    %620 = arith.subf %616, %619 : vector<16x16xf32>
    %621 = math.exp %620 : vector<16x16xf32>
    %cst_224 = arith.constant dense<0.000000e+00> : vector<16xf32>
    %622 = vector.multi_reduction <add>, %621, %cst_224 [1] : vector<16x16xf32> to vector<16xf32>
    %623 = vector.shape_cast %622 : vector<16xf32> to vector<16x1xf32>
    %624 = tpu.reciprocal %623 {approx = true} : vector<16x1xf32> -> vector<16x1xf32>
    %625 = vector.broadcast %624 : vector<16x1xf32> to vector<16x16xf32>
    %626 = arith.mulf %621, %625 : vector<16x16xf32>
    %627 = vector.extract_strided_slice %477 {offsets = [0, 56], sizes = [16, 8], strides = [1, 1]} : vector<16x64xf32> to vector<16x8xf32>
    %cst_225 = arith.constant dense<0.000000e+00> : vector<16x8xf32>
    %628 = tpu.matmul %626, %627, %cst_225 {dimension_numbers = #tpu.dot_dimension_numbers<[1], [0], [0], [1], [0, 0, 1, 1], [], []>} : vector<16x16xf32>, vector<16x8xf32>, vector<16x8xf32> -> vector<16x8xf32>
    %c0_226 = arith.constant 0 : index
    %c56_227 = arith.constant 56 : index
    %629 = vector.load %arg13[%c0_226, %c56_227] : memref<16x64xf32, #tpu.memory_space<vmem>>, vector<16x8xf32>
    tpu.vector_store %arg13[%c0_226, %c56_227], %628 {strides = array<i32>} : memref<16x64xf32, #tpu.memory_space<vmem>>, vector<16x8xf32>,
    %c0_228 = arith.constant 0 : index
    %c0_229 = arith.constant 0 : index
    %630 = vector.load %arg13[%c0_228, %c0_229] : memref<16x64xf32, #tpu.memory_space<vmem>>, vector<16x64xf32>
    %c3 = arith.constant 3 : index
    %c0_230 = arith.constant 0 : index
    %c0_231 = arith.constant 0 : index
    %631 = vector.load %arg5[%c3, %c0_230, %c0_231] : memref<6x64x64xbf16, #tpu.memory_space<vmem>>, vector<1x64x64xbf16>
    %632 = vector.shape_cast %631 : vector<1x64x64xbf16> to vector<64x64xbf16>
    %633 = arith.extf %632 : vector<64x64xbf16> to vector<64x64xf32>
    %cst_232 = arith.constant dense<0.000000e+00> : vector<16x64xf32>
    %634 = tpu.matmul %630, %633, %cst_232 {dimension_numbers = #tpu.dot_dimension_numbers<[1], [0], [0], [1], [0, 0, 1, 1], [], []>} : vector<16x64xf32>, vector<64x64xf32>, vector<16x64xf32> -> vector<16x64xf32>
    %635 = arith.addf %443, %634 : vector<16x64xf32>
    %636 = vector.extract_strided_slice %5 {offsets = [4, 0], sizes = [1, 64], strides = [1, 1]} : vector<8x64xf32> to vector<1x64xf32>
    %637 = vector.broadcast %636 : vector<1x64xf32> to vector<16x64xf32>
    %638 = arith.addf %635, %637 : vector<16x64xf32>
    %639 = vector.extract_strided_slice %6 {offsets = [4, 0], sizes = [1, 64], strides = [1, 1]} : vector<14x64xf32> to vector<1x64xf32>
    %640 = vector.extract_strided_slice %6 {offsets = [11, 0], sizes = [1, 64], strides = [1, 1]} : vector<14x64xf32> to vector<1x64xf32>
    %cst_233 = arith.constant dense<0.000000e+00> : vector<16xf32>
    %641 = vector.multi_reduction <add>, %638, %cst_233 [1] : vector<16x64xf32> to vector<16xf32>
    %642 = vector.shape_cast %641 : vector<16xf32> to vector<16x1xf32>
    %cst_234 = arith.constant 6.400000e+01 : f32
    %643 = vector.broadcast %cst_234 : f32 to vector<16x1xf32>
    %644 = arith.divf %642, %643 : vector<16x1xf32>
    %645 = vector.broadcast %644 : vector<16x1xf32> to vector<16x64xf32>
    %646 = arith.subf %638, %645 : vector<16x64xf32>
    %647 = arith.mulf %646, %646 : vector<16x64xf32>
    %cst_235 = arith.constant dense<0.000000e+00> : vector<16xf32>
    %648 = vector.multi_reduction <add>, %647, %cst_235 [1] : vector<16x64xf32> to vector<16xf32>
    %649 = vector.shape_cast %648 : vector<16xf32> to vector<16x1xf32>
    %cst_236 = arith.constant 0.0158730168 : f32
    %650 = vector.broadcast %cst_236 : f32 to vector<16x1xf32>
    %651 = arith.mulf %649, %650 : vector<16x1xf32>
    %652 = vector.broadcast %644 : vector<16x1xf32> to vector<16x64xf32>
    %653 = arith.subf %638, %652 : vector<16x64xf32>
    %654 = vector.broadcast %639 : vector<1x64xf32> to vector<16x64xf32>
    %655 = arith.mulf %654, %653 : vector<16x64xf32>
    %656 = math.sqrt %651 : vector<16x1xf32>
    %cst_237 = arith.constant 9.99999997E-7 : f32
    %657 = vector.broadcast %cst_237 : f32 to vector<16x1xf32>
    %658 = arith.addf %656, %657 : vector<16x1xf32>
    %659 = vector.broadcast %658 : vector<16x1xf32> to vector<16x64xf32>
    %660 = arith.divf %655, %659 : vector<16x64xf32>
    %661 = vector.broadcast %640 : vector<1x64xf32> to vector<16x64xf32>
    %662 = arith.addf %660, %661 : vector<16x64xf32>
    %c4 = arith.constant 4 : index
    %c0_238 = arith.constant 0 : index
    %c0_239 = arith.constant 0 : index
    %663 = vector.load %arg5[%c4, %c0_238, %c0_239] : memref<6x64x64xbf16, #tpu.memory_space<vmem>>, vector<1x64x64xbf16>
    %664 = vector.shape_cast %663 : vector<1x64x64xbf16> to vector<64x64xbf16>
    %665 = arith.extf %664 : vector<64x64xbf16> to vector<64x64xf32>
    %cst_240 = arith.constant dense<0.000000e+00> : vector<16x64xf32>
    %666 = tpu.matmul %662, %665, %cst_240 {dimension_numbers = #tpu.dot_dimension_numbers<[1], [0], [0], [1], [0, 0, 1, 1], [], []>} : vector<16x64xf32>, vector<64x64xf32>, vector<16x64xf32> -> vector<16x64xf32>
    %667 = vector.extract_strided_slice %5 {offsets = [5, 0], sizes = [1, 64], strides = [1, 1]} : vector<8x64xf32> to vector<1x64xf32>
    %668 = vector.broadcast %667 : vector<1x64xf32> to vector<16x64xf32>
    %669 = arith.addf %666, %668 : vector<16x64xf32>
    %c1_241 = arith.constant 1 : index
    %c0_242 = arith.constant 0 : index
    %c0_243 = arith.constant 0 : index
    %670 = vector.load %arg6[%c1_241, %c0_242, %c0_243] : memref<2x64x128xbf16, #tpu.memory_space<vmem>>, vector<1x64x128xbf16>
    %671 = vector.shape_cast %670 : vector<1x64x128xbf16> to vector<64x128xbf16>
    %672 = arith.extf %671 : vector<64x128xbf16> to vector<64x128xf32>
    %cst_244 = arith.constant dense<0.000000e+00> : vector<24x128xf32>
    %673 = tpu.matmul %1, %672, %cst_244 {dimension_numbers = #tpu.dot_dimension_numbers<[1], [0], [0], [1], [0, 0, 1, 1], [], []>} : vector<24x64xf32>, vector<64x128xf32>, vector<24x128xf32> -> vector<24x128xf32>
    %674 = vector.extract_strided_slice %4 {offsets = [4, 0], sizes = [1, 128], strides = [1, 1]} : vector<6x256xf32> to vector<1x128xf32>
    %675 = vector.broadcast %674 : vector<1x128xf32> to vector<24x128xf32>
    %676 = arith.addf %673, %675 : vector<24x128xf32>
    %677 = vector.extract_strided_slice %676 {offsets = [0, 0], sizes = [24, 64], strides = [1, 1]} : vector<24x128xf32> to vector<24x64xf32>
    %678 = vector.extract_strided_slice %676 {offsets = [0, 64], sizes = [24, 64], strides = [1, 1]} : vector<24x128xf32> to vector<24x64xf32>
    %679 = vector.extract_strided_slice %669 {offsets = [0, 0], sizes = [16, 8], strides = [1, 1]} : vector<16x64xf32> to vector<16x8xf32>
    %680 = vector.extract_strided_slice %677 {offsets = [0, 0], sizes = [24, 8], strides = [1, 1]} : vector<24x64xf32> to vector<24x8xf32>
    %cst_245 = arith.constant dense<0.000000e+00> : vector<16x24xf32>
    %681 = tpu.matmul %679, %680, %cst_245 {dimension_numbers = #tpu.dot_dimension_numbers<[1], [1], [0], [0], [0, 0, 1, 0], [], []>} : vector<16x8xf32>, vector<24x8xf32>, vector<16x24xf32> -> vector<16x24xf32>
    %cst_246 = arith.constant 0.353553385 : f32
    %682 = vector.broadcast %cst_246 : f32 to vector<16x24xf32>
    %683 = arith.mulf %681, %682 : vector<16x24xf32>
    %684 = arith.addf %683, %3 : vector<16x24xf32>
    %cst_247 = arith.constant dense<0xFF800000> : vector<16xf32>
    %685 = vector.multi_reduction <maximumf>, %684, %cst_247 [1] : vector<16x24xf32> to vector<16xf32>
    %686 = vector.shape_cast %685 : vector<16xf32> to vector<16x1xf32>
    %687 = vector.broadcast %686 : vector<16x1xf32> to vector<16x24xf32>
    %688 = arith.subf %684, %687 : vector<16x24xf32>
    %689 = math.exp %688 : vector<16x24xf32>
    %cst_248 = arith.constant dense<0.000000e+00> : vector<16xf32>
    %690 = vector.multi_reduction <add>, %689, %cst_248 [1] : vector<16x24xf32> to vector<16xf32>
    %691 = vector.shape_cast %690 : vector<16xf32> to vector<16x1xf32>
    %692 = tpu.reciprocal %691 {approx = true} : vector<16x1xf32> -> vector<16x1xf32>
    %693 = vector.broadcast %692 : vector<16x1xf32> to vector<16x24xf32>
    %694 = arith.mulf %689, %693 : vector<16x24xf32>
    %695 = vector.extract_strided_slice %678 {offsets = [0, 0], sizes = [24, 8], strides = [1, 1]} : vector<24x64xf32> to vector<24x8xf32>
    %cst_249 = arith.constant dense<0.000000e+00> : vector<16x8xf32>
    %696 = tpu.matmul %694, %695, %cst_249 {dimension_numbers = #tpu.dot_dimension_numbers<[1], [0], [0], [1], [0, 0, 1, 1], [], []>} : vector<16x24xf32>, vector<24x8xf32>, vector<16x8xf32> -> vector<16x8xf32>
    %c0_250 = arith.constant 0 : index
    %c0_251 = arith.constant 0 : index
    %697 = vector.load %arg13[%c0_250, %c0_251] : memref<16x64xf32, #tpu.memory_space<vmem>>, vector<16x8xf32>
    tpu.vector_store %arg13[%c0_250, %c0_251], %696 {strides = array<i32>} : memref<16x64xf32, #tpu.memory_space<vmem>>, vector<16x8xf32>,
    %698 = vector.extract_strided_slice %669 {offsets = [0, 8], sizes = [16, 8], strides = [1, 1]} : vector<16x64xf32> to vector<16x8xf32>
    %699 = vector.extract_strided_slice %677 {offsets = [0, 8], sizes = [24, 8], strides = [1, 1]} : vector<24x64xf32> to vector<24x8xf32>
    %cst_252 = arith.constant dense<0.000000e+00> : vector<16x24xf32>
    %700 = tpu.matmul %698, %699, %cst_252 {dimension_numbers = #tpu.dot_dimension_numbers<[1], [1], [0], [0], [0, 0, 1, 0], [], []>} : vector<16x8xf32>, vector<24x8xf32>, vector<16x24xf32> -> vector<16x24xf32>
    %cst_253 = arith.constant 0.353553385 : f32
    %701 = vector.broadcast %cst_253 : f32 to vector<16x24xf32>
    %702 = arith.mulf %700, %701 : vector<16x24xf32>
    %703 = arith.addf %702, %3 : vector<16x24xf32>
    %cst_254 = arith.constant dense<0xFF800000> : vector<16xf32>
    %704 = vector.multi_reduction <maximumf>, %703, %cst_254 [1] : vector<16x24xf32> to vector<16xf32>
    %705 = vector.shape_cast %704 : vector<16xf32> to vector<16x1xf32>
    %706 = vector.broadcast %705 : vector<16x1xf32> to vector<16x24xf32>
    %707 = arith.subf %703, %706 : vector<16x24xf32>
    %708 = math.exp %707 : vector<16x24xf32>
    %cst_255 = arith.constant dense<0.000000e+00> : vector<16xf32>
    %709 = vector.multi_reduction <add>, %708, %cst_255 [1] : vector<16x24xf32> to vector<16xf32>
    %710 = vector.shape_cast %709 : vector<16xf32> to vector<16x1xf32>
    %711 = tpu.reciprocal %710 {approx = true} : vector<16x1xf32> -> vector<16x1xf32>
    %712 = vector.broadcast %711 : vector<16x1xf32> to vector<16x24xf32>
    %713 = arith.mulf %708, %712 : vector<16x24xf32>
    %714 = vector.extract_strided_slice %678 {offsets = [0, 8], sizes = [24, 8], strides = [1, 1]} : vector<24x64xf32> to vector<24x8xf32>
    %cst_256 = arith.constant dense<0.000000e+00> : vector<16x8xf32>
    %715 = tpu.matmul %713, %714, %cst_256 {dimension_numbers = #tpu.dot_dimension_numbers<[1], [0], [0], [1], [0, 0, 1, 1], [], []>} : vector<16x24xf32>, vector<24x8xf32>, vector<16x8xf32> -> vector<16x8xf32>
    %c0_257 = arith.constant 0 : index
    %c8_258 = arith.constant 8 : index
    %716 = vector.load %arg13[%c0_257, %c8_258] : memref<16x64xf32, #tpu.memory_space<vmem>>, vector<16x8xf32>
    tpu.vector_store %arg13[%c0_257, %c8_258], %715 {strides = array<i32>} : memref<16x64xf32, #tpu.memory_space<vmem>>, vector<16x8xf32>,
    %717 = vector.extract_strided_slice %669 {offsets = [0, 16], sizes = [16, 8], strides = [1, 1]} : vector<16x64xf32> to vector<16x8xf32>
    %718 = vector.extract_strided_slice %677 {offsets = [0, 16], sizes = [24, 8], strides = [1, 1]} : vector<24x64xf32> to vector<24x8xf32>
    %cst_259 = arith.constant dense<0.000000e+00> : vector<16x24xf32>
    %719 = tpu.matmul %717, %718, %cst_259 {dimension_numbers = #tpu.dot_dimension_numbers<[1], [1], [0], [0], [0, 0, 1, 0], [], []>} : vector<16x8xf32>, vector<24x8xf32>, vector<16x24xf32> -> vector<16x24xf32>
    %cst_260 = arith.constant 0.353553385 : f32
    %720 = vector.broadcast %cst_260 : f32 to vector<16x24xf32>
    %721 = arith.mulf %719, %720 : vector<16x24xf32>
    %722 = arith.addf %721, %3 : vector<16x24xf32>
    %cst_261 = arith.constant dense<0xFF800000> : vector<16xf32>
    %723 = vector.multi_reduction <maximumf>, %722, %cst_261 [1] : vector<16x24xf32> to vector<16xf32>
    %724 = vector.shape_cast %723 : vector<16xf32> to vector<16x1xf32>
    %725 = vector.broadcast %724 : vector<16x1xf32> to vector<16x24xf32>
    %726 = arith.subf %722, %725 : vector<16x24xf32>
    %727 = math.exp %726 : vector<16x24xf32>
    %cst_262 = arith.constant dense<0.000000e+00> : vector<16xf32>
    %728 = vector.multi_reduction <add>, %727, %cst_262 [1] : vector<16x24xf32> to vector<16xf32>
    %729 = vector.shape_cast %728 : vector<16xf32> to vector<16x1xf32>
    %730 = tpu.reciprocal %729 {approx = true} : vector<16x1xf32> -> vector<16x1xf32>
    %731 = vector.broadcast %730 : vector<16x1xf32> to vector<16x24xf32>
    %732 = arith.mulf %727, %731 : vector<16x24xf32>
    %733 = vector.extract_strided_slice %678 {offsets = [0, 16], sizes = [24, 8], strides = [1, 1]} : vector<24x64xf32> to vector<24x8xf32>
    %cst_263 = arith.constant dense<0.000000e+00> : vector<16x8xf32>
    %734 = tpu.matmul %732, %733, %cst_263 {dimension_numbers = #tpu.dot_dimension_numbers<[1], [0], [0], [1], [0, 0, 1, 1], [], []>} : vector<16x24xf32>, vector<24x8xf32>, vector<16x8xf32> -> vector<16x8xf32>
    %c0_264 = arith.constant 0 : index
    %c16_265 = arith.constant 16 : index
    %735 = vector.load %arg13[%c0_264, %c16_265] : memref<16x64xf32, #tpu.memory_space<vmem>>, vector<16x8xf32>
    tpu.vector_store %arg13[%c0_264, %c16_265], %734 {strides = array<i32>} : memref<16x64xf32, #tpu.memory_space<vmem>>, vector<16x8xf32>,
    %736 = vector.extract_strided_slice %669 {offsets = [0, 24], sizes = [16, 8], strides = [1, 1]} : vector<16x64xf32> to vector<16x8xf32>
    %737 = vector.extract_strided_slice %677 {offsets = [0, 24], sizes = [24, 8], strides = [1, 1]} : vector<24x64xf32> to vector<24x8xf32>
    %cst_266 = arith.constant dense<0.000000e+00> : vector<16x24xf32>
    %738 = tpu.matmul %736, %737, %cst_266 {dimension_numbers = #tpu.dot_dimension_numbers<[1], [1], [0], [0], [0, 0, 1, 0], [], []>} : vector<16x8xf32>, vector<24x8xf32>, vector<16x24xf32> -> vector<16x24xf32>
    %cst_267 = arith.constant 0.353553385 : f32
    %739 = vector.broadcast %cst_267 : f32 to vector<16x24xf32>
    %740 = arith.mulf %738, %739 : vector<16x24xf32>
    %741 = arith.addf %740, %3 : vector<16x24xf32>
    %cst_268 = arith.constant dense<0xFF800000> : vector<16xf32>
    %742 = vector.multi_reduction <maximumf>, %741, %cst_268 [1] : vector<16x24xf32> to vector<16xf32>
    %743 = vector.shape_cast %742 : vector<16xf32> to vector<16x1xf32>
    %744 = vector.broadcast %743 : vector<16x1xf32> to vector<16x24xf32>
    %745 = arith.subf %741, %744 : vector<16x24xf32>
    %746 = math.exp %745 : vector<16x24xf32>
    %cst_269 = arith.constant dense<0.000000e+00> : vector<16xf32>
    %747 = vector.multi_reduction <add>, %746, %cst_269 [1] : vector<16x24xf32> to vector<16xf32>
    %748 = vector.shape_cast %747 : vector<16xf32> to vector<16x1xf32>
    %749 = tpu.reciprocal %748 {approx = true} : vector<16x1xf32> -> vector<16x1xf32>
    %750 = vector.broadcast %749 : vector<16x1xf32> to vector<16x24xf32>
    %751 = arith.mulf %746, %750 : vector<16x24xf32>
    %752 = vector.extract_strided_slice %678 {offsets = [0, 24], sizes = [24, 8], strides = [1, 1]} : vector<24x64xf32> to vector<24x8xf32>
    %cst_270 = arith.constant dense<0.000000e+00> : vector<16x8xf32>
    %753 = tpu.matmul %751, %752, %cst_270 {dimension_numbers = #tpu.dot_dimension_numbers<[1], [0], [0], [1], [0, 0, 1, 1], [], []>} : vector<16x24xf32>, vector<24x8xf32>, vector<16x8xf32> -> vector<16x8xf32>
    %c0_271 = arith.constant 0 : index
    %c24_272 = arith.constant 24 : index
    %754 = vector.load %arg13[%c0_271, %c24_272] : memref<16x64xf32, #tpu.memory_space<vmem>>, vector<16x8xf32>
    tpu.vector_store %arg13[%c0_271, %c24_272], %753 {strides = array<i32>} : memref<16x64xf32, #tpu.memory_space<vmem>>, vector<16x8xf32>,
    %755 = vector.extract_strided_slice %669 {offsets = [0, 32], sizes = [16, 8], strides = [1, 1]} : vector<16x64xf32> to vector<16x8xf32>
    %756 = vector.extract_strided_slice %677 {offsets = [0, 32], sizes = [24, 8], strides = [1, 1]} : vector<24x64xf32> to vector<24x8xf32>
    %cst_273 = arith.constant dense<0.000000e+00> : vector<16x24xf32>
    %757 = tpu.matmul %755, %756, %cst_273 {dimension_numbers = #tpu.dot_dimension_numbers<[1], [1], [0], [0], [0, 0, 1, 0], [], []>} : vector<16x8xf32>, vector<24x8xf32>, vector<16x24xf32> -> vector<16x24xf32>
    %cst_274 = arith.constant 0.353553385 : f32
    %758 = vector.broadcast %cst_274 : f32 to vector<16x24xf32>
    %759 = arith.mulf %757, %758 : vector<16x24xf32>
    %760 = arith.addf %759, %3 : vector<16x24xf32>
    %cst_275 = arith.constant dense<0xFF800000> : vector<16xf32>
    %761 = vector.multi_reduction <maximumf>, %760, %cst_275 [1] : vector<16x24xf32> to vector<16xf32>
    %762 = vector.shape_cast %761 : vector<16xf32> to vector<16x1xf32>
    %763 = vector.broadcast %762 : vector<16x1xf32> to vector<16x24xf32>
    %764 = arith.subf %760, %763 : vector<16x24xf32>
    %765 = math.exp %764 : vector<16x24xf32>
    %cst_276 = arith.constant dense<0.000000e+00> : vector<16xf32>
    %766 = vector.multi_reduction <add>, %765, %cst_276 [1] : vector<16x24xf32> to vector<16xf32>
    %767 = vector.shape_cast %766 : vector<16xf32> to vector<16x1xf32>
    %768 = tpu.reciprocal %767 {approx = true} : vector<16x1xf32> -> vector<16x1xf32>
    %769 = vector.broadcast %768 : vector<16x1xf32> to vector<16x24xf32>
    %770 = arith.mulf %765, %769 : vector<16x24xf32>
    %771 = vector.extract_strided_slice %678 {offsets = [0, 32], sizes = [24, 8], strides = [1, 1]} : vector<24x64xf32> to vector<24x8xf32>
    %cst_277 = arith.constant dense<0.000000e+00> : vector<16x8xf32>
    %772 = tpu.matmul %770, %771, %cst_277 {dimension_numbers = #tpu.dot_dimension_numbers<[1], [0], [0], [1], [0, 0, 1, 1], [], []>} : vector<16x24xf32>, vector<24x8xf32>, vector<16x8xf32> -> vector<16x8xf32>
    %c0_278 = arith.constant 0 : index
    %c32_279 = arith.constant 32 : index
    %773 = vector.load %arg13[%c0_278, %c32_279] : memref<16x64xf32, #tpu.memory_space<vmem>>, vector<16x8xf32>
    tpu.vector_store %arg13[%c0_278, %c32_279], %772 {strides = array<i32>} : memref<16x64xf32, #tpu.memory_space<vmem>>, vector<16x8xf32>,
    %774 = vector.extract_strided_slice %669 {offsets = [0, 40], sizes = [16, 8], strides = [1, 1]} : vector<16x64xf32> to vector<16x8xf32>
    %775 = vector.extract_strided_slice %677 {offsets = [0, 40], sizes = [24, 8], strides = [1, 1]} : vector<24x64xf32> to vector<24x8xf32>
    %cst_280 = arith.constant dense<0.000000e+00> : vector<16x24xf32>
    %776 = tpu.matmul %774, %775, %cst_280 {dimension_numbers = #tpu.dot_dimension_numbers<[1], [1], [0], [0], [0, 0, 1, 0], [], []>} : vector<16x8xf32>, vector<24x8xf32>, vector<16x24xf32> -> vector<16x24xf32>
    %cst_281 = arith.constant 0.353553385 : f32
    %777 = vector.broadcast %cst_281 : f32 to vector<16x24xf32>
    %778 = arith.mulf %776, %777 : vector<16x24xf32>
    %779 = arith.addf %778, %3 : vector<16x24xf32>
    %cst_282 = arith.constant dense<0xFF800000> : vector<16xf32>
    %780 = vector.multi_reduction <maximumf>, %779, %cst_282 [1] : vector<16x24xf32> to vector<16xf32>
    %781 = vector.shape_cast %780 : vector<16xf32> to vector<16x1xf32>
    %782 = vector.broadcast %781 : vector<16x1xf32> to vector<16x24xf32>
    %783 = arith.subf %779, %782 : vector<16x24xf32>
    %784 = math.exp %783 : vector<16x24xf32>
    %cst_283 = arith.constant dense<0.000000e+00> : vector<16xf32>
    %785 = vector.multi_reduction <add>, %784, %cst_283 [1] : vector<16x24xf32> to vector<16xf32>
    %786 = vector.shape_cast %785 : vector<16xf32> to vector<16x1xf32>
    %787 = tpu.reciprocal %786 {approx = true} : vector<16x1xf32> -> vector<16x1xf32>
    %788 = vector.broadcast %787 : vector<16x1xf32> to vector<16x24xf32>
    %789 = arith.mulf %784, %788 : vector<16x24xf32>
    %790 = vector.extract_strided_slice %678 {offsets = [0, 40], sizes = [24, 8], strides = [1, 1]} : vector<24x64xf32> to vector<24x8xf32>
    %cst_284 = arith.constant dense<0.000000e+00> : vector<16x8xf32>
    %791 = tpu.matmul %789, %790, %cst_284 {dimension_numbers = #tpu.dot_dimension_numbers<[1], [0], [0], [1], [0, 0, 1, 1], [], []>} : vector<16x24xf32>, vector<24x8xf32>, vector<16x8xf32> -> vector<16x8xf32>
    %c0_285 = arith.constant 0 : index
    %c40_286 = arith.constant 40 : index
    %792 = vector.load %arg13[%c0_285, %c40_286] : memref<16x64xf32, #tpu.memory_space<vmem>>, vector<16x8xf32>
    tpu.vector_store %arg13[%c0_285, %c40_286], %791 {strides = array<i32>} : memref<16x64xf32, #tpu.memory_space<vmem>>, vector<16x8xf32>,
    %793 = vector.extract_strided_slice %669 {offsets = [0, 48], sizes = [16, 8], strides = [1, 1]} : vector<16x64xf32> to vector<16x8xf32>
    %794 = vector.extract_strided_slice %677 {offsets = [0, 48], sizes = [24, 8], strides = [1, 1]} : vector<24x64xf32> to vector<24x8xf32>
    %cst_287 = arith.constant dense<0.000000e+00> : vector<16x24xf32>
    %795 = tpu.matmul %793, %794, %cst_287 {dimension_numbers = #tpu.dot_dimension_numbers<[1], [1], [0], [0], [0, 0, 1, 0], [], []>} : vector<16x8xf32>, vector<24x8xf32>, vector<16x24xf32> -> vector<16x24xf32>
    %cst_288 = arith.constant 0.353553385 : f32
    %796 = vector.broadcast %cst_288 : f32 to vector<16x24xf32>
    %797 = arith.mulf %795, %796 : vector<16x24xf32>
    %798 = arith.addf %797, %3 : vector<16x24xf32>
    %cst_289 = arith.constant dense<0xFF800000> : vector<16xf32>
    %799 = vector.multi_reduction <maximumf>, %798, %cst_289 [1] : vector<16x24xf32> to vector<16xf32>
    %800 = vector.shape_cast %799 : vector<16xf32> to vector<16x1xf32>
    %801 = vector.broadcast %800 : vector<16x1xf32> to vector<16x24xf32>
    %802 = arith.subf %798, %801 : vector<16x24xf32>
    %803 = math.exp %802 : vector<16x24xf32>
    %cst_290 = arith.constant dense<0.000000e+00> : vector<16xf32>
    %804 = vector.multi_reduction <add>, %803, %cst_290 [1] : vector<16x24xf32> to vector<16xf32>
    %805 = vector.shape_cast %804 : vector<16xf32> to vector<16x1xf32>
    %806 = tpu.reciprocal %805 {approx = true} : vector<16x1xf32> -> vector<16x1xf32>
    %807 = vector.broadcast %806 : vector<16x1xf32> to vector<16x24xf32>
    %808 = arith.mulf %803, %807 : vector<16x24xf32>
    %809 = vector.extract_strided_slice %678 {offsets = [0, 48], sizes = [24, 8], strides = [1, 1]} : vector<24x64xf32> to vector<24x8xf32>
    %cst_291 = arith.constant dense<0.000000e+00> : vector<16x8xf32>
    %810 = tpu.matmul %808, %809, %cst_291 {dimension_numbers = #tpu.dot_dimension_numbers<[1], [0], [0], [1], [0, 0, 1, 1], [], []>} : vector<16x24xf32>, vector<24x8xf32>, vector<16x8xf32> -> vector<16x8xf32>
    %c0_292 = arith.constant 0 : index
    %c48_293 = arith.constant 48 : index
    %811 = vector.load %arg13[%c0_292, %c48_293] : memref<16x64xf32, #tpu.memory_space<vmem>>, vector<16x8xf32>
    tpu.vector_store %arg13[%c0_292, %c48_293], %810 {strides = array<i32>} : memref<16x64xf32, #tpu.memory_space<vmem>>, vector<16x8xf32>,
    %812 = vector.extract_strided_slice %669 {offsets = [0, 56], sizes = [16, 8], strides = [1, 1]} : vector<16x64xf32> to vector<16x8xf32>
    %813 = vector.extract_strided_slice %677 {offsets = [0, 56], sizes = [24, 8], strides = [1, 1]} : vector<24x64xf32> to vector<24x8xf32>
    %cst_294 = arith.constant dense<0.000000e+00> : vector<16x24xf32>
    %814 = tpu.matmul %812, %813, %cst_294 {dimension_numbers = #tpu.dot_dimension_numbers<[1], [1], [0], [0], [0, 0, 1, 0], [], []>} : vector<16x8xf32>, vector<24x8xf32>, vector<16x24xf32> -> vector<16x24xf32>
    %cst_295 = arith.constant 0.353553385 : f32
    %815 = vector.broadcast %cst_295 : f32 to vector<16x24xf32>
    %816 = arith.mulf %814, %815 : vector<16x24xf32>
    %817 = arith.addf %816, %3 : vector<16x24xf32>
    %cst_296 = arith.constant dense<0xFF800000> : vector<16xf32>
    %818 = vector.multi_reduction <maximumf>, %817, %cst_296 [1] : vector<16x24xf32> to vector<16xf32>
    %819 = vector.shape_cast %818 : vector<16xf32> to vector<16x1xf32>
    %820 = vector.broadcast %819 : vector<16x1xf32> to vector<16x24xf32>
    %821 = arith.subf %817, %820 : vector<16x24xf32>
    %822 = math.exp %821 : vector<16x24xf32>
    %cst_297 = arith.constant dense<0.000000e+00> : vector<16xf32>
    %823 = vector.multi_reduction <add>, %822, %cst_297 [1] : vector<16x24xf32> to vector<16xf32>
    %824 = vector.shape_cast %823 : vector<16xf32> to vector<16x1xf32>
    %825 = tpu.reciprocal %824 {approx = true} : vector<16x1xf32> -> vector<16x1xf32>
    %826 = vector.broadcast %825 : vector<16x1xf32> to vector<16x24xf32>
    %827 = arith.mulf %822, %826 : vector<16x24xf32>
    %828 = vector.extract_strided_slice %678 {offsets = [0, 56], sizes = [24, 8], strides = [1, 1]} : vector<24x64xf32> to vector<24x8xf32>
    %cst_298 = arith.constant dense<0.000000e+00> : vector<16x8xf32>
    %829 = tpu.matmul %827, %828, %cst_298 {dimension_numbers = #tpu.dot_dimension_numbers<[1], [0], [0], [1], [0, 0, 1, 1], [], []>} : vector<16x24xf32>, vector<24x8xf32>, vector<16x8xf32> -> vector<16x8xf32>
    %c0_299 = arith.constant 0 : index
    %c56_300 = arith.constant 56 : index
    %830 = vector.load %arg13[%c0_299, %c56_300] : memref<16x64xf32, #tpu.memory_space<vmem>>, vector<16x8xf32>
    tpu.vector_store %arg13[%c0_299, %c56_300], %829 {strides = array<i32>} : memref<16x64xf32, #tpu.memory_space<vmem>>, vector<16x8xf32>,
    %c0_301 = arith.constant 0 : index
    %c0_302 = arith.constant 0 : index
    %831 = vector.load %arg13[%c0_301, %c0_302] : memref<16x64xf32, #tpu.memory_space<vmem>>, vector<16x64xf32>
    %c5 = arith.constant 5 : index
    %c0_303 = arith.constant 0 : index
    %c0_304 = arith.constant 0 : index
    %832 = vector.load %arg5[%c5, %c0_303, %c0_304] : memref<6x64x64xbf16, #tpu.memory_space<vmem>>, vector<1x64x64xbf16>
    %833 = vector.shape_cast %832 : vector<1x64x64xbf16> to vector<64x64xbf16>
    %834 = arith.extf %833 : vector<64x64xbf16> to vector<64x64xf32>
    %cst_305 = arith.constant dense<0.000000e+00> : vector<16x64xf32>
    %835 = tpu.matmul %831, %834, %cst_305 {dimension_numbers = #tpu.dot_dimension_numbers<[1], [0], [0], [1], [0, 0, 1, 1], [], []>} : vector<16x64xf32>, vector<64x64xf32>, vector<16x64xf32> -> vector<16x64xf32>
    %836 = arith.addf %638, %835 : vector<16x64xf32>
    %837 = vector.extract_strided_slice %5 {offsets = [6, 0], sizes = [1, 64], strides = [1, 1]} : vector<8x64xf32> to vector<1x64xf32>
    %838 = vector.broadcast %837 : vector<1x64xf32> to vector<16x64xf32>
    %839 = arith.addf %836, %838 : vector<16x64xf32>
    %840 = vector.extract_strided_slice %6 {offsets = [5, 0], sizes = [1, 64], strides = [1, 1]} : vector<14x64xf32> to vector<1x64xf32>
    %841 = vector.extract_strided_slice %6 {offsets = [12, 0], sizes = [1, 64], strides = [1, 1]} : vector<14x64xf32> to vector<1x64xf32>
    %cst_306 = arith.constant dense<0.000000e+00> : vector<16xf32>
    %842 = vector.multi_reduction <add>, %839, %cst_306 [1] : vector<16x64xf32> to vector<16xf32>
    %843 = vector.shape_cast %842 : vector<16xf32> to vector<16x1xf32>
    %cst_307 = arith.constant 6.400000e+01 : f32
    %844 = vector.broadcast %cst_307 : f32 to vector<16x1xf32>
    %845 = arith.divf %843, %844 : vector<16x1xf32>
    %846 = vector.broadcast %845 : vector<16x1xf32> to vector<16x64xf32>
    %847 = arith.subf %839, %846 : vector<16x64xf32>
    %848 = arith.mulf %847, %847 : vector<16x64xf32>
    %cst_308 = arith.constant dense<0.000000e+00> : vector<16xf32>
    %849 = vector.multi_reduction <add>, %848, %cst_308 [1] : vector<16x64xf32> to vector<16xf32>
    %850 = vector.shape_cast %849 : vector<16xf32> to vector<16x1xf32>
    %cst_309 = arith.constant 0.0158730168 : f32
    %851 = vector.broadcast %cst_309 : f32 to vector<16x1xf32>
    %852 = arith.mulf %850, %851 : vector<16x1xf32>
    %853 = vector.broadcast %845 : vector<16x1xf32> to vector<16x64xf32>
    %854 = arith.subf %839, %853 : vector<16x64xf32>
    %855 = vector.broadcast %840 : vector<1x64xf32> to vector<16x64xf32>
    %856 = arith.mulf %855, %854 : vector<16x64xf32>
    %857 = math.sqrt %852 : vector<16x1xf32>
    %cst_310 = arith.constant 9.99999997E-7 : f32
    %858 = vector.broadcast %cst_310 : f32 to vector<16x1xf32>
    %859 = arith.addf %857, %858 : vector<16x1xf32>
    %860 = vector.broadcast %859 : vector<16x1xf32> to vector<16x64xf32>
    %861 = arith.divf %856, %860 : vector<16x64xf32>
    %862 = vector.broadcast %841 : vector<1x64xf32> to vector<16x64xf32>
    %863 = arith.addf %861, %862 : vector<16x64xf32>
    %c1_311 = arith.constant 1 : index
    %c0_312 = arith.constant 0 : index
    %c0_313 = arith.constant 0 : index
    %864 = vector.load %arg7[%c1_311, %c0_312, %c0_313] : memref<2x64x256xbf16, #tpu.memory_space<vmem>>, vector<1x64x256xbf16>
    %865 = vector.shape_cast %864 : vector<1x64x256xbf16> to vector<64x256xbf16>
    %866 = arith.extf %865 : vector<64x256xbf16> to vector<64x256xf32>
    %cst_314 = arith.constant dense<0.000000e+00> : vector<16x256xf32>
    %867 = tpu.matmul %863, %866, %cst_314 {dimension_numbers = #tpu.dot_dimension_numbers<[1], [0], [0], [1], [0, 0, 1, 1], [], []>} : vector<16x64xf32>, vector<64x256xf32>, vector<16x256xf32> -> vector<16x256xf32>
    %868 = vector.extract_strided_slice %4 {offsets = [5, 0], sizes = [1, 256], strides = [1, 1]} : vector<6x256xf32> to vector<1x256xf32>
    %869 = vector.broadcast %868 : vector<1x256xf32> to vector<16x256xf32>
    %870 = arith.addf %867, %869 : vector<16x256xf32>
    %cst_315 = arith.constant 0.000000e+00 : f32
    %871 = vector.broadcast %cst_315 : f32 to vector<16x256xf32>
    %872 = arith.maximumf %870, %871 : vector<16x256xf32>
    %c1_316 = arith.constant 1 : index
    %c0_317 = arith.constant 0 : index
    %c0_318 = arith.constant 0 : index
    %873 = vector.load %arg8[%c1_316, %c0_317, %c0_318] : memref<2x256x64xbf16, #tpu.memory_space<vmem>>, vector<1x256x64xbf16>
    %874 = vector.shape_cast %873 : vector<1x256x64xbf16> to vector<256x64xbf16>
    %875 = arith.extf %874 : vector<256x64xbf16> to vector<256x64xf32>
    %cst_319 = arith.constant dense<0.000000e+00> : vector<16x64xf32>
    %876 = tpu.matmul %872, %875, %cst_319 {dimension_numbers = #tpu.dot_dimension_numbers<[1], [0], [0], [1], [0, 0, 1, 1], [], []>} : vector<16x256xf32>, vector<256x64xf32>, vector<16x64xf32> -> vector<16x64xf32>
    %877 = arith.addf %839, %876 : vector<16x64xf32>
    %878 = vector.extract_strided_slice %5 {offsets = [7, 0], sizes = [1, 64], strides = [1, 1]} : vector<8x64xf32> to vector<1x64xf32>
    %879 = vector.broadcast %878 : vector<1x64xf32> to vector<16x64xf32>
    %880 = arith.addf %877, %879 : vector<16x64xf32>
    %881 = vector.extract_strided_slice %6 {offsets = [6, 0], sizes = [1, 64], strides = [1, 1]} : vector<14x64xf32> to vector<1x64xf32>
    %882 = vector.extract_strided_slice %6 {offsets = [13, 0], sizes = [1, 64], strides = [1, 1]} : vector<14x64xf32> to vector<1x64xf32>
    %cst_320 = arith.constant dense<0.000000e+00> : vector<16xf32>
    %883 = vector.multi_reduction <add>, %880, %cst_320 [1] : vector<16x64xf32> to vector<16xf32>
    %884 = vector.shape_cast %883 : vector<16xf32> to vector<16x1xf32>
    %cst_321 = arith.constant 6.400000e+01 : f32
    %885 = vector.broadcast %cst_321 : f32 to vector<16x1xf32>
    %886 = arith.divf %884, %885 : vector<16x1xf32>
    %887 = vector.broadcast %886 : vector<16x1xf32> to vector<16x64xf32>
    %888 = arith.subf %880, %887 : vector<16x64xf32>
    %889 = arith.mulf %888, %888 : vector<16x64xf32>
    %cst_322 = arith.constant dense<0.000000e+00> : vector<16xf32>
    %890 = vector.multi_reduction <add>, %889, %cst_322 [1] : vector<16x64xf32> to vector<16xf32>
    %891 = vector.shape_cast %890 : vector<16xf32> to vector<16x1xf32>
    %cst_323 = arith.constant 0.0158730168 : f32
    %892 = vector.broadcast %cst_323 : f32 to vector<16x1xf32>
    %893 = arith.mulf %891, %892 : vector<16x1xf32>
    %894 = vector.broadcast %886 : vector<16x1xf32> to vector<16x64xf32>
    %895 = arith.subf %880, %894 : vector<16x64xf32>
    %896 = vector.broadcast %881 : vector<1x64xf32> to vector<16x64xf32>
    %897 = arith.mulf %896, %895 : vector<16x64xf32>
    %898 = math.sqrt %893 : vector<16x1xf32>
    %cst_324 = arith.constant 9.99999997E-7 : f32
    %899 = vector.broadcast %cst_324 : f32 to vector<16x1xf32>
    %900 = arith.addf %898, %899 : vector<16x1xf32>
    %901 = vector.broadcast %900 : vector<16x1xf32> to vector<16x64xf32>
    %902 = arith.divf %897, %901 : vector<16x64xf32>
    %903 = vector.broadcast %882 : vector<1x64xf32> to vector<16x64xf32>
    %904 = arith.addf %902, %903 : vector<16x64xf32>
    %c0_325 = arith.constant 0 : index
    %c0_326 = arith.constant 0 : index
    %905 = vector.load %arg12[%c0_325, %c0_326] : memref<16x64xf32, #tpu.memory_space<vmem>>, vector<16x64xf32>
    tpu.vector_store %arg12[%c0_325, %c0_326], %904 {strides = array<i32>} : memref<16x64xf32, #tpu.memory_space<vmem>>, vector<16x64xf32>,
    return
  }
}

</mosaic_0001>

<bundles_post_ra>
// kernel: transformer_decoder_forward.1
= control target key start
LH: loop header
LB: loop body
LE: loop exit
PB: predicated region body
PF: predicated region fallthrough
CT: control target
= control target key end

     0   :  { %17 = vsyncpa [#allocation4], 0  ;;  %s14078_s0 = inlined_call_operand.hbm [shape: f32[16,64], index: 0, kind: input, shape index: {}]   ;;  %s14079_s1 = inlined_call_operand.vmem [shape: f32[24,64], index: 1, kind: input, shape index: {}]   ;;  %s14080_s2 = inlined_call_operand.vmem [shape: f32[16,16], index: 2, kind: input, shape index: {}]   ;;  %s14081_s3 = inlined_call_operand.vmem [shape: f32[16,24], index: 3, kind: input, shape index: {}]   ;;  %s14082_s4 = inlined_call_operand.vmem [shape: bf16[2,64,192], index: 4, kind: input, shape index: {}]   ;;  %s14083_s5 = inlined_call_operand.vmem [shape: bf16[6,64,64], index: 5, kind: input, shape index: {}]   ;;  %s14084_s6 = inlined_call_operand.hbm [shape: bf16[2,64,128], index: 6, kind: input, shape index: {}]   ;;  %s14085_s7 = inlined_call_operand.vmem [shape: bf16[2,64,256], index: 7, kind: input, shape index: {}]   ;;  %s14086_s8 = inlined_call_operand.vmem [shape: bf16[2,256,64], index: 8, kind: input, shape index: {}]   ;;  %s14087_s9 = inlined_call_operand.hbm [shape: f32[6,256], index: 9, kind: input, shape index: {}]   ;;  %s14088_s10 = inlined_call_operand.hbm [shape: f32[8,64], index: 10, kind: input, shape index: {}]   ;;  %s14089_s11 = inlined_call_operand.hbm [shape: f32[14,64], index: 11, kind: input, shape index: {}]   ;;  %s14090_s12 = inlined_call_operand.hbm [shape: f32[16,64], index: 12, kind: output, shape index: {}]  }
   0x1   :  { %18 = vsyncpa [#allocation7], 0 }
   0x2   :  { %19 = vsyncpa [#allocation10], 0 }
   0x3   :  { %20 = vsyncpa [#allocation5], 0  ;;  %s12244_s21 = smov [#allocation6]   ;;  %s12104_s25 = scalar_lea.hbm %s14084_s6, 1024 }
   0x4   :  { %s48_s22 = sshll.u32 %s12244_s21, 4  ;;  %p12105_p0 = scmp.ne.s32.totalorder %s14084_s6, %s12104_s25  ;;  %s49_s22 = int_to_ptr.vmem [resolvable:$true] %s48_s22 }
   0x5   :  { %p12108_p1 = scmp.lt.u32.totalorder %s12104_s25, %s14084_s6 }
   0x7   :  { %p12110_p2 = pnand %p12108_p1, %p12105_p0 }
   0x9   :  { %12113 = shalt.err (!%p12110_p2)
}
   0xa   :  { %s12114_s30 = scalar_lea.vmem %s49_s22, 1024  ;;  %p12119_p4 = scmp.lt.s32.totalorder %s49_s22, %s49_s22 }
   0xb   :  { %p12115_p3 = scmp.ne.s32.totalorder %s49_s22, %s12114_s30  ;;  %p12120_p5 = scmp.lt.s32.totalorder %s12114_s30, %s12114_s30 }
   0xd   :  { %p12121_p6 = por %p12120_p5, %p12119_p4 }
   0xf   :  { %p12122_p7 = pnand %p12121_p6, %p12115_p3 }
  0x11   :  { %12125 = shalt.err (!%p12122_p7)
}
  0x12   :  { %s12245_s13 = smov 64   ;;  %s12246_s14 = smov 4  }
  0x13   :  { %54 = dma.hbm_to_vmem [thread:$0]  %s14084_s6, 1024, %s49_s22, [#allocation7], %s12245_s13, %s12245_s13, %s12246_s14  }
  0x14   :  { %s12247_s17 = smov [#allocation9]   ;;  %s12248_s19 = smov [#allocation3]  }
  0x15   :  { %s75_s18 = sshll.u32 %s12247_s17, 4  ;;  %s26_s20 = sshll.u32 %s12248_s19, 4  ;;  %s76_s18 = int_to_ptr.vmem [resolvable:$true] %s75_s18  ;;  %s27_s20 = int_to_ptr.vmem [resolvable:$true] %s26_s20 }
  0x16   :  { %s12126_s24 = scalar_lea.hbm %s14088_s10, 128 }
  0x17   :  { %p12127_p8 = scmp.ne.s32.totalorder %s14088_s10, %s12126_s24  ;;  %p12130_p9 = scmp.lt.u32.totalorder %s12126_s24, %s14088_s10 }
  0x19   :  { %p12132_p10 = pnand %p12130_p9, %p12127_p8 }
  0x1b   :  { %12135 = shalt.err (!%p12132_p10)
}
  0x1c   :  { %s12136_s6 = scalar_lea.vmem %s76_s18, 128  ;;  %p12141_p12 = scmp.lt.s32.totalorder %s76_s18, %s76_s18 }
  0x1d   :  { %p12137_p11 = scmp.ne.s32.totalorder %s76_s18, %s12136_s6  ;;  %p12142_p13 = scmp.lt.s32.totalorder %s12136_s6, %s12136_s6 }
  0x1f   :  { %p12143_p0 = por %p12142_p13, %p12141_p12 }
  0x21   :  { %p12144_p1 = pnand %p12143_p0, %p12137_p11 }
  0x23   :  { %12147 = shalt.err (!%p12144_p1)
}
  0x24   :  { %78 = dma.hbm_to_vmem [thread:$0]  %s14088_s10, 128, %s76_s18, [#allocation10]  }
  0x25   :  { %s12148_s15 = scalar_lea.hbm %s14078_s0, 256 }
  0x26   :  { %p12149_p2 = scmp.ne.s32.totalorder %s14078_s0, %s12148_s15  ;;  %p12152_p3 = scmp.lt.u32.totalorder %s12148_s15, %s14078_s0 }
  0x28   :  { %p12154_p4 = pnand %p12152_p3, %p12149_p2 }
  0x2a   :  { %12157 = shalt.err (!%p12154_p4)
}
  0x2b   :  { %s12158_s23 = scalar_lea.vmem %s27_s20, 256  ;;  %p12163_p6 = scmp.lt.s32.totalorder %s27_s20, %s27_s20 }
  0x2c   :  { %p12159_p5 = scmp.ne.s32.totalorder %s27_s20, %s12158_s23  ;;  %p12164_p7 = scmp.lt.s32.totalorder %s12158_s23, %s12158_s23 }
  0x2e   :  { %p12165_p8 = por %p12164_p7, %p12163_p6 }
  0x30   :  { %p12166_p9 = pnand %p12165_p8, %p12159_p5 }
  0x32   :  { %12169 = shalt.err (!%p12166_p9)
}
  0x33   :  { %s14091_s10 = smov 128   ;;  %s14092_s18 = smov 8  }
  0x34   :  { %32 = dma.hbm_to_vmem [thread:$0]  %s14078_s0, 256, %s27_s20, [#allocation4], %s14091_s10, %s14091_s10, %s14092_s18  }
  0x35   :  { %s12251_s26 = smov [#allocation8]   ;;  %s12252_s28 = smov [#allocation11]  }
  0x36   :  { %s65_s27 = sshll.u32 %s12251_s26, 4  ;;  %s84_s6 = sshll.u32 %s12252_s28, 4  ;;  %s66_s27 = int_to_ptr.vmem [resolvable:$true] %s65_s27  ;;  %s85_s6 = int_to_ptr.vmem [resolvable:$true] %s84_s6 }
  0x37   :  { %s12170_s30 = scalar_lea.hbm %s14087_s9, 256 }
  0x38   :  { %p12171_p10 = scmp.ne.s32.totalorder %s14087_s9, %s12170_s30  ;;  %p12174_p11 = scmp.lt.u32.totalorder %s12170_s30, %s14087_s9 }
  0x3a   :  { %p12176_p12 = pnand %p12174_p11, %p12171_p10 }
  0x3c   :  { %12179 = shalt.err (!%p12176_p12)
}
  0x3d   :  { %s12180_s0 = scalar_lea.vmem %s66_s27, 256  ;;  %p12185_p0 = scmp.lt.s32.totalorder %s66_s27, %s66_s27 }
  0x3e   :  { %p12181_p13 = scmp.ne.s32.totalorder %s66_s27, %s12180_s0  ;;  %p12186_p1 = scmp.lt.s32.totalorder %s12180_s0, %s12180_s0 }
  0x40   :  { %p12187_p2 = por %p12186_p1, %p12185_p0 }
  0x42   :  { %p12188_p3 = pnand %p12187_p2, %p12181_p13 }
  0x44   :  { %12191 = shalt.err (!%p12188_p3)
}
  0x45   :  { %68 = dma.hbm_to_vmem [thread:$0]  %s14087_s9, 256, %s66_s27, [#allocation7]  }
  0x46   :  { %s12192_s24 = scalar_lea.hbm %s14089_s11, 256 }
  0x47   :  { %p12193_p4 = scmp.ne.s32.totalorder %s14089_s11, %s12192_s24  ;;  %p12196_p5 = scmp.lt.u32.totalorder %s12192_s24, %s14089_s11 }
  0x49   :  { %p12198_p6 = pnand %p12196_p5, %p12193_p4 }
  0x4b   :  { %12201 = shalt.err (!%p12198_p6)
}
  0x4c   :  { %s12202_s29 = scalar_lea.vmem %s85_s6, 256  ;;  %p12207_p8 = scmp.lt.s32.totalorder %s85_s6, %s85_s6 }
  0x4d   :  { %p12203_p7 = scmp.ne.s32.totalorder %s85_s6, %s12202_s29  ;;  %p12208_p9 = scmp.lt.s32.totalorder %s12202_s29, %s12202_s29 }
  0x4f   :  { %p12209_p10 = por %p12208_p9, %p12207_p8 }
  0x51   :  { %p12210_p11 = pnand %p12209_p10, %p12203_p7 }
  0x53   :  { %12213 = shalt.err (!%p12210_p11)
}
  0x54   :  { %90 = dma.hbm_to_vmem [thread:$0]  %s14089_s11, 256, %s85_s6, [#allocation10], %s14091_s10, %s14091_s10, %s14092_s18  }
  0x55   :  { %12236 = dma.done.wait [#allocation4], 256  }
  0x56   :  { %12237 = vsyncadd [#allocation4], 4294967040 }
  0x57   :  { %12238 = dma.done.wait [#allocation7], 1280  }
  0x58   :  { %12239 = vsyncadd [#allocation7], 4294966016 }
  0x59   :  { %12240 = dma.done.wait [#allocation10], 384  }
  0x5a   :  { %12241 = vsyncadd [#allocation10], 4294966912  ;;  %vm120_vm0 = vcmask 523264   ;;  %v106_v0 = vld [vmem:[#allocation3] sm:$0xff]  ;;  %v107_v1 = vld [vmem:[#allocation3 + $0x8] sm:$0xff]  ;;  %v12253_v19 = vmov 0.0   ;;  %v142_v28 = vlaneseq }
  0x5b   :  { %v121_v2 = vsel %vm120_vm0, %v106_v0, 0.0  ;;  %v124_v3 = vsel %vm120_vm0, %v107_v1, 0.0  ;;  %v11719_v14 = vld [vmem:[%s14082_s4 + $0x4] ss:$8 sps:$4 sm:$0xff]   ;;  %v11721_v15 = vld [vmem:[%s14082_s4] ss:$8 sps:$4 sm:$0xff]   ;;  %276 = vmatprep.mubr.f32.mxu1 %v12253_v19 }
  0x5c   :  { %122 = vadd.xlane.f32.xlu0 %v121_v2  ;;  %10794 = vmatprep.subr.bf16.mxu1 %v11719_v14  ;;  %v11722_v16 = vld [vmem:[%s14082_s4 + $0x14] ss:$8 sps:$4 sm:$0xff]   ;;  %v11724_v17 = vld [vmem:[%s14082_s4 + $0x10] ss:$8 sps:$4 sm:$0xff]   ;;  %v11725_v18 = vld [vmem:[%s14082_s4 + $0x24] ss:$8 sps:$4 sm:$0xff]  }
  0x5d   :  { %10796 = vmatpush1.bf16.msra.mxu1 %v11721_v15  ;;  %v11727_v20 = vld [vmem:[%s14082_s4 + $0x20] ss:$8 sps:$4 sm:$0xff]   ;;  %v11728_v21 = vld [vmem:[%s14082_s4 + $0x34] ss:$8 sps:$4 sm:$0xff]   ;;  %v11730_v22 = vld [vmem:[%s14082_s4 + $0x30] ss:$8 sps:$4 sm:$0xff]  }
  0x5e   :  { %10798 = vmatprep.subr.bf16.mxu1 %v11722_v16  ;;  %v12432_v33 = vshrl.u32 %v142_v28, 7  ;;  %v118_v41 = vld [vmem:[#allocation11] sm:$0xff]  ;;  %v115_v54 = vld [vmem:[#allocation8] sm:$0x3f]  ;;  %v116_v56 = vld [vmem:[#allocation8 + $0x8] sm:$0x3f] }
  0x5f   :  { %vm295_vm5 = vcmask 64512   ;;  %s12254_s22 = smov 120   ;;  %s12255_s29 = smov 48   ;;  %vm383_vm7 = vcmask 130048   ;;  %v12488_v15 = vld [vmem:[%s14080_s2 + $0x8] sm:$0xff]  ;;  %vm703_vm8 = vcmask 130112  }
  0x60   :  { %125 = vadd.xlane.f32.xlu0 %v124_v3  ;;  %v12435_v39 = vsub.s32 0, %v12432_v33  ;;  %v170_v44 = vsub.s32 7, %v12432_v33  ;;  %s12256_s9 = smov 112   ;;  %vm12470_vm6 = vmpackc.low %vm295_vm5, %vm295_vm5  ;;  %s12257_s14 = smov 56   ;;  %vm918_vm9 = vcmask 195712   ;;  %vm1133_vm10 = vcmask 261312  }
  0x61   :  { %10800 = vmatpush1.bf16.msra.mxu1 %v11724_v17  ;;  %s12258_s15 = smov 40   ;;  %s12259_s16 = smov 104   ;;  %vm1348_vm11 = vcmask 326912   ;;  %vm1563_vm12 = vcmask 392512   ;;  %vm1778_vm13 = vcmask 458112   ;;  %vm1993_vm14 = vcmask 523712  }
  0x62   :  { %10802 = vmatprep.subr.bf16.mxu1 %v11725_v18  ;;  %v145_v43 = vrot.slane %v118_v41, %v12435_v39  ;;  %v171_v46 = vrot.slane %v118_v41, %v170_v44  ;;  %v201_v55 = vrot.slane %v115_v54, %v12435_v39  ;;  %v205_v60 = vrot.slane %v116_v56, %v12435_v39  ;;  %s12260_s17 = smov 32   ;;  %s12261_s0 = smov 96  }
  0x63   :  { %s12262_s20 = smov 24   ;;  %s12263_s19 = smov 88   ;;  %vm12268_vm15 = vmmov 0  }
  0x64   :  { %s12264_s21 = smov 16   ;;  %s12265_s23 = smov 80  }
  0x65   :  { %10804 = vmatpush1.bf16.msra.mxu1 %v11727_v20  ;;  %s14094_s24 = smov 72  }
  0x66   :  { %10806 = vmatprep.subr.bf16.mxu1 %v11728_v21 }
  0x69   :  { %10808 = vmatpush1.bf16.msra.mxu1 %v11730_v22 }
  0xe9   :  { %v123_v4 = vpop.xlane.xlu0 %122 }
  0xea   :  { %v128_v5 = vmul.f32 0.015625, %v123_v4 }
  0xec   :  { %v130_v6 = vsub.f32 %v106_v0, %v128_v5 }
  0xed   :  { %v126_v7 = vpop.xlane.xlu0 %125 }
  0xee   :  { %v129_v8 = vmul.f32 0.015625, %v126_v7  ;;  %v132_v9 = vmul.f32 %v130_v6, %v130_v6  ;;  %v146_v45 = vmul.f32 %v145_v43, %v130_v6 }
  0xf0   :  { %v131_v10 = vsub.f32 %v107_v1, %v129_v8  ;;  %v134_v11 = vsel %vm120_vm0, %v132_v9, 0.0 }
  0xf1   :  { %135 = vadd.xlane.f32.xlu1 %v134_v11 }
  0xf2   :  { %v133_v12 = vmul.f32 %v131_v10, %v131_v10  ;;  %v147_v49 = vmul.f32 %v145_v43, %v131_v10 }
  0xf4   :  { %v137_v13 = vsel %vm120_vm0, %v133_v12, 0.0  ;;  %v12483_v12 = vld [vmem:[%s14080_s2] sm:$0xff] }
  0xf5   :  { %138 = vadd.xlane.f32.xlu1 %v137_v13 }
 0x17e   :  { %v136_v23 = vpop.xlane.xlu1 %135 }
 0x17f   :  { %v140_v24 = vmul.f32 0.015873017, %v136_v23 }
 0x181   :  { %11767 = vrsqrt.f32 %v140_v24  ;;  %vm150_vm1 = vcmp.eq.f32.partialorder %v140_v24, inf  ;;  %v153_v30 = vand.u32 2147483648, %v140_v24  ;;  %vm152_vm2 = vcmp.eq.f32.partialorder %v140_v24, 0.0 }
 0x182   :  { %v139_v25 = vpop.xlane.xlu1 %138 }
 0x183   :  { %v141_v26 = vmul.f32 0.015873017, %v139_v25 }
 0x185   :  { %11769 = vrsqrt.f32 %v141_v26  ;;  %vm157_vm3 = vcmp.eq.f32.partialorder %v141_v26, inf  ;;  %v160_v37 = vand.u32 2147483648, %v141_v26  ;;  %vm159_vm4 = vcmp.eq.f32.partialorder %v141_v26, 0.0 }
 0x18b   :  { %v11768_v27 = vpop.eup %11767 }
 0x18c   :  { %v149_v29 = vmul.f32 %v11768_v27, %v140_v24 }
 0x18e   :  { %v151_v31 = vsel %vm150_vm1, %v140_v24, %v149_v29 }
 0x18f   :  { %v11770_v32 = vpop.eup %11769  ;;  %v154_v34 = vsel %vm152_vm2, %v153_v30, %v151_v31 }
 0x190   :  { %v156_v35 = vmul.f32 %v11770_v32, %v141_v26  ;;  %v162_v36 = vadd.f32 1e-06, %v154_v34 }
 0x192   :  { %v158_v38 = vsel %vm157_vm3, %v141_v26, %v156_v35  ;;  %11771 = vrcp.f32 %v162_v36 }
 0x193   :  { %v161_v40 = vsel %vm159_vm4, %v160_v37, %v158_v38 }
 0x194   :  { %v163_v42 = vadd.f32 1e-06, %v161_v40 }
 0x196   :  { %11773 = vrcp.f32 %v163_v42 }
 0x19c   :  { %v11772_v47 = vpop.eup %11771 }
 0x19d   :  { %v165_v48 = vmul.f32 %v11772_v47, %v146_v45 }
 0x19f   :  { %v172_v50 = vadd.f32 %v171_v46, %v165_v48 }
 0x1a0   :  { %v11774_v51 = vpop.eup %11773 }
 0x1a1   :  { %9033 = vmatmul.mubr.msk.f32.vlgmr.msra.gmra.mrb[0].mxu1 %vm120_vm0, %v172_v50  ;;  %v167_v52 = vmul.f32 %v11774_v51, %v147_v49 }
 0x1a2   :  { %282 = vmatprep.mubr.f32.mxu1 %v12253_v19 }
 0x1a3   :  { %v173_v53 = vadd.f32 %v171_v46, %v167_v52 }
 0x1a5   :  { %9034 = vmatmul.mubr.msk.f32.gmra.mrb[2].mxu1 %vm120_vm0, %v173_v53 }
 0x274   :  { %v278_v57 = vpop.f32.mrb[0].mxu1 }
 0x275   :  { %v12445_v58 = vadd.f32 %v278_v57, %v201_v55  ;;  %v280_v59 = vpop.f32.mrb[1].mxu1 }
 0x276   :  { %v281_v0 = vadd.f32 %v280_v59, %v205_v60 }
 0x277   :  { %10121 = vmatprep.mubr.msk.f32.mxu1 %vm295_vm5, %v12445_v58 }
 0x278   :  { %v284_v61 = vpop.f32.mrb[2].mxu1 }
 0x279   :  { %v12450_v62 = vadd.f32 %v284_v61, %v201_v55  ;;  %v286_v63 = vpop.f32.mrb[3].mxu1 }
 0x27a   :  { %v287_v1 = vadd.f32 %v286_v63, %v205_v60 }
 0x27b   :  { %v12454_v2 = vpack.i.bf16 %v12450_v62, %v12445_v58 }
 0x27c   :  { %v10815_v3 = vpack.c.bf16 %v287_v1, %v281_v0  ;;  %v12456_v4 = vpack.i.bf16 %v287_v1, %v281_v0 }
 0x27d   :  { %11420 = vrot.lane.b32.xlu0 %v12454_v2, %s12245_s13 }
 0x281   :  { %489 = vrot.lane.b32.xlu0 %v12445_v58, %s12254_s22 }
 0x285   :  { %11430 = vrot.lane.b32.xlu0 %v12454_v2, %s12255_s29 }
 0x289   :  { %491 = vrot.lane.b32.xlu0 %v12450_v62, %s12254_s22 }
 0x28d   :  { %708 = vrot.lane.b32.xlu0 %v12450_v62, %s12256_s9 }
 0x2ef   :  { %v11421_v5 = vpop.permute.xlu0 %11420 }
 0x2f0   :  { %v11423_v6 = vunpack.i.h.bf16 %v11421_v5  ;;  %v11422_v7 = vunpack.i.l.bf16 %v11421_v5 }
 0x2f2   :  { %v10809_v9 = vpack.c.bf16 %v11423_v6, %v11422_v7 }
 0x2f3   :  { %v490_v34 = vpop.permute.xlu0 %489 }
 0x2f4   :  { %10811 = vmatprep.subr.msk.bf16.mxu1 %vm12470_vm6, %v10809_v9 }
 0x2f5   :  { %10814 = vmatpush3.bf16.xpose.msk.msra.mxu1 %vm12470_vm6, %v10809_v9 }
 0x2f6   :  { %10816 = vmatprep.subr.bf16.mxu1 %v10815_v3 }
 0x2f7   :  { %v11431_v40 = vpop.permute.xlu0 %11430 }
 0x2f8   :  { %v11433_v43 = vunpack.i.h.bf16 %v11431_v40  ;;  %v11432_v45 = vunpack.i.l.bf16 %v11431_v40 }
 0x2fa   :  { %v10829_v48 = vpack.c.bf16 %v11433_v43, %v11432_v45 }
 0x2fb   :  { %v492_v49 = vpop.permute.xlu0 %491 }
 0x2fc   :  { %10122 = vmatmul.mubr.msk.f32.vlgmr.msra.gmra.mrb[4].mxu1 %vm295_vm5, %v12450_v62 }
 0x2fd   :  { %10818 = vmatpush3.bf16.msra.mxu1 %v10815_v3 }
 0x2ff   :  { %v709_v51 = vpop.permute.xlu0 %708 }
 0x3cf   :  { %v10123_v10 = vpop.f32.mrb[4].mxu1 }
 0x3d0   :  { %v370_v11 = vpop.f32.mrb[5].mxu1  ;;  %v380_v13 = vmul.f32 0.35355338, %v10123_v10 }
 0x3d1   :  { %v379_v14 = vmul.f32 0.35355338, %v370_v11 }
 0x3d2   :  { %v382_v18 = vadd.f32 %v380_v13, %v12488_v15 }
 0x3d3   :  { %v381_v16 = vadd.f32 %v379_v14, %v12483_v12 }
 0x3d4   :  { %v387_v20 = vsel %vm383_vm7, %v382_v18, -inf }
 0x3d5   :  { %v384_v17 = vsel %vm383_vm7, %v381_v16, -inf }
 0x3d6   :  { %385 = vmax.xlane.f32.xlu1 %v384_v17 }
 0x3da   :  { %388 = vmax.xlane.f32.xlu1 %v387_v20 }
 0x463   :  { %v386_v21 = vpop.xlane.xlu1 %385 }
 0x464   :  { %v390_v22 = vsub.f32 %v381_v16, %v386_v21 }
 0x466   :  { %v392_v25 = vmul.f32 1.442695, %v390_v22 }
 0x467   :  { %v389_v23 = vpop.xlane.xlu1 %388 }
 0x468   :  { %v391_v24 = vsub.f32 %v382_v18, %v389_v23 }
 0x46a   :  { %v394_v26 = vmul.f32 1.442695, %v391_v24 }
 0x46c   :  { %11775 = vpow2.f32 %v394_v26 }
 0x46d   :  { %11777 = vpow2.f32 %v392_v25 }
 0x476   :  { %v11776_v27 = vpop.eup %11775 }
 0x477   :  { %v399_v28 = vsel %vm383_vm7, %v11776_v27, 0.0  ;;  %v11778_v29 = vpop.eup %11777 }
 0x478   :  { %400 = vadd.xlane.f32.xlu1 %v399_v28  ;;  %v396_v30 = vsel %vm383_vm7, %v11778_v29, 0.0 }
 0x47c   :  { %397 = vadd.xlane.f32.xlu1 %v396_v30 }
 0x48d   :  { %11425 = vrot.lane.b32.xlu1 %v12454_v2, %s12257_s14 }
 0x491   :  { %706 = vrot.lane.b32.xlu1 %v12445_v58, %s12256_s9 }
 0x505   :  { %v401_v31 = vpop.xlane.xlu1 %400 }
 0x506   :  { %11779 = vrcp.f32 %v401_v31 }
 0x509   :  { %v398_v32 = vpop.xlane.xlu1 %397 }
 0x50a   :  { %11781 = vrcp.f32 %v398_v32 }
 0x50d   :  { %v11426_v35 = vpop.permute.xlu1 %11425 }
 0x50e   :  { %v11428_v36 = vunpack.i.h.bf16 %v11426_v35  ;;  %v11427_v37 = vunpack.i.l.bf16 %v11426_v35 }
 0x510   :  { %v10819_v38 = vpack.c.bf16 %v11428_v36, %v11427_v37  ;;  %v11780_v41 = vpop.eup %11779 }
 0x511   :  { %v405_v47 = vmul.f32 %v11780_v41, %v11776_v27  ;;  %v707_v50 = vpop.permute.xlu1 %706 }
 0x512   :  { %10821 = vmatprep.subr.msk.bf16.mxu1 %vm12470_vm6, %v10819_v38 }
 0x514   :  { %v11782_v42 = vpop.eup %11781 }
 0x515   :  { %v404_v46 = vmul.f32 %v11782_v42, %v11778_v29 }
 0x517   :  { %10128 = vmatprep.mubr.msk.f32.mxu1 %vm383_vm7, %v404_v46 }
 0x518   :  { %10129 = vmatmul.mubr.msk.f32.vlgmr.msra.gmra.mrb[6].mxu1 %vm383_vm7, %v405_v47 }
 0x519   :  { %10824 = vmatpush3.bf16.xpose.msk.msra.mxu1 %vm12470_vm6, %v10819_v38  ;;  %10135 = vmatprep.mubr.msk.f32.mxu1 %vm295_vm5, %v490_v34 }
 0x51a   :  { %10831 = vmatprep.subr.msk.bf16.mxu1 %vm12470_vm6, %v10829_v48 }
 0x520   :  { %10136 = vmatmul.mubr.msk.f32.vlgmr.msra.gmra.mrb[8].mxu1 %vm295_vm5, %v492_v49 }
 0x521   :  { %10834 = vmatpush3.bf16.xpose.msk.msra.mxu1 %vm12470_vm6, %v10829_v48  ;;  %10149 = vmatprep.mubr.msk.f32.mxu1 %vm295_vm5, %v707_v50 }
 0x528   :  { %10150 = vmatmul.mubr.msk.f32.vlgmr.msra.gmra.mrb[10].mxu1 %vm295_vm5, %v709_v51 }
 0x5eb   :  { %v10130_v52 = vpop.f32.mrb[6].mxu1 }
 0x5ec   :  { %488 = vst.msk [vmem:[#allocation2 + $0x8] sm:$0xff] %vm295_vm5, %v10130_v52  ;;  %v478_v53 = vpop.f32.mrb[7].mxu1 }
 0x5ed   :  { %487 = vst.msk [vmem:[#allocation2] sm:$0xff] %vm295_vm5, %v478_v53 }
 0x5f3   :  { %v10137_v54 = vpop.f32.mrb[8].mxu1 }
 0x5f4   :  { %v581_v55 = vmul.f32 0.35355338, %v10137_v54  ;;  %v571_v56 = vpop.f32.mrb[9].mxu1 }
 0x5f5   :  { %v580_v57 = vmul.f32 0.35355338, %v571_v56 }
 0x5f6   :  { %v583_v59 = vadd.f32 %v581_v55, %v12488_v15 }
 0x5f7   :  { %v582_v60 = vadd.f32 %v580_v57, %v12483_v12 }
 0x5f8   :  { %v587_v61 = vsel %vm383_vm7, %v583_v59, -inf }
 0x5f9   :  { %588 = vmax.xlane.f32.xlu0 %v587_v61  ;;  %v584_v63 = vsel %vm383_vm7, %v582_v60, -inf }
 0x5fa   :  { %585 = vmax.xlane.f32.xlu1 %v584_v63 }
 0x5fb   :  { %v10151_v0 = vpop.f32.mrb[10].mxu1 }
 0x5fc   :  { %v788_v1 = vpop.f32.mrb[11].mxu1  ;;  %v798_v3 = vmul.f32 0.35355338, %v10151_v0 }
 0x5fd   :  { %v797_v5 = vmul.f32 0.35355338, %v788_v1 }
 0x5fe   :  { %v800_v9 = vadd.f32 %v798_v3, %v12488_v15 }
 0x5ff   :  { %v799_v6 = vadd.f32 %v797_v5, %v12483_v12 }
 0x600   :  { %v804_v10 = vsel %vm383_vm7, %v800_v9, -inf }
 0x601   :  { %v801_v7 = vsel %vm383_vm7, %v799_v6, -inf }
 0x602   :  { %802 = vmax.xlane.f32.xlu0 %v801_v7 }
 0x606   :  { %805 = vmax.xlane.f32.xlu0 %v804_v10 }
 0x60b   :  { %11435 = vrot.lane.b32.xlu1 %v12456_v4, %s12254_s22 }
 0x686   :  { %v589_v11 = vpop.xlane.xlu0 %588 }
 0x687   :  { %v591_v13 = vsub.f32 %v583_v59, %v589_v11  ;;  %v586_v14 = vpop.xlane.xlu1 %585 }
 0x688   :  { %v590_v16 = vsub.f32 %v582_v60, %v586_v14 }
 0x689   :  { %v594_v17 = vmul.f32 1.442695, %v591_v13 }
 0x68a   :  { %v592_v18 = vmul.f32 1.442695, %v590_v16 }
 0x68b   :  { %11783 = vpow2.f32 %v594_v17  ;;  %v11436_v20 = vpop.permute.xlu1 %11435 }
 0x68c   :  { %11785 = vpow2.f32 %v592_v18  ;;  %v11438_v21 = vunpack.i.h.bf16 %v11436_v20  ;;  %v11437_v22 = vunpack.i.l.bf16 %v11436_v20 }
 0x68e   :  { %v10825_v23 = vpack.c.bf16 %v11438_v21, %v11437_v22 }
 0x68f   :  { %v803_v24 = vpop.xlane.xlu0 %802 }
 0x690   :  { %10826 = vmatprep.subr.bf16.mxu0 %v10825_v23  ;;  %v807_v35 = vsub.f32 %v799_v6, %v803_v24 }
 0x691   :  { %10828 = vmatpush3.bf16.msra.mxu0 %v10825_v23 }
 0x692   :  { %v809_v36 = vmul.f32 1.442695, %v807_v35 }
 0x693   :  { %v806_v25 = vpop.xlane.xlu0 %805 }
 0x694   :  { %v808_v26 = vsub.f32 %v800_v9, %v806_v25 }
 0x695   :  { %v11784_v27 = vpop.eup %11783 }
 0x696   :  { %v11786_v28 = vpop.eup %11785  ;;  %v811_v29 = vmul.f32 1.442695, %v808_v26  ;;  %v599_v30 = vsel %vm383_vm7, %v11784_v27, 0.0 }
 0x697   :  { %600 = vadd.xlane.f32.xlu0 %v599_v30  ;;  %v596_v31 = vsel %vm383_vm7, %v11786_v28, 0.0 }
 0x698   :  { %11787 = vpow2.f32 %v811_v29  ;;  %597 = vadd.xlane.f32.xlu1 %v596_v31 }
 0x699   :  { %11789 = vpow2.f32 %v809_v36 }
 0x6a2   :  { %v11788_v32 = vpop.eup %11787 }
 0x6a3   :  { %v816_v34 = vsel %vm383_vm7, %v11788_v32, 0.0  ;;  %v11790_v37 = vpop.eup %11789 }
 0x6a4   :  { %817 = vadd.xlane.f32.xlu0 %v816_v34  ;;  %v813_v38 = vsel %vm383_vm7, %v11790_v37, 0.0 }
 0x6a9   :  { %11445 = vrot.lane.b32.xlu1 %v12454_v2, %s12258_s15 }
 0x6ad   :  { %921 = vrot.lane.b32.xlu1 %v12445_v58, %s12259_s16 }
 0x6ba   :  { %11440 = vrot.lane.b32.xlu0 %v12456_v4, %s12256_s9 }
 0x6d1   :  { %814 = vadd.xlane.f32.xlu1 %v813_v38 }
 0x6e2   :  { %923 = vrot.lane.b32.xlu1 %v12450_v62, %s12259_s16 }
 0x724   :  { %v601_v40 = vpop.xlane.xlu0 %600 }
 0x725   :  { %11791 = vrcp.f32 %v601_v40  ;;  %v598_v41 = vpop.xlane.xlu1 %597 }
 0x726   :  { %11793 = vrcp.f32 %v598_v41 }
 0x729   :  { %v11446_v48 = vpop.permute.xlu1 %11445 }
 0x72a   :  { %v11448_v50 = vunpack.i.h.bf16 %v11446_v48  ;;  %v11447_v51 = vunpack.i.l.bf16 %v11446_v48 }
 0x72c   :  { %v10839_v55 = vpack.c.bf16 %v11448_v50, %v11447_v51 }
 0x72d   :  { %v922_v56 = vpop.permute.xlu1 %921 }
 0x72f   :  { %v11792_v42 = vpop.eup %11791 }
 0x730   :  { %v11794_v43 = vpop.eup %11793  ;;  %v605_v47 = vmul.f32 %v11792_v42, %v11784_v27 }
 0x731   :  { %v818_v45 = vpop.xlane.xlu0 %817  ;;  %v604_v46 = vmul.f32 %v11794_v43, %v11786_v28 }
 0x732   :  { %11795 = vrcp.f32 %v818_v45 }
 0x733   :  { %10142 = vmatprep.mubr.msk.f32.mxu0 %vm383_vm7, %v604_v46 }
 0x734   :  { %10143 = vmatmul.mubr.msk.f32.vlgmr.msra.gmra.mrb[0].mxu0 %vm383_vm7, %v605_v47 }
 0x735   :  { %v11441_v49 = vpop.permute.xlu0 %11440 }
 0x736   :  { %v11443_v52 = vunpack.i.h.bf16 %v11441_v49  ;;  %v11442_v53 = vunpack.i.l.bf16 %v11441_v49 }
 0x738   :  { %v10835_v54 = vpack.c.bf16 %v11443_v52, %v11442_v53 }
 0x73a   :  { %10836 = vmatprep.subr.bf16.mxu0 %v10835_v54 }
 0x73b   :  { %10838 = vmatpush3.bf16.msra.mxu0 %v10835_v54 }
 0x73c   :  { %10841 = vmatprep.subr.msk.bf16.mxu0 %vm12470_vm6, %v10839_v55  ;;  %v11796_v59 = vpop.eup %11795 }
 0x73d   :  { %v822_v63 = vmul.f32 %v11796_v59, %v11788_v32 }
 0x75e   :  { %v815_v57 = vpop.xlane.xlu1 %814 }
 0x75f   :  { %11797 = vrcp.f32 %v815_v57 }
 0x762   :  { %v924_v0 = vpop.permute.xlu1 %923 }
 0x769   :  { %v11798_v60 = vpop.eup %11797 }
 0x76a   :  { %v821_v61 = vmul.f32 %v11798_v60, %v11790_v37 }
 0x76c   :  { %10156 = vmatprep.mubr.msk.f32.mxu0 %vm383_vm7, %v821_v61 }
 0x76d   :  { %10157 = vmatmul.mubr.msk.f32.vlgmr.msra.gmra.mrb[2].mxu0 %vm383_vm7, %v822_v63 }
 0x76e   :  { %10844 = vmatpush3.bf16.xpose.msk.msra.mxu0 %vm12470_vm6, %v10839_v55  ;;  %10163 = vmatprep.mubr.msk.f32.mxu0 %vm295_vm5, %v922_v56 }
 0x775   :  { %10164 = vmatmul.mubr.msk.f32.vlgmr.msra.gmra.mrb[4].mxu0 %vm295_vm5, %v924_v0 }
 0x807   :  { %v12548_v1 = vpop.f32.mrb[0].mxu0 }
 0x808   :  { %v12550_v3 = vpop.f32.mrb[1].mxu0 }
 0x840   :  { %v12552_v5 = vpop.f32.mrb[2].mxu0 }
 0x841   :  { %v12554_v6 = vpop.f32.mrb[3].mxu0 }
 0x848   :  { %v10165_v7 = vpop.f32.mrb[4].mxu0 }
 0x849   :  { %v1013_v9 = vmul.f32 0.35355338, %v10165_v7  ;;  %v1003_v10 = vpop.f32.mrb[5].mxu0 }
 0x84a   :  { %v1012_v11 = vmul.f32 0.35355338, %v1003_v10 }
 0x84b   :  { %v1015_v13 = vadd.f32 %v1013_v9, %v12488_v15 }
 0x84c   :  { %v1014_v14 = vadd.f32 %v1012_v11, %v12483_v12 }
 0x84d   :  { %v1019_v16 = vsel %vm383_vm7, %v1015_v13, -inf }
 0x84e   :  { %1020 = vmax.xlane.f32.xlu1 %v1019_v16  ;;  %v1016_v17 = vsel %vm383_vm7, %v1014_v14, -inf }
 0x84f   :  { %1017 = vmax.xlane.f32.xlu0 %v1016_v17 }
 0x85f   :  { %11455 = vrot.lane.b32.xlu1 %v12454_v2, %s12260_s17 }
 0x863   :  { %1136 = vrot.lane.b32.xlu1 %v12445_v58, %s12261_s0 }
 0x867   :  { %1138 = vrot.lane.b32.xlu1 %v12450_v62, %s12261_s0 }
 0x8db   :  { %v1021_v18 = vpop.xlane.xlu1 %1020 }
 0x8dc   :  { %v1023_v20 = vsub.f32 %v1015_v13, %v1021_v18  ;;  %v1018_v21 = vpop.xlane.xlu0 %1017 }
 0x8dd   :  { %v1022_v22 = vsub.f32 %v1014_v14, %v1018_v21 }
 0x8de   :  { %v1026_v23 = vmul.f32 1.442695, %v1023_v20 }
 0x8df   :  { %v1024_v24 = vmul.f32 1.442695, %v1022_v22  ;;  %v11456_v31 = vpop.permute.xlu1 %11455 }
 0x8e0   :  { %11799 = vpow2.f32 %v1026_v23  ;;  %v11458_v34 = vunpack.i.h.bf16 %v11456_v31  ;;  %v11457_v35 = vunpack.i.l.bf16 %v11456_v31 }
 0x8e1   :  { %11801 = vpow2.f32 %v1024_v24 }
 0x8e2   :  { %v10849_v40 = vpack.c.bf16 %v11458_v34, %v11457_v35 }
 0x8e3   :  { %v1137_v46 = vpop.permute.xlu1 %1136 }
 0x8e7   :  { %v1139_v47 = vpop.permute.xlu1 %1138 }
 0x8ea   :  { %v11800_v25 = vpop.eup %11799 }
 0x8eb   :  { %v1031_v26 = vsel %vm383_vm7, %v11800_v25, 0.0  ;;  %v11802_v27 = vpop.eup %11801 }
 0x8ec   :  { %1032 = vadd.xlane.f32.xlu0 %v1031_v26  ;;  %v1028_v28 = vsel %vm383_vm7, %v11802_v27, 0.0 }
 0x8f0   :  { %1029 = vadd.xlane.f32.xlu0 %v1028_v28 }
 0x906   :  { %11450 = vrot.lane.b32.xlu0 %v12456_v4, %s12259_s16 }
 0x979   :  { %v1033_v29 = vpop.xlane.xlu0 %1032 }
 0x97a   :  { %11803 = vrcp.f32 %v1033_v29 }
 0x97d   :  { %v1030_v30 = vpop.xlane.xlu0 %1029 }
 0x97e   :  { %11805 = vrcp.f32 %v1030_v30 }
 0x981   :  { %v11451_v32 = vpop.permute.xlu0 %11450 }
 0x982   :  { %v11453_v36 = vunpack.i.h.bf16 %v11451_v32  ;;  %v11452_v37 = vunpack.i.l.bf16 %v11451_v32 }
 0x984   :  { %v10845_v38 = vpack.c.bf16 %v11453_v36, %v11452_v37  ;;  %v11804_v41 = vpop.eup %11803 }
 0x985   :  { %v1037_v45 = vmul.f32 %v11804_v41, %v11800_v25 }
 0x986   :  { %10846 = vmatprep.subr.bf16.mxu1 %v10845_v38 }
 0x987   :  { %10848 = vmatpush3.bf16.msra.mxu1 %v10845_v38 }
 0x988   :  { %v11806_v42 = vpop.eup %11805  ;;  %10851 = vmatprep.subr.msk.bf16.mxu1 %vm12470_vm6, %v10849_v40 }
 0x989   :  { %v1036_v43 = vmul.f32 %v11806_v42, %v11802_v27 }
 0x98b   :  { %10170 = vmatprep.mubr.msk.f32.mxu1 %vm383_vm7, %v1036_v43 }
 0x98c   :  { %10171 = vmatmul.mubr.msk.f32.vlgmr.msra.gmra.mrb[12].mxu1 %vm383_vm7, %v1037_v45 }
 0x98d   :  { %10177 = vmatprep.mubr.msk.f32.mxu1 %vm295_vm5, %v1137_v46 }
 0x990   :  { %10854 = vmatpush3.bf16.xpose.msk.msra.mxu1 %vm12470_vm6, %v10849_v40 }
 0x997   :  { %10178 = vmatmul.mubr.msk.f32.vlgmr.msra.gmra.mrb[14].mxu1 %vm295_vm5, %v1139_v47 }
 0xa5f   :  { %v12578_v48 = vpop.f32.mrb[12].mxu1 }
 0xa60   :  { %v12580_v49 = vpop.f32.mrb[13].mxu1 }
 0xa6a   :  { %v10179_v50 = vpop.f32.mrb[14].mxu1 }
 0xa6b   :  { %v1228_v51 = vmul.f32 0.35355338, %v10179_v50  ;;  %v1218_v52 = vpop.f32.mrb[15].mxu1 }
 0xa6c   :  { %v1227_v53 = vmul.f32 0.35355338, %v1218_v52 }
 0xa6d   :  { %v1230_v54 = vadd.f32 %v1228_v51, %v12488_v15 }
 0xa6e   :  { %v1229_v55 = vadd.f32 %v1227_v53, %v12483_v12 }
 0xa6f   :  { %v1234_v56 = vsel %vm383_vm7, %v1230_v54, -inf }
 0xa70   :  { %1235 = vmax.xlane.f32.xlu1 %v1234_v56  ;;  %v1231_v57 = vsel %vm383_vm7, %v1229_v55, -inf }
 0xa71   :  { %1232 = vmax.xlane.f32.xlu0 %v1231_v57 }
 0xa81   :  { %11465 = vrot.lane.b32.xlu1 %v12454_v2, %s12262_s20 }
 0xa85   :  { %1351 = vrot.lane.b32.xlu1 %v12445_v58, %s12263_s19 }
 0xa89   :  { %1353 = vrot.lane.b32.xlu1 %v12450_v62, %s12263_s19 }
 0xafd   :  { %v1236_v59 = vpop.xlane.xlu1 %1235 }
 0xafe   :  { %v1238_v60 = vsub.f32 %v1230_v54, %v1236_v59  ;;  %v1233_v61 = vpop.xlane.xlu0 %1232 }
 0xaff   :  { %v1237_v63 = vsub.f32 %v1229_v55, %v1233_v61 }
 0xb00   :  { %v1241_v0 = vmul.f32 1.442695, %v1238_v60 }
 0xb01   :  { %v1239_v7 = vmul.f32 1.442695, %v1237_v63  ;;  %v11466_v17 = vpop.permute.xlu1 %11465 }
 0xb02   :  { %11807 = vpow2.f32 %v1241_v0  ;;  %v11468_v20 = vunpack.i.h.bf16 %v11466_v17  ;;  %v11467_v21 = vunpack.i.l.bf16 %v11466_v17 }
 0xb03   :  { %11809 = vpow2.f32 %v1239_v7 }
 0xb04   :  { %v10859_v25 = vpack.c.bf16 %v11468_v20, %v11467_v21 }
 0xb05   :  { %v1352_v30 = vpop.permute.xlu1 %1351 }
 0xb09   :  { %v1354_v31 = vpop.permute.xlu1 %1353 }
 0xb0c   :  { %v11808_v9 = vpop.eup %11807 }
 0xb0d   :  { %v1246_v10 = vsel %vm383_vm7, %v11808_v9, 0.0  ;;  %v11810_v11 = vpop.eup %11809 }
 0xb0e   :  { %1247 = vadd.xlane.f32.xlu0 %v1246_v10  ;;  %v1243_v13 = vsel %vm383_vm7, %v11810_v11, 0.0 }
 0xb12   :  { %1244 = vadd.xlane.f32.xlu0 %v1243_v13 }
 0xb28   :  { %11460 = vrot.lane.b32.xlu0 %v12456_v4, %s12261_s0 }
 0xb9b   :  { %v1248_v14 = vpop.xlane.xlu0 %1247 }
 0xb9c   :  { %11811 = vrcp.f32 %v1248_v14 }
 0xb9f   :  { %v1245_v16 = vpop.xlane.xlu0 %1244 }
 0xba0   :  { %11813 = vrcp.f32 %v1245_v16 }
 0xba3   :  { %v11461_v18 = vpop.permute.xlu0 %11460 }
 0xba4   :  { %v11463_v22 = vunpack.i.h.bf16 %v11461_v18  ;;  %v11462_v23 = vunpack.i.l.bf16 %v11461_v18 }
 0xba6   :  { %v10855_v24 = vpack.c.bf16 %v11463_v22, %v11462_v23  ;;  %v11812_v26 = vpop.eup %11811 }
 0xba7   :  { %v1252_v29 = vmul.f32 %v11812_v26, %v11808_v9 }
 0xba8   :  { %10856 = vmatprep.subr.bf16.mxu0 %v10855_v24 }
 0xba9   :  { %10858 = vmatpush3.bf16.msra.mxu0 %v10855_v24 }
 0xbaa   :  { %v11814_v27 = vpop.eup %11813  ;;  %10861 = vmatprep.subr.msk.bf16.mxu0 %vm12470_vm6, %v10859_v25 }
 0xbab   :  { %v1251_v28 = vmul.f32 %v11814_v27, %v11810_v11 }
 0xbad   :  { %10184 = vmatprep.mubr.msk.f32.mxu0 %vm383_vm7, %v1251_v28 }
 0xbae   :  { %10185 = vmatmul.mubr.msk.f32.vlgmr.msra.gmra.mrb[6].mxu0 %vm383_vm7, %v1252_v29 }
 0xbaf   :  { %10191 = vmatprep.mubr.msk.f32.mxu0 %vm295_vm5, %v1352_v30 }
 0xbb2   :  { %10864 = vmatpush3.bf16.xpose.msk.msra.mxu0 %vm12470_vm6, %v10859_v25 }
 0xbb9   :  { %10192 = vmatmul.mubr.msk.f32.vlgmr.msra.gmra.mrb[8].mxu0 %vm295_vm5, %v1354_v31 }
 0xc81   :  { %v12604_v32 = vpop.f32.mrb[6].mxu0 }
 0xc82   :  { %v12606_v34 = vpop.f32.mrb[7].mxu0 }
 0xc8c   :  { %v10193_v35 = vpop.f32.mrb[8].mxu0 }
 0xc8d   :  { %v1443_v36 = vmul.f32 0.35355338, %v10193_v35  ;;  %v1433_v37 = vpop.f32.mrb[9].mxu0 }
 0xc8e   :  { %v1442_v38 = vmul.f32 0.35355338, %v1433_v37 }
 0xc8f   :  { %v1445_v40 = vadd.f32 %v1443_v36, %v12488_v15 }
 0xc90   :  { %v1444_v41 = vadd.f32 %v1442_v38, %v12483_v12 }
 0xc91   :  { %v1449_v42 = vsel %vm383_vm7, %v1445_v40, -inf }
 0xc92   :  { %1450 = vmax.xlane.f32.xlu1 %v1449_v42  ;;  %v1446_v43 = vsel %vm383_vm7, %v1444_v41, -inf }
 0xc93   :  { %1447 = vmax.xlane.f32.xlu0 %v1446_v43 }
 0xca3   :  { %11475 = vrot.lane.b32.xlu1 %v12454_v2, %s12264_s21 }
 0xca7   :  { %1566 = vrot.lane.b32.xlu1 %v12445_v58, %s12265_s23 }
 0xcab   :  { %1568 = vrot.lane.b32.xlu1 %v12450_v62, %s12265_s23 }
 0xd1f   :  { %v1451_v45 = vpop.xlane.xlu1 %1450 }
 0xd20   :  { %v1453_v46 = vsub.f32 %v1445_v40, %v1451_v45  ;;  %v1448_v47 = vpop.xlane.xlu0 %1447 }
 0xd21   :  { %v1452_v50 = vsub.f32 %v1444_v41, %v1448_v47 }
 0xd22   :  { %v1456_v51 = vmul.f32 1.442695, %v1453_v46 }
 0xd23   :  { %v1454_v52 = vmul.f32 1.442695, %v1452_v50  ;;  %v11476_v60 = vpop.permute.xlu1 %11475 }
 0xd24   :  { %11815 = vpow2.f32 %v1456_v51  ;;  %v11478_v63 = vunpack.i.h.bf16 %v11476_v60  ;;  %v11477_v0 = vunpack.i.l.bf16 %v11476_v60 }
 0xd25   :  { %11817 = vpow2.f32 %v1454_v52 }
 0xd26   :  { %v10869_v11 = vpack.c.bf16 %v11478_v63, %v11477_v0 }
 0xd27   :  { %v1567_v18 = vpop.permute.xlu1 %1566 }
 0xd2b   :  { %v1569_v20 = vpop.permute.xlu1 %1568 }
 0xd2e   :  { %v11816_v53 = vpop.eup %11815 }
 0xd2f   :  { %v1461_v54 = vsel %vm383_vm7, %v11816_v53, 0.0  ;;  %v11818_v55 = vpop.eup %11817 }
 0xd30   :  { %1462 = vadd.xlane.f32.xlu0 %v1461_v54  ;;  %v1458_v56 = vsel %vm383_vm7, %v11818_v55, 0.0 }
 0xd34   :  { %1459 = vadd.xlane.f32.xlu0 %v1458_v56 }
 0xd4a   :  { %11470 = vrot.lane.b32.xlu0 %v12456_v4, %s12263_s19 }
 0xdbd   :  { %v1463_v57 = vpop.xlane.xlu0 %1462 }
 0xdbe   :  { %11819 = vrcp.f32 %v1463_v57 }
 0xdc1   :  { %v1460_v59 = vpop.xlane.xlu0 %1459 }
 0xdc2   :  { %11821 = vrcp.f32 %v1460_v59 }
 0xdc5   :  { %v11471_v61 = vpop.permute.xlu0 %11470 }
 0xdc6   :  { %v11473_v7 = vunpack.i.h.bf16 %v11471_v61  ;;  %v11472_v9 = vunpack.i.l.bf16 %v11471_v61 }
 0xdc8   :  { %v10865_v10 = vpack.c.bf16 %v11473_v7, %v11472_v9  ;;  %v11820_v13 = vpop.eup %11819 }
 0xdc9   :  { %v1467_v17 = vmul.f32 %v11820_v13, %v11816_v53 }
 0xdca   :  { %10866 = vmatprep.subr.bf16.mxu1 %v10865_v10 }
 0xdcb   :  { %10868 = vmatpush3.bf16.msra.mxu1 %v10865_v10 }
 0xdcc   :  { %v11822_v14 = vpop.eup %11821  ;;  %10871 = vmatprep.subr.msk.bf16.mxu1 %vm12470_vm6, %v10869_v11 }
 0xdcd   :  { %v1466_v16 = vmul.f32 %v11822_v14, %v11818_v55 }
 0xdcf   :  { %10198 = vmatprep.mubr.msk.f32.mxu1 %vm383_vm7, %v1466_v16 }
 0xdd0   :  { %10199 = vmatmul.mubr.msk.f32.vlgmr.msra.gmra.mrb[16].mxu1 %vm383_vm7, %v1467_v17 }
 0xdd1   :  { %10205 = vmatprep.mubr.msk.f32.mxu1 %vm295_vm5, %v1567_v18 }
 0xdd4   :  { %10874 = vmatpush3.bf16.xpose.msk.msra.mxu1 %vm12470_vm6, %v10869_v11 }
 0xddb   :  { %10206 = vmatmul.mubr.msk.f32.vlgmr.msra.gmra.mrb[18].mxu1 %vm295_vm5, %v1569_v20 }
 0xea3   :  { %v12630_v21 = vpop.f32.mrb[16].mxu1 }
 0xea4   :  { %v12632_v22 = vpop.f32.mrb[17].mxu1 }
 0xeae   :  { %v10207_v23 = vpop.f32.mrb[18].mxu1 }
 0xeaf   :  { %v1658_v24 = vmul.f32 0.35355338, %v10207_v23  ;;  %v1648_v25 = vpop.f32.mrb[19].mxu1 }
 0xeb0   :  { %v1657_v26 = vmul.f32 0.35355338, %v1648_v25 }
 0xeb1   :  { %v1660_v27 = vadd.f32 %v1658_v24, %v12488_v15 }
 0xeb2   :  { %v1659_v28 = vadd.f32 %v1657_v26, %v12483_v12 }
 0xeb3   :  { %v1664_v29 = vsel %vm383_vm7, %v1660_v27, -inf }
 0xeb4   :  { %1665 = vmax.xlane.f32.xlu1 %v1664_v29  ;;  %v1661_v30 = vsel %vm383_vm7, %v1659_v28, -inf }
 0xeb5   :  { %1662 = vmax.xlane.f32.xlu0 %v1661_v30 }
 0xec5   :  { %11485 = vrot.lane.b32.xlu1 %v12454_v2, %s14092_s18 }
 0xec9   :  { %1781 = vrot.lane.b32.xlu1 %v12445_v58, %s14094_s24 }
 0xecd   :  { %1783 = vrot.lane.b32.xlu1 %v12450_v62, %s14094_s24 }
 0xf41   :  { %v1666_v31 = vpop.xlane.xlu1 %1665 }
 0xf42   :  { %v1668_v35 = vsub.f32 %v1660_v27, %v1666_v31  ;;  %v1663_v36 = vpop.xlane.xlu0 %1662 }
 0xf43   :  { %v1667_v37 = vsub.f32 %v1659_v28, %v1663_v36 }
 0xf44   :  { %v1671_v38 = vmul.f32 1.442695, %v1668_v35 }
 0xf45   :  { %v1669_v40 = vmul.f32 1.442695, %v1667_v37  ;;  %v11486_v45 = vpop.permute.xlu1 %11485 }
 0xf46   :  { %11823 = vpow2.f32 %v1671_v38  ;;  %v11488_v47 = vunpack.i.h.bf16 %v11486_v45  ;;  %v11487_v50 = vunpack.i.l.bf16 %v11486_v45  ;;  %v9613_v45 = vld [vmem:[%s14083_s5 + $0x18] sm:$0xff]  }
 0xf47   :  { %11825 = vpow2.f32 %v1669_v40 }
 0xf48   :  { %v10879_v54 = vpack.c.bf16 %v11488_v47, %v11487_v50 }
 0xf49   :  { %v1782_v60 = vpop.permute.xlu1 %1781 }
 0xf4d   :  { %v1784_v61 = vpop.permute.xlu1 %1783 }
 0xf50   :  { %v11824_v41 = vpop.eup %11823 }
 0xf51   :  { %v1676_v42 = vsel %vm383_vm7, %v11824_v41, 0.0  ;;  %v11826_v43 = vpop.eup %11825 }
 0xf52   :  { %1677 = vadd.xlane.f32.xlu0 %v1676_v42  ;;  %v1673_v2 = vsel %vm383_vm7, %v11826_v43, 0.0 }
 0xf56   :  { %1674 = vadd.xlane.f32.xlu0 %v1673_v2  ;;  %v9356_v2 = vld [vmem:[%s14083_s5] sm:$0xff]  }
 0xf6c   :  { %11480 = vrot.lane.b32.xlu0 %v12456_v4, %s12265_s23 }
 0xfdf   :  { %v1678_v58 = vpop.xlane.xlu0 %1677 }
 0xfe0   :  { %11827 = vrcp.f32 %v1678_v58  ;;  %v9611_v58 = vld [vmem:[%s14083_s5 + $0x8] sm:$0xff]  }
 0xfe3   :  { %v1675_v62 = vpop.xlane.xlu0 %1674 }
 0xfe4   :  { %11829 = vrcp.f32 %v1675_v62  ;;  %v9612_v62 = vld [vmem:[%s14083_s5 + $0x10] sm:$0xff]  }
 0xfe7   :  { %v11481_v46 = vpop.permute.xlu0 %11480 }
 0xfe8   :  { %v11483_v51 = vunpack.i.h.bf16 %v11481_v46  ;;  %v11482_v52 = vunpack.i.l.bf16 %v11481_v46 }
 0xfea   :  { %v10875_v53 = vpack.c.bf16 %v11483_v51, %v11482_v52  ;;  %v11828_v55 = vpop.eup %11827 }
 0xfeb   :  { %v1682_v59 = vmul.f32 %v11828_v55, %v11824_v41 }
 0xfec   :  { %10876 = vmatprep.subr.bf16.mxu0 %v10875_v53 }
 0xfed   :  { %10878 = vmatpush3.bf16.msra.mxu0 %v10875_v53 }
 0xfee   :  { %v11830_v56 = vpop.eup %11829  ;;  %10881 = vmatprep.subr.msk.bf16.mxu0 %vm12470_vm6, %v10879_v54 }
 0xfef   :  { %v1681_v57 = vmul.f32 %v11830_v56, %v11826_v43 }
 0xff1   :  { %10212 = vmatprep.mubr.msk.f32.mxu0 %vm383_vm7, %v1681_v57  ;;  %v12079_v57 = vld [vmem:[#allocation3 + $0x8] sm:$0xff] }
 0xff2   :  { %10213 = vmatmul.mubr.msk.f32.vlgmr.msra.gmra.mrb[10].mxu0 %vm383_vm7, %v1682_v59 }
 0xff3   :  { %10219 = vmatprep.mubr.msk.f32.mxu0 %vm295_vm5, %v1782_v60 }
 0xff6   :  { %10884 = vmatpush3.bf16.xpose.msk.msra.mxu0 %vm12470_vm6, %v10879_v54  ;;  %v12718_v54 = vld [vmem:[#allocation9] sm:$0xff] }
 0xff7   :  { %v2100_v55 = vrot.slane %v12718_v54, %v12435_v39 }
 0xffd   :  { %10220 = vmatmul.mubr.msk.f32.vlgmr.msra.gmra.mrb[12].mxu0 %vm295_vm5, %v1784_v61  ;;  %v12080_v61 = vld [vmem:[#allocation3] sm:$0xff] }
0x10c5   :  { %v10214_v63 = vpop.f32.mrb[10].mxu0 }
0x10c6   :  { %v1761_v0 = vpop.f32.mrb[11].mxu0 }
0x10d0   :  { %v10221_v7 = vpop.f32.mrb[12].mxu0 }
0x10d1   :  { %v1873_v9 = vmul.f32 0.35355338, %v10221_v7  ;;  %v1863_v10 = vpop.f32.mrb[13].mxu0 }
0x10d2   :  { %v1872_v11 = vmul.f32 0.35355338, %v1863_v10 }
0x10d3   :  { %v1875_v13 = vadd.f32 %v1873_v9, %v12488_v15 }
0x10d4   :  { %v1874_v14 = vadd.f32 %v1872_v11, %v12483_v12 }
0x10d5   :  { %v1879_v16 = vsel %vm383_vm7, %v1875_v13, -inf }
0x10d6   :  { %1880 = vmax.xlane.f32.xlu1 %v1879_v16  ;;  %v1876_v17 = vsel %vm383_vm7, %v1874_v14, -inf }
0x10d7   :  { %1877 = vmax.xlane.f32.xlu0 %v1876_v17 }
0x10e7   :  { %697 = vrot.lane.b32.xlu1 %v12550_v3, %s14092_s18 }
0x10eb   :  { %699 = vrot.lane.b32.xlu1 %v12548_v1, %s14092_s18 }
0x10ef   :  { %912 = vrot.lane.b32.xlu1 %v12554_v6, %s12264_s21 }
0x10f3   :  { %1127 = vrot.lane.b32.xlu1 %v12580_v49, %s12262_s20 }
0x10f7   :  { %1342 = vrot.lane.b32.xlu1 %v12606_v34, %s12260_s17 }
0x10fb   :  { %1557 = vrot.lane.b32.xlu1 %v12632_v22, %s12258_s15 }
0x10ff   :  { %1772 = vrot.lane.b32.xlu1 %v1761_v0, %s12255_s29 }
0x1163   :  { %v1881_v12 = vpop.xlane.xlu1 %1880 }
0x1164   :  { %v1883_v15 = vsub.f32 %v1875_v13, %v1881_v12  ;;  %v1878_v3 = vpop.xlane.xlu0 %1877 }
0x1165   :  { %v1882_v18 = vsub.f32 %v1874_v14, %v1878_v3 }
0x1166   :  { %v1886_v1 = vmul.f32 1.442695, %v1883_v15 }
0x1167   :  { %v1884_v20 = vmul.f32 1.442695, %v1882_v18  ;;  %v698_v23 = vpop.permute.xlu1 %697 }
0x1168   :  { %11831 = vpow2.f32 %v1886_v1  ;;  %704 = vst.msk [vmem:[#allocation2] sm:$0xff] %vm703_vm8, %v698_v23  ;;  %v9388_v23 = vld [vmem:[#allocation6] sm:$0xff]  }
0x1169   :  { %11833 = vpow2.f32 %v1884_v20  ;;  %v12267_v20 = vmov 0.0|0.0  }
0x116b   :  { %v700_v6 = vpop.permute.xlu1 %699 }
0x116c   :  { %705 = vst.msk [vmem:[#allocation2 + $0x8] sm:$0xff] %vm703_vm8, %v700_v6  ;;  %v9618_v6 = vld [vmem:[#allocation6 + $0x8] sm:$0xff]  }
0x116f   :  { %v913_v49 = vpop.permute.xlu1 %912 }
0x1170   :  { %919 = vst.msk [vmem:[#allocation2] sm:$0xff] %vm918_vm9, %v913_v49  ;;  %v9619_v49 = vld [vmem:[#allocation6 + $0x10] sm:$0xff]  }
0x1172   :  { %v11832_v34 = vpop.eup %11831 }
0x1173   :  { %v1128_v22 = vpop.permute.xlu1 %1127  ;;  %v1891_v24 = vsel %vm383_vm7, %v11832_v34, 0.0  ;;  %v11834_v25 = vpop.eup %11833 }
0x1174   :  { %1134 = vst.msk [vmem:[#allocation2] sm:$0xff] %vm1133_vm10, %v1128_v22  ;;  %1892 = vadd.xlane.f32.xlu0 %v1891_v24  ;;  %v1888_v27 = vsel %vm383_vm7, %v11834_v25, 0.0  ;;  %v108_v22 = vld [vmem:[%s14079_s1] sm:$0xff]  ;;  %v109_v24 = vld [vmem:[%s14079_s1 + $0x8] sm:$0xff] }
0x1177   :  { %v1343_v26 = vpop.permute.xlu1 %1342 }
0x1178   :  { %1349 = vst.msk [vmem:[#allocation2] sm:$0xff] %vm1348_vm11, %v1343_v26  ;;  %1889 = vadd.xlane.f32.xlu0 %v1888_v27  ;;  %v9615_v26 = vld [vmem:[%s14083_s5 + $0x28] sm:$0xff]   ;;  %v9616_v27 = vld [vmem:[%s14083_s5 + $0x30] sm:$0xff]  }
0x117b   :  { %v1558_v28 = vpop.permute.xlu1 %1557 }
0x117c   :  { %1564 = vst.msk [vmem:[#allocation2] sm:$0xff] %vm1563_vm12, %v1558_v28  ;;  %v9617_v28 = vld [vmem:[%s14083_s5 + $0x38] sm:$0xff]  }
0x117f   :  { %v1773_v29 = vpop.permute.xlu1 %1772 }
0x1180   :  { %1779 = vst.msk [vmem:[#allocation2] sm:$0xff] %vm1778_vm13, %v1773_v29  ;;  %v110_v29 = vld [vmem:[%s14079_s1 + $0x10] sm:$0xff] }
0x118e   :  { %11490 = vrot.lane.b32.xlu0 %v12456_v4, %s14094_s24 }
0x1192   :  { %914 = vrot.lane.b32.xlu0 %v12552_v5, %s12264_s21 }
0x1196   :  { %1129 = vrot.lane.b32.xlu0 %v12578_v48, %s12262_s20 }
0x119a   :  { %1344 = vrot.lane.b32.xlu0 %v12604_v32, %s12260_s17 }
0x119e   :  { %1559 = vrot.lane.b32.xlu0 %v12630_v21, %s12258_s15 }
0x11a2   :  { %1774 = vrot.lane.b32.xlu0 %v10214_v63, %s12255_s29 }
0x1201   :  { %v1893_v30 = vpop.xlane.xlu0 %1892 }
0x1202   :  { %11835 = vrcp.f32 %v1893_v30 }
0x1205   :  { %v1890_v31 = vpop.xlane.xlu0 %1889 }
0x1206   :  { %11837 = vrcp.f32 %v1890_v31 }
0x1209   :  { %v11491_v35 = vpop.permute.xlu0 %11490 }
0x120a   :  { %v11493_v4 = vunpack.i.h.bf16 %v11491_v35  ;;  %v11492_v36 = vunpack.i.l.bf16 %v11491_v35 }
0x120c   :  { %v10885_v37 = vpack.c.bf16 %v11493_v4, %v11492_v36  ;;  %v11836_v48 = vpop.eup %11835 }
0x120d   :  { %v915_v5 = vpop.permute.xlu0 %914  ;;  %v1897_v21 = vmul.f32 %v11836_v48, %v11832_v34  ;;  %v9620_v34 = vld [vmem:[#allocation6 + $0x18] sm:$0xff]  }
0x120e   :  { %920 = vst.msk [vmem:[#allocation2 + $0x8] sm:$0xff] %vm918_vm9, %v915_v5  ;;  %10886 = vmatprep.subr.bf16.mxu1 %v10885_v37 }
0x120f   :  { %10888 = vmatpush3.bf16.msra.mxu1 %v10885_v37 }
0x1210   :  { %v11838_v32 = vpop.eup %11837  ;;  %10890 = vmatprep.subr.bf16.mxu1 %v9356_v2 }
0x1211   :  { %v1130_v38 = vpop.permute.xlu0 %1129  ;;  %v1896_v40 = vmul.f32 %v11838_v32, %v11834_v25  ;;  %v9614_v25 = vld [vmem:[%s14083_s5 + $0x20] sm:$0xff]  }
0x1212   :  { %1135 = vst.msk [vmem:[#allocation2 + $0x8] sm:$0xff] %vm1133_vm10, %v1130_v38  ;;  %10906 = vmatprep.subr.bf16.mxu0 %v9614_v25 }
0x1213   :  { %10226 = vmatprep.mubr.msk.f32.mxu1 %vm383_vm7, %v1896_v40  ;;  %10908 = vmatpush3.bf16.msra.mxu0 %v9614_v25 }
0x1214   :  { %10227 = vmatmul.mubr.msk.f32.vlgmr.msra.gmra.mrb[20].mxu1 %vm383_vm7, %v1897_v21  ;;  %10910 = vmatprep.subr.bf16.mxu0 %v9615_v26 }
0x1215   :  { %v1345_v41 = vpop.permute.xlu0 %1344  ;;  %10892 = vmatpush3.bf16.msra.mxu1 %v9356_v2 }
0x1216   :  { %1350 = vst.msk [vmem:[#allocation2 + $0x8] sm:$0xff] %vm1348_vm11, %v1345_v41  ;;  %10894 = vmatprep.subr.bf16.mxu1 %v9611_v58 }
0x1217   :  { %10912 = vmatpush3.bf16.msra.mxu0 %v9615_v26 }
0x1218   :  { %10914 = vmatprep.subr.bf16.mxu0 %v9616_v27 }
0x1219   :  { %v1560_v42 = vpop.permute.xlu0 %1559  ;;  %10896 = vmatpush3.bf16.msra.mxu1 %v9611_v58 }
0x121a   :  { %1565 = vst.msk [vmem:[#allocation2 + $0x8] sm:$0xff] %vm1563_vm12, %v1560_v42  ;;  %10898 = vmatprep.subr.bf16.mxu1 %v9612_v62 }
0x121b   :  { %10916 = vmatpush3.bf16.msra.mxu0 %v9616_v27 }
0x121c   :  { %10918 = vmatprep.subr.bf16.mxu0 %v9617_v28 }
0x121d   :  { %v1775_v43 = vpop.permute.xlu0 %1774  ;;  %10900 = vmatpush3.bf16.msra.mxu1 %v9612_v62  ;;  %v12081_v62 = vld [vmem:[#allocation11] sm:$0xff] }
0x121e   :  { %1780 = vst.msk [vmem:[#allocation2 + $0x8] sm:$0xff] %vm1778_vm13, %v1775_v43  ;;  %10902 = vmatprep.subr.bf16.mxu1 %v9613_v45  ;;  %v12777_v43 = vsub.s32 1, %v12432_v33 }
0x121f   :  { %10920 = vmatpush3.bf16.msra.mxu0 %v9617_v28  ;;  %v12827_v28 = vld [vmem:[%s14081_s3 + $0x8] sm:$0xff] }
0x1221   :  { %10904 = vmatpush3.bf16.msra.mxu1 %v9613_v45  ;;  %v2126_v45 = vrot.slane %v12081_v62, %v12777_v43 }
0x1222   :  { %10921 = vmatprep.subr.bf16.mxu1 %v12267_v20 }
0x12e7   :  { %v10228_v46 = vpop.f32.mrb[20].mxu1 }
0x12e8   :  { %1989 = vrot.lane.b32.xlu0 %v10228_v46, %s12257_s14  ;;  %v1976_v47 = vpop.f32.mrb[21].mxu1  ;;  %v119_v46 = vld [vmem:[#allocation11 + $0x8] sm:$0x3f] }
0x12e9   :  { %1987 = vrot.lane.b32.xlu1 %v1976_v47, %s12257_s14 }
0x135a   :  { %v1990_v50 = vpop.permute.xlu0 %1989 }
0x135b   :  { %1995 = vst.msk [vmem:[#allocation2 + $0x8] sm:$0xff] %vm1993_vm14, %v1990_v50  ;;  %v1988_v51 = vpop.permute.xlu1 %1987  ;;  %v2152_v50 = vrot.slane %v119_v46, %v12435_v39 }
0x135c   :  { %1994 = vst.msk [vmem:[#allocation2] sm:$0xff] %vm1993_vm14, %v1988_v51 }
0x1362   :  { %v1997_v53 = vld [vmem:[#allocation2 + $0x8] sm:$0xff] }
0x1363   :  { %v1996_v52 = vld [vmem:[#allocation2] sm:$0xff] }
0x1364   :  { %10245 = vmatprep.mubr.msk.f32.mxu1 %vm120_vm0, %v1996_v52 }
0x1365   :  { %10246 = vmatmul.mubr.msk.f32.vlgmr.msra.gmra.mrb[22].mxu1 %vm120_vm0, %v1997_v53 }
0x1366   :  { %10923 = vmatpush3.bf16.msra.mxu1 %v9388_v23  ;;  %10283 = vmatprep.mubr.msk.f32.mxu1 %vm12268_vm15, %v12253_v19 }
0x1367   :  { %10924 = vmatprep.subr.bf16.mxu1 %v12267_v20 }
0x136a   :  { %10926 = vmatpush3.bf16.msra.mxu1 %v9618_v6 }
0x136b   :  { %10927 = vmatprep.subr.bf16.mxu1 %v12267_v20 }
0x136e   :  { %10929 = vmatpush3.bf16.msra.mxu1 %v9619_v49  ;;  %v2175_v49 = vrot.slane %v12718_v54, %v12777_v43 }
0x136f   :  { %10930 = vmatprep.subr.bf16.mxu1 %v12267_v20 }
0x1372   :  { %10932 = vmatpush3.bf16.msra.mxu1 %v9620_v34 }
0x1375   :  { %10284 = vmatmul.mubr.msk.f32.vlgmr.msra.gmra.mrb[24].mxu1 %vm120_vm0, %v108_v22 }
0x1376   :  { %10286 = vmatprep.mubr.msk.f32.mxu1 %vm12268_vm15, %v12253_v19 }
0x1379   :  { %10287 = vmatmul.mubr.msk.f32.gmra.mrb[26].mxu1 %vm120_vm0, %v109_v24 }
0x137a   :  { %10289 = vmatprep.mubr.msk.f32.mxu1 %vm12268_vm15, %v12253_v19 }
0x137d   :  { %10290 = vmatmul.mubr.msk.f32.gmra.mrb[28].mxu1 %vm120_vm0, %v110_v29 }
0x1438   :  { %v10247_v56 = vpop.f32.mrb[22].mxu1 }
0x1439   :  { %v2096_v59 = vadd.f32 %v12079_v57, %v10247_v56  ;;  %v2086_v60 = vpop.f32.mrb[23].mxu1 }
0x143a   :  { %v2095_v63 = vadd.f32 %v12080_v61, %v2086_v60  ;;  %v12082_v60 = vld [vmem:[#allocation8] sm:$0x3f] }
0x143b   :  { %v12722_v0 = vadd.f32 %v2100_v55, %v2096_v59  ;;  %v2276_v61 = vrot.slane %v12082_v60, %v12777_v43 }
0x143c   :  { %v12724_v7 = vadd.f32 %v2100_v55, %v2095_v63 }
0x143d   :  { %v2106_v9 = vsel %vm120_vm0, %v12722_v0, 0.0 }
0x143e   :  { %2107 = vadd.xlane.f32.xlu0 %v2106_v9  ;;  %v2103_v10 = vsel %vm120_vm0, %v12724_v7, 0.0 }
0x143f   :  { %2104 = vadd.xlane.f32.xlu1 %v2103_v10 }
0x1448   :  { %v2352_v63 = vpop.f32.mrb[24].mxu1 }
0x1449   :  { %v10285_v9 = vpop.f32.mrb[25].mxu1  ;;  %v2353_v10 = vadd.f32 %v2352_v63, %v2276_v61 }
0x14cb   :  { %v2108_v11 = vpop.xlane.xlu0 %2107 }
0x14cc   :  { %v2110_v13 = vmul.f32 0.015625, %v2108_v11  ;;  %v2105_v14 = vpop.xlane.xlu1 %2104  ;;  %v2357_v11 = vpop.f32.mrb[26].mxu1 }
0x14cd   :  { %v2109_v16 = vmul.f32 0.015625, %v2105_v14  ;;  %v2358_v39 = vadd.f32 %v2357_v11, %v2276_v61 }
0x14ce   :  { %v12731_v17 = vsub.f32 %v12722_v0, %v2110_v13  ;;  %v10288_v13 = vpop.f32.mrb[27].mxu1 }
0x14cf   :  { %v12734_v12 = vsub.f32 %v12724_v7, %v2109_v16  ;;  %v10933_v14 = vpack.c.bf16 %v2358_v39, %v2353_v10  ;;  %v12786_v16 = vpack.i.bf16 %v2358_v39, %v2353_v10 }
0x14d0   :  { %v2114_v18 = vmul.f32 %v12731_v17, %v12731_v17  ;;  %v2128_v53 = vmul.f32 %v2126_v45, %v12731_v17  ;;  %v2362_v17 = vpop.f32.mrb[28].mxu1 }
0x14d1   :  { %v2113_v15 = vmul.f32 %v12734_v12, %v12734_v12  ;;  %v2127_v47 = vmul.f32 %v2126_v45, %v12734_v12  ;;  %10935 = vmatprep.subr.msk.bf16.mxu0 %vm12470_vm6, %v10933_v14  ;;  %11495 = vrot.lane.b32.xlu1 %v12786_v16, %s12254_s22  ;;  %v12794_v12 = vadd.f32 %v2362_v17, %v2276_v61 }
0x14d2   :  { %v2118_v1 = vsel %vm120_vm0, %v2114_v18, 0.0 }
0x14d3   :  { %v2115_v3 = vsel %vm120_vm0, %v2113_v15, 0.0  ;;  %v10291_v15 = vpop.f32.mrb[29].mxu1 }
0x14d4   :  { %2116 = vadd.xlane.f32.xlu0 %v2115_v3 }
0x14d8   :  { %2119 = vadd.xlane.f32.xlu0 %v2118_v1 }
0x14ee   :  { %2583 = vrot.lane.b32.xlu0 %v12794_v12, %s12254_s22 }
0x1543   :  { %v11496_v3 = vpop.permute.xlu1 %11495 }
0x1544   :  { %v11498_v18 = vunpack.i.h.bf16 %v11496_v3  ;;  %v11497_v1 = vunpack.i.l.bf16 %v11496_v3 }
0x1546   :  { %v10943_v23 = vpack.c.bf16 %v11498_v18, %v11497_v1 }
0x1548   :  { %10945 = vmatprep.subr.msk.bf16.mxu1 %vm12470_vm6, %v10943_v23 }
0x1549   :  { %10948 = vmatpush3.bf16.xpose.msk.msra.mxu1 %vm12470_vm6, %v10943_v23 }
0x1561   :  { %v2117_v30 = vpop.xlane.xlu0 %2116 }
0x1562   :  { %v2121_v31 = vmul.f32 0.015873017, %v2117_v30 }
0x1564   :  { %11839 = vrsqrt.f32 %v2121_v31  ;;  %vm2131_vm1 = vcmp.eq.f32.partialorder %v2121_v31, inf  ;;  %v2134_v5 = vand.u32 2147483648, %v2121_v31  ;;  %vm2133_vm2 = vcmp.eq.f32.partialorder %v2121_v31, 0.0 }
0x1565   :  { %v2120_v35 = vpop.xlane.xlu0 %2119 }
0x1566   :  { %v2122_v4 = vmul.f32 0.015873017, %v2120_v35 }
0x1568   :  { %11841 = vrsqrt.f32 %v2122_v4  ;;  %vm2138_vm3 = vcmp.eq.f32.partialorder %v2122_v4, inf  ;;  %v2141_v41 = vand.u32 2147483648, %v2122_v4  ;;  %vm2140_vm4 = vcmp.eq.f32.partialorder %v2122_v4, 0.0 }
0x1569   :  { %v2584_v6 = vpop.permute.xlu0 %2583 }
0x156a   :  { %10314 = vmatprep.subr.msk.mxu1 %vm295_vm5, %v2584_v6 }
0x156b   :  { %10315 = vmatpush3.xpose.msk.msra.mxu1 %vm295_vm5, %v2584_v6 }
0x156e   :  { %v11840_v36 = vpop.eup %11839 }
0x156f   :  { %v2130_v37 = vmul.f32 %v11840_v36, %v2121_v31 }
0x1571   :  { %v2132_v48 = vsel %vm2131_vm1, %v2121_v31, %v2130_v37  ;;  %v12832_v31 = vld [vmem:[%s14081_s3] sm:$0xff]  ;;  %vm14096_vm1 = vcmask 195584  }
0x1572   :  { %v11842_v32 = vpop.eup %11841  ;;  %v2135_v38 = vsel %vm2133_vm2, %v2134_v5, %v2132_v48 }
0x1573   :  { %v2137_v40 = vmul.f32 %v11842_v32, %v2122_v4  ;;  %v2143_v21 = vadd.f32 1e-06, %v2135_v38 }
0x1575   :  { %v2139_v42 = vsel %vm2138_vm3, %v2122_v4, %v2137_v40  ;;  %11843 = vrcp.f32 %v2143_v21 }
0x1576   :  { %v2142_v2 = vsel %vm2140_vm4, %v2141_v41, %v2139_v42 }
0x1577   :  { %v2144_v58 = vadd.f32 1e-06, %v2142_v2 }
0x1579   :  { %11845 = vrcp.f32 %v2144_v58 }
0x157f   :  { %v11844_v51 = vpop.eup %11843 }
0x1580   :  { %v2146_v52 = vmul.f32 %v11844_v51, %v2127_v47 }
0x1582   :  { %v2153_v55 = vadd.f32 %v2152_v50, %v2146_v52 }
0x1583   :  { %v11846_v56 = vpop.eup %11845 }
0x1584   :  { %v2148_v57 = vmul.f32 %v11846_v56, %v2128_v53  ;;  %10264 = vmatprep.mubr.msk.f32.mxu0 %vm120_vm0, %v2153_v55 }
0x1586   :  { %v2154_v59 = vadd.f32 %v2152_v50, %v2148_v57 }
0x1588   :  { %10265 = vmatmul.mubr.msk.f32.vlgmr.msra.gmra.mrb[14].mxu0 %vm120_vm0, %v2154_v59 }
0x1589   :  { %10938 = vmatpush3.bf16.xpose.msk.msra.mxu0 %vm12470_vm6, %v10933_v14 }
0x158a   :  { %10296 = vmatprep.subr.msk.mxu0 %vm295_vm5, %v12794_v12 }
0x1591   :  { %10297 = vmatpush3.xpose.msk.msra.mxu0 %vm295_vm5, %v12794_v12 }
0x165b   :  { %v10266_v34 = vpop.f32.mrb[14].mxu0 }
0x165c   :  { %v2248_v22 = vpop.f32.mrb[15].mxu0  ;;  %v12812_v25 = vadd.f32 %v10266_v34, %v2175_v49 }
0x165d   :  { %v12810_v24 = vadd.f32 %v2248_v22, %v2175_v49 }
0x165f   :  { %2575 = vrot.lane.b32.xlu1 %v12810_v24, %s12254_s22  ;;  %10298 = vmatprep.mubr.msk.f32.mxu0 %vm295_vm5, %v12810_v24 }
0x1660   :  { %10299 = vmatmul.mubr.msk.f32.vlgmr.msra.gmra.mrb[16].mxu0 %vm295_vm5, %v12812_v25 }
0x1663   :  { %2577 = vrot.lane.b32.xlu1 %v12812_v25, %s12254_s22 }
0x16d1   :  { %v2576_v26 = vpop.permute.xlu1 %2575 }
0x16d2   :  { %10316 = vmatprep.mubr.msk.f32.mxu1 %vm295_vm5, %v2576_v26 }
0x16d5   :  { %v2578_v54 = vpop.permute.xlu1 %2577 }
0x16d6   :  { %10317 = vmatmul.mubr.msk.f32.vlgmr.msra.gmra.mrb[30].mxu1 %vm295_vm5, %v2578_v54 }
0x1733   :  { %v10300_v27 = vpop.f32.mrb[16].mxu0 }
0x1734   :  { %v2457_v29 = vmul.f32 0.35355338, %v10300_v27  ;;  %v2447_v30 = vpop.f32.mrb[17].mxu0 }
0x1735   :  { %v2456_v35 = vmul.f32 0.35355338, %v2447_v30 }
0x1736   :  { %v2459_v4 = vadd.f32 %v2457_v29, %v12827_v28 }
0x1737   :  { %v2458_v36 = vadd.f32 %v2456_v35, %v12832_v31 }
0x1738   :  { %v2464_v37 = vsel %vm14096_vm1, %v2459_v4, -inf }
0x1739   :  { %2465 = vmax.xlane.f32.xlu0 %v2464_v37  ;;  %v2461_v5 = vsel %vm14096_vm1, %v2458_v36, -inf }
0x173a   :  { %2462 = vmax.xlane.f32.xlu1 %v2461_v5 }
0x174b   :  { %11500 = vrot.lane.b32.xlu1 %v12786_v16, %s12245_s13 }
0x17a9   :  { %v10318_v48 = vpop.f32.mrb[30].mxu1 }
0x17aa   :  { %v2661_v32 = vpop.f32.mrb[31].mxu1  ;;  %v2671_v38 = vmul.f32 0.35355338, %v10318_v48 }
0x17ab   :  { %v2670_v40 = vmul.f32 0.35355338, %v2661_v32 }
0x17ac   :  { %v2673_v42 = vadd.f32 %v2671_v38, %v12827_v28 }
0x17ad   :  { %v2672_v21 = vadd.f32 %v2670_v40, %v12832_v31 }
0x17ae   :  { %v2677_v2 = vsel %vm14096_vm1, %v2673_v42, -inf }
0x17af   :  { %v2674_v41 = vsel %vm14096_vm1, %v2672_v21, -inf }
0x17b0   :  { %2675 = vmax.xlane.f32.xlu0 %v2674_v41 }
0x17b4   :  { %2678 = vmax.xlane.f32.xlu0 %v2677_v2 }
0x17c6   :  { %v2466_v58 = vpop.xlane.xlu0 %2465 }
0x17c7   :  { %v2468_v62 = vsub.f32 %v2459_v4, %v2466_v58  ;;  %v2463_v45 = vpop.xlane.xlu1 %2462 }
0x17c8   :  { %v2467_v46 = vsub.f32 %v2458_v36, %v2463_v45 }
0x17c9   :  { %v2471_v47 = vmul.f32 1.442695, %v2468_v62 }
0x17ca   :  { %v2469_v50 = vmul.f32 1.442695, %v2467_v46 }
0x17cb   :  { %11847 = vpow2.f32 %v2471_v47  ;;  %v11501_v51 = vpop.permute.xlu1 %11500 }
0x17cc   :  { %11849 = vpow2.f32 %v2469_v50  ;;  %v11503_v52 = vunpack.i.h.bf16 %v11501_v51  ;;  %v11502_v53 = vunpack.i.l.bf16 %v11501_v51 }
0x17ce   :  { %v10939_v55 = vpack.c.bf16 %v11503_v52, %v11502_v53 }
0x17d0   :  { %10940 = vmatprep.subr.bf16.mxu0 %v10939_v55 }
0x17d1   :  { %10942 = vmatpush3.bf16.msra.mxu0 %v10939_v55 }
0x17d5   :  { %v11848_v56 = vpop.eup %11847 }
0x17d6   :  { %v11850_v57 = vpop.eup %11849  ;;  %v2476_v59 = vsel %vm14096_vm1, %v11848_v56, 0.0 }
0x17d7   :  { %2477 = vadd.xlane.f32.xlu0 %v2476_v59  ;;  %v2473_v60 = vsel %vm14096_vm1, %v11850_v57, 0.0 }
0x17d8   :  { %2474 = vadd.xlane.f32.xlu1 %v2473_v60 }
0x17e9   :  { %11505 = vrot.lane.b32.xlu1 %v12786_v16, %s12257_s14 }
0x17ed   :  { %2700 = vrot.lane.b32.xlu1 %v12794_v12, %s12257_s14 }
0x183d   :  { %v2676_v61 = vpop.xlane.xlu0 %2675 }
0x183e   :  { %v2680_v63 = vsub.f32 %v2672_v21, %v2676_v61 }
0x1840   :  { %v2682_v9 = vmul.f32 1.442695, %v2680_v63 }
0x1841   :  { %v2679_v10 = vpop.xlane.xlu0 %2678 }
0x1842   :  { %11851 = vpow2.f32 %v2682_v9  ;;  %v2681_v11 = vsub.f32 %v2673_v42, %v2679_v10 }
0x1844   :  { %v2684_v39 = vmul.f32 1.442695, %v2681_v11 }
0x1846   :  { %11853 = vpow2.f32 %v2684_v39 }
0x184c   :  { %v11852_v13 = vpop.eup %11851 }
0x184d   :  { %v2686_v14 = vsel %vm14096_vm1, %v11852_v13, 0.0 }
0x184e   :  { %2687 = vadd.xlane.f32.xlu1 %v2686_v14 }
0x1850   :  { %v11854_v17 = vpop.eup %11853 }
0x1851   :  { %v2689_v15 = vsel %vm14096_vm1, %v11854_v17, 0.0 }
0x1852   :  { %2690 = vadd.xlane.f32.xlu0 %v2689_v15 }
0x185f   :  { %11510 = vrot.lane.b32.xlu1 %v12786_v16, %s12256_s9 }
0x1863   :  { %2796 = vrot.lane.b32.xlu1 %v12810_v24, %s12256_s9 }
0x1864   :  { %v2478_v6 = vpop.xlane.xlu0 %2477 }
0x1865   :  { %v2475_v3 = vpop.xlane.xlu1 %2474 }
0x1866   :  { %11855 = vrcp.f32 %v2475_v3 }
0x1867   :  { %11857 = vrcp.f32 %v2478_v6 }
0x1868   :  { %2487 = vrot.lane.b32.xlu0 %v12794_v12, %s12245_s13 }
0x1869   :  { %v11506_v23 = vpop.permute.xlu1 %11505 }
0x186a   :  { %v11508_v26 = vunpack.i.h.bf16 %v11506_v23  ;;  %v11507_v54 = vunpack.i.l.bf16 %v11506_v23 }
0x186c   :  { %2804 = vrot.lane.b32.xlu0 %v12794_v12, %s12256_s9  ;;  %v10949_v4 = vpack.c.bf16 %v11508_v26, %v11507_v54 }
0x186d   :  { %v2701_v49 = vpop.permute.xlu1 %2700 }
0x1870   :  { %v11856_v18 = vpop.eup %11855  ;;  %2798 = vrot.lane.b32.xlu0 %v12812_v25, %s12256_s9 }
0x1871   :  { %v2481_v1 = vmul.f32 %v11856_v18, %v11850_v57  ;;  %v11858_v27 = vpop.eup %11857 }
0x1872   :  { %v2482_v35 = vmul.f32 %v11858_v27, %v11848_v56 }
0x1873   :  { %10307 = vmatprep.mubr.msk.f32.mxu0 %vm14096_vm1, %v2481_v1 }
0x18db   :  { %v2688_v34 = vpop.xlane.xlu1 %2687 }
0x18dc   :  { %11859 = vrcp.f32 %v2688_v34 }
0x18df   :  { %v2691_v22 = vpop.xlane.xlu0 %2690  ;;  %v11511_v29 = vpop.permute.xlu1 %11510 }
0x18e0   :  { %11861 = vrcp.f32 %v2691_v22  ;;  %v11513_v37 = vunpack.i.h.bf16 %v11511_v29  ;;  %v11512_v5 = vunpack.i.l.bf16 %v11511_v29 }
0x18e2   :  { %v10953_v38 = vpack.c.bf16 %v11513_v37, %v11512_v5 }
0x18e3   :  { %v2488_v30 = vpop.permute.xlu0 %2487  ;;  %v2797_v21 = vpop.permute.xlu1 %2796 }
0x18e4   :  { %10305 = vmatprep.subr.mxu0 %v2488_v30 }
0x18e5   :  { %10306 = vmatpush3.msra.mxu0 %v2488_v30 }
0x18e6   :  { %v11860_v36 = vpop.eup %11859  ;;  %10308 = vmatmul.mubr.msk.f32.vlgmr.msra.gmra.mrb[18].mxu0 %vm14096_vm1, %v2482_v35  ;;  %10950 = vmatprep.subr.bf16.mxu0 %v10949_v4 }
0x18e7   :  { %10952 = vmatpush3.bf16.msra.mxu0 %v10949_v4  ;;  %v2694_v48 = vmul.f32 %v11860_v36, %v11852_v13  ;;  %v2805_v41 = vpop.permute.xlu0 %2804 }
0x18e8   :  { %10323 = vmatprep.subr.mxu0 %v2701_v49 }
0x18e9   :  { %10325 = vmatprep.mubr.msk.f32.mxu0 %vm14096_vm1, %v2694_v48 }
0x18ea   :  { %v11862_v32 = vpop.eup %11861 }
0x18eb   :  { %10324 = vmatpush3.msra.mxu0 %v2701_v49  ;;  %v2695_v40 = vmul.f32 %v11862_v32, %v11854_v17  ;;  %v2799_v42 = vpop.permute.xlu0 %2798 }
0x18ec   :  { %10955 = vmatprep.subr.msk.bf16.mxu0 %vm12470_vm6, %v10953_v38 }
0x18ed   :  { %10326 = vmatmul.mubr.msk.f32.vlgmr.msra.gmra.mrb[20].mxu0 %vm14096_vm1, %v2695_v40 }
0x18ee   :  { %10334 = vmatprep.mubr.msk.f32.mxu0 %vm295_vm5, %v2797_v21 }
0x18f2   :  { %10958 = vmatpush3.bf16.xpose.msk.msra.mxu0 %vm12470_vm6, %v10953_v38 }
0x18f3   :  { %10332 = vmatprep.subr.msk.mxu0 %vm295_vm5, %v2805_v41 }
0x18fa   :  { %10333 = vmatpush3.xpose.msk.msra.mxu0 %vm295_vm5, %v2805_v41 }
0x18fd   :  { %10335 = vmatmul.mubr.msk.f32.vlgmr.msra.gmra.mrb[22].mxu0 %vm295_vm5, %v2799_v42 }
0x19b9   :  { %v10309_v2 = vpop.f32.mrb[18].mxu0 }
0x19ba   :  { %2574 = vst.msk [vmem:[#allocation2 + $0x8] sm:$0xff] %vm295_vm5, %v10309_v2  ;;  %v2564_v58 = vpop.f32.mrb[19].mxu0 }
0x19bb   :  { %2573 = vst.msk [vmem:[#allocation2] sm:$0xff] %vm295_vm5, %v2564_v58 }
0x19c0   :  { %v12876_v62 = vpop.f32.mrb[20].mxu0 }
0x19c1   :  { %v12878_v45 = vpop.f32.mrb[21].mxu0 }
0x19d0   :  { %v10336_v46 = vpop.f32.mrb[22].mxu0 }
0x19d1   :  { %v2892_v47 = vmul.f32 0.35355338, %v10336_v46  ;;  %v2882_v50 = vpop.f32.mrb[23].mxu0 }
0x19d2   :  { %v2891_v51 = vmul.f32 0.35355338, %v2882_v50 }
0x19d3   :  { %v2894_v52 = vadd.f32 %v2892_v47, %v12827_v28 }
0x19d4   :  { %v2893_v53 = vadd.f32 %v2891_v51, %v12832_v31 }
0x19d5   :  { %v2898_v55 = vsel %vm14096_vm1, %v2894_v52, -inf }
0x19d6   :  { %2899 = vmax.xlane.f32.xlu0 %v2898_v55  ;;  %v2895_v56 = vsel %vm14096_vm1, %v2893_v53, -inf }
0x19d7   :  { %2896 = vmax.xlane.f32.xlu1 %v2895_v56 }
0x19e8   :  { %11515 = vrot.lane.b32.xlu1 %v12786_v16, %s12255_s29 }
0x19ec   :  { %11520 = vrot.lane.b32.xlu1 %v12786_v16, %s12259_s16 }
0x19f0   :  { %3025 = vrot.lane.b32.xlu1 %v12794_v12, %s12259_s16 }
0x19f4   :  { %3017 = vrot.lane.b32.xlu1 %v12810_v24, %s12259_s16 }
0x1a63   :  { %v2900_v57 = vpop.xlane.xlu0 %2899 }
0x1a64   :  { %v2902_v59 = vsub.f32 %v2894_v52, %v2900_v57  ;;  %v2897_v60 = vpop.xlane.xlu1 %2896 }
0x1a65   :  { %v2901_v61 = vsub.f32 %v2893_v53, %v2897_v60 }
0x1a66   :  { %v2905_v63 = vmul.f32 1.442695, %v2902_v59 }
0x1a67   :  { %v2903_v9 = vmul.f32 1.442695, %v2901_v61 }
0x1a68   :  { %11863 = vpow2.f32 %v2905_v63  ;;  %v11516_v10 = vpop.permute.xlu1 %11515 }
0x1a69   :  { %v11518_v11 = vunpack.i.h.bf16 %v11516_v10  ;;  %v11517_v39 = vunpack.i.l.bf16 %v11516_v10  ;;  %11865 = vpow2.f32 %v2903_v9 }
0x1a6b   :  { %v10959_v13 = vpack.c.bf16 %v11518_v11, %v11517_v39 }
0x1a6c   :  { %v11521_v1 = vpop.permute.xlu1 %11520 }
0x1a6d   :  { %10960 = vmatprep.subr.bf16.mxu1 %v10959_v13  ;;  %v11523_v6 = vunpack.i.h.bf16 %v11521_v1  ;;  %v11522_v49 = vunpack.i.l.bf16 %v11521_v1 }
0x1a6e   :  { %10962 = vmatpush3.bf16.msra.mxu1 %v10959_v13 }
0x1a6f   :  { %v10963_v22 = vpack.c.bf16 %v11523_v6, %v11522_v49 }
0x1a70   :  { %v3026_v26 = vpop.permute.xlu1 %3025 }
0x1a72   :  { %v11864_v14 = vpop.eup %11863 }
0x1a73   :  { %v2910_v17 = vsel %vm14096_vm1, %v11864_v14, 0.0  ;;  %v11866_v15 = vpop.eup %11865 }
0x1a74   :  { %2911 = vadd.xlane.f32.xlu0 %v2910_v17  ;;  %v2907_v3 = vsel %vm14096_vm1, %v11866_v15, 0.0  ;;  %v3018_v35 = vpop.permute.xlu1 %3017 }
0x1a78   :  { %2908 = vadd.xlane.f32.xlu0 %v2907_v3 }
0x1a8e   :  { %2921 = vrot.lane.b32.xlu0 %v12794_v12, %s12255_s29 }
0x1a92   :  { %3019 = vrot.lane.b32.xlu0 %v12812_v25, %s12259_s16 }
0x1b01   :  { %v2912_v18 = vpop.xlane.xlu0 %2911 }
0x1b02   :  { %11867 = vrcp.f32 %v2912_v18 }
0x1b05   :  { %v2909_v23 = vpop.xlane.xlu0 %2908 }
0x1b06   :  { %11869 = vrcp.f32 %v2909_v23 }
0x1b09   :  { %v2922_v34 = vpop.permute.xlu0 %2921 }
0x1b0a   :  { %10341 = vmatprep.subr.mxu1 %v2922_v34 }
0x1b0b   :  { %10342 = vmatpush3.msra.mxu1 %v2922_v34 }
0x1b0c   :  { %10965 = vmatprep.subr.msk.bf16.mxu1 %vm12470_vm6, %v10963_v22  ;;  %v11868_v54 = vpop.eup %11867 }
0x1b0d   :  { %v2916_v30 = vmul.f32 %v11868_v54, %v11864_v14  ;;  %v3020_v4 = vpop.permute.xlu0 %3019 }
0x1b10   :  { %v11870_v27 = vpop.eup %11869 }
0x1b11   :  { %v2915_v29 = vmul.f32 %v11870_v27, %v11866_v15 }
0x1b13   :  { %10343 = vmatprep.mubr.msk.f32.mxu1 %vm14096_vm1, %v2915_v29 }
0x1b14   :  { %10344 = vmatmul.mubr.msk.f32.vlgmr.msra.gmra.mrb[32].mxu1 %vm14096_vm1, %v2916_v30 }
0x1b15   :  { %10968 = vmatpush3.bf16.xpose.msk.msra.mxu1 %vm12470_vm6, %v10963_v22  ;;  %10352 = vmatprep.mubr.msk.f32.mxu1 %vm295_vm5, %v3018_v35 }
0x1b16   :  { %10350 = vmatprep.subr.msk.mxu1 %vm295_vm5, %v3026_v26 }
0x1b1d   :  { %10351 = vmatpush3.xpose.msk.msra.mxu1 %vm295_vm5, %v3026_v26 }
0x1b20   :  { %10353 = vmatmul.mubr.msk.f32.vlgmr.msra.gmra.mrb[34].mxu1 %vm295_vm5, %v3020_v4 }
0x1be7   :  { %v12908_v36 = vpop.f32.mrb[32].mxu1 }
0x1be8   :  { %v12910_v37 = vpop.f32.mrb[33].mxu1 }
0x1bf3   :  { %v10354_v5 = vpop.f32.mrb[34].mxu1 }
0x1bf4   :  { %v3113_v48 = vmul.f32 0.35355338, %v10354_v5  ;;  %v3103_v32 = vpop.f32.mrb[35].mxu1 }
0x1bf5   :  { %v3112_v38 = vmul.f32 0.35355338, %v3103_v32 }
0x1bf6   :  { %v3115_v40 = vadd.f32 %v3113_v48, %v12827_v28 }
0x1bf7   :  { %v3114_v21 = vadd.f32 %v3112_v38, %v12832_v31 }
0x1bf8   :  { %v3119_v41 = vsel %vm14096_vm1, %v3115_v40, -inf }
0x1bf9   :  { %3120 = vmax.xlane.f32.xlu0 %v3119_v41  ;;  %v3116_v42 = vsel %vm14096_vm1, %v3114_v21, -inf }
0x1bfa   :  { %3117 = vmax.xlane.f32.xlu1 %v3116_v42 }
0x1c0b   :  { %11525 = vrot.lane.b32.xlu1 %v12786_v16, %s12258_s15 }
0x1c0f   :  { %11530 = vrot.lane.b32.xlu1 %v12786_v16, %s12261_s0 }
0x1c13   :  { %3246 = vrot.lane.b32.xlu1 %v12794_v12, %s12261_s0 }
0x1c17   :  { %3238 = vrot.lane.b32.xlu1 %v12810_v24, %s12261_s0 }
0x1c86   :  { %v3121_v2 = vpop.xlane.xlu0 %3120 }
0x1c87   :  { %v3123_v58 = vsub.f32 %v3115_v40, %v3121_v2  ;;  %v3118_v46 = vpop.xlane.xlu1 %3117 }
0x1c88   :  { %v3122_v47 = vsub.f32 %v3114_v21, %v3118_v46 }
0x1c89   :  { %v3126_v50 = vmul.f32 1.442695, %v3123_v58 }
0x1c8a   :  { %v3124_v51 = vmul.f32 1.442695, %v3122_v47 }
0x1c8b   :  { %11871 = vpow2.f32 %v3126_v50  ;;  %v11526_v52 = vpop.permute.xlu1 %11525 }
0x1c8c   :  { %v11528_v53 = vunpack.i.h.bf16 %v11526_v52  ;;  %v11527_v55 = vunpack.i.l.bf16 %v11526_v52  ;;  %11873 = vpow2.f32 %v3124_v51 }
0x1c8e   :  { %v10969_v56 = vpack.c.bf16 %v11528_v53, %v11527_v55 }
0x1c8f   :  { %v11531_v9 = vpop.permute.xlu1 %11530 }
0x1c90   :  { %10970 = vmatprep.subr.bf16.mxu0 %v10969_v56  ;;  %v11533_v11 = vunpack.i.h.bf16 %v11531_v9  ;;  %v11532_v39 = vunpack.i.l.bf16 %v11531_v9 }
0x1c91   :  { %10972 = vmatpush3.bf16.msra.mxu0 %v10969_v56 }
0x1c92   :  { %v10973_v14 = vpack.c.bf16 %v11533_v11, %v11532_v39 }
0x1c93   :  { %v3247_v17 = vpop.permute.xlu1 %3246 }
0x1c95   :  { %v11872_v57 = vpop.eup %11871 }
0x1c96   :  { %v3131_v59 = vsel %vm14096_vm1, %v11872_v57, 0.0  ;;  %v11874_v60 = vpop.eup %11873 }
0x1c97   :  { %3132 = vadd.xlane.f32.xlu0 %v3131_v59  ;;  %v3128_v61 = vsel %vm14096_vm1, %v11874_v60, 0.0  ;;  %v3239_v23 = vpop.permute.xlu1 %3238 }
0x1c9b   :  { %3129 = vadd.xlane.f32.xlu0 %v3128_v61 }
0x1cb1   :  { %3142 = vrot.lane.b32.xlu0 %v12794_v12, %s12258_s15 }
0x1cb5   :  { %3240 = vrot.lane.b32.xlu0 %v12812_v25, %s12261_s0 }
0x1d24   :  { %v3133_v63 = vpop.xlane.xlu0 %3132 }
0x1d25   :  { %11875 = vrcp.f32 %v3133_v63 }
0x1d28   :  { %v3130_v10 = vpop.xlane.xlu0 %3129 }
0x1d29   :  { %11877 = vrcp.f32 %v3130_v10 }
0x1d2c   :  { %v3143_v13 = vpop.permute.xlu0 %3142 }
0x1d2d   :  { %10359 = vmatprep.subr.mxu0 %v3143_v13 }
0x1d2e   :  { %10360 = vmatpush3.msra.mxu0 %v3143_v13 }
0x1d2f   :  { %10975 = vmatprep.subr.msk.bf16.mxu0 %vm12470_vm6, %v10973_v14  ;;  %v11876_v15 = vpop.eup %11875 }
0x1d30   :  { %v3137_v1 = vmul.f32 %v11876_v15, %v11872_v57  ;;  %v3241_v6 = vpop.permute.xlu0 %3240 }
0x1d33   :  { %v11878_v3 = vpop.eup %11877 }
0x1d34   :  { %v3136_v18 = vmul.f32 %v11878_v3, %v11874_v60 }
0x1d36   :  { %10361 = vmatprep.mubr.msk.f32.mxu0 %vm14096_vm1, %v3136_v18 }
0x1d37   :  { %10362 = vmatmul.mubr.msk.f32.vlgmr.msra.gmra.mrb[24].mxu0 %vm14096_vm1, %v3137_v1 }
0x1d38   :  { %10978 = vmatpush3.bf16.xpose.msk.msra.mxu0 %vm12470_vm6, %v10973_v14  ;;  %10370 = vmatprep.mubr.msk.f32.mxu0 %vm295_vm5, %v3239_v23 }
0x1d39   :  { %10368 = vmatprep.subr.msk.mxu0 %vm295_vm5, %v3247_v17 }
0x1d40   :  { %10369 = vmatpush3.xpose.msk.msra.mxu0 %vm295_vm5, %v3247_v17 }
0x1d43   :  { %10371 = vmatmul.mubr.msk.f32.vlgmr.msra.gmra.mrb[26].mxu0 %vm295_vm5, %v3241_v6 }
0x1e0a   :  { %v12940_v49 = vpop.f32.mrb[24].mxu0 }
0x1e0b   :  { %v12942_v34 = vpop.f32.mrb[25].mxu0 }
0x1e16   :  { %v10372_v22 = vpop.f32.mrb[26].mxu0 }
0x1e17   :  { %v3334_v26 = vmul.f32 0.35355338, %v10372_v22  ;;  %v3324_v54 = vpop.f32.mrb[27].mxu0 }
0x1e18   :  { %v3333_v27 = vmul.f32 0.35355338, %v3324_v54 }
0x1e19   :  { %v3336_v29 = vadd.f32 %v3334_v26, %v12827_v28 }
0x1e1a   :  { %v3335_v30 = vadd.f32 %v3333_v27, %v12832_v31 }
0x1e1b   :  { %v3340_v35 = vsel %vm14096_vm1, %v3336_v29, -inf }
0x1e1c   :  { %3341 = vmax.xlane.f32.xlu0 %v3340_v35  ;;  %v3337_v4 = vsel %vm14096_vm1, %v3335_v30, -inf }
0x1e1d   :  { %3338 = vmax.xlane.f32.xlu1 %v3337_v4 }
0x1e2e   :  { %11535 = vrot.lane.b32.xlu1 %v12786_v16, %s12260_s17 }
0x1e32   :  { %11540 = vrot.lane.b32.xlu1 %v12786_v16, %s12263_s19 }
0x1e36   :  { %3467 = vrot.lane.b32.xlu1 %v12794_v12, %s12263_s19 }
0x1e3a   :  { %3459 = vrot.lane.b32.xlu1 %v12810_v24, %s12263_s19 }
0x1ea9   :  { %v3342_v5 = vpop.xlane.xlu0 %3341 }
0x1eaa   :  { %v3344_v48 = vsub.f32 %v3336_v29, %v3342_v5  ;;  %v3339_v32 = vpop.xlane.xlu1 %3338 }
0x1eab   :  { %v3343_v38 = vsub.f32 %v3335_v30, %v3339_v32 }
0x1eac   :  { %v3347_v40 = vmul.f32 1.442695, %v3344_v48 }
0x1ead   :  { %v3345_v21 = vmul.f32 1.442695, %v3343_v38 }
0x1eae   :  { %11879 = vpow2.f32 %v3347_v40  ;;  %v11536_v41 = vpop.permute.xlu1 %11535 }
0x1eaf   :  { %v11538_v42 = vunpack.i.h.bf16 %v11536_v41  ;;  %v11537_v2 = vunpack.i.l.bf16 %v11536_v41  ;;  %11881 = vpow2.f32 %v3345_v21 }
0x1eb1   :  { %v10979_v58 = vpack.c.bf16 %v11538_v42, %v11537_v2 }
0x1eb2   :  { %v11541_v53 = vpop.permute.xlu1 %11540 }
0x1eb3   :  { %10980 = vmatprep.subr.bf16.mxu1 %v10979_v58  ;;  %v11543_v56 = vunpack.i.h.bf16 %v11541_v53  ;;  %v11542_v57 = vunpack.i.l.bf16 %v11541_v53 }
0x1eb4   :  { %10982 = vmatpush3.bf16.msra.mxu1 %v10979_v58 }
0x1eb5   :  { %v10983_v60 = vpack.c.bf16 %v11543_v56, %v11542_v57 }
0x1eb6   :  { %v3468_v61 = vpop.permute.xlu1 %3467 }
0x1eb8   :  { %v11880_v46 = vpop.eup %11879 }
0x1eb9   :  { %v3352_v47 = vsel %vm14096_vm1, %v11880_v46, 0.0  ;;  %v11882_v50 = vpop.eup %11881 }
0x1eba   :  { %3353 = vadd.xlane.f32.xlu0 %v3352_v47  ;;  %v3349_v51 = vsel %vm14096_vm1, %v11882_v50, 0.0  ;;  %v3460_v39 = vpop.permute.xlu1 %3459 }
0x1ebe   :  { %3350 = vadd.xlane.f32.xlu0 %v3349_v51 }
0x1ed4   :  { %3363 = vrot.lane.b32.xlu0 %v12794_v12, %s12260_s17 }
0x1ed8   :  { %3461 = vrot.lane.b32.xlu0 %v12812_v25, %s12263_s19 }
0x1f47   :  { %v3354_v52 = vpop.xlane.xlu0 %3353 }
0x1f48   :  { %11883 = vrcp.f32 %v3354_v52 }
0x1f4b   :  { %v3351_v55 = vpop.xlane.xlu0 %3350 }
0x1f4c   :  { %11885 = vrcp.f32 %v3351_v55 }
0x1f4f   :  { %v3364_v59 = vpop.permute.xlu0 %3363 }
0x1f50   :  { %10377 = vmatprep.subr.mxu1 %v3364_v59 }
0x1f51   :  { %10378 = vmatpush3.msra.mxu1 %v3364_v59 }
0x1f52   :  { %10985 = vmatprep.subr.msk.bf16.mxu1 %vm12470_vm6, %v10983_v60  ;;  %v11884_v63 = vpop.eup %11883 }
0x1f53   :  { %v3358_v11 = vmul.f32 %v11884_v63, %v11880_v46  ;;  %v3462_v13 = vpop.permute.xlu0 %3461 }
0x1f56   :  { %v11886_v9 = vpop.eup %11885 }
0x1f57   :  { %v3357_v10 = vmul.f32 %v11886_v9, %v11882_v50 }
0x1f59   :  { %10379 = vmatprep.mubr.msk.f32.mxu1 %vm14096_vm1, %v3357_v10 }
0x1f5a   :  { %10380 = vmatmul.mubr.msk.f32.vlgmr.msra.gmra.mrb[36].mxu1 %vm14096_vm1, %v3358_v11 }
0x1f5b   :  { %10988 = vmatpush3.bf16.xpose.msk.msra.mxu1 %vm12470_vm6, %v10983_v60  ;;  %10388 = vmatprep.mubr.msk.f32.mxu1 %vm295_vm5, %v3460_v39 }
0x1f5c   :  { %10386 = vmatprep.subr.msk.mxu1 %vm295_vm5, %v3468_v61 }
0x1f63   :  { %10387 = vmatpush3.xpose.msk.msra.mxu1 %vm295_vm5, %v3468_v61 }
0x1f66   :  { %10389 = vmatmul.mubr.msk.f32.vlgmr.msra.gmra.mrb[38].mxu1 %vm295_vm5, %v3462_v13 }
0x202d   :  { %v12972_v14 = vpop.f32.mrb[36].mxu1 }
0x202e   :  { %v12974_v17 = vpop.f32.mrb[37].mxu1 }
0x2039   :  { %v10390_v15 = vpop.f32.mrb[38].mxu1 }
0x203a   :  { %v3555_v3 = vmul.f32 0.35355338, %v10390_v15  ;;  %v3545_v18 = vpop.f32.mrb[39].mxu1 }
0x203b   :  { %v3554_v1 = vmul.f32 0.35355338, %v3545_v18 }
0x203c   :  { %v3557_v23 = vadd.f32 %v3555_v3, %v12827_v28 }
0x203d   :  { %v3556_v6 = vadd.f32 %v3554_v1, %v12832_v31 }
0x203e   :  { %v3561_v22 = vsel %vm14096_vm1, %v3557_v23, -inf }
0x203f   :  { %3562 = vmax.xlane.f32.xlu0 %v3561_v22  ;;  %v3558_v26 = vsel %vm14096_vm1, %v3556_v6, -inf }
0x2040   :  { %3559 = vmax.xlane.f32.xlu1 %v3558_v26 }
0x2051   :  { %11545 = vrot.lane.b32.xlu1 %v12786_v16, %s12262_s20 }
0x2055   :  { %11550 = vrot.lane.b32.xlu1 %v12786_v16, %s12265_s23 }
0x2059   :  { %3688 = vrot.lane.b32.xlu1 %v12794_v12, %s12265_s23 }
0x205d   :  { %3680 = vrot.lane.b32.xlu1 %v12810_v24, %s12265_s23 }
0x20cc   :  { %v3563_v54 = vpop.xlane.xlu0 %3562 }
0x20cd   :  { %v3565_v27 = vsub.f32 %v3557_v23, %v3563_v54  ;;  %v3560_v29 = vpop.xlane.xlu1 %3559 }
0x20ce   :  { %v3564_v30 = vsub.f32 %v3556_v6, %v3560_v29 }
0x20cf   :  { %v3568_v35 = vmul.f32 1.442695, %v3565_v27 }
0x20d0   :  { %v3566_v4 = vmul.f32 1.442695, %v3564_v30 }
0x20d1   :  { %11887 = vpow2.f32 %v3568_v35  ;;  %v11546_v5 = vpop.permute.xlu1 %11545 }
0x20d2   :  { %v11548_v48 = vunpack.i.h.bf16 %v11546_v5  ;;  %v11547_v32 = vunpack.i.l.bf16 %v11546_v5  ;;  %11889 = vpow2.f32 %v3566_v4 }
0x20d4   :  { %v10989_v38 = vpack.c.bf16 %v11548_v48, %v11547_v32 }
0x20d5   :  { %v11551_v58 = vpop.permute.xlu1 %11550 }
0x20d6   :  { %10990 = vmatprep.subr.bf16.mxu0 %v10989_v38  ;;  %v11553_v47 = vunpack.i.h.bf16 %v11551_v58  ;;  %v11552_v50 = vunpack.i.l.bf16 %v11551_v58 }
0x20d7   :  { %10992 = vmatpush3.bf16.msra.mxu0 %v10989_v38 }
0x20d8   :  { %v10993_v52 = vpack.c.bf16 %v11553_v47, %v11552_v50 }
0x20d9   :  { %v3689_v53 = vpop.permute.xlu1 %3688 }
0x20db   :  { %v11888_v40 = vpop.eup %11887 }
0x20dc   :  { %v3573_v21 = vsel %vm14096_vm1, %v11888_v40, 0.0  ;;  %v11890_v41 = vpop.eup %11889 }
0x20dd   :  { %3574 = vadd.xlane.f32.xlu0 %v3573_v21  ;;  %v3570_v42 = vsel %vm14096_vm1, %v11890_v41, 0.0  ;;  %v3681_v60 = vpop.permute.xlu1 %3680 }
0x20e1   :  { %3571 = vadd.xlane.f32.xlu0 %v3570_v42 }
0x20f7   :  { %3584 = vrot.lane.b32.xlu0 %v12794_v12, %s12262_s20 }
0x20fb   :  { %3682 = vrot.lane.b32.xlu0 %v12812_v25, %s12265_s23 }
0x216a   :  { %v3575_v2 = vpop.xlane.xlu0 %3574 }
0x216b   :  { %11891 = vrcp.f32 %v3575_v2 }
0x216e   :  { %v3572_v46 = vpop.xlane.xlu0 %3571 }
0x216f   :  { %11893 = vrcp.f32 %v3572_v46 }
0x2172   :  { %v3585_v51 = vpop.permute.xlu0 %3584 }
0x2173   :  { %10395 = vmatprep.subr.mxu0 %v3585_v51 }
0x2174   :  { %10396 = vmatpush3.msra.mxu0 %v3585_v51 }
0x2175   :  { %10995 = vmatprep.subr.msk.bf16.mxu0 %vm12470_vm6, %v10993_v52  ;;  %v11892_v55 = vpop.eup %11891 }
0x2176   :  { %v3579_v59 = vmul.f32 %v11892_v55, %v11888_v40  ;;  %v3683_v61 = vpop.permute.xlu0 %3682 }
0x2179   :  { %v11894_v56 = vpop.eup %11893 }
0x217a   :  { %v3578_v57 = vmul.f32 %v11894_v56, %v11890_v41 }
0x217c   :  { %10397 = vmatprep.mubr.msk.f32.mxu0 %vm14096_vm1, %v3578_v57 }
0x217d   :  { %10398 = vmatmul.mubr.msk.f32.vlgmr.msra.gmra.mrb[28].mxu0 %vm14096_vm1, %v3579_v59 }
0x217e   :  { %10998 = vmatpush3.bf16.xpose.msk.msra.mxu0 %vm12470_vm6, %v10993_v52  ;;  %10406 = vmatprep.mubr.msk.f32.mxu0 %vm295_vm5, %v3681_v60 }
0x217f   :  { %10404 = vmatprep.subr.msk.mxu0 %vm295_vm5, %v3689_v53 }
0x2186   :  { %10405 = vmatpush3.xpose.msk.msra.mxu0 %vm295_vm5, %v3689_v53 }
0x2189   :  { %10407 = vmatmul.mubr.msk.f32.vlgmr.msra.gmra.mrb[30].mxu0 %vm295_vm5, %v3683_v61 }
0x2250   :  { %v13004_v63 = vpop.f32.mrb[28].mxu0 }
0x2251   :  { %v13006_v9 = vpop.f32.mrb[29].mxu0 }
0x225c   :  { %v10408_v10 = vpop.f32.mrb[30].mxu0 }
0x225d   :  { %v3776_v11 = vmul.f32 0.35355338, %v10408_v10  ;;  %v3766_v39 = vpop.f32.mrb[31].mxu0 }
0x225e   :  { %v3775_v13 = vmul.f32 0.35355338, %v3766_v39 }
0x225f   :  { %v3778_v15 = vadd.f32 %v3776_v11, %v12827_v28 }
0x2260   :  { %v3777_v3 = vadd.f32 %v3775_v13, %v12832_v31 }
0x2261   :  { %v3782_v18 = vsel %vm14096_vm1, %v3778_v15, -inf }
0x2262   :  { %3783 = vmax.xlane.f32.xlu0 %v3782_v18  ;;  %v3779_v1 = vsel %vm14096_vm1, %v3777_v3, -inf }
0x2263   :  { %3780 = vmax.xlane.f32.xlu1 %v3779_v1 }
0x2274   :  { %11555 = vrot.lane.b32.xlu1 %v12786_v16, %s12264_s21 }
0x2278   :  { %11560 = vrot.lane.b32.xlu1 %v12786_v16, %s14094_s24 }
0x227c   :  { %3909 = vrot.lane.b32.xlu1 %v12794_v12, %s14094_s24 }
0x2280   :  { %3901 = vrot.lane.b32.xlu1 %v12810_v24, %s14094_s24 }
0x22ef   :  { %v3784_v23 = vpop.xlane.xlu0 %3783 }
0x22f0   :  { %v3786_v6 = vsub.f32 %v3778_v15, %v3784_v23  ;;  %v3781_v22 = vpop.xlane.xlu1 %3780 }
0x22f1   :  { %v3785_v26 = vsub.f32 %v3777_v3, %v3781_v22 }
0x22f2   :  { %v3789_v54 = vmul.f32 1.442695, %v3786_v6 }
0x22f3   :  { %v3787_v27 = vmul.f32 1.442695, %v3785_v26 }
0x22f4   :  { %11895 = vpow2.f32 %v3789_v54  ;;  %v11556_v29 = vpop.permute.xlu1 %11555 }
0x22f5   :  { %v11558_v30 = vunpack.i.h.bf16 %v11556_v29  ;;  %v11557_v35 = vunpack.i.l.bf16 %v11556_v29  ;;  %11897 = vpow2.f32 %v3787_v27 }
0x22f7   :  { %v10999_v4 = vpack.c.bf16 %v11558_v30, %v11557_v35 }
0x22f8   :  { %v11561_v40 = vpop.permute.xlu1 %11560 }
0x22f9   :  { %11000 = vmatprep.subr.bf16.mxu1 %v10999_v4  ;;  %v11563_v41 = vunpack.i.h.bf16 %v11561_v40  ;;  %v11562_v42 = vunpack.i.l.bf16 %v11561_v40  ;;  %v9621_v40 = vld [vmem:[%s14083_s5 + $0x40] sm:$0xff]  }
0x22fa   :  { %11002 = vmatpush3.bf16.msra.mxu1 %v10999_v4 }
0x22fb   :  { %v11003_v58 = vpack.c.bf16 %v11563_v41, %v11562_v42  ;;  %v9623_v41 = vld [vmem:[%s14083_s5 + $0x50] sm:$0xff]   ;;  %v9624_v42 = vld [vmem:[%s14083_s5 + $0x58] sm:$0xff]  }
0x22fc   :  { %v3910_v46 = vpop.permute.xlu1 %3909 }
0x22fe   :  { %v11896_v5 = vpop.eup %11895 }
0x22ff   :  { %v3794_v48 = vsel %vm14096_vm1, %v11896_v5, 0.0  ;;  %v11898_v32 = vpop.eup %11897 }
0x2300   :  { %3795 = vadd.xlane.f32.xlu0 %v3794_v48  ;;  %v3791_v24 = vsel %vm14096_vm1, %v11898_v32, 0.0 }
0x2304   :  { %3792 = vadd.xlane.f32.xlu0 %v3791_v24 }
0x231a   :  { %3805 = vrot.lane.b32.xlu0 %v12794_v12, %s12264_s21 }
0x231e   :  { %3903 = vrot.lane.b32.xlu0 %v12812_v25, %s14094_s24  ;;  %v3902_v25 = vpop.permute.xlu1 %3901  ;;  %s14100_s24 = smov 8  }
0x238d   :  { %v3796_v38 = vpop.xlane.xlu0 %3795 }
0x238e   :  { %11899 = vrcp.f32 %v3796_v38 }
0x2391   :  { %v3793_v21 = vpop.xlane.xlu0 %3792 }
0x2392   :  { %11901 = vrcp.f32 %v3793_v21  ;;  %v9622_v21 = vld [vmem:[%s14083_s5 + $0x48] sm:$0xff]  }
0x2395   :  { %v3806_v2 = vpop.permute.xlu0 %3805 }
0x2396   :  { %10413 = vmatprep.subr.mxu1 %v3806_v2 }
0x2397   :  { %10414 = vmatpush3.msra.mxu1 %v3806_v2 }
0x2398   :  { %11005 = vmatprep.subr.msk.bf16.mxu1 %vm12470_vm6, %v11003_v58  ;;  %v11900_v47 = vpop.eup %11899 }
0x2399   :  { %v3800_v52 = vmul.f32 %v11900_v47, %v11896_v5  ;;  %v3904_v53 = vpop.permute.xlu0 %3903 }
0x239c   :  { %v11902_v50 = vpop.eup %11901 }
0x239d   :  { %v3799_v51 = vmul.f32 %v11902_v50, %v11898_v32 }
0x239f   :  { %10415 = vmatprep.mubr.msk.f32.mxu1 %vm14096_vm1, %v3799_v51 }
0x23a0   :  { %10416 = vmatmul.mubr.msk.f32.vlgmr.msra.gmra.mrb[40].mxu1 %vm14096_vm1, %v3800_v52  ;;  %v13102_v52 = vsub.s32 2, %v12432_v33 }
0x23a1   :  { %11008 = vmatpush3.bf16.xpose.msk.msra.mxu1 %vm12470_vm6, %v11003_v58  ;;  %10424 = vmatprep.mubr.msk.f32.mxu1 %vm295_vm5, %v3902_v25  ;;  %v13104_v25 = vld [vmem:[#allocation9] sm:$0xff] }
0x23a2   :  { %10422 = vmatprep.subr.msk.mxu1 %vm295_vm5, %v3910_v46 }
0x23a9   :  { %10423 = vmatpush3.xpose.msk.msra.mxu1 %vm295_vm5, %v3910_v46 }
0x23ac   :  { %10425 = vmatmul.mubr.msk.f32.vlgmr.msra.gmra.mrb[42].mxu1 %vm295_vm5, %v3904_v53  ;;  %v4227_v53 = vrot.slane %v13104_v25, %v13102_v52 }
0x23ad   :  { %4384 = vmatprep.mubr.f32.mxu1 %v12253_v19 }
0x2473   :  { %v10417_v55 = vpop.f32.mrb[40].mxu1 }
0x2474   :  { %v3882_v56 = vpop.f32.mrb[41].mxu1 }
0x247f   :  { %v10426_v57 = vpop.f32.mrb[42].mxu1 }
0x2480   :  { %v3997_v59 = vmul.f32 0.35355338, %v10426_v57  ;;  %v3987_v60 = vpop.f32.mrb[43].mxu1 }
0x2481   :  { %v3996_v61 = vmul.f32 0.35355338, %v3987_v60 }
0x2482   :  { %v3999_v10 = vadd.f32 %v3997_v59, %v12827_v28 }
0x2483   :  { %v3998_v11 = vadd.f32 %v3996_v61, %v12832_v31 }
0x2484   :  { %v4003_v39 = vsel %vm14096_vm1, %v3999_v10, -inf }
0x2485   :  { %4004 = vmax.xlane.f32.xlu0 %v4003_v39  ;;  %v4000_v13 = vsel %vm14096_vm1, %v3998_v11, -inf }
0x2486   :  { %4001 = vmax.xlane.f32.xlu1 %v4000_v13 }
0x2497   :  { %11565 = vrot.lane.b32.xlu1 %v12786_v16, %s14092_s18 }
0x249b   :  { %2788 = vrot.lane.b32.xlu1 %v12878_v45, %s14092_s18 }
0x249f   :  { %2790 = vrot.lane.b32.xlu1 %v12876_v62, %s14092_s18 }
0x24a3   :  { %3009 = vrot.lane.b32.xlu1 %v12910_v37, %s12264_s21 }
0x24a7   :  { %3230 = vrot.lane.b32.xlu1 %v12942_v34, %s12262_s20 }
0x24ab   :  { %3451 = vrot.lane.b32.xlu1 %v12974_v17, %s12260_s17 }
0x24af   :  { %3672 = vrot.lane.b32.xlu1 %v13006_v9, %s12258_s15 }
0x24b3   :  { %3893 = vrot.lane.b32.xlu1 %v3882_v56, %s12255_s29 }
0x2512   :  { %v4005_v16 = vpop.xlane.xlu0 %4004 }
0x2513   :  { %v4007_v28 = vsub.f32 %v3999_v10, %v4005_v16  ;;  %v4002_v31 = vpop.xlane.xlu1 %4001 }
0x2514   :  { %v4006_v45 = vsub.f32 %v3998_v11, %v4002_v31 }
0x2515   :  { %v4010_v15 = vmul.f32 1.442695, %v4007_v28 }
0x2516   :  { %v4008_v62 = vmul.f32 1.442695, %v4006_v45 }
0x2517   :  { %11903 = vpow2.f32 %v4010_v15  ;;  %v11566_v3 = vpop.permute.xlu1 %11565 }
0x2518   :  { %v11568_v37 = vunpack.i.h.bf16 %v11566_v3  ;;  %v11567_v18 = vunpack.i.l.bf16 %v11566_v3  ;;  %11905 = vpow2.f32 %v4008_v62  ;;  %v11731_v3 = vld [vmem:[%s14085_s7 + $0x4] ss:$8 sps:$4 sm:$0xff]  }
0x2519   :  { %11030 = vmatprep.subr.bf16.mxu1 %v11731_v3 }
0x251a   :  { %v11009_v34 = vpack.c.bf16 %v11568_v37, %v11567_v18  ;;  %v11733_v37 = vld [vmem:[%s14085_s7] ss:$8 sps:$4 sm:$0xff]   ;;  %v11734_v18 = vld [vmem:[%s14085_s7 + $0x14] ss:$8 sps:$4 sm:$0xff]  }
0x251b   :  { %v2789_v1 = vpop.permute.xlu1 %2788  ;;  %11032 = vmatpush1.bf16.msra.mxu1 %v11733_v37 }
0x251c   :  { %2794 = vst.msk [vmem:[#allocation2] sm:$0xff] %vm703_vm8, %v2789_v1  ;;  %11010 = vmatprep.subr.bf16.mxu0 %v11009_v34  ;;  %v11737_v1 = vld [vmem:[%s14085_s7 + $0x24] ss:$8 sps:$4 sm:$0xff]   ;;  %11034 = vmatprep.subr.bf16.mxu1 %v11734_v18 }
0x251d   :  { %11012 = vmatpush3.bf16.msra.mxu0 %v11009_v34  ;;  %v11736_v34 = vld [vmem:[%s14085_s7 + $0x10] ss:$8 sps:$4 sm:$0xff]  }
0x251f   :  { %v2791_v17 = vpop.permute.xlu1 %2790  ;;  %11036 = vmatpush1.bf16.msra.mxu1 %v11736_v34 }
0x2520   :  { %2795 = vst.msk [vmem:[#allocation2 + $0x8] sm:$0xff] %vm703_vm8, %v2791_v17  ;;  %v11739_v17 = vld [vmem:[%s14085_s7 + $0x20] ss:$8 sps:$4 sm:$0xff]   ;;  %11038 = vmatprep.subr.bf16.mxu1 %v11737_v1 }
0x2521   :  { %v11904_v9 = vpop.eup %11903 }
0x2522   :  { %v4015_v23 = vsel %vm14096_vm1, %v11904_v9, 0.0  ;;  %v11906_v6 = vpop.eup %11905 }
0x2523   :  { %4016 = vadd.xlane.f32.xlu0 %v4015_v23  ;;  %v3010_v22 = vpop.permute.xlu1 %3009  ;;  %v4012_v26 = vsel %vm14096_vm1, %v11906_v6, 0.0  ;;  %11040 = vmatpush1.bf16.msra.mxu1 %v11739_v17  ;;  %v11742_v23 = vld [vmem:[%s14085_s7 + $0x30] ss:$8 sps:$4 sm:$0xff]  }
0x2524   :  { %3015 = vst.msk [vmem:[#allocation2] sm:$0xff] %vm918_vm9, %v3010_v22  ;;  %v9420_v22 = vld [vmem:[%s14086_s8] sm:$0xff]  }
0x2527   :  { %4013 = vadd.xlane.f32.xlu0 %v4012_v26  ;;  %v3231_v54 = vpop.permute.xlu1 %3230  ;;  %v9633_v26 = vld [vmem:[%s14086_s8 + $0x48] sm:$0xff]  }
0x2528   :  { %3236 = vst.msk [vmem:[#allocation2] sm:$0xff] %vm1133_vm10, %v3231_v54  ;;  %v9625_v54 = vld [vmem:[%s14086_s8 + $0x8] sm:$0xff]  }
0x252b   :  { %v3452_v27 = vpop.permute.xlu1 %3451 }
0x252c   :  { %3457 = vst.msk [vmem:[#allocation2] sm:$0xff] %vm1348_vm11, %v3452_v27  ;;  %v9634_v27 = vld [vmem:[%s14086_s8 + $0x50] sm:$0xff]  }
0x252f   :  { %v3673_v29 = vpop.permute.xlu1 %3672 }
0x2530   :  { %3678 = vst.msk [vmem:[#allocation2] sm:$0xff] %vm1563_vm12, %v3673_v29  ;;  %v9626_v29 = vld [vmem:[%s14086_s8 + $0x10] sm:$0xff]  }
0x2533   :  { %v3894_v30 = vpop.permute.xlu1 %3893 }
0x2534   :  { %3899 = vst.msk [vmem:[#allocation2] sm:$0xff] %vm1778_vm13, %v3894_v30  ;;  %v9635_v30 = vld [vmem:[%s14086_s8 + $0x58] sm:$0xff]  }
0x253d   :  { %4026 = vrot.lane.b32.xlu0 %v12794_v12, %s14092_s18 }
0x2541   :  { %3011 = vrot.lane.b32.xlu0 %v12908_v36, %s12264_s21 }
0x2545   :  { %3232 = vrot.lane.b32.xlu0 %v12940_v49, %s12262_s20 }
0x2549   :  { %3453 = vrot.lane.b32.xlu0 %v12972_v14, %s12260_s17 }
0x254d   :  { %3674 = vrot.lane.b32.xlu0 %v13004_v63, %s12258_s15 }
0x2551   :  { %3895 = vrot.lane.b32.xlu0 %v10417_v55, %s12255_s29 }
0x25b0   :  { %v4017_v35 = vpop.xlane.xlu0 %4016 }
0x25b1   :  { %11907 = vrcp.f32 %v4017_v35  ;;  %v9627_v35 = vld [vmem:[%s14086_s8 + $0x18] sm:$0xff]  }
0x25b4   :  { %v4014_v4 = vpop.xlane.xlu0 %4013 }
0x25b5   :  { %11909 = vrcp.f32 %v4014_v4  ;;  %v9636_v4 = vld [vmem:[%s14086_s8 + $0x60] sm:$0xff]  }
0x25b8   :  { %v4027_v5 = vpop.permute.xlu0 %4026 }
0x25b9   :  { %10431 = vmatprep.subr.mxu0 %v4027_v5 }
0x25ba   :  { %10432 = vmatpush3.msra.mxu0 %v4027_v5  ;;  %v9628_v5 = vld [vmem:[%s14086_s8 + $0x20] sm:$0xff]  }
0x25bb   :  { %v11908_v36 = vpop.eup %11907  ;;  %11014 = vmatprep.subr.bf16.mxu0 %v9621_v40 }
0x25bc   :  { %v3012_v12 = vpop.permute.xlu0 %3011  ;;  %v4021_v14 = vmul.f32 %v11908_v36, %v11904_v9  ;;  %v11740_v9 = vld [vmem:[%s14085_s7 + $0x34] ss:$8 sps:$4 sm:$0xff]   ;;  %v9629_v36 = vld [vmem:[%s14086_s8 + $0x28] sm:$0xff]  }
0x25bd   :  { %3016 = vst.msk [vmem:[#allocation2 + $0x8] sm:$0xff] %vm918_vm9, %v3012_v12  ;;  %11042 = vmatprep.subr.bf16.mxu1 %v11740_v9  ;;  %v9637_v12 = vld [vmem:[%s14086_s8 + $0x68] sm:$0xff]  }
0x25be   :  { %11044 = vmatpush1.bf16.msra.mxu1 %v11742_v23 }
0x25bf   :  { %v11910_v49 = vpop.eup %11909 }
0x25c0   :  { %v3233_v48 = vpop.permute.xlu0 %3232  ;;  %v4020_v32 = vmul.f32 %v11910_v49, %v11906_v6  ;;  %v9632_v6 = vld [vmem:[%s14086_s8 + $0x40] sm:$0xff]   ;;  %v9638_v49 = vld [vmem:[%s14086_s8 + $0x70] sm:$0xff]  }
0x25c1   :  { %3237 = vst.msk [vmem:[#allocation2 + $0x8] sm:$0xff] %vm1133_vm10, %v3233_v48 }
0x25c2   :  { %10433 = vmatprep.mubr.msk.f32.mxu0 %vm14096_vm1, %v4020_v32 }
0x25c3   :  { %10434 = vmatmul.mubr.msk.f32.vlgmr.msra.gmra.mrb[32].mxu0 %vm14096_vm1, %v4021_v14 }
0x25c4   :  { %v3454_v63 = vpop.permute.xlu0 %3453  ;;  %11016 = vmatpush3.bf16.msra.mxu0 %v9621_v40 }
0x25c5   :  { %3458 = vst.msk [vmem:[#allocation2 + $0x8] sm:$0xff] %vm1348_vm11, %v3454_v63  ;;  %11018 = vmatprep.subr.bf16.mxu0 %v9622_v21 }
0x25c8   :  { %v3675_v24 = vpop.permute.xlu0 %3674  ;;  %11020 = vmatpush3.bf16.msra.mxu0 %v9622_v21 }
0x25c9   :  { %3679 = vst.msk [vmem:[#allocation2 + $0x8] sm:$0xff] %vm1563_vm12, %v3675_v24  ;;  %11022 = vmatprep.subr.bf16.mxu0 %v9623_v41 }
0x25cc   :  { %v3896_v38 = vpop.permute.xlu0 %3895  ;;  %11024 = vmatpush3.bf16.msra.mxu0 %v9623_v41 }
0x25cd   :  { %3900 = vst.msk [vmem:[#allocation2 + $0x8] sm:$0xff] %vm1778_vm13, %v3896_v38  ;;  %11026 = vmatprep.subr.bf16.mxu0 %v9624_v42 }
0x25d0   :  { %11028 = vmatpush3.bf16.msra.mxu0 %v9624_v42 }
0x25d1   :  { %11046 = vmatprep.subr.bf16.mxu0 %v9632_v6 }
0x2696   :  { %v10435_v2 = vpop.f32.mrb[32].mxu0 }
0x2697   :  { %4116 = vrot.lane.b32.xlu0 %v10435_v2, %s12257_s14  ;;  %v4103_v58 = vpop.f32.mrb[33].mxu0 }
0x2698   :  { %4114 = vrot.lane.b32.xlu1 %v4103_v58, %s12257_s14 }
0x2709   :  { %v4117_v46 = vpop.permute.xlu0 %4116 }
0x270a   :  { %4121 = vst.msk [vmem:[#allocation2 + $0x8] sm:$0xff] %vm1993_vm14, %v4117_v46  ;;  %v4115_v47 = vpop.permute.xlu1 %4114 }
0x270b   :  { %4120 = vst.msk [vmem:[#allocation2] sm:$0xff] %vm1993_vm14, %v4115_v47 }
0x2711   :  { %v4123_v51 = vld [vmem:[#allocation2 + $0x8] sm:$0xff] }
0x2712   :  { %v4122_v50 = vld [vmem:[#allocation2] sm:$0xff] }
0x2713   :  { %10452 = vmatprep.mubr.msk.f32.mxu0 %vm120_vm0, %v4122_v50 }
0x2714   :  { %10453 = vmatmul.mubr.msk.f32.vlgmr.msra.gmra.mrb[34].mxu0 %vm120_vm0, %v4123_v51 }
0x2715   :  { %11048 = vmatpush3.bf16.msra.mxu0 %v9420_v22 }
0x2716   :  { %11050 = vmatprep.subr.bf16.mxu0 %v9633_v26 }
0x2719   :  { %11052 = vmatpush3.bf16.msra.mxu0 %v9625_v54 }
0x271a   :  { %11054 = vmatprep.subr.bf16.mxu0 %v9634_v27 }
0x271d   :  { %11056 = vmatpush3.bf16.msra.mxu0 %v9626_v29  ;;  %v13225_v29 = vsub.s32 3, %v12432_v33 }
0x271e   :  { %11058 = vmatprep.subr.bf16.mxu0 %v9635_v30 }
0x2721   :  { %11060 = vmatpush3.bf16.msra.mxu0 %v9627_v35 }
0x2722   :  { %11062 = vmatprep.subr.bf16.mxu0 %v9636_v4 }
0x2725   :  { %11064 = vmatpush3.bf16.msra.mxu0 %v9628_v5  ;;  %v4545_v5 = vrot.slane %v13104_v25, %v13225_v29 }
0x2726   :  { %11066 = vmatprep.subr.bf16.mxu0 %v9637_v12 }
0x2729   :  { %11068 = vmatpush3.bf16.msra.mxu0 %v9629_v36 }
0x272a   :  { %11070 = vmatprep.subr.bf16.mxu0 %v9638_v49 }
0x27e7   :  { %v10454_v55 = vpop.f32.mrb[34].mxu0 }
0x27e8   :  { %v4223_v56 = vadd.f32 %v10454_v55, %v12722_v0  ;;  %v4213_v57 = vpop.f32.mrb[35].mxu0 }
0x27e9   :  { %v4222_v59 = vadd.f32 %v4213_v57, %v12724_v7  ;;  %v13198_v57 = vld [vmem:[#allocation11 + $0x8] sm:$0x3f] }
0x27ea   :  { %v13110_v60 = vadd.f32 %v4227_v53, %v4223_v56 }
0x27eb   :  { %v13112_v61 = vadd.f32 %v4227_v53, %v4222_v59  ;;  %v13193_v53 = vld [vmem:[#allocation11] sm:$0xff]  ;;  %v4279_v59 = vrot.slane %v13198_v57, %v12777_v43  ;;  %v9630_v43 = vld [vmem:[%s14086_s8 + $0x30] sm:$0xff]  }
0x27ec   :  { %v4233_v10 = vsel %vm120_vm0, %v13110_v60, 0.0  ;;  %v4253_v55 = vrot.slane %v13193_v53, %v13102_v52  ;;  %11072 = vmatpush3.bf16.msra.mxu0 %v9630_v43 }
0x27ed   :  { %4234 = vadd.xlane.f32.xlu0 %v4233_v10  ;;  %v4230_v11 = vsel %vm120_vm0, %v13112_v61, 0.0 }
0x27ee   :  { %4231 = vadd.xlane.f32.xlu1 %v4230_v11 }
0x287a   :  { %v4235_v39 = vpop.xlane.xlu0 %4234 }
0x287b   :  { %v4237_v13 = vmul.f32 0.015625, %v4235_v39  ;;  %v4232_v16 = vpop.xlane.xlu1 %4231 }
0x287c   :  { %v4236_v28 = vmul.f32 0.015625, %v4232_v16 }
0x287d   :  { %v13119_v0 = vsub.f32 %v13110_v60, %v4237_v13 }
0x287e   :  { %v13122_v7 = vsub.f32 %v13112_v61, %v4236_v28 }
0x287f   :  { %v4241_v15 = vmul.f32 %v13119_v0, %v13119_v0  ;;  %v4255_v39 = vmul.f32 %v4253_v55, %v13119_v0  ;;  %v9639_v0 = vld [vmem:[%s14086_s8 + $0x78] sm:$0xff]  }
0x2880   :  { %v4240_v31 = vmul.f32 %v13122_v7, %v13122_v7  ;;  %v4254_v56 = vmul.f32 %v4253_v55, %v13122_v7  ;;  %11074 = vmatprep.subr.bf16.mxu0 %v9639_v0  ;;  %v9631_v7 = vld [vmem:[%s14086_s8 + $0x38] sm:$0xff]  }
0x2881   :  { %v4245_v62 = vsel %vm120_vm0, %v4241_v15, 0.0  ;;  %11076 = vmatpush3.bf16.msra.mxu0 %v9631_v7  ;;  %v11748_v55 = vld [vmem:[%s14082_s4 + $0x50] ss:$8 sps:$4 sm:$0xff]  }
0x2882   :  { %v4242_v45 = vsel %vm120_vm0, %v4240_v31, 0.0 }
0x2883   :  { %4243 = vadd.xlane.f32.xlu0 %v4242_v45  ;;  %v13216_v45 = vld [vmem:[#allocation8] sm:$0x3f] }
0x2884   :  { %v4309_v15 = vrot.slane %v13216_v45, %v13102_v52 }
0x2887   :  { %4246 = vadd.xlane.f32.xlu0 %v4245_v62  ;;  %v13220_v62 = vld [vmem:[#allocation8 + $0x8] sm:$0x3f] }
0x2888   :  { %v4313_v3 = vrot.slane %v13220_v62, %v13102_v52 }
0x2910   :  { %v4244_v48 = vpop.xlane.xlu0 %4243 }
0x2911   :  { %v4248_v32 = vmul.f32 0.015873017, %v4244_v48 }
0x2913   :  { %11911 = vrsqrt.f32 %v4248_v32  ;;  %vm4258_vm2 = vcmp.eq.f32.partialorder %v4248_v32, inf  ;;  %v4261_v40 = vand.u32 2147483648, %v4248_v32  ;;  %vm4260_vm3 = vcmp.eq.f32.partialorder %v4248_v32, 0.0 }
0x2914   :  { %v4247_v14 = vpop.xlane.xlu0 %4246 }
0x2915   :  { %v4249_v63 = vmul.f32 0.015873017, %v4247_v14 }
0x2917   :  { %11913 = vrsqrt.f32 %v4249_v63  ;;  %vm4265_vm4 = vcmp.eq.f32.partialorder %v4249_v63, inf  ;;  %v4268_v46 = vand.u32 2147483648, %v4249_v63  ;;  %vm4267_vm1 = vcmp.eq.f32.partialorder %v4249_v63, 0.0 }
0x291d   :  { %v11912_v24 = vpop.eup %11911 }
0x291e   :  { %v4257_v38 = vmul.f32 %v11912_v24, %v4248_v32 }
0x2920   :  { %v4259_v21 = vsel %vm4258_vm2, %v4248_v32, %v4257_v38 }
0x2921   :  { %v11914_v41 = vpop.eup %11913  ;;  %v4262_v42 = vsel %vm4260_vm3, %v4261_v40, %v4259_v21 }
0x2922   :  { %v4270_v2 = vadd.f32 1e-06, %v4262_v42  ;;  %v4264_v58 = vmul.f32 %v11914_v41, %v4249_v63 }
0x2924   :  { %11915 = vrcp.f32 %v4270_v2  ;;  %v4266_v47 = vsel %vm4265_vm4, %v4249_v63, %v4264_v58 }
0x2925   :  { %v4269_v50 = vsel %vm4267_vm1, %v4268_v46, %v4266_v47  ;;  %v11743_v47 = vld [vmem:[%s14082_s4 + $0x44] ss:$8 sps:$4 sm:$0xff]  }
0x2926   :  { %v4271_v51 = vadd.f32 1e-06, %v4269_v50  ;;  %v11745_v50 = vld [vmem:[%s14082_s4 + $0x40] ss:$8 sps:$4 sm:$0xff]   ;;  %11078 = vmatprep.subr.bf16.mxu1 %v11743_v47 }
0x2928   :  { %11917 = vrcp.f32 %v4271_v51  ;;  %v11746_v51 = vld [vmem:[%s14082_s4 + $0x54] ss:$8 sps:$4 sm:$0xff]  }
0x292e   :  { %v11916_v10 = vpop.eup %11915 }
0x292f   :  { %v4273_v11 = vmul.f32 %v11916_v10, %v4254_v56  ;;  %v11749_v56 = vld [vmem:[%s14082_s4 + $0x64] ss:$8 sps:$4 sm:$0xff]   ;;  %v11752_v10 = vld [vmem:[%s14082_s4 + $0x74] ss:$8 sps:$4 sm:$0xff]  }
0x2931   :  { %v4280_v13 = vadd.f32 %v4279_v59, %v4273_v11  ;;  %v11754_v11 = vld [vmem:[%s14082_s4 + $0x70] ss:$8 sps:$4 sm:$0xff]  }
0x2932   :  { %v11918_v16 = vpop.eup %11917 }
0x2933   :  { %9164 = vmatmul.mubr.msk.f32.vlgmr.msra.gmra.mrb[44].mxu1 %vm120_vm0, %v4280_v13  ;;  %v4275_v28 = vmul.f32 %v11918_v16, %v4255_v39 }
0x2934   :  { %4390 = vmatprep.mubr.f32.mxu1 %v12253_v19  ;;  %11080 = vmatpush1.bf16.msra.mxu1 %v11745_v50 }
0x2935   :  { %v4281_v31 = vadd.f32 %v4279_v59, %v4275_v28  ;;  %11082 = vmatprep.subr.bf16.mxu1 %v11746_v51  ;;  %v11751_v59 = vld [vmem:[%s14082_s4 + $0x60] ss:$8 sps:$4 sm:$0xff]  }
0x2937   :  { %9165 = vmatmul.mubr.msk.f32.gmra.mrb[46].mxu1 %vm120_vm0, %v4281_v31 }
0x2938   :  { %4703 = vmatprep.mubr.f32.mxu1 %v12253_v19  ;;  %11084 = vmatpush1.bf16.msra.mxu1 %v11748_v55  ;;  %v13313_v55 = vld [vmem:[%s14080_s2] sm:$0xff] }
0x2939   :  { %11086 = vmatprep.subr.bf16.mxu1 %v11749_v56 }
0x293c   :  { %11088 = vmatpush1.bf16.msra.mxu1 %v11751_v59  ;;  %v13319_v59 = vld [vmem:[%s14080_s2 + $0x8] sm:$0xff]  ;;  %s14099_s2 = smov 72  }
0x293d   :  { %11090 = vmatprep.subr.bf16.mxu1 %v11752_v10 }
0x2940   :  { %11092 = vmatpush1.bf16.msra.mxu1 %v11754_v11 }
0x2a06   :  { %v4386_v37 = vpop.f32.mrb[44].mxu1 }
0x2a07   :  { %v4387_v18 = vadd.f32 %v4386_v37, %v4309_v15  ;;  %v4388_v34 = vpop.f32.mrb[45].mxu1 }
0x2a08   :  { %v4389_v1 = vadd.f32 %v4388_v34, %v4313_v3 }
0x2a09   :  { %v4397_v23 = vmax.f32 %v4387_v18, 0.0 }
0x2a0a   :  { %v4398_v17 = vmax.f32 %v4389_v1, 0.0  ;;  %v4392_v9 = vpop.f32.mrb[46].mxu1 }
0x2a0b   :  { %v4393_v6 = vadd.f32 %v4392_v9, %v4309_v15  ;;  %v4394_v22 = vpop.f32.mrb[47].mxu1 }
0x2a0c   :  { %v4395_v26 = vadd.f32 %v4394_v22, %v4313_v3  ;;  %4529 = vmatprep.mubr.f32.mxu0 %v4398_v17  ;;  %v4597_v22 = vrot.slane %v13198_v57, %v13102_v52  ;;  %v4632_v57 = vrot.slane %v13220_v62, %v13225_v29 }
0x2a0d   :  { %4530 = vmatmul.mubr.f32.vlgmr.msra.gmra.mrb[36].mxu0 %v4397_v23  ;;  %v4399_v27 = vmax.f32 %v4393_v6, 0.0  ;;  %v4571_v23 = vrot.slane %v13193_v53, %v13225_v29  ;;  %v4628_v53 = vrot.slane %v13216_v45, %v13225_v29 }
0x2a0e   :  { %v4400_v54 = vmax.f32 %v4395_v26, 0.0 }
0x2a10   :  { %4534 = vmatprep.mubr.f32.mxu0 %v4400_v54 }
0x2a11   :  { %4535 = vmatmul.mubr.f32.gmra.mrb[38].mxu0 %v4399_v27 }
0x2ae0   :  { %v9888_v30 = vpop.f32.mrb[36].mxu0 }
0x2ae1   :  { %v9889_v35 = vpop.f32.mrb[37].mxu0 }
0x2ae2   :  { %v9890_v4 = vadd.f32 %v9889_v35, %v9888_v30 }
0x2ae4   :  { %v4540_v12 = vadd.f32 %v9890_v4, %v13112_v61  ;;  %v9891_v36 = vpop.f32.mrb[38].mxu0 }
0x2ae5   :  { %v9892_v49 = vpop.f32.mrb[39].mxu0 }
0x2ae6   :  { %v13230_v48 = vadd.f32 %v4545_v5, %v4540_v12  ;;  %v9893_v32 = vadd.f32 %v9892_v49, %v9891_v36 }
0x2ae8   :  { %v4541_v14 = vadd.f32 %v9893_v32, %v13110_v60  ;;  %v4548_v63 = vsel %vm120_vm0, %v13230_v48, 0.0 }
0x2ae9   :  { %4549 = vadd.xlane.f32.xlu1 %v4548_v63 }
0x2aea   :  { %v13235_v24 = vadd.f32 %v4545_v5, %v4541_v14 }
0x2aec   :  { %v4551_v38 = vsel %vm120_vm0, %v13235_v24, 0.0 }
0x2aed   :  { %4552 = vadd.xlane.f32.xlu0 %v4551_v38 }
0x2b76   :  { %v4550_v25 = vpop.xlane.xlu1 %4549 }
0x2b77   :  { %v4554_v40 = vmul.f32 0.015625, %v4550_v25 }
0x2b79   :  { %v4556_v61 = vsub.f32 %v13230_v48, %v4554_v40 }
0x2b7a   :  { %v4553_v21 = vpop.xlane.xlu0 %4552 }
0x2b7b   :  { %v4555_v41 = vmul.f32 0.015625, %v4553_v21  ;;  %v4558_v42 = vmul.f32 %v4556_v61, %v4556_v61  ;;  %v4572_v6 = vmul.f32 %v4571_v23, %v4556_v61 }
0x2b7d   :  { %v4557_v2 = vsub.f32 %v13235_v24, %v4555_v41  ;;  %v4560_v60 = vsel %vm120_vm0, %v4558_v42, 0.0 }
0x2b7e   :  { %4561 = vadd.xlane.f32.xlu1 %v4560_v60 }
0x2b7f   :  { %v4559_v58 = vmul.f32 %v4557_v2, %v4557_v2  ;;  %v4573_v27 = vmul.f32 %v4571_v23, %v4557_v2 }
0x2b81   :  { %v4563_v46 = vsel %vm120_vm0, %v4559_v58, 0.0 }
0x2b82   :  { %4564 = vadd.xlane.f32.xlu0 %v4563_v46 }
0x2c0b   :  { %v4562_v39 = vpop.xlane.xlu1 %4561 }
0x2c0c   :  { %v4566_v13 = vmul.f32 0.015873017, %v4562_v39 }
0x2c0e   :  { %11919 = vrsqrt.f32 %v4566_v13  ;;  %vm4576_vm1 = vcmp.eq.f32.partialorder %v4566_v13, inf  ;;  %v4579_v0 = vand.u32 2147483648, %v4566_v13  ;;  %vm4578_vm2 = vcmp.eq.f32.partialorder %v4566_v13, 0.0 }
0x2c0f   :  { %v4565_v16 = vpop.xlane.xlu0 %4564 }
0x2c10   :  { %v4567_v28 = vmul.f32 0.015873017, %v4565_v16 }
0x2c12   :  { %11921 = vrsqrt.f32 %v4567_v28  ;;  %vm4583_vm3 = vcmp.eq.f32.partialorder %v4567_v28, inf  ;;  %v4586_v34 = vand.u32 2147483648, %v4567_v28  ;;  %vm4585_vm4 = vcmp.eq.f32.partialorder %v4567_v28, 0.0 }
0x2c18   :  { %v11920_v31 = vpop.eup %11919 }
0x2c19   :  { %v4575_v43 = vmul.f32 %v11920_v31, %v4566_v13 }
0x2c1b   :  { %v4577_v7 = vsel %vm4576_vm1, %v4566_v13, %v4575_v43 }
0x2c1c   :  { %v11922_v15 = vpop.eup %11921  ;;  %v4580_v3 = vsel %vm4578_vm2, %v4579_v0, %v4577_v7 }
0x2c1d   :  { %v4588_v37 = vadd.f32 1e-06, %v4580_v3  ;;  %v4582_v18 = vmul.f32 %v11922_v15, %v4567_v28 }
0x2c1f   :  { %11923 = vrcp.f32 %v4588_v37  ;;  %v4584_v1 = vsel %vm4583_vm3, %v4567_v28, %v4582_v18  ;;  %vm14101_vm3 = vcmask 195584  }
0x2c20   :  { %v4587_v17 = vsel %vm4585_vm4, %v4586_v34, %v4584_v1  ;;  %vm14102_vm4 = vmmov %vm14101_vm3 }
0x2c21   :  { %v4589_v9 = vadd.f32 1e-06, %v4587_v17 }
0x2c23   :  { %11925 = vrcp.f32 %v4589_v9 }
0x2c29   :  { %v11924_v26 = vpop.eup %11923 }
0x2c2a   :  { %v4591_v54 = vmul.f32 %v11924_v26, %v4572_v6 }
0x2c2c   :  { %v4598_v30 = vadd.f32 %v4597_v22, %v4591_v54 }
0x2c2d   :  { %v11926_v35 = vpop.eup %11925 }
0x2c2e   :  { %9174 = vmatmul.mubr.msk.f32.vlgmr.msra.gmra.mrb[48].mxu1 %vm120_vm0, %v4598_v30  ;;  %v4593_v4 = vmul.f32 %v11926_v35, %v4573_v27 }
0x2c2f   :  { %4709 = vmatprep.mubr.f32.mxu1 %v12253_v19 }
0x2c30   :  { %v4599_v5 = vadd.f32 %v4597_v22, %v4593_v4 }
0x2c32   :  { %9175 = vmatmul.mubr.msk.f32.gmra.mrb[50].mxu1 %vm120_vm0, %v4599_v5 }
0x2d01   :  { %v4705_v12 = vpop.f32.mrb[48].mxu1 }
0x2d02   :  { %v13276_v36 = vadd.f32 %v4705_v12, %v4628_v53  ;;  %v4707_v52 = vpop.f32.mrb[49].mxu1 }
0x2d03   :  { %v4708_v63 = vadd.f32 %v4707_v52, %v4632_v57 }
0x2d04   :  { %10459 = vmatprep.mubr.msk.f32.mxu1 %vm295_vm5, %v13276_v36 }
0x2d05   :  { %v4711_v49 = vpop.f32.mrb[50].mxu1 }
0x2d06   :  { %v13282_v32 = vadd.f32 %v4711_v49, %v4628_v53  ;;  %v4713_v14 = vpop.f32.mrb[51].mxu1 }
0x2d07   :  { %v4714_v38 = vadd.f32 %v4713_v14, %v4632_v57 }
0x2d08   :  { %v13286_v25 = vpack.i.bf16 %v13282_v32, %v13276_v36 }
0x2d09   :  { %v11099_v45 = vpack.c.bf16 %v4714_v38, %v4708_v63  ;;  %v13288_v40 = vpack.i.bf16 %v4714_v38, %v4708_v63 }
0x2d0a   :  { %11570 = vrot.lane.b32.xlu1 %v13286_v25, %s12245_s13 }
0x2d0e   :  { %11575 = vrot.lane.b32.xlu1 %v13286_v25, %s12257_s14 }
0x2d12   :  { %11580 = vrot.lane.b32.xlu1 %v13286_v25, %s12255_s29 }
0x2d16   :  { %4916 = vrot.lane.b32.xlu1 %v13282_v32, %s12254_s22 }
0x2d1a   :  { %5130 = vrot.lane.b32.xlu1 %v13276_v36, %s12256_s9 }
0x2d1e   :  { %5132 = vrot.lane.b32.xlu1 %v13282_v32, %s12256_s9 }
0x2d7c   :  { %v11571_v62 = vpop.permute.xlu1 %11570 }
0x2d7d   :  { %v11573_v61 = vunpack.i.h.bf16 %v11571_v62  ;;  %v11572_v21 = vunpack.i.l.bf16 %v11571_v62 }
0x2d7f   :  { %v11093_v41 = vpack.c.bf16 %v11573_v61, %v11572_v21 }
0x2d80   :  { %v11576_v42 = vpop.permute.xlu1 %11575 }
0x2d81   :  { %11095 = vmatprep.subr.msk.bf16.mxu1 %vm12470_vm6, %v11093_v41  ;;  %v11578_v2 = vunpack.i.h.bf16 %v11576_v42  ;;  %v11577_v60 = vunpack.i.l.bf16 %v11576_v42 }
0x2d82   :  { %11098 = vmatpush3.bf16.xpose.msk.msra.mxu1 %vm12470_vm6, %v11093_v41 }
0x2d83   :  { %11100 = vmatprep.subr.bf16.mxu1 %v11099_v45  ;;  %v11103_v58 = vpack.c.bf16 %v11578_v2, %v11577_v60 }
0x2d84   :  { %v11581_v17 = vpop.permute.xlu1 %11580 }
0x2d85   :  { %v11583_v23 = vunpack.i.h.bf16 %v11581_v17  ;;  %v11582_v6 = vunpack.i.l.bf16 %v11581_v17 }
0x2d87   :  { %v11113_v54 = vpack.c.bf16 %v11583_v23, %v11582_v6 }
0x2d88   :  { %v4917_v30 = vpop.permute.xlu1 %4916 }
0x2d89   :  { %10460 = vmatmul.mubr.msk.f32.vlgmr.msra.gmra.mrb[52].mxu1 %vm295_vm5, %v13282_v32 }
0x2d8a   :  { %11102 = vmatpush3.bf16.msra.mxu1 %v11099_v45 }
0x2d8b   :  { %11105 = vmatprep.subr.msk.bf16.mxu1 %vm12470_vm6, %v11103_v58 }
0x2d8c   :  { %v5131_v35 = vpop.permute.xlu1 %5130 }
0x2d90   :  { %v5133_v4 = vpop.permute.xlu1 %5132 }
0x2e5c   :  { %v10461_v46 = vpop.f32.mrb[52].mxu1 }
0x2e5d   :  { %v4796_v47 = vpop.f32.mrb[53].mxu1  ;;  %v4806_v50 = vmul.f32 0.35355338, %v10461_v46 }
0x2e5e   :  { %v4805_v51 = vmul.f32 0.35355338, %v4796_v47 }
0x2e5f   :  { %v4808_v10 = vadd.f32 %v13319_v59, %v4806_v50 }
0x2e60   :  { %v4807_v56 = vadd.f32 %v13313_v55, %v4805_v51 }
0x2e61   :  { %v4812_v39 = vsel %vm383_vm7, %v4808_v10, -inf }
0x2e62   :  { %v4809_v11 = vsel %vm383_vm7, %v4807_v56, -inf }
0x2e63   :  { %4810 = vmax.xlane.f32.xlu0 %v4809_v11 }
0x2e67   :  { %4813 = vmax.xlane.f32.xlu0 %v4812_v39 }
0x2ef0   :  { %v4811_v13 = vpop.xlane.xlu0 %4810 }
0x2ef1   :  { %v4815_v16 = vsub.f32 %v4807_v56, %v4811_v13 }
0x2ef3   :  { %v4817_v28 = vmul.f32 1.442695, %v4815_v16 }
0x2ef4   :  { %v4814_v31 = vpop.xlane.xlu0 %4813 }
0x2ef5   :  { %11927 = vpow2.f32 %v4817_v28  ;;  %v4816_v43 = vsub.f32 %v4808_v10, %v4814_v31 }
0x2ef7   :  { %v4819_v0 = vmul.f32 1.442695, %v4816_v43 }
0x2ef9   :  { %11929 = vpow2.f32 %v4819_v0 }
0x2eff   :  { %v11928_v7 = vpop.eup %11927 }
0x2f00   :  { %v4821_v15 = vsel %vm383_vm7, %v11928_v7, 0.0 }
0x2f01   :  { %4822 = vadd.xlane.f32.xlu0 %v4821_v15 }
0x2f03   :  { %v11930_v3 = vpop.eup %11929 }
0x2f04   :  { %v4824_v37 = vsel %vm383_vm7, %v11930_v3, 0.0 }
0x2f05   :  { %4825 = vadd.xlane.f32.xlu0 %v4824_v37 }
0x2f1b   :  { %4914 = vrot.lane.b32.xlu0 %v13276_v36, %s12254_s22 }
0x2f8e   :  { %v4823_v18 = vpop.xlane.xlu0 %4822 }
0x2f8f   :  { %11931 = vrcp.f32 %v4823_v18 }
0x2f92   :  { %v4826_v34 = vpop.xlane.xlu0 %4825 }
0x2f93   :  { %11933 = vrcp.f32 %v4826_v34 }
0x2f96   :  { %v4915_v27 = vpop.permute.xlu0 %4914 }
0x2f99   :  { %v11932_v1 = vpop.eup %11931 }
0x2f9a   :  { %v4829_v9 = vmul.f32 %v11932_v1, %v11928_v7 }
0x2f9c   :  { %10466 = vmatprep.mubr.msk.f32.mxu1 %vm383_vm7, %v4829_v9 }
0x2f9d   :  { %v11934_v22 = vpop.eup %11933 }
0x2f9e   :  { %v4830_v26 = vmul.f32 %v11934_v22, %v11930_v3 }
0x2fa0   :  { %10467 = vmatmul.mubr.msk.f32.vlgmr.msra.gmra.mrb[54].mxu1 %vm383_vm7, %v4830_v26 }
0x2fa1   :  { %11108 = vmatpush3.bf16.xpose.msk.msra.mxu1 %vm12470_vm6, %v11103_v58  ;;  %10473 = vmatprep.mubr.msk.f32.mxu1 %vm295_vm5, %v4915_v27 }
0x2fa2   :  { %11115 = vmatprep.subr.msk.bf16.mxu1 %vm12470_vm6, %v11113_v54 }
0x2fa8   :  { %10474 = vmatmul.mubr.msk.f32.vlgmr.msra.gmra.mrb[56].mxu1 %vm295_vm5, %v4917_v30 }
0x2fa9   :  { %11118 = vmatpush3.bf16.xpose.msk.msra.mxu1 %vm12470_vm6, %v11113_v54  ;;  %10487 = vmatprep.mubr.msk.f32.mxu1 %vm295_vm5, %v5131_v35 }
0x2fb0   :  { %10488 = vmatmul.mubr.msk.f32.vlgmr.msra.gmra.mrb[58].mxu1 %vm295_vm5, %v5133_v4 }
0x3073   :  { %v10468_v5 = vpop.f32.mrb[54].mxu1 }
0x3074   :  { %4913 = vst.msk [vmem:[#allocation2 + $0x8] sm:$0xff] %vm295_vm5, %v10468_v5  ;;  %v4903_v53 = vpop.f32.mrb[55].mxu1 }
0x3075   :  { %4912 = vst.msk [vmem:[#allocation2] sm:$0xff] %vm295_vm5, %v4903_v53 }
0x307b   :  { %v10475_v12 = vpop.f32.mrb[56].mxu1 }
0x307c   :  { %v5006_v52 = vmul.f32 0.35355338, %v10475_v12  ;;  %v4996_v57 = vpop.f32.mrb[57].mxu1 }
0x307d   :  { %v5005_v49 = vmul.f32 0.35355338, %v4996_v57 }
0x307e   :  { %v5008_v14 = vadd.f32 %v13319_v59, %v5006_v52 }
0x307f   :  { %v5007_v63 = vadd.f32 %v13313_v55, %v5005_v49 }
0x3080   :  { %v5012_v38 = vsel %vm383_vm7, %v5008_v14, -inf }
0x3081   :  { %5013 = vmax.xlane.f32.xlu0 %v5012_v38  ;;  %v5009_v45 = vsel %vm383_vm7, %v5007_v63, -inf }
0x3082   :  { %5010 = vmax.xlane.f32.xlu1 %v5009_v45 }
0x3083   :  { %v10489_v62 = vpop.f32.mrb[58].mxu1 }
0x3084   :  { %v5222_v61 = vmul.f32 0.35355338, %v10489_v62  ;;  %v5212_v21 = vpop.f32.mrb[59].mxu1 }
0x3085   :  { %v5221_v41 = vmul.f32 0.35355338, %v5212_v21 }
0x3086   :  { %v5224_v42 = vadd.f32 %v13319_v59, %v5222_v61 }
0x3087   :  { %v5223_v2 = vadd.f32 %v13313_v55, %v5221_v41 }
0x3088   :  { %v5228_v60 = vsel %vm383_vm7, %v5224_v42, -inf }
0x3089   :  { %5229 = vmax.xlane.f32.xlu1 %v5228_v60  ;;  %v5225_v58 = vsel %vm383_vm7, %v5223_v2, -inf }
0x308a   :  { %5226 = vmax.xlane.f32.xlu0 %v5225_v58 }
0x310e   :  { %v5014_v46 = vpop.xlane.xlu0 %5013 }
0x310f   :  { %v5016_v47 = vsub.f32 %v5008_v14, %v5014_v46  ;;  %v5011_v50 = vpop.xlane.xlu1 %5010 }
0x3110   :  { %v5015_v51 = vsub.f32 %v5007_v63, %v5011_v50 }
0x3111   :  { %v5019_v56 = vmul.f32 1.442695, %v5016_v47 }
0x3112   :  { %v5017_v10 = vmul.f32 1.442695, %v5015_v51 }
0x3113   :  { %11935 = vpow2.f32 %v5019_v56 }
0x3114   :  { %11937 = vpow2.f32 %v5017_v10 }
0x3116   :  { %v5230_v11 = vpop.xlane.xlu1 %5229 }
0x3117   :  { %v5232_v39 = vsub.f32 %v5224_v42, %v5230_v11  ;;  %v5227_v13 = vpop.xlane.xlu0 %5226 }
0x3118   :  { %v5231_v16 = vsub.f32 %v5223_v2, %v5227_v13 }
0x3119   :  { %v5235_v28 = vmul.f32 1.442695, %v5232_v39 }
0x311a   :  { %v5233_v31 = vmul.f32 1.442695, %v5231_v16 }
0x311b   :  { %11939 = vpow2.f32 %v5235_v28 }
0x311c   :  { %11941 = vpow2.f32 %v5233_v31 }
0x311d   :  { %v11936_v43 = vpop.eup %11935 }
0x311e   :  { %v11938_v0 = vpop.eup %11937  ;;  %v5024_v7 = vsel %vm383_vm7, %v11936_v43, 0.0 }
0x311f   :  { %5025 = vadd.xlane.f32.xlu1 %v5024_v7  ;;  %v5021_v15 = vsel %vm383_vm7, %v11938_v0, 0.0 }
0x3120   :  { %5022 = vadd.xlane.f32.xlu0 %v5021_v15 }
0x3125   :  { %v11940_v3 = vpop.eup %11939 }
0x3126   :  { %v11942_v37 = vpop.eup %11941  ;;  %v5240_v18 = vsel %vm383_vm7, %v11940_v3, 0.0 }
0x3127   :  { %5241 = vadd.xlane.f32.xlu1 %v5240_v18  ;;  %v5237_v34 = vsel %vm383_vm7, %v11942_v37, 0.0 }
0x3128   :  { %5238 = vadd.xlane.f32.xlu0 %v5237_v34 }
0x3138   :  { %11590 = vrot.lane.b32.xlu1 %v13288_v40, %s12256_s9 }
0x313c   :  { %11595 = vrot.lane.b32.xlu1 %v13286_v25, %s12258_s15 }
0x313e   :  { %11585 = vrot.lane.b32.xlu0 %v13288_v40, %s12254_s22 }
0x3140   :  { %5344 = vrot.lane.b32.xlu1 %v13276_v36, %s12259_s16 }
0x3142   :  { %5346 = vrot.lane.b32.xlu0 %v13282_v32, %s12259_s16 }
0x31ac   :  { %v5026_v17 = vpop.xlane.xlu1 %5025 }
0x31ad   :  { %v5023_v1 = vpop.xlane.xlu0 %5022 }
0x31ae   :  { %11943 = vrcp.f32 %v5023_v1 }
0x31af   :  { %11945 = vrcp.f32 %v5026_v17 }
0x31b4   :  { %v5242_v9 = vpop.xlane.xlu1 %5241 }
0x31b5   :  { %v5239_v23 = vpop.xlane.xlu0 %5238 }
0x31b6   :  { %11947 = vrcp.f32 %v5239_v23 }
0x31b7   :  { %11949 = vrcp.f32 %v5242_v9 }
0x31b8   :  { %v11944_v6 = vpop.eup %11943  ;;  %v11591_v22 = vpop.permute.xlu1 %11590 }
0x31b9   :  { %v11586_v26 = vpop.permute.xlu0 %11585  ;;  %v5029_v54 = vmul.f32 %v11944_v6, %v11938_v0  ;;  %v11593_v27 = vunpack.i.h.bf16 %v11591_v22  ;;  %v11592_v30 = vunpack.i.l.bf16 %v11591_v22  ;;  %v11946_v12 = vpop.eup %11945 }
0x31ba   :  { %v11588_v35 = vunpack.i.h.bf16 %v11586_v26  ;;  %v11587_v4 = vunpack.i.l.bf16 %v11586_v26  ;;  %v5030_v63 = vmul.f32 %v11946_v12, %v11936_v43 }
0x31bb   :  { %10480 = vmatprep.mubr.msk.f32.mxu0 %vm383_vm7, %v5029_v54  ;;  %v11119_v49 = vpack.c.bf16 %v11593_v27, %v11592_v30 }
0x31bc   :  { %v11596_v5 = vpop.permute.xlu1 %11595  ;;  %v11109_v53 = vpack.c.bf16 %v11588_v35, %v11587_v4 }
0x31bd   :  { %v11598_v52 = vunpack.i.h.bf16 %v11596_v5  ;;  %v11597_v57 = vunpack.i.l.bf16 %v11596_v5  ;;  %v5347_v41 = vpop.permute.xlu0 %5346 }
0x31be   :  { %11110 = vmatprep.subr.bf16.mxu0 %v11109_v53 }
0x31bf   :  { %11112 = vmatpush3.bf16.msra.mxu0 %v11109_v53  ;;  %v11123_v62 = vpack.c.bf16 %v11598_v52, %v11597_v57 }
0x31c0   :  { %v11948_v14 = vpop.eup %11947  ;;  %11120 = vmatprep.subr.bf16.mxu0 %v11119_v49  ;;  %v5345_v21 = vpop.permute.xlu1 %5344 }
0x31c1   :  { %v11950_v38 = vpop.eup %11949  ;;  %v5245_v45 = vmul.f32 %v11948_v14, %v11942_v37 }
0x31c2   :  { %10481 = vmatmul.mubr.msk.f32.vlgmr.msra.gmra.mrb[40].mxu0 %vm383_vm7, %v5030_v63  ;;  %v5246_v61 = vmul.f32 %v11950_v38, %v11940_v3 }
0x31c3   :  { %11122 = vmatpush3.bf16.msra.mxu0 %v11119_v49  ;;  %10494 = vmatprep.mubr.msk.f32.mxu0 %vm383_vm7, %v5245_v45 }
0x31c4   :  { %11125 = vmatprep.subr.msk.bf16.mxu0 %vm12470_vm6, %v11123_v62 }
0x31c6   :  { %10495 = vmatmul.mubr.msk.f32.vlgmr.msra.gmra.mrb[42].mxu0 %vm383_vm7, %v5246_v61 }
0x31c7   :  { %10501 = vmatprep.mubr.msk.f32.mxu0 %vm295_vm5, %v5345_v21 }
0x31cc   :  { %11128 = vmatpush3.bf16.xpose.msk.msra.mxu0 %vm12470_vm6, %v11123_v62 }
0x31d3   :  { %10502 = vmatmul.mubr.msk.f32.vlgmr.msra.gmra.mrb[44].mxu0 %vm295_vm5, %v5347_v41 }
0x3295   :  { %v13374_v42 = vpop.f32.mrb[40].mxu0 }
0x3296   :  { %v13376_v2 = vpop.f32.mrb[41].mxu0 }
0x3299   :  { %v13378_v60 = vpop.f32.mrb[42].mxu0 }
0x329a   :  { %v13380_v58 = vpop.f32.mrb[43].mxu0 }
0x32a6   :  { %v10503_v46 = vpop.f32.mrb[44].mxu0 }
0x32a7   :  { %v5436_v47 = vmul.f32 0.35355338, %v10503_v46  ;;  %v5426_v50 = vpop.f32.mrb[45].mxu0 }
0x32a8   :  { %v5435_v51 = vmul.f32 0.35355338, %v5426_v50 }
0x32a9   :  { %v5438_v56 = vadd.f32 %v13319_v59, %v5436_v47 }
0x32aa   :  { %v5437_v10 = vadd.f32 %v13313_v55, %v5435_v51 }
0x32ab   :  { %v5442_v11 = vsel %vm383_vm7, %v5438_v56, -inf }
0x32ac   :  { %5443 = vmax.xlane.f32.xlu0 %v5442_v11  ;;  %v5439_v39 = vsel %vm383_vm7, %v5437_v10, -inf }
0x32ad   :  { %5440 = vmax.xlane.f32.xlu1 %v5439_v39 }
0x32be   :  { %11600 = vrot.lane.b32.xlu1 %v13288_v40, %s12259_s16 }
0x32c2   :  { %5558 = vrot.lane.b32.xlu1 %v13276_v36, %s12261_s0 }
0x32c6   :  { %5560 = vrot.lane.b32.xlu1 %v13282_v32, %s12261_s0 }
0x3339   :  { %v5444_v13 = vpop.xlane.xlu0 %5443 }
0x333a   :  { %v5446_v16 = vsub.f32 %v5438_v56, %v5444_v13  ;;  %v5441_v28 = vpop.xlane.xlu1 %5440 }
0x333b   :  { %v5445_v31 = vsub.f32 %v5437_v10, %v5441_v28 }
0x333c   :  { %v5449_v43 = vmul.f32 1.442695, %v5446_v16 }
0x333d   :  { %v5447_v0 = vmul.f32 1.442695, %v5445_v31 }
0x333e   :  { %11951 = vpow2.f32 %v5449_v43  ;;  %v11601_v7 = vpop.permute.xlu1 %11600 }
0x333f   :  { %v11603_v15 = vunpack.i.h.bf16 %v11601_v7  ;;  %v11602_v3 = vunpack.i.l.bf16 %v11601_v7  ;;  %11953 = vpow2.f32 %v5447_v0 }
0x3341   :  { %v11129_v37 = vpack.c.bf16 %v11603_v15, %v11602_v3 }
0x3342   :  { %v5559_v5 = vpop.permute.xlu1 %5558 }
0x3343   :  { %11130 = vmatprep.subr.bf16.mxu1 %v11129_v37 }
0x3344   :  { %11132 = vmatpush3.bf16.msra.mxu1 %v11129_v37 }
0x3346   :  { %v5561_v53 = vpop.permute.xlu1 %5560 }
0x3348   :  { %v11952_v18 = vpop.eup %11951 }
0x3349   :  { %v5454_v34 = vsel %vm383_vm7, %v11952_v18, 0.0  ;;  %v11954_v1 = vpop.eup %11953 }
0x334a   :  { %5455 = vadd.xlane.f32.xlu0 %v5454_v34  ;;  %v5451_v17 = vsel %vm383_vm7, %v11954_v1, 0.0 }
0x334e   :  { %5452 = vadd.xlane.f32.xlu0 %v5451_v17 }
0x3364   :  { %11605 = vrot.lane.b32.xlu0 %v13286_v25, %s12260_s17 }
0x33d7   :  { %v5456_v9 = vpop.xlane.xlu0 %5455 }
0x33d8   :  { %11955 = vrcp.f32 %v5456_v9 }
0x33db   :  { %v5453_v23 = vpop.xlane.xlu0 %5452 }
0x33dc   :  { %11957 = vrcp.f32 %v5453_v23 }
0x33df   :  { %v11606_v6 = vpop.permute.xlu0 %11605 }
0x33e0   :  { %v11608_v22 = vunpack.i.h.bf16 %v11606_v6  ;;  %v11607_v26 = vunpack.i.l.bf16 %v11606_v6 }
0x33e2   :  { %v11133_v54 = vpack.c.bf16 %v11608_v22, %v11607_v26  ;;  %v11956_v27 = vpop.eup %11955 }
0x33e3   :  { %v5460_v4 = vmul.f32 %v11956_v27, %v11952_v18 }
0x33e4   :  { %11135 = vmatprep.subr.msk.bf16.mxu1 %vm12470_vm6, %v11133_v54 }
0x33e6   :  { %v11958_v30 = vpop.eup %11957 }
0x33e7   :  { %v5459_v35 = vmul.f32 %v11958_v30, %v11954_v1 }
0x33e9   :  { %10508 = vmatprep.mubr.msk.f32.mxu1 %vm383_vm7, %v5459_v35 }
0x33ea   :  { %10509 = vmatmul.mubr.msk.f32.vlgmr.msra.gmra.mrb[60].mxu1 %vm383_vm7, %v5460_v4 }
0x33eb   :  { %11138 = vmatpush3.bf16.xpose.msk.msra.mxu1 %vm12470_vm6, %v11133_v54  ;;  %10515 = vmatprep.mubr.msk.f32.mxu1 %vm295_vm5, %v5559_v5 }
0x33f2   :  { %10516 = vmatmul.mubr.msk.f32.vlgmr.msra.gmra.mrb[62].mxu1 %vm295_vm5, %v5561_v53 }
0x34bd   :  { %v13404_v12 = vpop.f32.mrb[60].mxu1 }
0x34be   :  { %v13406_v52 = vpop.f32.mrb[61].mxu1 }
0x34c5   :  { %v10517_v57 = vpop.f32.mrb[62].mxu1 }
0x34c6   :  { %v5650_v49 = vmul.f32 0.35355338, %v10517_v57  ;;  %v5640_v14 = vpop.f32.mrb[63].mxu1 }
0x34c7   :  { %v5649_v63 = vmul.f32 0.35355338, %v5640_v14 }
0x34c8   :  { %v5652_v38 = vadd.f32 %v13319_v59, %v5650_v49 }
0x34c9   :  { %v5651_v45 = vadd.f32 %v13313_v55, %v5649_v63 }
0x34ca   :  { %v5656_v62 = vsel %vm383_vm7, %v5652_v38, -inf }
0x34cb   :  { %5657 = vmax.xlane.f32.xlu0 %v5656_v62  ;;  %v5653_v61 = vsel %vm383_vm7, %v5651_v45, -inf }
0x34cc   :  { %5654 = vmax.xlane.f32.xlu1 %v5653_v61 }
0x34dd   :  { %11610 = vrot.lane.b32.xlu1 %v13288_v40, %s12261_s0 }
0x34e1   :  { %5772 = vrot.lane.b32.xlu1 %v13276_v36, %s12263_s19 }
0x34e5   :  { %5774 = vrot.lane.b32.xlu1 %v13282_v32, %s12263_s19 }
0x3558   :  { %v5658_v21 = vpop.xlane.xlu0 %5657 }
0x3559   :  { %v5660_v41 = vsub.f32 %v5652_v38, %v5658_v21  ;;  %v5655_v46 = vpop.xlane.xlu1 %5654 }
0x355a   :  { %v5659_v47 = vsub.f32 %v5651_v45, %v5655_v46 }
0x355b   :  { %v5663_v50 = vmul.f32 1.442695, %v5660_v41 }
0x355c   :  { %v5661_v51 = vmul.f32 1.442695, %v5659_v47 }
0x355d   :  { %11959 = vpow2.f32 %v5663_v50  ;;  %v11611_v56 = vpop.permute.xlu1 %11610 }
0x355e   :  { %v11613_v10 = vunpack.i.h.bf16 %v11611_v56  ;;  %v11612_v11 = vunpack.i.l.bf16 %v11611_v56  ;;  %11961 = vpow2.f32 %v5661_v51 }
0x3560   :  { %v11139_v39 = vpack.c.bf16 %v11613_v10, %v11612_v11 }
0x3561   :  { %v5773_v9 = vpop.permute.xlu1 %5772 }
0x3562   :  { %11140 = vmatprep.subr.bf16.mxu0 %v11139_v39 }
0x3563   :  { %11142 = vmatpush3.bf16.msra.mxu0 %v11139_v39 }
0x3565   :  { %v5775_v23 = vpop.permute.xlu1 %5774 }
0x3567   :  { %v11960_v13 = vpop.eup %11959 }
0x3568   :  { %v5668_v16 = vsel %vm383_vm7, %v11960_v13, 0.0  ;;  %v11962_v28 = vpop.eup %11961 }
0x3569   :  { %5669 = vadd.xlane.f32.xlu0 %v5668_v16  ;;  %v5665_v31 = vsel %vm383_vm7, %v11962_v28, 0.0 }
0x356d   :  { %5666 = vadd.xlane.f32.xlu0 %v5665_v31 }
0x3583   :  { %11615 = vrot.lane.b32.xlu0 %v13286_v25, %s12262_s20 }
0x35f6   :  { %v5670_v43 = vpop.xlane.xlu0 %5669 }
0x35f7   :  { %11963 = vrcp.f32 %v5670_v43 }
0x35fa   :  { %v5667_v0 = vpop.xlane.xlu0 %5666 }
0x35fb   :  { %11965 = vrcp.f32 %v5667_v0 }
0x35fe   :  { %v11616_v7 = vpop.permute.xlu0 %11615 }
0x35ff   :  { %v11618_v15 = vunpack.i.h.bf16 %v11616_v7  ;;  %v11617_v3 = vunpack.i.l.bf16 %v11616_v7 }
0x3601   :  { %v11143_v37 = vpack.c.bf16 %v11618_v15, %v11617_v3  ;;  %v11964_v18 = vpop.eup %11963 }
0x3602   :  { %v5674_v17 = vmul.f32 %v11964_v18, %v11960_v13 }
0x3603   :  { %11145 = vmatprep.subr.msk.bf16.mxu0 %vm12470_vm6, %v11143_v37 }
0x3605   :  { %v11966_v34 = vpop.eup %11965 }
0x3606   :  { %v5673_v1 = vmul.f32 %v11966_v34, %v11962_v28 }
0x3608   :  { %10522 = vmatprep.mubr.msk.f32.mxu0 %vm383_vm7, %v5673_v1 }
0x3609   :  { %10523 = vmatmul.mubr.msk.f32.vlgmr.msra.gmra.mrb[46].mxu0 %vm383_vm7, %v5674_v17 }
0x360a   :  { %11148 = vmatpush3.bf16.xpose.msk.msra.mxu0 %vm12470_vm6, %v11143_v37  ;;  %10529 = vmatprep.mubr.msk.f32.mxu0 %vm295_vm5, %v5773_v9 }
0x3611   :  { %10530 = vmatmul.mubr.msk.f32.vlgmr.msra.gmra.mrb[48].mxu0 %vm295_vm5, %v5775_v23 }
0x36dc   :  { %v13430_v6 = vpop.f32.mrb[46].mxu0 }
0x36dd   :  { %v13432_v22 = vpop.f32.mrb[47].mxu0 }
0x36e4   :  { %v10531_v26 = vpop.f32.mrb[48].mxu0 }
0x36e5   :  { %v5864_v54 = vmul.f32 0.35355338, %v10531_v26  ;;  %v5854_v27 = vpop.f32.mrb[49].mxu0 }
0x36e6   :  { %v5863_v30 = vmul.f32 0.35355338, %v5854_v27 }
0x36e7   :  { %v5866_v35 = vadd.f32 %v13319_v59, %v5864_v54 }
0x36e8   :  { %v5865_v4 = vadd.f32 %v13313_v55, %v5863_v30 }
0x36e9   :  { %v5870_v5 = vsel %vm383_vm7, %v5866_v35, -inf }
0x36ea   :  { %5871 = vmax.xlane.f32.xlu0 %v5870_v5  ;;  %v5867_v53 = vsel %vm383_vm7, %v5865_v4, -inf }
0x36eb   :  { %5868 = vmax.xlane.f32.xlu1 %v5867_v53 }
0x36fc   :  { %11620 = vrot.lane.b32.xlu1 %v13288_v40, %s12263_s19 }
0x3700   :  { %5986 = vrot.lane.b32.xlu1 %v13276_v36, %s12265_s23 }
0x3704   :  { %5988 = vrot.lane.b32.xlu1 %v13282_v32, %s12265_s23 }
0x3777   :  { %v5872_v57 = vpop.xlane.xlu0 %5871 }
0x3778   :  { %v5874_v49 = vsub.f32 %v5866_v35, %v5872_v57  ;;  %v5869_v14 = vpop.xlane.xlu1 %5868 }
0x3779   :  { %v5873_v63 = vsub.f32 %v5865_v4, %v5869_v14 }
0x377a   :  { %v5877_v38 = vmul.f32 1.442695, %v5874_v49 }
0x377b   :  { %v5875_v45 = vmul.f32 1.442695, %v5873_v63 }
0x377c   :  { %11967 = vpow2.f32 %v5877_v38  ;;  %v11621_v62 = vpop.permute.xlu1 %11620 }
0x377d   :  { %v11623_v61 = vunpack.i.h.bf16 %v11621_v62  ;;  %v11622_v21 = vunpack.i.l.bf16 %v11621_v62  ;;  %11969 = vpow2.f32 %v5875_v45 }
0x377f   :  { %v11149_v41 = vpack.c.bf16 %v11623_v61, %v11622_v21 }
0x3780   :  { %v5987_v7 = vpop.permute.xlu1 %5986 }
0x3781   :  { %11150 = vmatprep.subr.bf16.mxu1 %v11149_v41 }
0x3782   :  { %11152 = vmatpush3.bf16.msra.mxu1 %v11149_v41 }
0x3784   :  { %v5989_v15 = vpop.permute.xlu1 %5988 }
0x3786   :  { %v11968_v46 = vpop.eup %11967 }
0x3787   :  { %v5882_v47 = vsel %vm383_vm7, %v11968_v46, 0.0  ;;  %v11970_v50 = vpop.eup %11969 }
0x3788   :  { %5883 = vadd.xlane.f32.xlu0 %v5882_v47  ;;  %v5879_v51 = vsel %vm383_vm7, %v11970_v50, 0.0 }
0x378c   :  { %5880 = vadd.xlane.f32.xlu0 %v5879_v51 }
0x37a2   :  { %11625 = vrot.lane.b32.xlu0 %v13286_v25, %s12264_s21 }
0x3815   :  { %v5884_v56 = vpop.xlane.xlu0 %5883 }
0x3816   :  { %11971 = vrcp.f32 %v5884_v56 }
0x3819   :  { %v5881_v10 = vpop.xlane.xlu0 %5880 }
0x381a   :  { %11973 = vrcp.f32 %v5881_v10 }
0x381d   :  { %v11626_v11 = vpop.permute.xlu0 %11625 }
0x381e   :  { %v11628_v39 = vunpack.i.h.bf16 %v11626_v11  ;;  %v11627_v13 = vunpack.i.l.bf16 %v11626_v11 }
0x3820   :  { %v11153_v16 = vpack.c.bf16 %v11628_v39, %v11627_v13  ;;  %v11972_v28 = vpop.eup %11971 }
0x3821   :  { %v5888_v0 = vmul.f32 %v11972_v28, %v11968_v46 }
0x3822   :  { %11155 = vmatprep.subr.msk.bf16.mxu1 %vm12470_vm6, %v11153_v16 }
0x3824   :  { %v11974_v31 = vpop.eup %11973 }
0x3825   :  { %v5887_v43 = vmul.f32 %v11974_v31, %v11970_v50 }
0x3827   :  { %10536 = vmatprep.mubr.msk.f32.mxu1 %vm383_vm7, %v5887_v43 }
0x3828   :  { %10537 = vmatmul.mubr.msk.f32.vlgmr.msra.gmra.mrb[64].mxu1 %vm383_vm7, %v5888_v0 }
0x3829   :  { %11158 = vmatpush3.bf16.xpose.msk.msra.mxu1 %vm12470_vm6, %v11153_v16  ;;  %10543 = vmatprep.mubr.msk.f32.mxu1 %vm295_vm5, %v5987_v7 }
0x3830   :  { %10544 = vmatmul.mubr.msk.f32.vlgmr.msra.gmra.mrb[66].mxu1 %vm295_vm5, %v5989_v15 }
0x38fb   :  { %v13456_v3 = vpop.f32.mrb[64].mxu1 }
0x38fc   :  { %v13458_v37 = vpop.f32.mrb[65].mxu1 }
0x3903   :  { %v10545_v18 = vpop.f32.mrb[66].mxu1 }
0x3904   :  { %v6078_v34 = vmul.f32 0.35355338, %v10545_v18  ;;  %v6068_v1 = vpop.f32.mrb[67].mxu1 }
0x3905   :  { %v6077_v17 = vmul.f32 0.35355338, %v6068_v1 }
0x3906   :  { %v6080_v9 = vadd.f32 %v13319_v59, %v6078_v34 }
0x3907   :  { %v6079_v23 = vadd.f32 %v13313_v55, %v6077_v17 }
0x3908   :  { %v6084_v26 = vsel %vm383_vm7, %v6080_v9, -inf }
0x3909   :  { %6085 = vmax.xlane.f32.xlu0 %v6084_v26  ;;  %v6081_v54 = vsel %vm383_vm7, %v6079_v23, -inf }
0x390a   :  { %6082 = vmax.xlane.f32.xlu1 %v6081_v54 }
0x391b   :  { %11630 = vrot.lane.b32.xlu1 %v13288_v40, %s12265_s23 }
0x391f   :  { %6200 = vrot.lane.b32.xlu1 %v13276_v36, %s14099_s2 }
0x3923   :  { %6202 = vrot.lane.b32.xlu1 %v13282_v32, %s14099_s2 }
0x3996   :  { %v6086_v27 = vpop.xlane.xlu0 %6085 }
0x3997   :  { %v6088_v30 = vsub.f32 %v6080_v9, %v6086_v27  ;;  %v6083_v35 = vpop.xlane.xlu1 %6082 }
0x3998   :  { %v6087_v4 = vsub.f32 %v6079_v23, %v6083_v35 }
0x3999   :  { %v6091_v5 = vmul.f32 1.442695, %v6088_v30 }
0x399a   :  { %v6089_v53 = vmul.f32 1.442695, %v6087_v4 }
0x399b   :  { %11975 = vpow2.f32 %v6091_v5  ;;  %v11631_v57 = vpop.permute.xlu1 %11630 }
0x399c   :  { %v11633_v49 = vunpack.i.h.bf16 %v11631_v57  ;;  %v11632_v14 = vunpack.i.l.bf16 %v11631_v57  ;;  %11977 = vpow2.f32 %v6089_v53 }
0x399e   :  { %v11159_v63 = vpack.c.bf16 %v11633_v49, %v11632_v14 }
0x399f   :  { %v6201_v11 = vpop.permute.xlu1 %6200 }
0x39a0   :  { %11160 = vmatprep.subr.bf16.mxu0 %v11159_v63 }
0x39a1   :  { %11162 = vmatpush3.bf16.msra.mxu0 %v11159_v63 }
0x39a5   :  { %v11976_v38 = vpop.eup %11975 }
0x39a6   :  { %v6096_v36 = vsel %vm383_vm7, %v11976_v38, 0.0  ;;  %v11978_v45 = vpop.eup %11977 }
0x39a7   :  { %6097 = vadd.xlane.f32.xlu0 %v6096_v36  ;;  %v6093_v32 = vsel %vm383_vm7, %v11978_v45, 0.0 }
0x39ab   :  { %6094 = vadd.xlane.f32.xlu0 %v6093_v32  ;;  %v9641_v32 = vld [vmem:[%s14083_s5 + $0x68] sm:$0xff]  }
0x39c1   :  { %11635 = vrot.lane.b32.xlu0 %v13286_v25, %s14100_s24  ;;  %v6203_v25 = vpop.permute.xlu1 %6202 }
0x3a34   :  { %v6098_v62 = vpop.xlane.xlu0 %6097 }
0x3a35   :  { %11979 = vrcp.f32 %v6098_v62  ;;  %v9642_v62 = vld [vmem:[%s14083_s5 + $0x70] sm:$0xff]  }
0x3a38   :  { %v6095_v61 = vpop.xlane.xlu0 %6094 }
0x3a39   :  { %11981 = vrcp.f32 %v6095_v61  ;;  %v9643_v61 = vld [vmem:[%s14083_s5 + $0x78] sm:$0xff]  }
0x3a3c   :  { %v11636_v21 = vpop.permute.xlu0 %11635 }
0x3a3d   :  { %v11638_v41 = vunpack.i.h.bf16 %v11636_v21  ;;  %v11637_v46 = vunpack.i.l.bf16 %v11636_v21 }
0x3a3f   :  { %v11163_v47 = vpack.c.bf16 %v11638_v41, %v11637_v46  ;;  %v11980_v50 = vpop.eup %11979 }
0x3a40   :  { %v6102_v10 = vmul.f32 %v11980_v50, %v11976_v38 }
0x3a41   :  { %11165 = vmatprep.subr.msk.bf16.mxu0 %vm12470_vm6, %v11163_v47 }
0x3a43   :  { %v11982_v51 = vpop.eup %11981 }
0x3a44   :  { %v6101_v56 = vmul.f32 %v11982_v51, %v11978_v45  ;;  %v9640_v45 = vld [vmem:[%s14083_s5 + $0x60] sm:$0xff]  }
0x3a46   :  { %10550 = vmatprep.mubr.msk.f32.mxu0 %vm383_vm7, %v6101_v56  ;;  %v13548_v56 = vsub.s32 4, %v12432_v33 }
0x3a47   :  { %10551 = vmatmul.mubr.msk.f32.vlgmr.msra.gmra.mrb[50].mxu0 %vm383_vm7, %v6102_v10  ;;  %v13550_v10 = vld [vmem:[#allocation9] sm:$0xff] }
0x3a48   :  { %11168 = vmatpush3.bf16.xpose.msk.msra.mxu0 %vm12470_vm6, %v11163_v47  ;;  %10557 = vmatprep.mubr.msk.f32.mxu0 %vm295_vm5, %v6201_v11  ;;  %v6519_v11 = vrot.slane %v13550_v10, %v13548_v56 }
0x3a4f   :  { %10558 = vmatmul.mubr.msk.f32.vlgmr.msra.gmra.mrb[52].mxu0 %vm295_vm5, %v6203_v25 }
0x3b1a   :  { %v10552_v39 = vpop.f32.mrb[50].mxu0 }
0x3b1b   :  { %v6181_v13 = vpop.f32.mrb[51].mxu0 }
0x3b22   :  { %v10559_v16 = vpop.f32.mrb[52].mxu0 }
0x3b23   :  { %v6292_v28 = vmul.f32 0.35355338, %v10559_v16  ;;  %v6282_v31 = vpop.f32.mrb[53].mxu0 }
0x3b24   :  { %v6291_v43 = vmul.f32 0.35355338, %v6282_v31 }
0x3b25   :  { %v6294_v0 = vadd.f32 %v13319_v59, %v6292_v28 }
0x3b26   :  { %v6293_v7 = vadd.f32 %v13313_v55, %v6291_v43 }
0x3b27   :  { %v6298_v15 = vsel %vm383_vm7, %v6294_v0, -inf }
0x3b28   :  { %6299 = vmax.xlane.f32.xlu0 %v6298_v15  ;;  %v6295_v18 = vsel %vm383_vm7, %v6293_v7, -inf }
0x3b29   :  { %6296 = vmax.xlane.f32.xlu1 %v6295_v18 }
0x3b3a   :  { %11640 = vrot.lane.b32.xlu1 %v13288_v40, %s14099_s2 }
0x3b3e   :  { %5124 = vrot.lane.b32.xlu1 %v13374_v42, %s14100_s24 }
0x3b42   :  { %5336 = vrot.lane.b32.xlu1 %v13380_v58, %s12264_s21 }
0x3b46   :  { %5338 = vrot.lane.b32.xlu1 %v13378_v60, %s12264_s21 }
0x3b4a   :  { %5552 = vrot.lane.b32.xlu1 %v13404_v12, %s12262_s20 }
0x3b4e   :  { %5766 = vrot.lane.b32.xlu1 %v13430_v6, %s12260_s17 }
0x3b52   :  { %5980 = vrot.lane.b32.xlu1 %v13456_v3, %s12258_s15 }
0x3b56   :  { %6194 = vrot.lane.b32.xlu1 %v10552_v39, %s12255_s29 }
0x3bb5   :  { %v6300_v40 = vpop.xlane.xlu0 %6299 }
0x3bb6   :  { %v6302_v55 = vsub.f32 %v6294_v0, %v6300_v40  ;;  %v6297_v59 = vpop.xlane.xlu1 %6296 }
0x3bb7   :  { %v6301_v42 = vsub.f32 %v6293_v7, %v6297_v59 }
0x3bb8   :  { %v6305_v34 = vmul.f32 1.442695, %v6302_v55 }
0x3bb9   :  { %v6303_v58 = vmul.f32 1.442695, %v6301_v42 }
0x3bba   :  { %v11641_v1 = vpop.permute.xlu1 %11640 }
0x3bbb   :  { %11983 = vpow2.f32 %v6303_v58  ;;  %v11643_v60 = vunpack.i.h.bf16 %v11641_v1  ;;  %v11642_v17 = vunpack.i.l.bf16 %v11641_v1  ;;  %v9516_v58 = vld [vmem:[#allocation6 + $0x20] sm:$0xff]   ;;  %v9648_v1 = vld [vmem:[#allocation6 + $0x28] sm:$0xff]  }
0x3bbc   :  { %11985 = vpow2.f32 %v6305_v34 }
0x3bbd   :  { %v11169_v12 = vpack.c.bf16 %v11643_v60, %v11642_v17  ;;  %v9649_v60 = vld [vmem:[#allocation6 + $0x30] sm:$0xff]   ;;  %v9650_v17 = vld [vmem:[#allocation6 + $0x38] sm:$0xff]  }
0x3bbe   :  { %v5125_v9 = vpop.permute.xlu1 %5124 }
0x3bbf   :  { %5129 = vst.msk [vmem:[#allocation2 + $0x8] sm:$0xff] %vm703_vm8, %v5125_v9  ;;  %11170 = vmatprep.subr.bf16.mxu1 %v11169_v12  ;;  %v12092_v9 = vld [vmem:[%s14079_s1 + $0x8] sm:$0xff] }
0x3bc0   :  { %11172 = vmatpush3.bf16.msra.mxu1 %v11169_v12  ;;  %v12091_v12 = vld [vmem:[%s14079_s1] sm:$0xff] }
0x3bc1   :  { %11174 = vmatprep.subr.bf16.mxu1 %v9640_v45 }
0x3bc2   :  { %v5337_v6 = vpop.permute.xlu1 %5336 }
0x3bc5   :  { %v11984_v3 = vpop.eup %11983 }
0x3bc6   :  { %v5339_v23 = vpop.permute.xlu1 %5338  ;;  %v6307_v26 = vsel %vm383_vm7, %v11984_v3, 0.0  ;;  %v11986_v54 = vpop.eup %11985 }
0x3bc7   :  { %5343 = vst.msk [vmem:[#allocation2 + $0x8] sm:$0xff] %vm918_vm9, %v5339_v23  ;;  %6308 = vadd.xlane.f32.xlu0 %v6307_v26  ;;  %v6310_v30 = vsel %vm383_vm7, %v11986_v54, 0.0  ;;  %v9646_v23 = vld [vmem:[%s14083_s5 + $0x90] sm:$0xff]   ;;  %v9647_v26 = vld [vmem:[%s14083_s5 + $0x98] sm:$0xff]  }
0x3bca   :  { %v5553_v27 = vpop.permute.xlu1 %5552 }
0x3bcb   :  { %5557 = vst.msk [vmem:[#allocation2 + $0x8] sm:$0xff] %vm1133_vm10, %v5553_v27  ;;  %6311 = vadd.xlane.f32.xlu0 %v6310_v30 }
0x3bce   :  { %v5767_v35 = vpop.permute.xlu1 %5766 }
0x3bcf   :  { %5771 = vst.msk [vmem:[#allocation2 + $0x8] sm:$0xff] %vm1348_vm11, %v5767_v35 }
0x3bd2   :  { %v5981_v4 = vpop.permute.xlu1 %5980 }
0x3bd3   :  { %5985 = vst.msk [vmem:[#allocation2 + $0x8] sm:$0xff] %vm1563_vm12, %v5981_v4 }
0x3bd6   :  { %v6195_v5 = vpop.permute.xlu1 %6194 }
0x3bd7   :  { %6199 = vst.msk [vmem:[#allocation2 + $0x8] sm:$0xff] %vm1778_vm13, %v6195_v5 }
0x3be1   :  { %5122 = vrot.lane.b32.xlu0 %v13376_v2, %s14100_s24 }
0x3be5   :  { %5550 = vrot.lane.b32.xlu0 %v13406_v52, %s12262_s20 }
0x3be9   :  { %5764 = vrot.lane.b32.xlu0 %v13432_v22, %s12260_s17 }
0x3bed   :  { %5978 = vrot.lane.b32.xlu0 %v13458_v37, %s12258_s15 }
0x3bf1   :  { %6192 = vrot.lane.b32.xlu0 %v6181_v13, %s12255_s29 }
0x3c54   :  { %v6309_v53 = vpop.xlane.xlu0 %6308 }
0x3c55   :  { %11987 = vrcp.f32 %v6309_v53 }
0x3c58   :  { %v6312_v57 = vpop.xlane.xlu0 %6311 }
0x3c59   :  { %11989 = vrcp.f32 %v6312_v57 }
0x3c5c   :  { %v5123_v49 = vpop.permute.xlu0 %5122 }
0x3c5d   :  { %5128 = vst.msk [vmem:[#allocation2] sm:$0xff] %vm703_vm8, %v5123_v49 }
0x3c5e   :  { %5342 = vst.msk [vmem:[#allocation2] sm:$0xff] %vm918_vm9, %v5337_v6  ;;  %v9645_v6 = vld [vmem:[%s14083_s5 + $0x88] sm:$0xff]  }
0x3c5f   :  { %v11988_v2 = vpop.eup %11987 }
0x3c60   :  { %v5551_v14 = vpop.permute.xlu0 %5550  ;;  %v6315_v52 = vmul.f32 %v11988_v2, %v11984_v3  ;;  %v12093_v3 = vld [vmem:[%s14079_s1 + $0x10] sm:$0xff] }
0x3c61   :  { %5556 = vst.msk [vmem:[#allocation2] sm:$0xff] %vm1133_vm10, %v5551_v14 }
0x3c62   :  { %10564 = vmatprep.mubr.msk.f32.mxu1 %vm383_vm7, %v6315_v52 }
0x3c63   :  { %v11990_v22 = vpop.eup %11989 }
0x3c64   :  { %v5765_v37 = vpop.permute.xlu0 %5764  ;;  %v6316_v63 = vmul.f32 %v11990_v22, %v11986_v54 }
0x3c65   :  { %5770 = vst.msk [vmem:[#allocation2] sm:$0xff] %vm1348_vm11, %v5765_v37 }
0x3c66   :  { %10565 = vmatmul.mubr.msk.f32.vlgmr.msra.gmra.mrb[68].mxu1 %vm383_vm7, %v6316_v63 }
0x3c67   :  { %11176 = vmatpush3.bf16.msra.mxu1 %v9640_v45 }
0x3c68   :  { %v5979_v38 = vpop.permute.xlu0 %5978  ;;  %11178 = vmatprep.subr.bf16.mxu1 %v9641_v32 }
0x3c69   :  { %5984 = vst.msk [vmem:[#allocation2] sm:$0xff] %vm1563_vm12, %v5979_v38 }
0x3c6b   :  { %11180 = vmatpush3.bf16.msra.mxu1 %v9641_v32 }
0x3c6c   :  { %v6193_v36 = vpop.permute.xlu0 %6192  ;;  %11182 = vmatprep.subr.bf16.mxu1 %v9642_v62 }
0x3c6d   :  { %6198 = vst.msk [vmem:[#allocation2] sm:$0xff] %vm1778_vm13, %v6193_v36  ;;  %v12094_v36 = vld [vmem:[#allocation11] sm:$0xff] }
0x3c6e   :  { %v6545_v45 = vrot.slane %v12094_v36, %v13548_v56 }
0x3c6f   :  { %11184 = vmatpush3.bf16.msra.mxu1 %v9642_v62  ;;  %v12095_v62 = vld [vmem:[#allocation11 + $0x8] sm:$0x3f] }
0x3c70   :  { %11186 = vmatprep.subr.bf16.mxu1 %v9643_v61 }
0x3c73   :  { %11188 = vmatpush3.bf16.msra.mxu1 %v9643_v61  ;;  %v6571_v61 = vrot.slane %v12095_v62, %v13225_v29 }
0x3c74   :  { %11205 = vmatprep.subr.bf16.mxu1 %v12267_v20 }
0x3d39   :  { %v10566_v21 = vpop.f32.mrb[68].mxu1 }
0x3d3a   :  { %6408 = vrot.lane.b32.xlu1 %v10566_v21, %s12257_s14  ;;  %v6395_v41 = vpop.f32.mrb[69].mxu1 }
0x3d3b   :  { %6406 = vrot.lane.b32.xlu0 %v6395_v41, %s12257_s14 }
0x3dac   :  { %v6409_v46 = vpop.permute.xlu1 %6408 }
0x3dad   :  { %6413 = vst.msk [vmem:[#allocation2 + $0x8] sm:$0xff] %vm1993_vm14, %v6409_v46  ;;  %v6407_v47 = vpop.permute.xlu0 %6406 }
0x3dae   :  { %6412 = vst.msk [vmem:[#allocation2] sm:$0xff] %vm1993_vm14, %v6407_v47 }
0x3db4   :  { %v6415_v51 = vld [vmem:[#allocation2 + $0x8] sm:$0xff] }
0x3db5   :  { %v6414_v50 = vld [vmem:[#allocation2] sm:$0xff] }
0x3db6   :  { %10583 = vmatprep.mubr.msk.f32.mxu1 %vm120_vm0, %v6414_v50 }
0x3db7   :  { %10584 = vmatmul.mubr.msk.f32.vlgmr.msra.gmra.mrb[70].mxu1 %vm120_vm0, %v6415_v51 }
0x3db8   :  { %10621 = vmatprep.mubr.msk.f32.mxu1 %vm12268_vm15, %v12253_v19  ;;  %11207 = vmatpush3.bf16.msra.mxu1 %v9516_v58 }
0x3db9   :  { %11208 = vmatprep.subr.bf16.mxu1 %v12267_v20 }
0x3dbc   :  { %11210 = vmatpush3.bf16.msra.mxu1 %v9648_v1  ;;  %v13637_v1 = vsub.s32 5, %v12432_v33 }
0x3dbd   :  { %11211 = vmatprep.subr.bf16.mxu1 %v12267_v20 }
0x3dc0   :  { %11213 = vmatpush3.bf16.msra.mxu1 %v9649_v60  ;;  %v6594_v60 = vrot.slane %v13550_v10, %v13637_v1 }
0x3dc1   :  { %11214 = vmatprep.subr.bf16.mxu1 %v12267_v20  ;;  %v9644_v20 = vld [vmem:[%s14083_s5 + $0x80] sm:$0xff]  }
0x3dc2   :  { %11190 = vmatprep.subr.bf16.mxu0 %v9644_v20 }
0x3dc3   :  { %11192 = vmatpush3.bf16.msra.mxu0 %v9644_v20 }
0x3dc4   :  { %11216 = vmatpush3.bf16.msra.mxu1 %v9650_v17  ;;  %11194 = vmatprep.subr.bf16.mxu0 %v9645_v6 }
0x3dc7   :  { %10622 = vmatmul.mubr.msk.f32.vlgmr.msra.gmra.mrb[72].mxu1 %vm120_vm0, %v12091_v12  ;;  %11196 = vmatpush3.bf16.msra.mxu0 %v9645_v6 }
0x3dc8   :  { %10624 = vmatprep.mubr.msk.f32.mxu1 %vm12268_vm15, %v12253_v19  ;;  %11198 = vmatprep.subr.bf16.mxu0 %v9646_v23 }
0x3dcb   :  { %10625 = vmatmul.mubr.msk.f32.gmra.mrb[74].mxu1 %vm120_vm0, %v12092_v9  ;;  %11200 = vmatpush3.bf16.msra.mxu0 %v9646_v23 }
0x3dcc   :  { %10627 = vmatprep.mubr.msk.f32.mxu1 %vm12268_vm15, %v12253_v19  ;;  %11202 = vmatprep.subr.bf16.mxu0 %v9647_v26 }
0x3dcf   :  { %10628 = vmatmul.mubr.msk.f32.gmra.mrb[76].mxu1 %vm120_vm0, %v12093_v3  ;;  %11204 = vmatpush3.bf16.msra.mxu0 %v9647_v26 }
0x3e8a   :  { %v10585_v25 = vpop.f32.mrb[70].mxu1 }
0x3e8b   :  { %v6515_v39 = vadd.f32 %v10585_v25, %v13235_v24  ;;  %v6505_v13 = vpop.f32.mrb[71].mxu1  ;;  %v12096_v25 = vld [vmem:[#allocation8] sm:$0x3f] }
0x3e8c   :  { %v6514_v16 = vadd.f32 %v6505_v13, %v13230_v48 }
0x3e8d   :  { %v13556_v28 = vadd.f32 %v6519_v11, %v6515_v39  ;;  %v6696_v39 = vrot.slane %v12096_v25, %v13548_v56 }
0x3e8e   :  { %v13558_v31 = vadd.f32 %v6519_v11, %v6514_v16 }
0x3e8f   :  { %v6525_v43 = vsel %vm120_vm0, %v13556_v28, 0.0 }
0x3e90   :  { %6526 = vadd.xlane.f32.xlu1 %v6525_v43  ;;  %v6522_v0 = vsel %vm120_vm0, %v13558_v31, 0.0 }
0x3e91   :  { %6523 = vadd.xlane.f32.xlu0 %v6522_v0 }
0x3e9a   :  { %v6763_v13 = vpop.f32.mrb[72].mxu1 }
0x3e9b   :  { %v10623_v16 = vpop.f32.mrb[73].mxu1  ;;  %v6764_v43 = vadd.f32 %v6763_v13, %v6696_v39 }
0x3e9e   :  { %v6768_v0 = vpop.f32.mrb[74].mxu1 }
0x3e9f   :  { %v6769_v29 = vadd.f32 %v6768_v0, %v6696_v39 }
0x3f1d   :  { %v6527_v7 = vpop.xlane.xlu1 %6526 }
0x3f1e   :  { %v6529_v15 = vmul.f32 0.015625, %v6527_v7  ;;  %v6524_v18 = vpop.xlane.xlu0 %6523  ;;  %v10626_v7 = vpop.f32.mrb[75].mxu1 }
0x3f1f   :  { %v6528_v40 = vmul.f32 0.015625, %v6524_v18  ;;  %v13614_v18 = vpack.i.bf16 %v6769_v29, %v6764_v43 }
0x3f20   :  { %v13565_v24 = vsub.f32 %v13556_v28, %v6529_v15  ;;  %v11217_v15 = vpack.c.bf16 %v6769_v29, %v6764_v43 }
0x3f21   :  { %v13568_v48 = vsub.f32 %v13558_v31, %v6528_v40  ;;  %v6773_v40 = vpop.f32.mrb[76].mxu1 }
0x3f22   :  { %v6533_v42 = vmul.f32 %v13565_v24, %v13565_v24  ;;  %v6547_v46 = vmul.f32 %v6545_v45, %v13565_v24  ;;  %11219 = vmatprep.subr.msk.bf16.mxu0 %vm12470_vm6, %v11217_v15  ;;  %v13620_v24 = vadd.f32 %v6773_v40, %v6696_v39 }
0x3f23   :  { %v6532_v55 = vmul.f32 %v13568_v48, %v13568_v48  ;;  %v6546_v32 = vmul.f32 %v6545_v45, %v13568_v48  ;;  %v10629_v48 = vpop.f32.mrb[77].mxu1 }
0x3f24   :  { %v6537_v34 = vsel %vm120_vm0, %v6533_v42, 0.0  ;;  %6993 = vrot.lane.b32.xlu1 %v13620_v24, %s12254_s22 }
0x3f25   :  { %v6534_v59 = vsel %vm120_vm0, %v6532_v55, 0.0 }
0x3f26   :  { %6535 = vadd.xlane.f32.xlu0 %v6534_v59 }
0x3f2a   :  { %6538 = vadd.xlane.f32.xlu0 %v6537_v34 }
0x3f40   :  { %11645 = vrot.lane.b32.xlu0 %v13614_v18, %s12254_s22 }
0x3f96   :  { %v6994_v58 = vpop.permute.xlu1 %6993 }
0x3fb3   :  { %v6536_v54 = vpop.xlane.xlu0 %6535 }
0x3fb4   :  { %v6540_v27 = vmul.f32 0.015873017, %v6536_v54 }
0x3fb6   :  { %11991 = vrsqrt.f32 %v6540_v27  ;;  %vm6550_vm7 = vcmp.eq.f32.partialorder %v6540_v27, inf  ;;  %v6553_v53 = vand.u32 2147483648, %v6540_v27  ;;  %vm6552_vm15 = vcmp.eq.f32.partialorder %v6540_v27, 0.0 }
0x3fb7   :  { %v6539_v30 = vpop.xlane.xlu0 %6538 }
0x3fb8   :  { %v6541_v35 = vmul.f32 0.015873017, %v6539_v30 }
0x3fba   :  { %11993 = vrsqrt.f32 %v6541_v35  ;;  %vm6557_vm1 = vcmp.eq.f32.partialorder %v6541_v35, inf  ;;  %v6560_v22 = vand.u32 2147483648, %v6541_v35  ;;  %vm6559_vm2 = vcmp.eq.f32.partialorder %v6541_v35, 0.0 }
0x3fbb   :  { %v11646_v55 = vpop.permute.xlu0 %11645 }
0x3fbc   :  { %v11648_v59 = vunpack.i.h.bf16 %v11646_v55  ;;  %v11647_v42 = vunpack.i.l.bf16 %v11646_v55 }
0x3fbe   :  { %v11227_v34 = vpack.c.bf16 %v11648_v59, %v11647_v42 }
0x3fc0   :  { %v11992_v4 = vpop.eup %11991  ;;  %11229 = vmatprep.subr.msk.bf16.mxu1 %vm12470_vm6, %v11227_v34 }
0x3fc1   :  { %v6549_v5 = vmul.f32 %v11992_v4, %v6540_v27  ;;  %11232 = vmatpush3.bf16.xpose.msk.msra.mxu1 %vm12470_vm6, %v11227_v34 }
0x3fc2   :  { %10652 = vmatprep.subr.msk.mxu1 %vm295_vm5, %v6994_v58 }
0x3fc3   :  { %v6551_v57 = vsel %vm6550_vm7, %v6540_v27, %v6549_v5  ;;  %v13658_v27 = vld [vmem:[%s14081_s3 + $0x8] sm:$0xff]  ;;  %vm14103_vm7 = vmmov %vm14101_vm3 }
0x3fc4   :  { %v11994_v49 = vpop.eup %11993  ;;  %v6554_v2 = vsel %vm6552_vm15, %v6553_v53, %v6551_v57  ;;  %vm14104_vm15 = vmmov %vm14101_vm3 }
0x3fc5   :  { %v6556_v14 = vmul.f32 %v11994_v49, %v6541_v35  ;;  %v6562_v52 = vadd.f32 1e-06, %v6554_v2 }
0x3fc7   :  { %v6558_v37 = vsel %vm6557_vm1, %v6541_v35, %v6556_v14  ;;  %11995 = vrcp.f32 %v6562_v52  ;;  %v13664_v35 = vld [vmem:[%s14081_s3] sm:$0xff]  ;;  %vm14105_vm1 = vmmov %vm14101_vm3 }
0x3fc8   :  { %v6561_v63 = vsel %vm6559_vm2, %v6560_v22, %v6558_v37  ;;  %vm14106_vm2 = vmmov %vm14105_vm1 }
0x3fc9   :  { %v6563_v38 = vadd.f32 1e-06, %v6561_v63  ;;  %10653 = vmatpush3.xpose.msk.msra.mxu1 %vm295_vm5, %v6994_v58 }
0x3fcb   :  { %11997 = vrcp.f32 %v6563_v38 }
0x3fd1   :  { %v11996_v21 = vpop.eup %11995 }
0x3fd2   :  { %v6565_v41 = vmul.f32 %v11996_v21, %v6546_v32 }
0x3fd4   :  { %v6572_v47 = vadd.f32 %v6571_v61, %v6565_v41 }
0x3fd5   :  { %v11998_v50 = vpop.eup %11997 }
0x3fd6   :  { %v6567_v51 = vmul.f32 %v11998_v50, %v6547_v46  ;;  %10602 = vmatprep.mubr.msk.f32.mxu0 %vm120_vm0, %v6572_v47 }
0x3fd8   :  { %v6573_v11 = vadd.f32 %v6571_v61, %v6567_v51 }
0x3fda   :  { %10603 = vmatmul.mubr.msk.f32.vlgmr.msra.gmra.mrb[54].mxu0 %vm120_vm0, %v6573_v11 }
0x3fdb   :  { %11222 = vmatpush3.bf16.xpose.msk.msra.mxu0 %vm12470_vm6, %v11217_v15 }
0x3fdc   :  { %10634 = vmatprep.subr.msk.mxu0 %vm295_vm5, %v13620_v24 }
0x3fe3   :  { %10635 = vmatpush3.xpose.msk.msra.mxu0 %vm295_vm5, %v13620_v24 }
0x40ad   :  { %v10604_v17 = vpop.f32.mrb[54].mxu0 }
0x40ae   :  { %v6667_v12 = vpop.f32.mrb[55].mxu0  ;;  %v13643_v20 = vadd.f32 %v10604_v17, %v6594_v60 }
0x40af   :  { %v13641_v9 = vadd.f32 %v6667_v12, %v6594_v60 }
0x40b1   :  { %6985 = vrot.lane.b32.xlu1 %v13641_v9, %s12254_s22  ;;  %10636 = vmatprep.mubr.msk.f32.mxu0 %vm295_vm5, %v13641_v9 }
0x40b2   :  { %10637 = vmatmul.mubr.msk.f32.vlgmr.msra.gmra.mrb[56].mxu0 %vm295_vm5, %v13643_v20 }
0x40b5   :  { %6987 = vrot.lane.b32.xlu1 %v13643_v20, %s12254_s22 }
0x4123   :  { %v6986_v6 = vpop.permute.xlu1 %6985 }
0x4124   :  { %10654 = vmatprep.mubr.msk.f32.mxu1 %vm295_vm5, %v6986_v6 }
0x4127   :  { %v6988_v10 = vpop.permute.xlu1 %6987 }
0x4128   :  { %10655 = vmatmul.mubr.msk.f32.vlgmr.msra.gmra.mrb[78].mxu1 %vm295_vm5, %v6988_v10 }
0x4185   :  { %v10638_v3 = vpop.f32.mrb[56].mxu0 }
0x4186   :  { %v6868_v23 = vmul.f32 0.35355338, %v10638_v3  ;;  %v6858_v26 = vpop.f32.mrb[57].mxu0 }
0x4187   :  { %v6867_v54 = vmul.f32 0.35355338, %v6858_v26 }
0x4188   :  { %v6870_v30 = vadd.f32 %v13658_v27, %v6868_v23 }
0x4189   :  { %v6869_v4 = vadd.f32 %v13664_v35, %v6867_v54 }
0x418a   :  { %v6874_v5 = vsel %vm14101_vm3, %v6870_v30, -inf  ;;  %vm14107_vm3 = vmmov %vm14105_vm1 }
0x418b   :  { %6875 = vmax.xlane.f32.xlu1 %v6874_v5  ;;  %v6871_v53 = vsel %vm14102_vm4, %v6869_v4, -inf  ;;  %vm14108_vm4 = vmmov %vm14105_vm1 }
0x418c   :  { %6872 = vmax.xlane.f32.xlu0 %v6871_v53 }
0x41fb   :  { %v10656_v57 = vpop.f32.mrb[78].mxu1 }
0x41fc   :  { %v7071_v49 = vpop.f32.mrb[79].mxu1  ;;  %v7081_v2 = vmul.f32 0.35355338, %v10656_v57 }
0x41fd   :  { %v7080_v14 = vmul.f32 0.35355338, %v7071_v49 }
0x41fe   :  { %v7083_v22 = vadd.f32 %v13658_v27, %v7081_v2 }
0x41ff   :  { %v7082_v52 = vadd.f32 %v13664_v35, %v7080_v14 }
0x4200   :  { %v7087_v63 = vsel %vm14104_vm15, %v7083_v22, -inf  ;;  %vm14110_vm15 = vmmov %vm14105_vm1 }
0x4201   :  { %v7084_v37 = vsel %vm14103_vm7, %v7082_v52, -inf  ;;  %vm14109_vm7 = vmmov %vm14105_vm1 }
0x4202   :  { %7085 = vmax.xlane.f32.xlu0 %v7084_v37 }
0x4206   :  { %7088 = vmax.xlane.f32.xlu0 %v7087_v63 }
0x4218   :  { %v6876_v38 = vpop.xlane.xlu1 %6875 }
0x4219   :  { %v6878_v36 = vsub.f32 %v6870_v30, %v6876_v38  ;;  %v6873_v45 = vpop.xlane.xlu0 %6872 }
0x421a   :  { %v6877_v32 = vsub.f32 %v6869_v4, %v6873_v45 }
0x421b   :  { %v6881_v62 = vmul.f32 1.442695, %v6878_v36 }
0x421c   :  { %v6879_v61 = vmul.f32 1.442695, %v6877_v32 }
0x421d   :  { %11999 = vpow2.f32 %v6881_v62 }
0x421e   :  { %12001 = vpow2.f32 %v6879_v61 }
0x4227   :  { %v12000_v21 = vpop.eup %11999 }
0x4228   :  { %v12002_v41 = vpop.eup %12001  ;;  %v6886_v46 = vsel %vm14105_vm1, %v12000_v21, 0.0 }
0x4229   :  { %6887 = vadd.xlane.f32.xlu1 %v6886_v46  ;;  %v6883_v47 = vsel %vm14106_vm2, %v12002_v41, 0.0  ;;  %vm14111_vm2 = vmmov %vm14105_vm1 }
0x422a   :  { %6884 = vadd.xlane.f32.xlu0 %v6883_v47 }
0x423a   :  { %6897 = vrot.lane.b32.xlu1 %v13620_v24, %s12245_s13 }
0x423e   :  { %11655 = vrot.lane.b32.xlu1 %v13614_v18, %s12257_s14 }
0x4240   :  { %11650 = vrot.lane.b32.xlu0 %v13614_v18, %s12245_s13 }
0x4242   :  { %7110 = vrot.lane.b32.xlu1 %v13620_v24, %s12257_s14 }
0x428f   :  { %v7086_v50 = vpop.xlane.xlu0 %7085 }
0x4290   :  { %v7090_v51 = vsub.f32 %v7082_v52, %v7086_v50 }
0x4292   :  { %v7092_v11 = vmul.f32 1.442695, %v7090_v51 }
0x4293   :  { %v7089_v25 = vpop.xlane.xlu0 %7088 }
0x4294   :  { %12003 = vpow2.f32 %v7092_v11  ;;  %v7091_v39 = vsub.f32 %v7083_v22, %v7089_v25 }
0x4296   :  { %v7094_v13 = vmul.f32 1.442695, %v7091_v39 }
0x4298   :  { %12005 = vpow2.f32 %v7094_v13 }
0x429e   :  { %v12004_v16 = vpop.eup %12003 }
0x429f   :  { %v7096_v43 = vsel %vm14107_vm3, %v12004_v16, 0.0  ;;  %vm14112_vm3 = vmmov %vm14105_vm1 }
0x42a0   :  { %7097 = vadd.xlane.f32.xlu0 %v7096_v43 }
0x42a2   :  { %v12006_v0 = vpop.eup %12005 }
0x42a3   :  { %v7099_v29 = vsel %vm14108_vm4, %v12006_v0, 0.0  ;;  %vm14113_vm4 = vmmov %vm14105_vm1 }
0x42a4   :  { %7100 = vadd.xlane.f32.xlu1 %v7099_v29 }
0x42b5   :  { %7214 = vrot.lane.b32.xlu1 %v13620_v24, %s12256_s9 }
0x42b6   :  { %v6888_v7 = vpop.xlane.xlu1 %6887  ;;  %11660 = vrot.lane.b32.xlu0 %v13614_v18, %s12256_s9 }
0x42b7   :  { %12007 = vrcp.f32 %v6888_v7  ;;  %v6885_v15 = vpop.xlane.xlu0 %6884 }
0x42b8   :  { %12009 = vrcp.f32 %v6885_v15 }
0x42b9   :  { %7208 = vrot.lane.b32.xlu1 %v13643_v20, %s12256_s9 }
0x42ba   :  { %v6898_v40 = vpop.permute.xlu1 %6897  ;;  %7206 = vrot.lane.b32.xlu0 %v13641_v9, %s12256_s9 }
0x42bb   :  { %v11651_v48 = vpop.permute.xlu0 %11650 }
0x42bc   :  { %v11653_v55 = vunpack.i.h.bf16 %v11651_v48  ;;  %v11652_v59 = vunpack.i.l.bf16 %v11651_v48 }
0x42be   :  { %v11223_v42 = vpack.c.bf16 %v11653_v55, %v11652_v59  ;;  %v11656_v34 = vpop.permute.xlu1 %11655 }
0x42bf   :  { %v11658_v58 = vunpack.i.h.bf16 %v11656_v34  ;;  %v11657_v60 = vunpack.i.l.bf16 %v11656_v34 }
0x42c0   :  { %11224 = vmatprep.subr.bf16.mxu0 %v11223_v42 }
0x42c1   :  { %v12008_v17 = vpop.eup %12007  ;;  %11226 = vmatpush3.bf16.msra.mxu0 %v11223_v42  ;;  %v11233_v3 = vpack.c.bf16 %v11658_v58, %v11657_v60 }
0x42c2   :  { %v12010_v12 = vpop.eup %12009  ;;  %10643 = vmatprep.subr.mxu0 %v6898_v40  ;;  %v6892_v10 = vmul.f32 %v12008_v17, %v12000_v21  ;;  %v7111_v23 = vpop.permute.xlu1 %7110 }
0x42c3   :  { %v6891_v6 = vmul.f32 %v12010_v12, %v12002_v41 }
0x42c5   :  { %10644 = vmatpush3.msra.mxu0 %v6898_v40  ;;  %10645 = vmatprep.mubr.msk.f32.mxu0 %vm14109_vm7, %v6891_v6  ;;  %vm14114_vm7 = vmmov %vm14105_vm1 }
0x42c6   :  { %10646 = vmatmul.mubr.msk.f32.vlgmr.msra.gmra.mrb[58].mxu0 %vm14110_vm15, %v6892_v10  ;;  %11234 = vmatprep.subr.bf16.mxu0 %v11233_v3  ;;  %vm14115_vm15 = vmmov %vm14105_vm1 }
0x42c7   :  { %11236 = vmatpush3.bf16.msra.mxu0 %v11233_v3 }
0x42c8   :  { %10661 = vmatprep.subr.mxu0 %v7111_v23 }
0x42cb   :  { %10662 = vmatpush3.msra.mxu0 %v7111_v23 }
0x432d   :  { %v7098_v26 = vpop.xlane.xlu0 %7097 }
0x432e   :  { %12011 = vrcp.f32 %v7098_v26 }
0x4331   :  { %v7101_v54 = vpop.xlane.xlu1 %7100  ;;  %v11661_v30 = vpop.permute.xlu0 %11660 }
0x4332   :  { %12013 = vrcp.f32 %v7101_v54  ;;  %v11663_v4 = vunpack.i.h.bf16 %v11661_v30  ;;  %v11662_v5 = vunpack.i.l.bf16 %v11661_v30 }
0x4334   :  { %v11237_v53 = vpack.c.bf16 %v11663_v4, %v11662_v5 }
0x4335   :  { %v7207_v52 = vpop.permute.xlu0 %7206  ;;  %v7215_v22 = vpop.permute.xlu1 %7214 }
0x4336   :  { %11239 = vmatprep.subr.msk.bf16.mxu0 %vm12470_vm6, %v11237_v53 }
0x4338   :  { %v12012_v57 = vpop.eup %12011 }
0x4339   :  { %v7104_v49 = vmul.f32 %v12012_v57, %v12004_v16  ;;  %v7209_v37 = vpop.permute.xlu1 %7208 }
0x433b   :  { %10663 = vmatprep.mubr.msk.f32.mxu0 %vm14105_vm1, %v7104_v49 }
0x433c   :  { %v12014_v2 = vpop.eup %12013 }
0x433d   :  { %v7105_v14 = vmul.f32 %v12014_v2, %v12006_v0 }
0x433f   :  { %10664 = vmatmul.mubr.msk.f32.vlgmr.msra.gmra.mrb[60].mxu0 %vm14111_vm2, %v7105_v14  ;;  %vm14116_vm2 = vmmov %vm14105_vm1 }
0x4340   :  { %11242 = vmatpush3.bf16.xpose.msk.msra.mxu0 %vm12470_vm6, %v11237_v53  ;;  %10672 = vmatprep.mubr.msk.f32.mxu0 %vm295_vm5, %v7207_v52 }
0x4341   :  { %10670 = vmatprep.subr.msk.mxu0 %vm295_vm5, %v7215_v22 }
0x4348   :  { %10671 = vmatpush3.xpose.msk.msra.mxu0 %vm295_vm5, %v7215_v22 }
0x434b   :  { %10673 = vmatmul.mubr.msk.f32.vlgmr.msra.gmra.mrb[62].mxu0 %vm295_vm5, %v7209_v37 }
0x4399   :  { %v10647_v63 = vpop.f32.mrb[58].mxu0 }
0x439a   :  { %6984 = vst.msk [vmem:[#allocation2 + $0x8] sm:$0xff] %vm295_vm5, %v10647_v63  ;;  %v6974_v38 = vpop.f32.mrb[59].mxu0 }
0x439b   :  { %6983 = vst.msk [vmem:[#allocation2] sm:$0xff] %vm295_vm5, %v6974_v38 }
0x4412   :  { %v13707_v36 = vpop.f32.mrb[60].mxu0 }
0x4413   :  { %v13709_v45 = vpop.f32.mrb[61].mxu0 }
0x441e   :  { %v10674_v32 = vpop.f32.mrb[62].mxu0 }
0x441f   :  { %v7302_v62 = vmul.f32 0.35355338, %v10674_v32  ;;  %v7292_v61 = vpop.f32.mrb[63].mxu0 }
0x4420   :  { %v7301_v21 = vmul.f32 0.35355338, %v7292_v61 }
0x4421   :  { %v7304_v41 = vadd.f32 %v13658_v27, %v7302_v62 }
0x4422   :  { %v7303_v46 = vadd.f32 %v13664_v35, %v7301_v21 }
0x4423   :  { %v7308_v47 = vsel %vm14112_vm3, %v7304_v41, -inf  ;;  %vm14117_vm3 = vmmov %vm14105_vm1 }
0x4424   :  { %7309 = vmax.xlane.f32.xlu1 %v7308_v47  ;;  %v7305_v50 = vsel %vm14113_vm4, %v7303_v46, -inf  ;;  %vm14118_vm4 = vmmov %vm14105_vm1 }
0x4425   :  { %7306 = vmax.xlane.f32.xlu0 %v7305_v50 }
0x4435   :  { %7331 = vrot.lane.b32.xlu1 %v13620_v24, %s12255_s29 }
0x4439   :  { %11670 = vrot.lane.b32.xlu1 %v13614_v18, %s12259_s16 }
0x443d   :  { %7435 = vrot.lane.b32.xlu1 %v13620_v24, %s12259_s16 }
0x4441   :  { %7429 = vrot.lane.b32.xlu1 %v13643_v20, %s12259_s16 }
0x44b1   :  { %v7310_v51 = vpop.xlane.xlu1 %7309 }
0x44b2   :  { %v7312_v11 = vsub.f32 %v7304_v41, %v7310_v51  ;;  %v7307_v25 = vpop.xlane.xlu0 %7306 }
0x44b3   :  { %v7311_v39 = vsub.f32 %v7303_v46, %v7307_v25 }
0x44b4   :  { %v7315_v13 = vmul.f32 1.442695, %v7312_v11 }
0x44b5   :  { %v7313_v16 = vmul.f32 1.442695, %v7311_v39  ;;  %v7332_v40 = vpop.permute.xlu1 %7331 }
0x44b6   :  { %12015 = vpow2.f32 %v7315_v13 }
0x44b7   :  { %12017 = vpow2.f32 %v7313_v16 }
0x44b9   :  { %v11671_v34 = vpop.permute.xlu1 %11670 }
0x44ba   :  { %v11673_v60 = vunpack.i.h.bf16 %v11671_v34  ;;  %v11672_v17 = vunpack.i.l.bf16 %v11671_v34 }
0x44bc   :  { %v11247_v3 = vpack.c.bf16 %v11673_v60, %v11672_v17 }
0x44bd   :  { %v7436_v54 = vpop.permute.xlu1 %7435 }
0x44c0   :  { %v12016_v43 = vpop.eup %12015 }
0x44c1   :  { %v7320_v0 = vsel %vm14114_vm7, %v12016_v43, 0.0  ;;  %v12018_v29 = vpop.eup %12017  ;;  %v7430_v30 = vpop.permute.xlu1 %7429  ;;  %vm14119_vm7 = vmmov %vm14105_vm1 }
0x44c2   :  { %7321 = vadd.xlane.f32.xlu0 %v7320_v0  ;;  %v7317_v7 = vsel %vm14115_vm15, %v12018_v29, 0.0  ;;  %vm14120_vm15 = vmmov %vm14105_vm1 }
0x44c6   :  { %7318 = vadd.xlane.f32.xlu0 %v7317_v7 }
0x44dc   :  { %11665 = vrot.lane.b32.xlu0 %v13614_v18, %s12255_s29 }
0x44e0   :  { %7427 = vrot.lane.b32.xlu0 %v13641_v9, %s12259_s16 }
0x454f   :  { %v7322_v15 = vpop.xlane.xlu0 %7321 }
0x4550   :  { %12019 = vrcp.f32 %v7322_v15 }
0x4553   :  { %v7319_v48 = vpop.xlane.xlu0 %7318 }
0x4554   :  { %12021 = vrcp.f32 %v7319_v48 }
0x4557   :  { %v11666_v55 = vpop.permute.xlu0 %11665 }
0x4558   :  { %v11668_v59 = vunpack.i.h.bf16 %v11666_v55  ;;  %v11667_v42 = vunpack.i.l.bf16 %v11666_v55 }
0x455a   :  { %v11243_v58 = vpack.c.bf16 %v11668_v59, %v11667_v42  ;;  %v12020_v12 = vpop.eup %12019 }
0x455b   :  { %v7326_v23 = vmul.f32 %v12020_v12, %v12016_v43  ;;  %v7428_v26 = vpop.permute.xlu0 %7427 }
0x455c   :  { %11244 = vmatprep.subr.bf16.mxu1 %v11243_v58 }
0x455d   :  { %11246 = vmatpush3.bf16.msra.mxu1 %v11243_v58 }
0x455e   :  { %v12022_v6 = vpop.eup %12021  ;;  %10679 = vmatprep.subr.mxu1 %v7332_v40 }
0x455f   :  { %v7325_v10 = vmul.f32 %v12022_v6, %v12018_v29 }
0x4561   :  { %10680 = vmatpush3.msra.mxu1 %v7332_v40  ;;  %10681 = vmatprep.mubr.msk.f32.mxu1 %vm14105_vm1, %v7325_v10 }
0x4562   :  { %10682 = vmatmul.mubr.msk.f32.vlgmr.msra.gmra.mrb[80].mxu1 %vm14116_vm2, %v7326_v23  ;;  %11249 = vmatprep.subr.msk.bf16.mxu1 %vm12470_vm6, %v11247_v3  ;;  %vm14121_vm2 = vmmov %vm14105_vm1 }
0x4563   :  { %10690 = vmatprep.mubr.msk.f32.mxu1 %vm295_vm5, %v7428_v26 }
0x4568   :  { %11252 = vmatpush3.bf16.xpose.msk.msra.mxu1 %vm12470_vm6, %v11247_v3 }
0x4569   :  { %10688 = vmatprep.subr.msk.mxu1 %vm295_vm5, %v7436_v54 }
0x4570   :  { %10689 = vmatpush3.xpose.msk.msra.mxu1 %vm295_vm5, %v7436_v54 }
0x4573   :  { %10691 = vmatmul.mubr.msk.f32.vlgmr.msra.gmra.mrb[82].mxu1 %vm295_vm5, %v7430_v30 }
0x4635   :  { %v13739_v4 = vpop.f32.mrb[80].mxu1 }
0x4636   :  { %v13741_v5 = vpop.f32.mrb[81].mxu1 }
0x4646   :  { %v10692_v53 = vpop.f32.mrb[82].mxu1 }
0x4647   :  { %v7523_v57 = vmul.f32 0.35355338, %v10692_v53  ;;  %v7513_v49 = vpop.f32.mrb[83].mxu1 }
0x4648   :  { %v7522_v2 = vmul.f32 0.35355338, %v7513_v49 }
0x4649   :  { %v7525_v14 = vadd.f32 %v13658_v27, %v7523_v57 }
0x464a   :  { %v7524_v52 = vadd.f32 %v13664_v35, %v7522_v2 }
0x464b   :  { %v7529_v22 = vsel %vm14117_vm3, %v7525_v14, -inf  ;;  %vm14122_vm3 = vmmov %vm14105_vm1 }
0x464c   :  { %7530 = vmax.xlane.f32.xlu1 %v7529_v22  ;;  %v7526_v37 = vsel %vm14118_vm4, %v7524_v52, -inf  ;;  %vm14123_vm4 = vmmov %vm14105_vm1 }
0x464d   :  { %7527 = vmax.xlane.f32.xlu0 %v7526_v37 }
0x465d   :  { %7552 = vrot.lane.b32.xlu1 %v13620_v24, %s12258_s15 }
0x4661   :  { %11680 = vrot.lane.b32.xlu1 %v13614_v18, %s12261_s0 }
0x4665   :  { %7656 = vrot.lane.b32.xlu1 %v13620_v24, %s12261_s0 }
0x4669   :  { %7650 = vrot.lane.b32.xlu1 %v13643_v20, %s12261_s0 }
0x46d9   :  { %v7531_v63 = vpop.xlane.xlu1 %7530 }
0x46da   :  { %v7533_v38 = vsub.f32 %v7525_v14, %v7531_v63  ;;  %v7528_v32 = vpop.xlane.xlu0 %7527 }
0x46db   :  { %v7532_v62 = vsub.f32 %v7524_v52, %v7528_v32 }
0x46dc   :  { %v7536_v61 = vmul.f32 1.442695, %v7533_v38 }
0x46dd   :  { %v7534_v21 = vmul.f32 1.442695, %v7532_v62  ;;  %v7553_v11 = vpop.permute.xlu1 %7552 }
0x46de   :  { %12023 = vpow2.f32 %v7536_v61 }
0x46df   :  { %12025 = vpow2.f32 %v7534_v21 }
0x46e1   :  { %v11681_v43 = vpop.permute.xlu1 %11680 }
0x46e2   :  { %v11683_v29 = vunpack.i.h.bf16 %v11681_v43  ;;  %v11682_v7 = vunpack.i.l.bf16 %v11681_v43 }
0x46e4   :  { %v11257_v55 = vpack.c.bf16 %v11683_v29, %v11682_v7 }
0x46e5   :  { %v7657_v34 = vpop.permute.xlu1 %7656 }
0x46e8   :  { %v12024_v41 = vpop.eup %12023 }
0x46e9   :  { %v7541_v46 = vsel %vm14119_vm7, %v12024_v41, 0.0  ;;  %v12026_v47 = vpop.eup %12025  ;;  %v7651_v58 = vpop.permute.xlu1 %7650  ;;  %vm14124_vm7 = vmmov %vm14105_vm1 }
0x46ea   :  { %7542 = vadd.xlane.f32.xlu0 %v7541_v46  ;;  %v7538_v50 = vsel %vm14120_vm15, %v12026_v47, 0.0  ;;  %vm14125_vm15 = vmmov %vm14105_vm1 }
0x46ee   :  { %7539 = vadd.xlane.f32.xlu0 %v7538_v50 }
0x4704   :  { %11675 = vrot.lane.b32.xlu0 %v13614_v18, %s12258_s15 }
0x4708   :  { %7648 = vrot.lane.b32.xlu0 %v13641_v9, %s12261_s0 }
0x4777   :  { %v7543_v51 = vpop.xlane.xlu0 %7542 }
0x4778   :  { %12027 = vrcp.f32 %v7543_v51 }
0x477b   :  { %v7540_v25 = vpop.xlane.xlu0 %7539 }
0x477c   :  { %12029 = vrcp.f32 %v7540_v25 }
0x477f   :  { %v11676_v39 = vpop.permute.xlu0 %11675 }
0x4780   :  { %v11678_v13 = vunpack.i.h.bf16 %v11676_v39  ;;  %v11677_v16 = vunpack.i.l.bf16 %v11676_v39 }
0x4782   :  { %v11253_v0 = vpack.c.bf16 %v11678_v13, %v11677_v16  ;;  %v12028_v15 = vpop.eup %12027 }
0x4783   :  { %v7547_v59 = vmul.f32 %v12028_v15, %v12024_v41  ;;  %v7649_v42 = vpop.permute.xlu0 %7648 }
0x4784   :  { %11254 = vmatprep.subr.bf16.mxu0 %v11253_v0 }
0x4785   :  { %11256 = vmatpush3.bf16.msra.mxu0 %v11253_v0 }
0x4786   :  { %v12030_v40 = vpop.eup %12029  ;;  %10697 = vmatprep.subr.mxu0 %v7553_v11 }
0x4787   :  { %v7546_v48 = vmul.f32 %v12030_v40, %v12026_v47 }
0x4789   :  { %10698 = vmatpush3.msra.mxu0 %v7553_v11  ;;  %10699 = vmatprep.mubr.msk.f32.mxu0 %vm14105_vm1, %v7546_v48 }
0x478a   :  { %10700 = vmatmul.mubr.msk.f32.vlgmr.msra.gmra.mrb[64].mxu0 %vm14121_vm2, %v7547_v59  ;;  %11259 = vmatprep.subr.msk.bf16.mxu0 %vm12470_vm6, %v11257_v55  ;;  %vm14126_vm2 = vmmov %vm14105_vm1 }
0x478b   :  { %10708 = vmatprep.mubr.msk.f32.mxu0 %vm295_vm5, %v7649_v42 }
0x4790   :  { %11262 = vmatpush3.bf16.xpose.msk.msra.mxu0 %vm12470_vm6, %v11257_v55 }
0x4791   :  { %10706 = vmatprep.subr.msk.mxu0 %vm295_vm5, %v7657_v34 }
0x4798   :  { %10707 = vmatpush3.xpose.msk.msra.mxu0 %vm295_vm5, %v7657_v34 }
0x479b   :  { %10709 = vmatmul.mubr.msk.f32.vlgmr.msra.gmra.mrb[66].mxu0 %vm295_vm5, %v7651_v58 }
0x485d   :  { %v13771_v60 = vpop.f32.mrb[64].mxu0 }
0x485e   :  { %v13773_v17 = vpop.f32.mrb[65].mxu0 }
0x486e   :  { %v10710_v12 = vpop.f32.mrb[66].mxu0 }
0x486f   :  { %v7744_v6 = vmul.f32 0.35355338, %v10710_v12  ;;  %v7734_v10 = vpop.f32.mrb[67].mxu0 }
0x4870   :  { %v7743_v3 = vmul.f32 0.35355338, %v7734_v10 }
0x4871   :  { %v7746_v23 = vadd.f32 %v13658_v27, %v7744_v6 }
0x4872   :  { %v7745_v26 = vadd.f32 %v13664_v35, %v7743_v3 }
0x4873   :  { %v7750_v54 = vsel %vm14122_vm3, %v7746_v23, -inf  ;;  %vm14127_vm3 = vmmov %vm14105_vm1 }
0x4874   :  { %7751 = vmax.xlane.f32.xlu1 %v7750_v54  ;;  %v7747_v30 = vsel %vm14123_vm4, %v7745_v26, -inf  ;;  %vm14128_vm4 = vmmov %vm14105_vm1 }
0x4875   :  { %7748 = vmax.xlane.f32.xlu0 %v7747_v30 }
0x4885   :  { %7773 = vrot.lane.b32.xlu1 %v13620_v24, %s12260_s17 }
0x4889   :  { %11690 = vrot.lane.b32.xlu1 %v13614_v18, %s12263_s19 }
0x488d   :  { %7877 = vrot.lane.b32.xlu1 %v13620_v24, %s12263_s19 }
0x4891   :  { %7871 = vrot.lane.b32.xlu1 %v13643_v20, %s12263_s19 }
0x4901   :  { %v7752_v53 = vpop.xlane.xlu1 %7751 }
0x4902   :  { %v7754_v57 = vsub.f32 %v7746_v23, %v7752_v53  ;;  %v7749_v49 = vpop.xlane.xlu0 %7748 }
0x4903   :  { %v7753_v2 = vsub.f32 %v7745_v26, %v7749_v49 }
0x4904   :  { %v7757_v14 = vmul.f32 1.442695, %v7754_v57 }
0x4905   :  { %v7755_v52 = vmul.f32 1.442695, %v7753_v2  ;;  %v7774_v62 = vpop.permute.xlu1 %7773 }
0x4906   :  { %12031 = vpow2.f32 %v7757_v14 }
0x4907   :  { %12033 = vpow2.f32 %v7755_v52 }
0x4909   :  { %v11691_v47 = vpop.permute.xlu1 %11690 }
0x490a   :  { %v11693_v51 = vunpack.i.h.bf16 %v11691_v47  ;;  %v11692_v11 = vunpack.i.l.bf16 %v11691_v47 }
0x490c   :  { %v11267_v16 = vpack.c.bf16 %v11693_v51, %v11692_v11 }
0x490d   :  { %v7878_v29 = vpop.permute.xlu1 %7877 }
0x4910   :  { %v12032_v22 = vpop.eup %12031 }
0x4911   :  { %v7762_v37 = vsel %vm14124_vm7, %v12032_v22, 0.0  ;;  %v12034_v63 = vpop.eup %12033  ;;  %v7872_v7 = vpop.permute.xlu1 %7871  ;;  %vm14129_vm7 = vmmov %vm14105_vm1 }
0x4912   :  { %7763 = vadd.xlane.f32.xlu0 %v7762_v37  ;;  %v7759_v38 = vsel %vm14125_vm15, %v12034_v63, 0.0  ;;  %vm14130_vm15 = vmmov %vm14105_vm1 }
0x4916   :  { %7760 = vadd.xlane.f32.xlu0 %v7759_v38 }
0x492c   :  { %11685 = vrot.lane.b32.xlu0 %v13614_v18, %s12260_s17 }
0x4930   :  { %7869 = vrot.lane.b32.xlu0 %v13641_v9, %s12263_s19 }
0x499f   :  { %v7764_v32 = vpop.xlane.xlu0 %7763 }
0x49a0   :  { %12035 = vrcp.f32 %v7764_v32 }
0x49a3   :  { %v7761_v61 = vpop.xlane.xlu0 %7760 }
0x49a4   :  { %12037 = vrcp.f32 %v7761_v61 }
0x49a7   :  { %v11686_v21 = vpop.permute.xlu0 %11685 }
0x49a8   :  { %v11688_v41 = vunpack.i.h.bf16 %v11686_v21  ;;  %v11687_v46 = vunpack.i.l.bf16 %v11686_v21 }
0x49aa   :  { %v11263_v50 = vpack.c.bf16 %v11688_v41, %v11687_v46  ;;  %v12036_v25 = vpop.eup %12035 }
0x49ab   :  { %v7768_v43 = vmul.f32 %v12036_v25, %v12032_v22  ;;  %v7870_v0 = vpop.permute.xlu0 %7869 }
0x49ac   :  { %11264 = vmatprep.subr.bf16.mxu1 %v11263_v50 }
0x49ad   :  { %11266 = vmatpush3.bf16.msra.mxu1 %v11263_v50 }
0x49ae   :  { %v12038_v39 = vpop.eup %12037  ;;  %10715 = vmatprep.subr.mxu1 %v7774_v62 }
0x49af   :  { %v7767_v13 = vmul.f32 %v12038_v39, %v12034_v63 }
0x49b1   :  { %10716 = vmatpush3.msra.mxu1 %v7774_v62  ;;  %10717 = vmatprep.mubr.msk.f32.mxu1 %vm14105_vm1, %v7767_v13 }
0x49b2   :  { %10718 = vmatmul.mubr.msk.f32.vlgmr.msra.gmra.mrb[84].mxu1 %vm14126_vm2, %v7768_v43  ;;  %11269 = vmatprep.subr.msk.bf16.mxu1 %vm12470_vm6, %v11267_v16  ;;  %vm14131_vm2 = vmmov %vm14105_vm1 }
0x49b3   :  { %10726 = vmatprep.mubr.msk.f32.mxu1 %vm295_vm5, %v7870_v0 }
0x49b8   :  { %11272 = vmatpush3.bf16.xpose.msk.msra.mxu1 %vm12470_vm6, %v11267_v16 }
0x49b9   :  { %10724 = vmatprep.subr.msk.mxu1 %vm295_vm5, %v7878_v29 }
0x49c0   :  { %10725 = vmatpush3.xpose.msk.msra.mxu1 %vm295_vm5, %v7878_v29 }
0x49c3   :  { %10727 = vmatmul.mubr.msk.f32.vlgmr.msra.gmra.mrb[86].mxu1 %vm295_vm5, %v7872_v7 }
0x4a85   :  { %v13803_v15 = vpop.f32.mrb[84].mxu1 }
0x4a86   :  { %v13805_v40 = vpop.f32.mrb[85].mxu1 }
0x4a96   :  { %v10728_v48 = vpop.f32.mrb[86].mxu1 }
0x4a97   :  { %v7965_v55 = vmul.f32 0.35355338, %v10728_v48  ;;  %v7955_v59 = vpop.f32.mrb[87].mxu1 }
0x4a98   :  { %v7964_v42 = vmul.f32 0.35355338, %v7955_v59 }
0x4a99   :  { %v7967_v34 = vadd.f32 %v13658_v27, %v7965_v55 }
0x4a9a   :  { %v7966_v58 = vadd.f32 %v13664_v35, %v7964_v42 }
0x4a9b   :  { %v7971_v12 = vsel %vm14127_vm3, %v7967_v34, -inf  ;;  %vm14132_vm3 = vmmov %vm14105_vm1 }
0x4a9c   :  { %7972 = vmax.xlane.f32.xlu1 %v7971_v12  ;;  %v7968_v6 = vsel %vm14128_vm4, %v7966_v58, -inf  ;;  %vm14133_vm4 = vmmov %vm14105_vm1 }
0x4a9d   :  { %7969 = vmax.xlane.f32.xlu0 %v7968_v6 }
0x4aad   :  { %7994 = vrot.lane.b32.xlu1 %v13620_v24, %s12262_s20 }
0x4ab1   :  { %11700 = vrot.lane.b32.xlu1 %v13614_v18, %s12265_s23 }
0x4ab5   :  { %8098 = vrot.lane.b32.xlu1 %v13620_v24, %s12265_s23 }
0x4ab9   :  { %8092 = vrot.lane.b32.xlu1 %v13643_v20, %s12265_s23 }
0x4b29   :  { %v7973_v10 = vpop.xlane.xlu1 %7972 }
0x4b2a   :  { %v7975_v3 = vsub.f32 %v7967_v34, %v7973_v10  ;;  %v7970_v23 = vpop.xlane.xlu0 %7969 }
0x4b2b   :  { %v7974_v26 = vsub.f32 %v7966_v58, %v7970_v23 }
0x4b2c   :  { %v7978_v54 = vmul.f32 1.442695, %v7975_v3 }
0x4b2d   :  { %v7976_v30 = vmul.f32 1.442695, %v7974_v26  ;;  %v7995_v52 = vpop.permute.xlu1 %7994 }
0x4b2e   :  { %12039 = vpow2.f32 %v7978_v54 }
0x4b2f   :  { %12041 = vpow2.f32 %v7976_v30 }
0x4b31   :  { %v11701_v32 = vpop.permute.xlu1 %11700 }
0x4b32   :  { %v11703_v61 = vunpack.i.h.bf16 %v11701_v32  ;;  %v11702_v21 = vunpack.i.l.bf16 %v11701_v32 }
0x4b34   :  { %v11277_v50 = vpack.c.bf16 %v11703_v61, %v11702_v21 }
0x4b35   :  { %v8099_v25 = vpop.permute.xlu1 %8098 }
0x4b38   :  { %v12040_v53 = vpop.eup %12039 }
0x4b39   :  { %v7983_v57 = vsel %vm14129_vm7, %v12040_v53, 0.0  ;;  %v12042_v49 = vpop.eup %12041  ;;  %v8093_v39 = vpop.permute.xlu1 %8092  ;;  %vm14134_vm7 = vmmov %vm14105_vm1 }
0x4b3a   :  { %7984 = vadd.xlane.f32.xlu0 %v7983_v57  ;;  %v7980_v2 = vsel %vm14130_vm15, %v12042_v49, 0.0  ;;  %vm14135_vm15 = vmmov %vm14105_vm1 }
0x4b3e   :  { %7981 = vadd.xlane.f32.xlu0 %v7980_v2 }
0x4b54   :  { %11695 = vrot.lane.b32.xlu0 %v13614_v18, %s12262_s20 }
0x4b58   :  { %8090 = vrot.lane.b32.xlu0 %v13641_v9, %s12265_s23 }
0x4bc7   :  { %v7985_v14 = vpop.xlane.xlu0 %7984 }
0x4bc8   :  { %12043 = vrcp.f32 %v7985_v14 }
0x4bcb   :  { %v7982_v22 = vpop.xlane.xlu0 %7981 }
0x4bcc   :  { %12045 = vrcp.f32 %v7982_v22 }
0x4bcf   :  { %v11696_v37 = vpop.permute.xlu0 %11695 }
0x4bd0   :  { %v11698_v63 = vunpack.i.h.bf16 %v11696_v37  ;;  %v11697_v38 = vunpack.i.l.bf16 %v11696_v37 }
0x4bd2   :  { %v11273_v62 = vpack.c.bf16 %v11698_v63, %v11697_v38  ;;  %v12044_v41 = vpop.eup %12043 }
0x4bd3   :  { %v7989_v51 = vmul.f32 %v12044_v41, %v12040_v53  ;;  %v8091_v11 = vpop.permute.xlu0 %8090 }
0x4bd4   :  { %11274 = vmatprep.subr.bf16.mxu0 %v11273_v62 }
0x4bd5   :  { %11276 = vmatpush3.bf16.msra.mxu0 %v11273_v62 }
0x4bd6   :  { %v12046_v46 = vpop.eup %12045  ;;  %10733 = vmatprep.subr.mxu0 %v7995_v52 }
0x4bd7   :  { %v7988_v47 = vmul.f32 %v12046_v46, %v12042_v49 }
0x4bd9   :  { %10734 = vmatpush3.msra.mxu0 %v7995_v52  ;;  %10735 = vmatprep.mubr.msk.f32.mxu0 %vm14105_vm1, %v7988_v47 }
0x4bda   :  { %10736 = vmatmul.mubr.msk.f32.vlgmr.msra.gmra.mrb[68].mxu0 %vm14131_vm2, %v7989_v51  ;;  %11279 = vmatprep.subr.msk.bf16.mxu0 %vm12470_vm6, %v11277_v50  ;;  %vm14136_vm2 = vmmov %vm14105_vm1 }
0x4bdb   :  { %10744 = vmatprep.mubr.msk.f32.mxu0 %vm295_vm5, %v8091_v11 }
0x4be0   :  { %11282 = vmatpush3.bf16.xpose.msk.msra.mxu0 %vm12470_vm6, %v11277_v50 }
0x4be1   :  { %10742 = vmatprep.subr.msk.mxu0 %vm295_vm5, %v8099_v25 }
0x4be8   :  { %10743 = vmatpush3.xpose.msk.msra.mxu0 %vm295_vm5, %v8099_v25 }
0x4beb   :  { %10745 = vmatmul.mubr.msk.f32.vlgmr.msra.gmra.mrb[70].mxu0 %vm295_vm5, %v8093_v39 }
0x4cad   :  { %v13835_v13 = vpop.f32.mrb[68].mxu0 }
0x4cae   :  { %v13837_v16 = vpop.f32.mrb[69].mxu0 }
0x4cbe   :  { %v10746_v43 = vpop.f32.mrb[70].mxu0 }
0x4cbf   :  { %v8186_v0 = vmul.f32 0.35355338, %v10746_v43  ;;  %v8176_v29 = vpop.f32.mrb[71].mxu0 }
0x4cc0   :  { %v8185_v7 = vmul.f32 0.35355338, %v8176_v29 }
0x4cc1   :  { %v8188_v48 = vadd.f32 %v13658_v27, %v8186_v0 }
0x4cc2   :  { %v8187_v55 = vadd.f32 %v13664_v35, %v8185_v7 }
0x4cc3   :  { %v8192_v59 = vsel %vm14132_vm3, %v8188_v48, -inf  ;;  %vm14138_vm3 = vmmov %vm14105_vm1 }
0x4cc4   :  { %8193 = vmax.xlane.f32.xlu1 %v8192_v59  ;;  %v8189_v42 = vsel %vm14133_vm4, %v8187_v55, -inf  ;;  %vm14140_vm4 = vmmov %vm14105_vm1 }
0x4cc5   :  { %8190 = vmax.xlane.f32.xlu0 %v8189_v42 }
0x4cd5   :  { %8215 = vrot.lane.b32.xlu1 %v13620_v24, %s12264_s21 }
0x4cd9   :  { %11710 = vrot.lane.b32.xlu1 %v13614_v18, %s14099_s2 }
0x4cdd   :  { %8319 = vrot.lane.b32.xlu1 %v13620_v24, %s14099_s2 }
0x4ce1   :  { %8313 = vrot.lane.b32.xlu1 %v13643_v20, %s14099_s2 }
0x4d51   :  { %v8194_v34 = vpop.xlane.xlu1 %8193 }
0x4d52   :  { %v8196_v58 = vsub.f32 %v8188_v48, %v8194_v34  ;;  %v8191_v12 = vpop.xlane.xlu0 %8190 }
0x4d53   :  { %v8195_v6 = vsub.f32 %v8187_v55, %v8191_v12 }
0x4d54   :  { %v8199_v10 = vmul.f32 1.442695, %v8196_v58 }
0x4d55   :  { %v8197_v3 = vmul.f32 1.442695, %v8195_v6  ;;  %v8216_v53 = vpop.permute.xlu1 %8215 }
0x4d56   :  { %12047 = vpow2.f32 %v8199_v10 }
0x4d57   :  { %12049 = vpow2.f32 %v8197_v3 }
0x4d59   :  { %v11711_v52 = vpop.permute.xlu1 %11710 }
0x4d5a   :  { %v11713_v37 = vunpack.i.h.bf16 %v11711_v52  ;;  %v11712_v63 = vunpack.i.l.bf16 %v11711_v52  ;;  %v9653_v52 = vld [vmem:[%s14083_s5 + $0xb0] sm:$0xff]  }
0x4d5c   :  { %v11287_v61 = vpack.c.bf16 %v11713_v37, %v11712_v63 }
0x4d5d   :  { %v8320_v41 = vpop.permute.xlu1 %8319 }
0x4d60   :  { %v12048_v23 = vpop.eup %12047 }
0x4d61   :  { %v8204_v26 = vsel %vm14134_vm7, %v12048_v23, 0.0  ;;  %v12050_v54 = vpop.eup %12049  ;;  %v8314_v46 = vpop.permute.xlu1 %8313  ;;  %vm14142_vm7 = vmmov %vm14105_vm1 }
0x4d62   :  { %8205 = vadd.xlane.f32.xlu0 %v8204_v26  ;;  %v8201_v30 = vsel %vm14135_vm15, %v12050_v54, 0.0 }
0x4d66   :  { %8202 = vadd.xlane.f32.xlu0 %v8201_v30 }
0x4d7c   :  { %11705 = vrot.lane.b32.xlu0 %v13614_v18, %s12264_s21 }
0x4d80   :  { %8311 = vrot.lane.b32.xlu0 %v13641_v9, %s14099_s2 }
0x4def   :  { %v8206_v20 = vpop.xlane.xlu0 %8205 }
0x4df0   :  { %12051 = vrcp.f32 %v8206_v20 }
0x4df3   :  { %v8203_v57 = vpop.xlane.xlu0 %8202 }
0x4df4   :  { %12053 = vrcp.f32 %v8203_v57 }
0x4df7   :  { %v11706_v49 = vpop.permute.xlu0 %11705 }
0x4df8   :  { %v11708_v2 = vunpack.i.h.bf16 %v11706_v49  ;;  %v11707_v14 = vunpack.i.l.bf16 %v11706_v49 }
0x4dfa   :  { %v11283_v22 = vpack.c.bf16 %v11708_v2, %v11707_v14  ;;  %v12052_v38 = vpop.eup %12051  ;;  %v9651_v2 = vld [vmem:[%s14083_s5 + $0xa0] sm:$0xff]   ;;  %v9652_v14 = vld [vmem:[%s14083_s5 + $0xa8] sm:$0xff]  }
0x4dfb   :  { %v8210_v9 = vmul.f32 %v12052_v38, %v12048_v23  ;;  %v8312_v21 = vpop.permute.xlu0 %8311 }
0x4dfc   :  { %11284 = vmatprep.subr.bf16.mxu1 %v11283_v22 }
0x4dfd   :  { %11286 = vmatpush3.bf16.msra.mxu1 %v11283_v22  ;;  %v9654_v22 = vld [vmem:[%s14083_s5 + $0xb8] sm:$0xff]  }
0x4dfe   :  { %v12054_v32 = vpop.eup %12053  ;;  %10751 = vmatprep.subr.mxu1 %v8216_v53 }
0x4dff   :  { %v8209_v62 = vmul.f32 %v12054_v32, %v12050_v54 }
0x4e01   :  { %10752 = vmatpush3.msra.mxu1 %v8216_v53  ;;  %10753 = vmatprep.mubr.msk.f32.mxu1 %vm14105_vm1, %v8209_v62 }
0x4e02   :  { %10754 = vmatmul.mubr.msk.f32.vlgmr.msra.gmra.mrb[88].mxu1 %vm14136_vm2, %v8210_v9  ;;  %11289 = vmatprep.subr.msk.bf16.mxu1 %vm12470_vm6, %v11287_v61  ;;  %v8636_v9 = vsub.s32 6, %v12432_v33 }
0x4e03   :  { %10762 = vmatprep.mubr.msk.f32.mxu1 %vm295_vm5, %v8312_v21  ;;  %v13933_v21 = vld [vmem:[#allocation9] sm:$0xff] }
0x4e08   :  { %11292 = vmatpush3.bf16.xpose.msk.msra.mxu1 %vm12470_vm6, %v11287_v61  ;;  %vm14137_vm6 = vmmov %vm14105_vm1 }
0x4e09   :  { %10760 = vmatprep.subr.msk.mxu1 %vm295_vm5, %v8320_v41 }
0x4e10   :  { %10761 = vmatpush3.xpose.msk.msra.mxu1 %vm295_vm5, %v8320_v41  ;;  %v8637_v41 = vrot.slane %v13933_v21, %v8636_v9 }
0x4e13   :  { %10763 = vmatmul.mubr.msk.f32.vlgmr.msra.gmra.mrb[90].mxu1 %vm295_vm5, %v8314_v46  ;;  %vm14139_vm5 = vmmov %vm14105_vm1 }
0x4e14   :  { %8795 = vmatprep.mubr.f32.mxu1 %v12253_v19 }
0x4ed5   :  { %v10755_v47 = vpop.f32.mrb[88].mxu1 }
0x4ed6   :  { %v8292_v50 = vpop.f32.mrb[89].mxu1 }
0x4ee6   :  { %v10764_v51 = vpop.f32.mrb[90].mxu1 }
0x4ee7   :  { %v8407_v11 = vmul.f32 0.35355338, %v10764_v51  ;;  %v8397_v25 = vpop.f32.mrb[91].mxu1 }
0x4ee8   :  { %v8406_v39 = vmul.f32 0.35355338, %v8397_v25 }
0x4ee9   :  { %v8409_v43 = vadd.f32 %v13658_v27, %v8407_v11 }
0x4eea   :  { %v8408_v8 = vadd.f32 %v13664_v35, %v8406_v39 }
0x4eeb   :  { %v8413_v0 = vsel %vm14137_vm6, %v8409_v43, -inf }
0x4eec   :  { %8414 = vmax.xlane.f32.xlu1 %v8413_v0  ;;  %v8410_v29 = vsel %vm14138_vm3, %v8408_v8, -inf }
0x4eed   :  { %8411 = vmax.xlane.f32.xlu0 %v8410_v29 }
0x4efd   :  { %8436 = vrot.lane.b32.xlu1 %v13620_v24, %s14100_s24 }
0x4f01   :  { %7198 = vrot.lane.b32.xlu1 %v13709_v45, %s14100_s24 }
0x4f05   :  { %7200 = vrot.lane.b32.xlu1 %v13707_v36, %s14100_s24 }
0x4f09   :  { %7421 = vrot.lane.b32.xlu1 %v13739_v4, %s12264_s21 }
0x4f0d   :  { %7642 = vrot.lane.b32.xlu1 %v13771_v60, %s12262_s20 }
0x4f11   :  { %7863 = vrot.lane.b32.xlu1 %v13803_v15, %s12260_s17 }
0x4f15   :  { %8084 = vrot.lane.b32.xlu1 %v13835_v13, %s12258_s15 }
0x4f19   :  { %8305 = vrot.lane.b32.xlu1 %v10755_v47, %s12255_s29 }
0x4f79   :  { %v8415_v24 = vpop.xlane.xlu1 %8414 }
0x4f7a   :  { %v8417_v27 = vsub.f32 %v8409_v43, %v8415_v24  ;;  %v8412_v35 = vpop.xlane.xlu0 %8411 }
0x4f7b   :  { %v8416_v45 = vsub.f32 %v8408_v8, %v8412_v35 }
0x4f7c   :  { %v8420_v7 = vmul.f32 1.442695, %v8417_v27 }
0x4f7d   :  { %v8418_v36 = vmul.f32 1.442695, %v8416_v45  ;;  %v8437_v48 = vpop.permute.xlu1 %8436 }
0x4f7e   :  { %12055 = vpow2.f32 %v8420_v7 }
0x4f7f   :  { %12057 = vpow2.f32 %v8418_v36  ;;  %v11755_v36 = vld [vmem:[%s14085_s7 + $0x44] ss:$8 sps:$4 sm:$0xff]  }
0x4f80   :  { %11314 = vmatprep.subr.bf16.mxu1 %v11755_v36 }
0x4f81   :  { %v7199_v4 = vpop.permute.xlu1 %7198 }
0x4f82   :  { %7204 = vst.msk [vmem:[#allocation2] sm:$0xff] %vm703_vm8, %v7199_v4  ;;  %v11758_v4 = vld [vmem:[%s14085_s7 + $0x54] ss:$8 sps:$4 sm:$0xff]  }
0x4f85   :  { %v7201_v60 = vpop.permute.xlu1 %7200 }
0x4f86   :  { %7205 = vst.msk [vmem:[#allocation2 + $0x8] sm:$0xff] %vm703_vm8, %v7201_v60  ;;  %vm14141_vm8 = vmmov %vm14105_vm1  ;;  %v11760_v60 = vld [vmem:[%s14085_s7 + $0x50] ss:$8 sps:$4 sm:$0xff]  }
0x4f88   :  { %v12056_v15 = vpop.eup %12055 }
0x4f89   :  { %v7422_v55 = vpop.permute.xlu1 %7421  ;;  %v8425_v13 = vsel %vm14139_vm5, %v12056_v15, 0.0  ;;  %v12058_v59 = vpop.eup %12057 }
0x4f8a   :  { %7426 = vst.msk [vmem:[#allocation2 + $0x8] sm:$0xff] %vm918_vm9, %v7422_v55  ;;  %8426 = vadd.xlane.f32.xlu0 %v8425_v13  ;;  %v8422_v34 = vsel %vm14140_vm4, %v12058_v59, 0.0  ;;  %v11763_v55 = vld [vmem:[%s14085_s7 + $0x60] ss:$8 sps:$4 sm:$0xff]   ;;  %v11764_v13 = vld [vmem:[%s14085_s7 + $0x74] ss:$8 sps:$4 sm:$0xff]  }
0x4f8d   :  { %v7643_v42 = vpop.permute.xlu1 %7642 }
0x4f8e   :  { %7647 = vst.msk [vmem:[#allocation2 + $0x8] sm:$0xff] %vm1133_vm10, %v7643_v42  ;;  %8423 = vadd.xlane.f32.xlu0 %v8422_v34  ;;  %v9663_v42 = vld [vmem:[%s14086_s8 + $0xc0] sm:$0xff]  }
0x4f8f   :  { %v9655_v34 = vld [vmem:[%s14086_s8 + $0x80] sm:$0xff]  }
0x4f91   :  { %v7864_v58 = vpop.permute.xlu1 %7863 }
0x4f92   :  { %7868 = vst.msk [vmem:[#allocation2 + $0x8] sm:$0xff] %vm1348_vm11, %v7864_v58  ;;  %v9664_v58 = vld [vmem:[%s14086_s8 + $0xc8] sm:$0xff]  }
0x4f95   :  { %v8085_v12 = vpop.permute.xlu1 %8084 }
0x4f96   :  { %8089 = vst.msk [vmem:[#allocation2 + $0x8] sm:$0xff] %vm1563_vm12, %v8085_v12  ;;  %v9656_v12 = vld [vmem:[%s14086_s8 + $0x88] sm:$0xff]  }
0x4f99   :  { %v8306_v6 = vpop.permute.xlu1 %8305 }
0x4f9a   :  { %8310 = vst.msk [vmem:[#allocation2 + $0x8] sm:$0xff] %vm1778_vm13, %v8306_v6  ;;  %v9665_v6 = vld [vmem:[%s14086_s8 + $0xd0] sm:$0xff]  }
0x4fa4   :  { %11715 = vrot.lane.b32.xlu0 %v13614_v18, %s14100_s24 }
0x4fa8   :  { %7419 = vrot.lane.b32.xlu0 %v13741_v5, %s12264_s21 }
0x4fac   :  { %7640 = vrot.lane.b32.xlu0 %v13773_v17, %s12262_s20 }
0x4fb0   :  { %7861 = vrot.lane.b32.xlu0 %v13805_v40, %s12260_s17 }
0x4fb4   :  { %8082 = vrot.lane.b32.xlu0 %v13837_v16, %s12258_s15 }
0x4fb8   :  { %8303 = vrot.lane.b32.xlu0 %v8292_v50, %s12255_s29 }
0x5017   :  { %v8427_v10 = vpop.xlane.xlu0 %8426 }
0x5018   :  { %12059 = vrcp.f32 %v8427_v10  ;;  %v9657_v10 = vld [vmem:[%s14086_s8 + $0x90] sm:$0xff]  }
0x501b   :  { %v8424_v3 = vpop.xlane.xlu0 %8423 }
0x501c   :  { %12061 = vrcp.f32 %v8424_v3  ;;  %v9666_v3 = vld [vmem:[%s14086_s8 + $0xd8] sm:$0xff]  }
0x501f   :  { %v11716_v23 = vpop.permute.xlu0 %11715 }
0x5020   :  { %v11718_v18 = vunpack.i.h.bf16 %v11716_v23  ;;  %v11717_v26 = vunpack.i.l.bf16 %v11716_v23  ;;  %v9658_v23 = vld [vmem:[%s14086_s8 + $0x98] sm:$0xff]  }
0x5022   :  { %v11293_v54 = vpack.c.bf16 %v11718_v18, %v11717_v26  ;;  %v12060_v17 = vpop.eup %12059  ;;  %v9667_v18 = vld [vmem:[%s14086_s8 + $0xe0] sm:$0xff]  }
0x5023   :  { %v7420_v5 = vpop.permute.xlu0 %7419  ;;  %v8431_v20 = vmul.f32 %v12060_v17, %v12056_v15  ;;  %v11761_v15 = vld [vmem:[%s14085_s7 + $0x64] ss:$8 sps:$4 sm:$0xff]   ;;  %v9669_v17 = vld [vmem:[%s14086_s8 + $0xf0] sm:$0xff]  }
0x5024   :  { %7425 = vst.msk [vmem:[#allocation2] sm:$0xff] %vm918_vm9, %v7420_v5  ;;  %11294 = vmatprep.subr.bf16.mxu0 %v11293_v54  ;;  %v9659_v26 = vld [vmem:[%s14086_s8 + $0xa0] sm:$0xff]   ;;  %v9660_v5 = vld [vmem:[%s14086_s8 + $0xa8] sm:$0xff]  }
0x5025   :  { %11296 = vmatpush3.bf16.msra.mxu0 %v11293_v54  ;;  %v9668_v54 = vld [vmem:[%s14086_s8 + $0xe8] sm:$0xff]  }
0x5026   :  { %v12062_v40 = vpop.eup %12061  ;;  %10769 = vmatprep.subr.mxu0 %v8437_v48 }
0x5027   :  { %v7641_v30 = vpop.permute.xlu0 %7640  ;;  %v8430_v16 = vmul.f32 %v12062_v40, %v12058_v59  ;;  %v11766_v59 = vld [vmem:[%s14085_s7 + $0x70] ss:$8 sps:$4 sm:$0xff]  }
0x5028   :  { %7646 = vst.msk [vmem:[#allocation2] sm:$0xff] %vm1133_vm10, %v7641_v30 }
0x5029   :  { %10770 = vmatpush3.msra.mxu0 %v8437_v48  ;;  %10771 = vmatprep.mubr.msk.f32.mxu0 %vm14141_vm8, %v8430_v16  ;;  %v11757_v48 = vld [vmem:[%s14085_s7 + $0x40] ss:$8 sps:$4 sm:$0xff]  }
0x502a   :  { %10772 = vmatmul.mubr.msk.f32.vlgmr.msra.gmra.mrb[72].mxu0 %vm14142_vm7, %v8431_v20  ;;  %11298 = vmatprep.subr.bf16.mxu0 %v9651_v2 }
0x502b   :  { %v7862_v53 = vpop.permute.xlu0 %7861  ;;  %11300 = vmatpush3.bf16.msra.mxu0 %v9651_v2  ;;  %11316 = vmatpush1.bf16.msra.mxu1 %v11757_v48 }
0x502c   :  { %7867 = vst.msk [vmem:[#allocation2] sm:$0xff] %vm1348_vm11, %v7862_v53  ;;  %11302 = vmatprep.subr.bf16.mxu0 %v9652_v14  ;;  %11318 = vmatprep.subr.bf16.mxu1 %v11758_v4 }
0x502f   :  { %v8083_v57 = vpop.permute.xlu0 %8082  ;;  %11304 = vmatpush3.bf16.msra.mxu0 %v9652_v14  ;;  %11320 = vmatpush1.bf16.msra.mxu1 %v11760_v60 }
0x5030   :  { %8088 = vst.msk [vmem:[#allocation2] sm:$0xff] %vm1563_vm12, %v8083_v57  ;;  %11306 = vmatprep.subr.bf16.mxu0 %v9653_v52  ;;  %11322 = vmatprep.subr.bf16.mxu1 %v11761_v15 }
0x5033   :  { %v8304_v49 = vpop.permute.xlu0 %8303  ;;  %11308 = vmatpush3.bf16.msra.mxu0 %v9653_v52  ;;  %11324 = vmatpush1.bf16.msra.mxu1 %v11763_v55 }
0x5034   :  { %8309 = vst.msk [vmem:[#allocation2] sm:$0xff] %vm1778_vm13, %v8304_v49  ;;  %11310 = vmatprep.subr.bf16.mxu0 %v9654_v22  ;;  %11326 = vmatprep.subr.bf16.mxu1 %v11764_v13 }
0x5037   :  { %11312 = vmatpush3.bf16.msra.mxu0 %v9654_v22  ;;  %11328 = vmatpush1.bf16.msra.mxu1 %v11766_v59 }
0x5038   :  { %11330 = vmatprep.subr.bf16.mxu0 %v9663_v42 }
0x50fd   :  { %v10773_v37 = vpop.f32.mrb[72].mxu0 }
0x50fe   :  { %8526 = vrot.lane.b32.xlu1 %v10773_v37, %s12257_s14  ;;  %v8513_v63 = vpop.f32.mrb[73].mxu0 }
0x50ff   :  { %8524 = vrot.lane.b32.xlu0 %v8513_v63, %s12257_s14 }
0x5170   :  { %v8527_v38 = vpop.permute.xlu1 %8526 }
0x5171   :  { %8531 = vst.msk [vmem:[#allocation2 + $0x8] sm:$0xff] %vm1993_vm14, %v8527_v38  ;;  %v8525_v32 = vpop.permute.xlu0 %8524 }
0x5172   :  { %8530 = vst.msk [vmem:[#allocation2] sm:$0xff] %vm1993_vm14, %v8525_v32 }
0x5178   :  { %v8533_v61 = vld [vmem:[#allocation2 + $0x8] sm:$0xff] }
0x5179   :  { %v8532_v62 = vld [vmem:[#allocation2] sm:$0xff] }
0x517a   :  { %10790 = vmatprep.mubr.msk.f32.mxu0 %vm120_vm0, %v8532_v62 }
0x517b   :  { %10791 = vmatmul.mubr.msk.f32.vlgmr.msra.gmra.mrb[74].mxu0 %vm120_vm0, %v8533_v61  ;;  %v14023_v61 = vld [vmem:[#allocation11] sm:$0xff] }
0x517c   :  { %11332 = vmatpush3.bf16.msra.mxu0 %v9655_v34 }
0x517d   :  { %11334 = vmatprep.subr.bf16.mxu0 %v9664_v58 }
0x5180   :  { %11336 = vmatpush3.bf16.msra.mxu0 %v9656_v12 }
0x5181   :  { %11338 = vmatprep.subr.bf16.mxu0 %v9665_v6 }
0x5184   :  { %11340 = vmatpush3.bf16.msra.mxu0 %v9657_v10 }
0x5185   :  { %11342 = vmatprep.subr.bf16.mxu0 %v9666_v3  ;;  %v8957_v3 = vrot.slane %v13933_v21, %v170_v44 }
0x5188   :  { %11344 = vmatpush3.bf16.msra.mxu0 %v9658_v23 }
0x5189   :  { %11346 = vmatprep.subr.bf16.mxu0 %v9667_v18 }
0x518c   :  { %11348 = vmatpush3.bf16.msra.mxu0 %v9659_v26 }
0x518d   :  { %11350 = vmatprep.subr.bf16.mxu0 %v9668_v54 }
0x5190   :  { %11352 = vmatpush3.bf16.msra.mxu0 %v9660_v5 }
0x5191   :  { %11354 = vmatprep.subr.bf16.mxu0 %v9669_v17 }
0x524e   :  { %v10792_v46 = vpop.f32.mrb[74].mxu0 }
0x524f   :  { %v8633_v47 = vadd.f32 %v10792_v46, %v13556_v28  ;;  %v8623_v50 = vpop.f32.mrb[75].mxu0 }
0x5250   :  { %v8632_v51 = vadd.f32 %v8623_v50, %v13558_v31 }
0x5251   :  { %v13940_v11 = vadd.f32 %v8637_v41, %v8633_v47  ;;  %v14028_v47 = vld [vmem:[#allocation11 + $0x8] sm:$0x3f] }
0x5252   :  { %v13942_v25 = vadd.f32 %v8637_v41, %v8632_v51  ;;  %v8663_v41 = vrot.slane %v14023_v61, %v13637_v1  ;;  %v8689_v50 = vrot.slane %v14028_v47, %v13548_v56  ;;  %v9670_v56 = vld [vmem:[%s14086_s8 + $0xf8] sm:$0xff]  }
0x5253   :  { %v8643_v39 = vsel %vm120_vm0, %v13940_v11, 0.0 }
0x5254   :  { %8644 = vadd.xlane.f32.xlu1 %v8643_v39  ;;  %v8640_v43 = vsel %vm120_vm0, %v13942_v25, 0.0 }
0x5255   :  { %8641 = vadd.xlane.f32.xlu0 %v8640_v43 }
0x52e1   :  { %v8645_v8 = vpop.xlane.xlu1 %8644 }
0x52e2   :  { %v8647_v0 = vmul.f32 0.015625, %v8645_v8  ;;  %v8642_v29 = vpop.xlane.xlu0 %8641 }
0x52e3   :  { %v8646_v24 = vmul.f32 0.015625, %v8642_v29 }
0x52e4   :  { %v13949_v28 = vsub.f32 %v13940_v11, %v8647_v0 }
0x52e5   :  { %v13952_v31 = vsub.f32 %v13942_v25, %v8646_v24 }
0x52e6   :  { %v8651_v45 = vmul.f32 %v13949_v28, %v13949_v28  ;;  %v8665_v43 = vmul.f32 %v8663_v41, %v13949_v28  ;;  %v9662_v28 = vld [vmem:[%s14086_s8 + $0xb8] sm:$0xff]  }
0x52e7   :  { %v8650_v27 = vmul.f32 %v13952_v31, %v13952_v31  ;;  %v8664_v46 = vmul.f32 %v8663_v41, %v13952_v31  ;;  %v9661_v31 = vld [vmem:[%s14086_s8 + $0xb0] sm:$0xff]   ;;  %s12269_s8 = smov [#allocation12]  }
0x52e8   :  { %v8655_v7 = vsel %vm120_vm0, %v8651_v45, 0.0  ;;  %11356 = vmatpush3.bf16.msra.mxu0 %v9661_v31  ;;  %s9019_s13 = sshll.u32 %s12269_s8, 4  ;;  %s9020_s13 = int_to_ptr.vmem [resolvable:$true] %s9019_s13 }
0x52e9   :  { %v8652_v35 = vsel %vm120_vm0, %v8650_v27, 0.0  ;;  %11358 = vmatprep.subr.bf16.mxu0 %v9670_v56  ;;  %v12102_v27 = vld [vmem:[#allocation8] sm:$0x3f]  ;;  %v9009_v56 = vrot.slane %v14028_v47, %v13637_v1  ;;  %s12214_s22 = scalar_lea.vmem %s9020_s13, 256  ;;  %p12219_p13 = scmp.lt.s32.totalorder %s9020_s13, %s9020_s13 }
0x52ea   :  { %8653 = vadd.xlane.f32.xlu0 %v8652_v35  ;;  %v12103_v35 = vld [vmem:[#allocation8 + $0x8] sm:$0x3f]  ;;  %p12215_p12 = scmp.ne.s32.totalorder %s9020_s13, %s12214_s22  ;;  %p12220_p0 = scmp.lt.s32.totalorder %s12214_s22, %s12214_s22 }
0x52eb   :  { %v8724_v45 = vrot.slane %v12103_v35, %v13637_v1 }
0x52ec   :  { %11360 = vmatpush3.bf16.msra.mxu0 %v9662_v28  ;;  %p12221_p1 = por %p12220_p0, %p12219_p13 }
0x52ee   :  { %8656 = vadd.xlane.f32.xlu0 %v8655_v7  ;;  %p12222_p2 = pnand %p12221_p1, %p12215_p12 }
0x5377   :  { %v8654_v40 = vpop.xlane.xlu0 %8653 }
0x5378   :  { %v8658_v30 = vmul.f32 0.015873017, %v8654_v40 }
0x537a   :  { %12063 = vrsqrt.f32 %v8658_v30  ;;  %vm8668_vm9 = vcmp.eq.f32.partialorder %v8658_v30, inf  ;;  %v8671_v49 = vand.u32 2147483648, %v8658_v30  ;;  %vm8670_vm10 = vcmp.eq.f32.partialorder %v8658_v30, 0.0 }
0x537b   :  { %v8657_v16 = vpop.xlane.xlu0 %8656 }
0x537c   :  { %v8659_v20 = vmul.f32 0.015873017, %v8657_v16 }
0x537e   :  { %12065 = vrsqrt.f32 %v8659_v20  ;;  %vm8675_vm11 = vcmp.eq.f32.partialorder %v8659_v20, inf  ;;  %v8678_v63 = vand.u32 2147483648, %v8659_v20  ;;  %vm8677_vm12 = vcmp.eq.f32.partialorder %v8659_v20, 0.0 }
0x5384   :  { %v12064_v53 = vpop.eup %12063 }
0x5385   :  { %v8667_v57 = vmul.f32 %v12064_v53, %v8658_v30 }
0x5387   :  { %v8669_v2 = vsel %vm8668_vm9, %v8658_v30, %v8667_v57 }
0x5388   :  { %v12066_v14 = vpop.eup %12065  ;;  %v8672_v52 = vsel %vm8670_vm10, %v8671_v49, %v8669_v2 }
0x5389   :  { %v8680_v22 = vadd.f32 1e-06, %v8672_v52  ;;  %v8674_v37 = vmul.f32 %v12066_v14, %v8659_v20 }
0x538b   :  { %12067 = vrcp.f32 %v8680_v22  ;;  %v8676_v38 = vsel %vm8675_vm11, %v8659_v20, %v8674_v37 }
0x538c   :  { %v8679_v32 = vsel %vm8677_vm12, %v8678_v63, %v8676_v38 }
0x538d   :  { %v8681_v62 = vadd.f32 1e-06, %v8679_v32 }
0x538f   :  { %12069 = vrcp.f32 %v8681_v62 }
0x5395   :  { %v12068_v51 = vpop.eup %12067 }
0x5396   :  { %v8683_v39 = vmul.f32 %v12068_v51, %v8664_v46 }
0x5398   :  { %v8690_v8 = vadd.f32 %v8689_v50, %v8683_v39 }
0x5399   :  { %v12070_v0 = vpop.eup %12069 }
0x539a   :  { %9321 = vmatmul.mubr.msk.f32.vlgmr.msra.gmra.mrb[92].mxu1 %vm120_vm0, %v8690_v8  ;;  %v8685_v29 = vmul.f32 %v12070_v0, %v8665_v43 }
0x539b   :  { %8801 = vmatprep.mubr.f32.mxu1 %v12253_v19  ;;  %v8720_v19 = vrot.slane %v12102_v27, %v13637_v1 }
0x539c   :  { %v8691_v24 = vadd.f32 %v8689_v50, %v8685_v29 }
0x539e   :  { %9322 = vmatmul.mubr.msk.f32.gmra.mrb[94].mxu1 %vm120_vm0, %v8691_v24  ;;  %v8983_v24 = vrot.slane %v14023_v61, %v8636_v9 }
0x546d   :  { %v8797_v7 = vpop.f32.mrb[92].mxu1 }
0x546e   :  { %v8798_v36 = vadd.f32 %v8797_v7, %v8720_v19  ;;  %v8799_v48 = vpop.f32.mrb[93].mxu1 }
0x546f   :  { %v8800_v4 = vadd.f32 %v8799_v48, %v8724_v45 }
0x5470   :  { %v8808_v55 = vmax.f32 %v8798_v36, 0.0 }
0x5471   :  { %v8809_v60 = vmax.f32 %v8800_v4, 0.0  ;;  %v8803_v15 = vpop.f32.mrb[94].mxu1 }
0x5472   :  { %v8804_v13 = vadd.f32 %v8803_v15, %v8720_v19  ;;  %v8805_v59 = vpop.f32.mrb[95].mxu1 }
0x5473   :  { %v8806_v42 = vadd.f32 %v8805_v59, %v8724_v45  ;;  %8941 = vmatprep.mubr.f32.mxu0 %v8809_v60 }
0x5474   :  { %8942 = vmatmul.mubr.f32.vlgmr.msra.gmra.mrb[76].mxu0 %v8808_v55  ;;  %v8810_v58 = vmax.f32 %v8804_v13, 0.0 }
0x5475   :  { %v8811_v34 = vmax.f32 %v8806_v42, 0.0 }
0x5477   :  { %8946 = vmatprep.mubr.f32.mxu0 %v8811_v34 }
0x5478   :  { %8947 = vmatmul.mubr.f32.gmra.mrb[78].mxu0 %v8810_v58 }
0x5547   :  { %v10111_v12 = vpop.f32.mrb[76].mxu0 }
0x5548   :  { %v10112_v6 = vpop.f32.mrb[77].mxu0 }
0x5549   :  { %v10113_v10 = vadd.f32 %v10112_v6, %v10111_v12 }
0x554b   :  { %v8952_v23 = vadd.f32 %v10113_v10, %v13942_v25  ;;  %v10114_v18 = vpop.f32.mrb[78].mxu0 }
0x554c   :  { %v10115_v26 = vpop.f32.mrb[79].mxu0 }
0x554d   :  { %v10116_v54 = vadd.f32 %v10115_v26, %v10114_v18  ;;  %v8958_v5 = vadd.f32 %v8957_v3, %v8952_v23 }
0x554f   :  { %v8953_v17 = vadd.f32 %v10116_v54, %v13940_v11  ;;  %v8960_v40 = vsel %vm120_vm0, %v8958_v5, 0.0 }
0x5550   :  { %8961 = vadd.xlane.f32.xlu0 %v8960_v40 }
0x5551   :  { %v8959_v30 = vadd.f32 %v8957_v3, %v8953_v17 }
0x5553   :  { %v8963_v16 = vsel %vm120_vm0, %v8959_v30, 0.0 }
0x5554   :  { %8964 = vadd.xlane.f32.xlu1 %v8963_v16 }
0x55dd   :  { %v8962_v20 = vpop.xlane.xlu0 %8961 }
0x55de   :  { %v8966_v53 = vmul.f32 0.015625, %v8962_v20 }
0x55e0   :  { %v8968_v57 = vsub.f32 %v8958_v5, %v8966_v53 }
0x55e1   :  { %v8965_v49 = vpop.xlane.xlu1 %8964 }
0x55e2   :  { %v8967_v44 = vmul.f32 0.015625, %v8965_v49  ;;  %v8970_v21 = vmul.f32 %v8968_v57, %v8968_v57  ;;  %v8984_v31 = vmul.f32 %v8983_v24, %v8968_v57 }
0x55e4   :  { %v8969_v25 = vsub.f32 %v8959_v30, %v8967_v44  ;;  %v8972_v2 = vsel %vm120_vm0, %v8970_v21, 0.0 }
0x55e5   :  { %8973 = vadd.xlane.f32.xlu0 %v8972_v2 }
0x55e6   :  { %v8971_v14 = vmul.f32 %v8969_v25, %v8969_v25  ;;  %v8985_v19 = vmul.f32 %v8983_v24, %v8969_v25 }
0x55e8   :  { %v8975_v11 = vsel %vm120_vm0, %v8971_v14, 0.0 }
0x55e9   :  { %8976 = vadd.xlane.f32.xlu1 %v8975_v11 }
0x5672   :  { %v8974_v52 = vpop.xlane.xlu0 %8973 }
0x5673   :  { %v8978_v22 = vmul.f32 0.015873017, %v8974_v52 }
0x5675   :  { %12071 = vrsqrt.f32 %v8978_v22  ;;  %vm8988_vm13 = vcmp.eq.f32.partialorder %v8978_v22, inf  ;;  %v8991_v62 = vand.u32 2147483648, %v8978_v22  ;;  %vm8990_vm14 = vcmp.eq.f32.partialorder %v8978_v22, 0.0 }
0x5676   :  { %v8977_v37 = vpop.xlane.xlu1 %8976 }
0x5677   :  { %v8979_v63 = vmul.f32 0.015873017, %v8977_v37 }
0x5679   :  { %12073 = vrsqrt.f32 %v8979_v63  ;;  %vm8995_vm15 = vcmp.eq.f32.partialorder %v8979_v63, inf  ;;  %v8998_v43 = vand.u32 2147483648, %v8979_v63  ;;  %vm8997_vm1 = vcmp.eq.f32.partialorder %v8979_v63, 0.0 }
0x567f   :  { %v12072_v38 = vpop.eup %12071 }
0x5680   :  { %v8987_v32 = vmul.f32 %v12072_v38, %v8978_v22 }
0x5682   :  { %v8989_v41 = vsel %vm8988_vm13, %v8978_v22, %v8987_v32 }
0x5683   :  { %v12074_v46 = vpop.eup %12073  ;;  %v8992_v50 = vsel %vm8990_vm14, %v8991_v62, %v8989_v41 }
0x5684   :  { %v9000_v51 = vadd.f32 1e-06, %v8992_v50  ;;  %v8994_v39 = vmul.f32 %v12074_v46, %v8979_v63 }
0x5686   :  { %12075 = vrcp.f32 %v9000_v51  ;;  %v8996_v8 = vsel %vm8995_vm15, %v8979_v63, %v8994_v39 }
0x5687   :  { %v8999_v0 = vsel %vm8997_vm1, %v8998_v43, %v8996_v8 }
0x5688   :  { %v9001_v29 = vadd.f32 1e-06, %v8999_v0 }
0x568a   :  { %12077 = vrcp.f32 %v9001_v29 }
0x5690   :  { %v12076_v28 = vpop.eup %12075 }
0x5691   :  { %v9003_v27 = vmul.f32 %v12076_v28, %v8984_v31 }
0x5693   :  { %v9010_v35 = vadd.f32 %v9009_v56, %v9003_v27 }
0x5694   :  { %v12078_v45 = vpop.eup %12077 }
0x5695   :  { %v9005_v7 = vmul.f32 %v12078_v45, %v8985_v19  ;;  %9012 = vst.msk [vmem:[#allocation12] sm:$0xff] %vm120_vm0, %v9010_v35 }
0x5697   :  { %v9011_v36 = vadd.f32 %v9009_v56, %v9005_v7 }
0x5699   :  { %9013 = vst.msk [vmem:[#allocation12 + $0x8] sm:$0xff] %vm120_vm0, %v9011_v36 }
0x569a   :  { %12225 = shalt.err (!%p12222_p2)
}
0x569b   :  { %s12226_s7 = scalar_lea.hbm %s14090_s12, 256 }
0x569c   :  { %p12227_p3 = scmp.ne.s32.totalorder %s14090_s12, %s12226_s7  ;;  %p12230_p4 = scmp.lt.u32.totalorder %s12226_s7, %s14090_s12 }
0x569e   :  { %p12232_p5 = pnand %p12230_p4, %p12227_p3 }
0x56a0   :  { %12235 = shalt.err (!%p12232_p5)
}
0x56a1   :  { %s14143_s14 = smov 128  }
0x56a2   :  { %9025 = dma.vmem_to_hbm [thread:$0]  %s9020_s13, 256, %s14090_s12, [#allocation5], %s14143_s14, %s14143_s14, %s14100_s24  }
0x56a3   :  { %12242 = dma.done.wait [#allocation5], 256  }
0x56a4   :  { %12243 = vsyncadd [#allocation5], 4294967040 }
0x56a5   :  { %9029 = vsyncpa [#allocation4], 1 }
0x56a6   :  { %9030 = vsyncpa [#allocation7], 1 }
0x56a7   :  { %9031 = vsyncpa [#allocation10], 1 }
0x56a8   :  { %9032 = vsyncpa [#allocation5], 1 }

</bundles_post_ra>
